<compile_context>
chip_gen: v7x
topology: tpu7x:2x2x1
jax: 0.10.0
libtpu: 0.0.40
codegen_flags: <defaults>
</compile_context>

<pallas_src>
import math

import jax
import jax.numpy as jnp
from jax import lax
from jax.experimental import pallas as pl
from jax.experimental.pallas import tpu as pltpu

# ----------------------- small, consistent configuration -----------------------
B      = 2      # batch                                  (64 in the dummy init)
L      = 32     # seq length                             (256 orig)
C_IN   = 128    # img-feat channel dim                   (256 orig)
D      = 128    # embed_dim                              (1024 orig)
C_OUT  = 128    # output channels of proj_layer2/rf_proj (256 orig)
H      = 4      # num_heads                              (16 orig)
DH     = D // H
FFN    = 4 * D  # dim_feedforward = embed_dim * 4
DEPTH  = 2      # transformer depth                      (6 orig)

_SQRT2        = math.sqrt(2.0)
_LN_EPS       = 1e-5
_PROJ1_LN_EPS = 1e-6

# Set False for exact-divide softmax when validating against an f32 reference.
_APPROX_RECIP = True


def _vmem_limit_bytes():
    """Generation-aware VMEM budget: ~3/4 of physical, capped at 100 MiB."""
    cap = None
    try:
        cap = getattr(pltpu.get_tpu_info(), "vmem_capacity_bytes", None)
    except Exception:
        cap = None
    if not cap:
        cap = 64 * 1024 * 1024          # conservative fallback (v7x-sized)
    return int(min(cap * 3 // 4, 100 * 1024 * 1024))


_VMEM_LIMIT = _vmem_limit_bytes()

_CP_STACK = pltpu.CompilerParams(
    dimension_semantics=("arbitrary",),     # depth is a carried (sequential) axis
    vmem_limit_bytes=_VMEM_LIMIT,
)


# --------------------------- in-kernel math helpers ---------------------------
def _gelu_exact(x):
    # erf-based GELU (PyTorch activation='gelu'); erf via Abramowitz & Stegun
    # 7.1.26 polynomial (|err| <= 1.5e-7), built only from ops guaranteed to
    # lower on Mosaic (mul/add/div/exp/abs/where).
    ax = jnp.abs(x) * (1.0 / _SQRT2)
    t = 1.0 / (1.0 + 0.3275911 * ax)
    poly = ((((1.061405429 * t - 1.453152027) * t + 1.421413741) * t
             - 0.284496736) * t + 0.254829592) * t
    erf_ax = 1.0 - poly * jnp.exp(-ax * ax)
    erf_x = jnp.where(x >= 0.0, erf_ax, -erf_ax)
    return 0.5 * x * (1.0 + erf_x)


def _layernorm(x, g, b, eps):
    # f32 statistics, matches torch.nn.LayerNorm over the last dim.
    mu = jnp.mean(x, axis=-1, keepdims=True)
    xc = x - mu
    var = jnp.mean(xc * xc, axis=-1, keepdims=True)
    return (xc * lax.rsqrt(var + eps)) * g + b


def _mm(x, w):
    # MXU matmul: bf16 operands (weights are stored bf16), f32 accumulation.
    return jnp.dot(x.astype(jnp.bfloat16), w, preferred_element_type=jnp.float32)


def _mha_one(qb, kb, vb, seg_bf, seg_f32):
    """Multi-head attention for ONE sample, no per-head loop / lane slicing.

    qb/kb/vb: (L, D) bf16 (qb pre-scaled by 1/sqrt(DH)).
    seg_*:    (H*L, D) 0/1 mask, seg[n, d] = 1 iff n//L == d//DH.

    Keys/values are replicated per head and masked to that head's lane
    segment, so one (L,D)x(D,H*L) matmul yields all per-head scores and one
    (L,H*L)x(H*L,D) matmul yields the per-head outputs already placed in their
    own lanes.  Per-head softmax denominators come from one small f32 matmul
    against the same 0/1 mask (per-row max is a valid shift for every head).
    """
    km = jnp.concatenate([kb] * H, axis=0) * seg_bf          # (H*L, D)
    vm = jnp.concatenate([vb] * H, axis=0) * seg_bf          # (H*L, D)
    s = lax.dot_general(qb, km, (((1,), (1,)), ((), ())),
                        preferred_element_type=jnp.float32)  # (L, H*L)
    s = s - jnp.max(s, axis=-1, keepdims=True)
    p = jnp.exp(s)                                           # f32 softmax stats
    o = jnp.dot(p.astype(jnp.bfloat16), vm,
                preferred_element_type=jnp.float32)          # (L, D) un-normalized
    denom = jnp.dot(p, seg_f32,
                    preferred_element_type=jnp.float32)      # (L, D) per-head sums
    return o * pl.reciprocal(denom, approx=_APPROX_RECIP)


def _mha(q, k, v, seg_bf, seg_f32):
    """Batched MHA on (N*L, D) f32 activations (N samples stacked on rows)."""
    scale = 1.0 / math.sqrt(DH)
    qb = (q * scale).astype(jnp.bfloat16)    # casts hoisted out of the loop
    kb = k.astype(jnp.bfloat16)
    vb = v.astype(jnp.bfloat16)
    nb = q.shape[0] // L
    outs = []
    for b in range(nb):                      # row (sublane) slices only - cheap
        r = slice(b * L, (b + 1) * L)
        outs.append(_mha_one(qb[r], kb[r], vb[r], seg_bf, seg_f32))
    return outs[0] if nb == 1 else jnp.concatenate(outs, axis=0)


# --------------------------------- Pallas kernels ---------------------------------
def _decoder_branch_kernel(
        img_ref, dqp_ref, pos_ref, seg_ref,
        p1_w_ref, p1_g_ref, p1_b_ref,
        sa_wqkv_ref, sa_bqkv_ref, sa_wo_ref, sa_bo_ref,
        ca_wq_ref, ca_bq_ref, ca_wkv_ref, ca_bkv_ref, ca_wo_ref, ca_bo_ref,
        w1_ref, b1_ref, w2_ref, b2_ref,
        ln1_g_ref, ln1_b_ref, ln2_g_ref, ln2_b_ref, ln3_g_ref, ln3_b_ref,
        h_w1_ref, h_w2_ref,
        out_ref,
        x_sc, sum_sc, memkv_sc):
    """proj_layer1 + DEPTH fused TransformerDecoderLayers + mean + proj_layer2.

    grid = (DEPTH,); all operands have constant index maps (fetched once)."""
    d = pl.program_id(0)

    seg_f32 = seg_ref[...]
    seg_bf = seg_f32.astype(jnp.bfloat16)

    @pl.when(d == 0)
    def _init():
        # memory = LN(img_feat @ W1) + pos ; cache its cross-attn K/V in VMEM.
        mem = _layernorm(_mm(img_ref[...], p1_w_ref[...]),
                         p1_g_ref[...], p1_b_ref[...], _PROJ1_LN_EPS)
        mem = mem + pos_ref[...]
        memkv_sc[...] = _mm(mem, ca_wkv_ref[...]) + ca_bkv_ref[...]
        x_sc[...] = dqp_ref[...]                   # data_query + pos (pre-tiled)
        sum_sc[...] = jnp.zeros_like(sum_sc)

    x = x_sc[...]

    # ---- self-attention (fused QKV) + residual + LN ----
    qkv = _mm(x, sa_wqkv_ref[...]) + sa_bqkv_ref[...]
    sa = _mha(qkv[:, :D], qkv[:, D:2 * D], qkv[:, 2 * D:], seg_bf, seg_f32)
    sa = _mm(sa, sa_wo_ref[...]) + sa_bo_ref[...]
    x = _layernorm(x + sa, ln1_g_ref[...], ln1_b_ref[...], _LN_EPS)

    # ---- cross-attention (memory K/V cached in VMEM) + residual + LN ----
    q = _mm(x, ca_wq_ref[...]) + ca_bq_ref[...]
    kv = memkv_sc[...]
    ca = _mha(q, kv[:, :D], kv[:, D:], seg_bf, seg_f32)
    ca = _mm(ca, ca_wo_ref[...]) + ca_bo_ref[...]
    x = _layernorm(x + ca, ln2_g_ref[...], ln2_b_ref[...], _LN_EPS)

    # ---- GELU FFN + residual + LN ----
    h = _gelu_exact(_mm(x, w1_ref[...]) + b1_ref[...])
    f = _mm(h, w2_ref[...]) + b2_ref[...]
    x = _layernorm(x + f, ln3_g_ref[...], ln3_b_ref[...], _LN_EPS)

    x_sc[...] = x
    sum_sc[...] = sum_sc[...] + x

    @pl.when(d == pl.num_programs(0) - 1)
    def _finalize():
        # mean over per-layer outputs, then proj_layer2: Linear->GELU->Linear.
        mean = sum_sc[...] * (1.0 / DEPTH)
        hh = _gelu_exact(_mm(mean, h_w1_ref[...]))
        out_ref[...] = _mm(hh, h_w2_ref[...]).astype(out_ref.dtype)


def _encoder_branch_kernel(
        x_in_ref, pos_ref, seg_ref,
        sa_wqkv_ref, sa_bqkv_ref, sa_wo_ref, sa_bo_ref,
        w1_ref, b1_ref, w2_ref, b2_ref,
        ln1_g_ref, ln1_b_ref, ln2_g_ref, ln2_b_ref,
        h_w1_ref, h_w2_ref,
        out_ref,
        x_sc, sum_sc):
    """pos add + DEPTH fused TransformerEncoderLayers + mean + rf_proj head."""
    d = pl.program_id(0)

    seg_f32 = seg_ref[...]
    seg_bf = seg_f32.astype(jnp.bfloat16)

    @pl.when(d == 0)
    def _init():
        x_sc[...] = x_in_ref[...] + pos_ref[...]
        sum_sc[...] = jnp.zeros_like(sum_sc)

    x = x_sc[...]

    # ---- self-attention (fused QKV) + residual + LN ----
    qkv = _mm(x, sa_wqkv_ref[...]) + sa_bqkv_ref[...]
    sa = _mha(qkv[:, :D], qkv[:, D:2 * D], qkv[:, 2 * D:], seg_bf, seg_f32)
    sa = _mm(sa, sa_wo_ref[...]) + sa_bo_ref[...]
    x = _layernorm(x + sa, ln1_g_ref[...], ln1_b_ref[...], _LN_EPS)

    # ---- GELU FFN + residual + LN ----
    h = _gelu_exact(_mm(x, w1_ref[...]) + b1_ref[...])
    f = _mm(h, w2_ref[...]) + b2_ref[...]
    x = _layernorm(x + f, ln2_g_ref[...], ln2_b_ref[...], _LN_EPS)

    x_sc[...] = x
    sum_sc[...] = sum_sc[...] + x

    @pl.when(d == pl.num_programs(0) - 1)
    def _finalize():
        mean = sum_sc[...] * (1.0 / DEPTH)
        hh = _gelu_exact(_mm(mean, h_w1_ref[...]))
        out_ref[...] = _mm(hh, h_w2_ref[...]).astype(out_ref.dtype)


# ------------------------------ pallas_call wrappers ------------------------------
def _spec(shape):
    # Full-array block, constant index map: DMA'd once, VMEM-resident across depth.
    return pl.BlockSpec(shape, lambda d: (0, 0))


def decoder_branch(p, img_flat, dqp, pos_bl, seg_mask):
    dec = p["dec"]
    n_rows = img_flat.shape[0]
    args = [
        img_flat, dqp, pos_bl, seg_mask,
        p["proj1_w"], p["proj1_ln_g"], p["proj1_ln_b"],
        dec["sa_wqkv"], dec["sa_bqkv"], dec["sa_wo"], dec["sa_bo"],
        dec["ca_wq"], dec["ca_bq"], dec["ca_wkv"], dec["ca_bkv"],
        dec["ca_wo"], dec["ca_bo"],
        dec["w1"], dec["b1"], dec["w2"], dec["b2"],
        dec["ln1_g"], dec["ln1_b"], dec["ln2_g"], dec["ln2_b"],
        dec["ln3_g"], dec["ln3_b"],
        p["proj2_w1"], p["proj2_w2"],
    ]
    return pl.pallas_call(
        _decoder_branch_kernel,
        grid=(DEPTH,),
        in_specs=[_spec(a.shape) for a in args],
        out_specs=_spec((n_rows, C_OUT)),
        out_shape=jax.ShapeDtypeStruct((n_rows, C_OUT), jnp.float32),
        scratch_shapes=[
            pltpu.VMEM((n_rows, D), jnp.float32),        # carried activation
            pltpu.VMEM((n_rows, D), jnp.float32),        # per-layer mean accumulator
            pltpu.VMEM((n_rows, 2 * D), jnp.float32),    # cached cross-attn K/V
        ],
        compiler_params=_CP_STACK,
    )(*args)


def encoder_branch(p, rf_flat, pos_bl, seg_mask):
    enc = p["enc"]
    n_rows = rf_flat.shape[0]
    args = [
        rf_flat, pos_bl, seg_mask,
        enc["sa_wqkv"], enc["sa_bqkv"], enc["sa_wo"], enc["sa_bo"],
        enc["w1"], enc["b1"], enc["w2"], enc["b2"],
        enc["ln1_g"], enc["ln1_b"], enc["ln2_g"], enc["ln2_b"],
        p["rfproj_w1"], p["rfproj_w2"],
    ]
    return pl.pallas_call(
        _encoder_branch_kernel,
        grid=(DEPTH,),
        in_specs=[_spec(a.shape) for a in args],
        out_specs=_spec((n_rows, C_OUT)),
        out_shape=jax.ShapeDtypeStruct((n_rows, C_OUT), jnp.float32),
        scratch_shapes=[
            pltpu.VMEM((n_rows, D), jnp.float32),        # carried activation
            pltpu.VMEM((n_rows, D), jnp.float32),        # per-layer mean accumulator
        ],
        compiler_params=_CP_STACK,
    )(*args)


# ------------------------------ positional encoding ------------------------------
def pos_enc_1d(length, channels):
    """Matches positional_encodings.PositionalEncoding1D (interleaved sin/cos)."""
    ch = int(math.ceil(channels / 2) * 2)
    inv_freq = 1.0 / (10000.0 ** (jnp.arange(0, ch, 2, dtype=jnp.float32) / ch))
    pos = jnp.arange(length, dtype=jnp.float32)
    sin_inp = pos[:, None] * inv_freq[None, :]
    emb = jnp.stack([jnp.sin(sin_inp), jnp.cos(sin_inp)], axis=-1).reshape(length, ch)
    return emb[:, :channels]                       # (L, channels)


def _segment_mask():
    """(H*L, D) 0/1 mask: seg[n, d] = 1 iff key-replica head n//L == lane head d//DH."""
    rows = jnp.arange(H * L, dtype=jnp.int32)[:, None] // L
    cols = jnp.arange(D, dtype=jnp.int32)[None, :] // DH
    return (rows == cols).astype(jnp.float32)


# ------------------------------------ forward ------------------------------------
def selfsup_forward(params, rf_latent, img_feat, mask_ratio=0.0):
    """rf_latent: (B, L, D)   img_feat: (B, 1, L, C_IN)"""
    Bn = rf_latent.shape[0]

    pos = pos_enc_1d(L, D)                                   # (L, D), constant-folded
    pos_bl = jnp.tile(pos, (Bn, 1))                          # (B*L, D)
    dqp = jnp.tile(params["data_query"] + pos, (Bn, 1))      # data_query + pos, tiled
    seg_mask = _segment_mask()                               # (H*L, D), constant-folded

    # imgfeat_patchify + batch folded into the row dimension.
    img_flat = img_feat.reshape(Bn * L, C_IN)
    rf_flat = rf_latent.reshape(Bn * L, D)

    # decoder branch: proj1 + DEPTH decoder layers + mean + proj_layer2 (one kernel)
    imgfeat_latent = decoder_branch(params, img_flat, dqp, pos_bl, seg_mask)
    imgfeat_latent = imgfeat_latent.reshape(Bn, L, C_OUT)

    # rf branch: pos add + DEPTH encoder layers + mean + rf_proj (one kernel)
    rf_out = encoder_branch(params, rf_flat, pos_bl, seg_mask)
    rf_out = rf_out.reshape(Bn, L, C_OUT)

    return {"imgfeat_latent": imgfeat_latent, "rf_latent": rf_out, "imgfeat_pred": None}


# ------------------------------ deterministic params ------------------------------
def init_params(key):
    """Weights pre-cast to bf16, biases/LN params pre-reshaped to (1, N) f32."""
    keys = iter(jax.random.split(key, 32))

    def w(shape, scale=0.02):
        return (scale * jax.random.normal(next(keys), shape, dtype=jnp.float32)
                ).astype(jnp.bfloat16)

    def zrow(n):
        return jnp.zeros((1, n), jnp.float32)

    def orow(n):
        return jnp.ones((1, n), jnp.float32)

    dec = dict(
        sa_wqkv=w((D, 3 * D)), sa_bqkv=zrow(3 * D), sa_wo=w((D, D)), sa_bo=zrow(D),
        ca_wq=w((D, D)), ca_bq=zrow(D), ca_wkv=w((D, 2 * D)), ca_bkv=zrow(2 * D),
        ca_wo=w((D, D)), ca_bo=zrow(D),
        w1=w((D, FFN)), b1=zrow(FFN), w2=w((FFN, D)), b2=zrow(D),
        ln1_g=orow(D), ln1_b=zrow(D),
        ln2_g=orow(D), ln2_b=zrow(D),
        ln3_g=orow(D), ln3_b=zrow(D),
    )
    enc = dict(
        sa_wqkv=w((D, 3 * D)), sa_bqkv=zrow(3 * D), sa_wo=w((D, D)), sa_bo=zrow(D),
        w1=w((D, FFN)), b1=zrow(FFN), w2=w((FFN, D)), b2=zrow(D),
        ln1_g=orow(D), ln1_b=zrow(D),
        ln2_g=orow(D), ln2_b=zrow(D),
    )

    return dict(
        proj1_w=w((C_IN, D)),
        proj1_ln_g=orow(D), proj1_ln_b=zrow(D),
        data_query=jnp.zeros((L, D), jnp.float32),   # nn.Parameter(torch.zeros(...))
        dec=dec, enc=enc,
        proj2_w1=w((D, D)), proj2_w2=w((D, C_OUT)),
        rfproj_w1=w((D, D)), rfproj_w2=w((D, C_OUT)),
    )


# ------------------------------------- main -------------------------------------
if __name__ == "__main__":
    key = jax.random.PRNGKey(0)
    kp, kr, ki = jax.random.split(key, 3)

    params = init_params(kp)
    rf_latent = jax.random.normal(kr, (B, L, D), dtype=jnp.float32)
    img_feat = jax.random.normal(ki, (B, 1, L, C_IN), dtype=jnp.float32)

    fwd = jax.jit(selfsup_forward)
    out = fwd(params, rf_latent, img_feat)

    jax.block_until_ready(out["imgfeat_latent"])
    jax.block_until_ready(out["rf_latent"])

    assert out["imgfeat_latent"].shape == (B, L, C_OUT)
    assert out["rf_latent"].shape == (B, L, C_OUT)
    assert out["imgfeat_pred"] is None

    print("KERNEL_OK")
</pallas_src>

<mosaic_0001>
module attributes {stable_mosaic.version = 11 : i64} {
  func.func @_encoder_branch_kernel(%arg0: i32, %arg1: memref<64x128xf32, #tpu.memory_space<vmem>>, %arg2: memref<64x128xf32, #tpu.memory_space<vmem>>, %arg3: memref<128x128xf32, #tpu.memory_space<vmem>>, %arg4: memref<128x384xbf16, #tpu.memory_space<vmem>>, %arg5: memref<1x384xf32, #tpu.memory_space<vmem>>, %arg6: memref<128x128xbf16, #tpu.memory_space<vmem>>, %arg7: memref<1x128xf32, #tpu.memory_space<vmem>>, %arg8: memref<128x512xbf16, #tpu.memory_space<vmem>>, %arg9: memref<1x512xf32, #tpu.memory_space<vmem>>, %arg10: memref<512x128xbf16, #tpu.memory_space<vmem>>, %arg11: memref<1x128xf32, #tpu.memory_space<vmem>>, %arg12: memref<1x128xf32, #tpu.memory_space<vmem>>, %arg13: memref<1x128xf32, #tpu.memory_space<vmem>>, %arg14: memref<1x128xf32, #tpu.memory_space<vmem>>, %arg15: memref<1x128xf32, #tpu.memory_space<vmem>>, %arg16: memref<128x128xbf16, #tpu.memory_space<vmem>>, %arg17: memref<128x128xbf16, #tpu.memory_space<vmem>>, %arg18: memref<64x128xf32, #tpu.memory_space<vmem>>, %arg19: memref<64x128xf32, #tpu.memory_space<vmem>>, %arg20: memref<64x128xf32, #tpu.memory_space<vmem>>) attributes {dimension_semantics = [#tpu.dimension_semantics<arbitrary>], iteration_bounds = array<i64: 2>, scalar_prefetch = 0 : i64, scratch_operands = 2 : i64, tpu.core_type = #tpu.core_type<tc>, window_params = [{pipeline_mode = #tpu.pipeline_mode<synchronous>, transform_indices = @transform_0, window_bounds = array<i64: 64, 128>}, {pipeline_mode = #tpu.pipeline_mode<synchronous>, transform_indices = @transform_1, window_bounds = array<i64: 64, 128>}, {pipeline_mode = #tpu.pipeline_mode<synchronous>, transform_indices = @transform_2, window_bounds = array<i64: 128, 128>}, {pipeline_mode = #tpu.pipeline_mode<synchronous>, transform_indices = @transform_3, window_bounds = array<i64: 128, 384>}, {pipeline_mode = #tpu.pipeline_mode<synchronous>, transform_indices = @transform_4, window_bounds = array<i64: 1, 384>}, {pipeline_mode = #tpu.pipeline_mode<synchronous>, transform_indices = @transform_5, window_bounds = array<i64: 128, 128>}, {pipeline_mode = #tpu.pipeline_mode<synchronous>, transform_indices = @transform_6, window_bounds = array<i64: 1, 128>}, {pipeline_mode = #tpu.pipeline_mode<synchronous>, transform_indices = @transform_7, window_bounds = array<i64: 128, 512>}, {pipeline_mode = #tpu.pipeline_mode<synchronous>, transform_indices = @transform_8, window_bounds = array<i64: 1, 512>}, {pipeline_mode = #tpu.pipeline_mode<synchronous>, transform_indices = @transform_9, window_bounds = array<i64: 512, 128>}, {pipeline_mode = #tpu.pipeline_mode<synchronous>, transform_indices = @transform_10, window_bounds = array<i64: 1, 128>}, {pipeline_mode = #tpu.pipeline_mode<synchronous>, transform_indices = @transform_11, window_bounds = array<i64: 1, 128>}, {pipeline_mode = #tpu.pipeline_mode<synchronous>, transform_indices = @transform_12, window_bounds = array<i64: 1, 128>}, {pipeline_mode = #tpu.pipeline_mode<synchronous>, transform_indices = @transform_13, window_bounds = array<i64: 1, 128>}, {pipeline_mode = #tpu.pipeline_mode<synchronous>, transform_indices = @transform_14, window_bounds = array<i64: 1, 128>}, {pipeline_mode = #tpu.pipeline_mode<synchronous>, transform_indices = @transform_15, window_bounds = array<i64: 128, 128>}, {pipeline_mode = #tpu.pipeline_mode<synchronous>, transform_indices = @transform_16, window_bounds = array<i64: 128, 128>}, {pipeline_mode = #tpu.pipeline_mode<synchronous>, transform_indices = @transform_17, window_bounds = array<i64: 64, 128>}]} {
    %c0 = arith.constant 0 : index
    %c0_0 = arith.constant 0 : index
    %0 = vector.load %arg3[%c0, %c0_0] : memref<128x128xf32, #tpu.memory_space<vmem>>, vector<128x128xf32>
    %1 = arith.truncf %0 : vector<128x128xf32> to vector<128x128xbf16>
    %c0_i32 = arith.constant 0 : i32
    %2 = arith.cmpi eq, %arg0, %c0_i32 : i32
    %3 = arith.extui %2 : i1 to i32
    %c0_i32_1 = arith.constant 0 : i32
    %4 = arith.cmpi ne, %3, %c0_i32_1 : i32
    scf.if %4 {
      %c0_72 = arith.constant 0 : index
      %c0_73 = arith.constant 0 : index
      %168 = vector.load %arg1[%c0_72, %c0_73] : memref<64x128xf32, #tpu.memory_space<vmem>>, vector<64x128xf32>
      %c0_74 = arith.constant 0 : index
      %c0_75 = arith.constant 0 : index
      %169 = vector.load %arg2[%c0_74, %c0_75] : memref<64x128xf32, #tpu.memory_space<vmem>>, vector<64x128xf32>
      %170 = arith.addf %168, %169 : vector<64x128xf32>
      %c0_76 = arith.constant 0 : index
      %c0_77 = arith.constant 0 : index
      %171 = vector.load %arg19[%c0_76, %c0_77] : memref<64x128xf32, #tpu.memory_space<vmem>>, vector<64x128xf32>
      tpu.vector_store %arg19[%c0_76, %c0_77], %170 {strides = array<i32>} : memref<64x128xf32, #tpu.memory_space<vmem>>, vector<64x128xf32>,
      %cst_78 = arith.constant 0.000000e+00 : f32
      %172 = vector.broadcast %cst_78 : f32 to vector<64x128xf32>
      %c0_79 = arith.constant 0 : index
      %c0_80 = arith.constant 0 : index
      %173 = vector.load %arg20[%c0_79, %c0_80] : memref<64x128xf32, #tpu.memory_space<vmem>>, vector<64x128xf32>
      tpu.vector_store %arg20[%c0_79, %c0_80], %172 {strides = array<i32>} : memref<64x128xf32, #tpu.memory_space<vmem>>, vector<64x128xf32>,
    } else {
    }
    %c0_2 = arith.constant 0 : index
    %c0_3 = arith.constant 0 : index
    %5 = vector.load %arg19[%c0_2, %c0_3] : memref<64x128xf32, #tpu.memory_space<vmem>>, vector<64x128xf32>
    %c0_4 = arith.constant 0 : index
    %c0_5 = arith.constant 0 : index
    %6 = vector.load %arg4[%c0_4, %c0_5] : memref<128x384xbf16, #tpu.memory_space<vmem>>, vector<128x384xbf16>
    %7 = arith.truncf %5 : vector<64x128xf32> to vector<64x128xbf16>
    %cst = arith.constant dense<0.000000e+00> : vector<64x384xf32>
    %8 = tpu.matmul %7, %6, %cst {dimension_numbers = #tpu.dot_dimension_numbers<[1], [0], [0], [1], [0, 0, 1, 1], [], []>} : vector<64x128xbf16>, vector<128x384xbf16>, vector<64x384xf32> -> vector<64x384xf32>
    %c0_6 = arith.constant 0 : index
    %c0_7 = arith.constant 0 : index
    %9 = vector.load %arg5[%c0_6, %c0_7] : memref<1x384xf32, #tpu.memory_space<vmem>>, vector<1x384xf32>
    %10 = vector.broadcast %9 : vector<1x384xf32> to vector<64x384xf32>
    %11 = arith.addf %8, %10 : vector<64x384xf32>
    %12 = vector.extract_strided_slice %11 {offsets = [0, 0], sizes = [64, 128], strides = [1, 1]} : vector<64x384xf32> to vector<64x128xf32>
    %13 = vector.extract_strided_slice %11 {offsets = [0, 128], sizes = [64, 128], strides = [1, 1]} : vector<64x384xf32> to vector<64x128xf32>
    %14 = vector.extract_strided_slice %11 {offsets = [0, 256], sizes = [64, 128], strides = [1, 1]} : vector<64x384xf32> to vector<64x128xf32>
    %cst_8 = arith.constant 0.176776692 : f32
    %15 = vector.broadcast %cst_8 : f32 to vector<64x128xf32>
    %16 = arith.mulf %12, %15 : vector<64x128xf32>
    %17 = arith.truncf %16 : vector<64x128xf32> to vector<64x128xbf16>
    %18 = arith.truncf %13 : vector<64x128xf32> to vector<64x128xbf16>
    %19 = arith.truncf %14 : vector<64x128xf32> to vector<64x128xbf16>
    %20 = vector.extract_strided_slice %17 {offsets = [0, 0], sizes = [32, 128], strides = [1, 1]} : vector<64x128xbf16> to vector<32x128xbf16>
    %21 = vector.extract_strided_slice %18 {offsets = [0, 0], sizes = [32, 128], strides = [1, 1]} : vector<64x128xbf16> to vector<32x128xbf16>
    %22 = vector.extract_strided_slice %19 {offsets = [0, 0], sizes = [32, 128], strides = [1, 1]} : vector<64x128xbf16> to vector<32x128xbf16>
    %23 = tpu.concatenate %21, %21, %21, %21 in 0 : vector<32x128xbf16>, vector<32x128xbf16>, vector<32x128xbf16>, vector<32x128xbf16> -> vector<128x128xbf16>
    %24 = arith.mulf %23, %1 : vector<128x128xbf16>
    %25 = tpu.concatenate %22, %22, %22, %22 in 0 : vector<32x128xbf16>, vector<32x128xbf16>, vector<32x128xbf16>, vector<32x128xbf16> -> vector<128x128xbf16>
    %26 = arith.mulf %25, %1 : vector<128x128xbf16>
    %cst_9 = arith.constant dense<0.000000e+00> : vector<32x128xf32>
    %27 = tpu.matmul %20, %24, %cst_9 {dimension_numbers = #tpu.dot_dimension_numbers<[1], [1], [0], [0], [0, 0, 1, 0], [], []>} : vector<32x128xbf16>, vector<128x128xbf16>, vector<32x128xf32> -> vector<32x128xf32>
    %cst_10 = arith.constant dense<0xFF800000> : vector<32xf32>
    %28 = vector.multi_reduction <maximumf>, %27, %cst_10 [1] : vector<32x128xf32> to vector<32xf32>
    %29 = vector.shape_cast %28 : vector<32xf32> to vector<32x1xf32>
    %30 = vector.broadcast %29 : vector<32x1xf32> to vector<32x128xf32>
    %31 = arith.subf %27, %30 : vector<32x128xf32>
    %32 = math.exp %31 : vector<32x128xf32>
    %33 = arith.truncf %32 : vector<32x128xf32> to vector<32x128xbf16>
    %cst_11 = arith.constant dense<0.000000e+00> : vector<32x128xf32>
    %34 = tpu.matmul %33, %26, %cst_11 {dimension_numbers = #tpu.dot_dimension_numbers<[1], [0], [0], [1], [0, 0, 1, 1], [], []>} : vector<32x128xbf16>, vector<128x128xbf16>, vector<32x128xf32> -> vector<32x128xf32>
    %cst_12 = arith.constant dense<0.000000e+00> : vector<32x128xf32>
    %35 = tpu.matmul %32, %0, %cst_12 {dimension_numbers = #tpu.dot_dimension_numbers<[1], [0], [0], [1], [0, 0, 1, 1], [], []>} : vector<32x128xf32>, vector<128x128xf32>, vector<32x128xf32> -> vector<32x128xf32>
    %36 = tpu.reciprocal %35 {approx = true} : vector<32x128xf32> -> vector<32x128xf32>
    %37 = arith.mulf %34, %36 : vector<32x128xf32>
    %38 = vector.extract_strided_slice %17 {offsets = [32, 0], sizes = [32, 128], strides = [1, 1]} : vector<64x128xbf16> to vector<32x128xbf16>
    %39 = vector.extract_strided_slice %18 {offsets = [32, 0], sizes = [32, 128], strides = [1, 1]} : vector<64x128xbf16> to vector<32x128xbf16>
    %40 = vector.extract_strided_slice %19 {offsets = [32, 0], sizes = [32, 128], strides = [1, 1]} : vector<64x128xbf16> to vector<32x128xbf16>
    %41 = tpu.concatenate %39, %39, %39, %39 in 0 : vector<32x128xbf16>, vector<32x128xbf16>, vector<32x128xbf16>, vector<32x128xbf16> -> vector<128x128xbf16>
    %42 = arith.mulf %41, %1 : vector<128x128xbf16>
    %43 = tpu.concatenate %40, %40, %40, %40 in 0 : vector<32x128xbf16>, vector<32x128xbf16>, vector<32x128xbf16>, vector<32x128xbf16> -> vector<128x128xbf16>
    %44 = arith.mulf %43, %1 : vector<128x128xbf16>
    %cst_13 = arith.constant dense<0.000000e+00> : vector<32x128xf32>
    %45 = tpu.matmul %38, %42, %cst_13 {dimension_numbers = #tpu.dot_dimension_numbers<[1], [1], [0], [0], [0, 0, 1, 0], [], []>} : vector<32x128xbf16>, vector<128x128xbf16>, vector<32x128xf32> -> vector<32x128xf32>
    %cst_14 = arith.constant dense<0xFF800000> : vector<32xf32>
    %46 = vector.multi_reduction <maximumf>, %45, %cst_14 [1] : vector<32x128xf32> to vector<32xf32>
    %47 = vector.shape_cast %46 : vector<32xf32> to vector<32x1xf32>
    %48 = vector.broadcast %47 : vector<32x1xf32> to vector<32x128xf32>
    %49 = arith.subf %45, %48 : vector<32x128xf32>
    %50 = math.exp %49 : vector<32x128xf32>
    %51 = arith.truncf %50 : vector<32x128xf32> to vector<32x128xbf16>
    %cst_15 = arith.constant dense<0.000000e+00> : vector<32x128xf32>
    %52 = tpu.matmul %51, %44, %cst_15 {dimension_numbers = #tpu.dot_dimension_numbers<[1], [0], [0], [1], [0, 0, 1, 1], [], []>} : vector<32x128xbf16>, vector<128x128xbf16>, vector<32x128xf32> -> vector<32x128xf32>
    %cst_16 = arith.constant dense<0.000000e+00> : vector<32x128xf32>
    %53 = tpu.matmul %50, %0, %cst_16 {dimension_numbers = #tpu.dot_dimension_numbers<[1], [0], [0], [1], [0, 0, 1, 1], [], []>} : vector<32x128xf32>, vector<128x128xf32>, vector<32x128xf32> -> vector<32x128xf32>
    %54 = tpu.reciprocal %53 {approx = true} : vector<32x128xf32> -> vector<32x128xf32>
    %55 = arith.mulf %52, %54 : vector<32x128xf32>
    %56 = tpu.concatenate %37, %55 in 0 : vector<32x128xf32>, vector<32x128xf32> -> vector<64x128xf32>
    %c0_17 = arith.constant 0 : index
    %c0_18 = arith.constant 0 : index
    %57 = vector.load %arg6[%c0_17, %c0_18] : memref<128x128xbf16, #tpu.memory_space<vmem>>, vector<128x128xbf16>
    %58 = arith.truncf %56 : vector<64x128xf32> to vector<64x128xbf16>
    %cst_19 = arith.constant dense<0.000000e+00> : vector<64x128xf32>
    %59 = tpu.matmul %58, %57, %cst_19 {dimension_numbers = #tpu.dot_dimension_numbers<[1], [0], [0], [1], [0, 0, 1, 1], [], []>} : vector<64x128xbf16>, vector<128x128xbf16>, vector<64x128xf32> -> vector<64x128xf32>
    %c0_20 = arith.constant 0 : index
    %c0_21 = arith.constant 0 : index
    %60 = vector.load %arg7[%c0_20, %c0_21] : memref<1x128xf32, #tpu.memory_space<vmem>>, vector<1x128xf32>
    %61 = vector.broadcast %60 : vector<1x128xf32> to vector<64x128xf32>
    %62 = arith.addf %59, %61 : vector<64x128xf32>
    %63 = arith.addf %5, %62 : vector<64x128xf32>
    %c0_22 = arith.constant 0 : index
    %c0_23 = arith.constant 0 : index
    %64 = vector.load %arg12[%c0_22, %c0_23] : memref<1x128xf32, #tpu.memory_space<vmem>>, vector<1x128xf32>
    %c0_24 = arith.constant 0 : index
    %c0_25 = arith.constant 0 : index
    %65 = vector.load %arg13[%c0_24, %c0_25] : memref<1x128xf32, #tpu.memory_space<vmem>>, vector<1x128xf32>
    %cst_26 = arith.constant dense<0.000000e+00> : vector<64xf32>
    %66 = vector.multi_reduction <add>, %63, %cst_26 [1] : vector<64x128xf32> to vector<64xf32>
    %67 = vector.shape_cast %66 : vector<64xf32> to vector<64x1xf32>
    %cst_27 = arith.constant 1.280000e+02 : f32
    %68 = vector.broadcast %cst_27 : f32 to vector<64x1xf32>
    %69 = arith.divf %67, %68 : vector<64x1xf32>
    %70 = vector.broadcast %69 : vector<64x1xf32> to vector<64x128xf32>
    %71 = arith.subf %63, %70 : vector<64x128xf32>
    %72 = arith.mulf %71, %71 : vector<64x128xf32>
    %cst_28 = arith.constant dense<0.000000e+00> : vector<64xf32>
    %73 = vector.multi_reduction <add>, %72, %cst_28 [1] : vector<64x128xf32> to vector<64xf32>
    %74 = vector.shape_cast %73 : vector<64xf32> to vector<64x1xf32>
    %cst_29 = arith.constant 1.280000e+02 : f32
    %75 = vector.broadcast %cst_29 : f32 to vector<64x1xf32>
    %76 = arith.divf %74, %75 : vector<64x1xf32>
    %cst_30 = arith.constant 9.99999974E-6 : f32
    %77 = vector.broadcast %cst_30 : f32 to vector<64x1xf32>
    %78 = arith.addf %76, %77 : vector<64x1xf32>
    %79 = math.rsqrt %78 : vector<64x1xf32>
    %80 = vector.broadcast %79 : vector<64x1xf32> to vector<64x128xf32>
    %81 = arith.mulf %71, %80 : vector<64x128xf32>
    %82 = vector.broadcast %64 : vector<1x128xf32> to vector<64x128xf32>
    %83 = arith.mulf %81, %82 : vector<64x128xf32>
    %84 = vector.broadcast %65 : vector<1x128xf32> to vector<64x128xf32>
    %85 = arith.addf %83, %84 : vector<64x128xf32>
    %c0_31 = arith.constant 0 : index
    %c0_32 = arith.constant 0 : index
    %86 = vector.load %arg8[%c0_31, %c0_32] : memref<128x512xbf16, #tpu.memory_space<vmem>>, vector<128x512xbf16>
    %87 = arith.truncf %85 : vector<64x128xf32> to vector<64x128xbf16>
    %cst_33 = arith.constant dense<0.000000e+00> : vector<64x512xf32>
    %88 = tpu.matmul %87, %86, %cst_33 {dimension_numbers = #tpu.dot_dimension_numbers<[1], [0], [0], [1], [0, 0, 1, 1], [], []>} : vector<64x128xbf16>, vector<128x512xbf16>, vector<64x512xf32> -> vector<64x512xf32>
    %c0_34 = arith.constant 0 : index
    %c0_35 = arith.constant 0 : index
    %89 = vector.load %arg9[%c0_34, %c0_35] : memref<1x512xf32, #tpu.memory_space<vmem>>, vector<1x512xf32>
    %90 = vector.broadcast %89 : vector<1x512xf32> to vector<64x512xf32>
    %91 = arith.addf %88, %90 : vector<64x512xf32>
    %92 = math.absf %91 : vector<64x512xf32>
    %cst_36 = arith.constant 0.707106769 : f32
    %93 = vector.broadcast %cst_36 : f32 to vector<64x512xf32>
    %94 = arith.mulf %92, %93 : vector<64x512xf32>
    %cst_37 = arith.constant 0.327591091 : f32
    %95 = vector.broadcast %cst_37 : f32 to vector<64x512xf32>
    %96 = arith.mulf %95, %94 : vector<64x512xf32>
    %cst_38 = arith.constant 1.000000e+00 : f32
    %97 = vector.broadcast %cst_38 : f32 to vector<64x512xf32>
    %98 = arith.addf %97, %96 : vector<64x512xf32>
    %cst_39 = arith.constant 1.000000e+00 : f32
    %99 = vector.broadcast %cst_39 : f32 to vector<64x512xf32>
    %100 = arith.divf %99, %98 : vector<64x512xf32>
    %cst_40 = arith.constant 1.06140542 : f32
    %101 = vector.broadcast %cst_40 : f32 to vector<64x512xf32>
    %102 = arith.mulf %101, %100 : vector<64x512xf32>
    %cst_41 = arith.constant 1.45315206 : f32
    %103 = vector.broadcast %cst_41 : f32 to vector<64x512xf32>
    %104 = arith.subf %102, %103 : vector<64x512xf32>
    %105 = arith.mulf %104, %100 : vector<64x512xf32>
    %cst_42 = arith.constant 1.42141378 : f32
    %106 = vector.broadcast %cst_42 : f32 to vector<64x512xf32>
    %107 = arith.addf %105, %106 : vector<64x512xf32>
    %108 = arith.mulf %107, %100 : vector<64x512xf32>
    %cst_43 = arith.constant 0.284496725 : f32
    %109 = vector.broadcast %cst_43 : f32 to vector<64x512xf32>
    %110 = arith.subf %108, %109 : vector<64x512xf32>
    %111 = arith.mulf %110, %100 : vector<64x512xf32>
    %cst_44 = arith.constant 0.254829586 : f32
    %112 = vector.broadcast %cst_44 : f32 to vector<64x512xf32>
    %113 = arith.addf %111, %112 : vector<64x512xf32>
    %114 = arith.mulf %113, %100 : vector<64x512xf32>
    %cst_45 = arith.constant 0.000000e+00 : f32
    %115 = vector.broadcast %cst_45 : f32 to vector<64x512xf32>
    %116 = arith.subf %115, %94 : vector<64x512xf32>
    %117 = arith.mulf %116, %94 : vector<64x512xf32>
    %118 = math.exp %117 : vector<64x512xf32>
    %119 = arith.mulf %114, %118 : vector<64x512xf32>
    %cst_46 = arith.constant 1.000000e+00 : f32
    %120 = vector.broadcast %cst_46 : f32 to vector<64x512xf32>
    %121 = arith.subf %120, %119 : vector<64x512xf32>
    %cst_47 = arith.constant 0.000000e+00 : f32
    %122 = vector.broadcast %cst_47 : f32 to vector<64x512xf32>
    %123 = arith.cmpf oge, %91, %122 : vector<64x512xf32>
    %cst_48 = arith.constant 0.000000e+00 : f32
    %124 = vector.broadcast %cst_48 : f32 to vector<64x512xf32>
    %125 = arith.subf %124, %121 : vector<64x512xf32>
    %126 = arith.select %123, %121, %125 : vector<64x512xi1>, vector<64x512xf32>
    %cst_49 = arith.constant 5.000000e-01 : f32
    %127 = vector.broadcast %cst_49 : f32 to vector<64x512xf32>
    %128 = arith.mulf %127, %91 : vector<64x512xf32>
    %cst_50 = arith.constant 1.000000e+00 : f32
    %129 = vector.broadcast %cst_50 : f32 to vector<64x512xf32>
    %130 = arith.addf %129, %126 : vector<64x512xf32>
    %131 = arith.mulf %128, %130 : vector<64x512xf32>
    %c0_51 = arith.constant 0 : index
    %c0_52 = arith.constant 0 : index
    %132 = vector.load %arg10[%c0_51, %c0_52] : memref<512x128xbf16, #tpu.memory_space<vmem>>, vector<512x128xbf16>
    %133 = arith.truncf %131 : vector<64x512xf32> to vector<64x512xbf16>
    %cst_53 = arith.constant dense<0.000000e+00> : vector<64x128xf32>
    %134 = tpu.matmul %133, %132, %cst_53 {dimension_numbers = #tpu.dot_dimension_numbers<[1], [0], [0], [1], [0, 0, 1, 1], [], []>} : vector<64x512xbf16>, vector<512x128xbf16>, vector<64x128xf32> -> vector<64x128xf32>
    %c0_54 = arith.constant 0 : index
    %c0_55 = arith.constant 0 : index
    %135 = vector.load %arg11[%c0_54, %c0_55] : memref<1x128xf32, #tpu.memory_space<vmem>>, vector<1x128xf32>
    %136 = vector.broadcast %135 : vector<1x128xf32> to vector<64x128xf32>
    %137 = arith.addf %134, %136 : vector<64x128xf32>
    %138 = arith.addf %85, %137 : vector<64x128xf32>
    %c0_56 = arith.constant 0 : index
    %c0_57 = arith.constant 0 : index
    %139 = vector.load %arg14[%c0_56, %c0_57] : memref<1x128xf32, #tpu.memory_space<vmem>>, vector<1x128xf32>
    %c0_58 = arith.constant 0 : index
    %c0_59 = arith.constant 0 : index
    %140 = vector.load %arg15[%c0_58, %c0_59] : memref<1x128xf32, #tpu.memory_space<vmem>>, vector<1x128xf32>
    %cst_60 = arith.constant dense<0.000000e+00> : vector<64xf32>
    %141 = vector.multi_reduction <add>, %138, %cst_60 [1] : vector<64x128xf32> to vector<64xf32>
    %142 = vector.shape_cast %141 : vector<64xf32> to vector<64x1xf32>
    %cst_61 = arith.constant 1.280000e+02 : f32
    %143 = vector.broadcast %cst_61 : f32 to vector<64x1xf32>
    %144 = arith.divf %142, %143 : vector<64x1xf32>
    %145 = vector.broadcast %144 : vector<64x1xf32> to vector<64x128xf32>
    %146 = arith.subf %138, %145 : vector<64x128xf32>
    %147 = arith.mulf %146, %146 : vector<64x128xf32>
    %cst_62 = arith.constant dense<0.000000e+00> : vector<64xf32>
    %148 = vector.multi_reduction <add>, %147, %cst_62 [1] : vector<64x128xf32> to vector<64xf32>
    %149 = vector.shape_cast %148 : vector<64xf32> to vector<64x1xf32>
    %cst_63 = arith.constant 1.280000e+02 : f32
    %150 = vector.broadcast %cst_63 : f32 to vector<64x1xf32>
    %151 = arith.divf %149, %150 : vector<64x1xf32>
    %cst_64 = arith.constant 9.99999974E-6 : f32
    %152 = vector.broadcast %cst_64 : f32 to vector<64x1xf32>
    %153 = arith.addf %151, %152 : vector<64x1xf32>
    %154 = math.rsqrt %153 : vector<64x1xf32>
    %155 = vector.broadcast %154 : vector<64x1xf32> to vector<64x128xf32>
    %156 = arith.mulf %146, %155 : vector<64x128xf32>
    %157 = vector.broadcast %139 : vector<1x128xf32> to vector<64x128xf32>
    %158 = arith.mulf %156, %157 : vector<64x128xf32>
    %159 = vector.broadcast %140 : vector<1x128xf32> to vector<64x128xf32>
    %160 = arith.addf %158, %159 : vector<64x128xf32>
    %c0_65 = arith.constant 0 : index
    %c0_66 = arith.constant 0 : index
    %161 = vector.load %arg19[%c0_65, %c0_66] : memref<64x128xf32, #tpu.memory_space<vmem>>, vector<64x128xf32>
    tpu.vector_store %arg19[%c0_65, %c0_66], %160 {strides = array<i32>} : memref<64x128xf32, #tpu.memory_space<vmem>>, vector<64x128xf32>,
    %c0_67 = arith.constant 0 : index
    %c0_68 = arith.constant 0 : index
    %162 = vector.load %arg20[%c0_67, %c0_68] : memref<64x128xf32, #tpu.memory_space<vmem>>, vector<64x128xf32>
    %163 = arith.addf %162, %160 : vector<64x128xf32>
    %c0_69 = arith.constant 0 : index
    %c0_70 = arith.constant 0 : index
    %164 = vector.load %arg20[%c0_69, %c0_70] : memref<64x128xf32, #tpu.memory_space<vmem>>, vector<64x128xf32>
    tpu.vector_store %arg20[%c0_69, %c0_70], %163 {strides = array<i32>} : memref<64x128xf32, #tpu.memory_space<vmem>>, vector<64x128xf32>,
    %c1_i32 = arith.constant 1 : i32
    %165 = arith.cmpi eq, %arg0, %c1_i32 : i32
    %166 = arith.extui %165 : i1 to i32
    %c0_i32_71 = arith.constant 0 : i32
    %167 = arith.cmpi ne, %166, %c0_i32_71 : i32
    scf.if %167 {
      %c0_72 = arith.constant 0 : index
      %c0_73 = arith.constant 0 : index
      %168 = vector.load %arg20[%c0_72, %c0_73] : memref<64x128xf32, #tpu.memory_space<vmem>>, vector<64x128xf32>
      %cst_74 = arith.constant 5.000000e-01 : f32
      %169 = vector.broadcast %cst_74 : f32 to vector<64x128xf32>
      %170 = arith.mulf %168, %169 : vector<64x128xf32>
      %c0_75 = arith.constant 0 : index
      %c0_76 = arith.constant 0 : index
      %171 = vector.load %arg16[%c0_75, %c0_76] : memref<128x128xbf16, #tpu.memory_space<vmem>>, vector<128x128xbf16>
      %172 = arith.truncf %170 : vector<64x128xf32> to vector<64x128xbf16>
      %cst_77 = arith.constant dense<0.000000e+00> : vector<64x128xf32>
      %173 = tpu.matmul %172, %171, %cst_77 {dimension_numbers = #tpu.dot_dimension_numbers<[1], [0], [0], [1], [0, 0, 1, 1], [], []>} : vector<64x128xbf16>, vector<128x128xbf16>, vector<64x128xf32> -> vector<64x128xf32>
      %174 = math.absf %173 : vector<64x128xf32>
      %cst_78 = arith.constant 0.707106769 : f32
      %175 = vector.broadcast %cst_78 : f32 to vector<64x128xf32>
      %176 = arith.mulf %174, %175 : vector<64x128xf32>
      %cst_79 = arith.constant 0.327591091 : f32
      %177 = vector.broadcast %cst_79 : f32 to vector<64x128xf32>
      %178 = arith.mulf %177, %176 : vector<64x128xf32>
      %cst_80 = arith.constant 1.000000e+00 : f32
      %179 = vector.broadcast %cst_80 : f32 to vector<64x128xf32>
      %180 = arith.addf %179, %178 : vector<64x128xf32>
      %cst_81 = arith.constant 1.000000e+00 : f32
      %181 = vector.broadcast %cst_81 : f32 to vector<64x128xf32>
      %182 = arith.divf %181, %180 : vector<64x128xf32>
      %cst_82 = arith.constant 1.06140542 : f32
      %183 = vector.broadcast %cst_82 : f32 to vector<64x128xf32>
      %184 = arith.mulf %183, %182 : vector<64x128xf32>
      %cst_83 = arith.constant 1.45315206 : f32
      %185 = vector.broadcast %cst_83 : f32 to vector<64x128xf32>
      %186 = arith.subf %184, %185 : vector<64x128xf32>
      %187 = arith.mulf %186, %182 : vector<64x128xf32>
      %cst_84 = arith.constant 1.42141378 : f32
      %188 = vector.broadcast %cst_84 : f32 to vector<64x128xf32>
      %189 = arith.addf %187, %188 : vector<64x128xf32>
      %190 = arith.mulf %189, %182 : vector<64x128xf32>
      %cst_85 = arith.constant 0.284496725 : f32
      %191 = vector.broadcast %cst_85 : f32 to vector<64x128xf32>
      %192 = arith.subf %190, %191 : vector<64x128xf32>
      %193 = arith.mulf %192, %182 : vector<64x128xf32>
      %cst_86 = arith.constant 0.254829586 : f32
      %194 = vector.broadcast %cst_86 : f32 to vector<64x128xf32>
      %195 = arith.addf %193, %194 : vector<64x128xf32>
      %196 = arith.mulf %195, %182 : vector<64x128xf32>
      %cst_87 = arith.constant 0.000000e+00 : f32
      %197 = vector.broadcast %cst_87 : f32 to vector<64x128xf32>
      %198 = arith.subf %197, %176 : vector<64x128xf32>
      %199 = arith.mulf %198, %176 : vector<64x128xf32>
      %200 = math.exp %199 : vector<64x128xf32>
      %201 = arith.mulf %196, %200 : vector<64x128xf32>
      %cst_88 = arith.constant 1.000000e+00 : f32
      %202 = vector.broadcast %cst_88 : f32 to vector<64x128xf32>
      %203 = arith.subf %202, %201 : vector<64x128xf32>
      %cst_89 = arith.constant 0.000000e+00 : f32
      %204 = vector.broadcast %cst_89 : f32 to vector<64x128xf32>
      %205 = arith.cmpf oge, %173, %204 : vector<64x128xf32>
      %cst_90 = arith.constant 0.000000e+00 : f32
      %206 = vector.broadcast %cst_90 : f32 to vector<64x128xf32>
      %207 = arith.subf %206, %203 : vector<64x128xf32>
      %208 = arith.select %205, %203, %207 : vector<64x128xi1>, vector<64x128xf32>
      %cst_91 = arith.constant 5.000000e-01 : f32
      %209 = vector.broadcast %cst_91 : f32 to vector<64x128xf32>
      %210 = arith.mulf %209, %173 : vector<64x128xf32>
      %cst_92 = arith.constant 1.000000e+00 : f32
      %211 = vector.broadcast %cst_92 : f32 to vector<64x128xf32>
      %212 = arith.addf %211, %208 : vector<64x128xf32>
      %213 = arith.mulf %210, %212 : vector<64x128xf32>
      %c0_93 = arith.constant 0 : index
      %c0_94 = arith.constant 0 : index
      %214 = vector.load %arg17[%c0_93, %c0_94] : memref<128x128xbf16, #tpu.memory_space<vmem>>, vector<128x128xbf16>
      %215 = arith.truncf %213 : vector<64x128xf32> to vector<64x128xbf16>
      %cst_95 = arith.constant dense<0.000000e+00> : vector<64x128xf32>
      %216 = tpu.matmul %215, %214, %cst_95 {dimension_numbers = #tpu.dot_dimension_numbers<[1], [0], [0], [1], [0, 0, 1, 1], [], []>} : vector<64x128xbf16>, vector<128x128xbf16>, vector<64x128xf32> -> vector<64x128xf32>
      %c0_96 = arith.constant 0 : index
      %c0_97 = arith.constant 0 : index
      %217 = vector.load %arg18[%c0_96, %c0_97] : memref<64x128xf32, #tpu.memory_space<vmem>>, vector<64x128xf32>
      tpu.vector_store %arg18[%c0_96, %c0_97], %216 {strides = array<i32>} : memref<64x128xf32, #tpu.memory_space<vmem>>, vector<64x128xf32>,
    } else {
    }
    return
  }
  func.func @transform_0(%arg0: i32) -> (i32, i32) {
    %c0_i32 = arith.constant 0 : i32
    %c0_i32_0 = arith.constant 0 : i32
    %c0_i32_1 = arith.constant 0 : i32
    return %c0_i32, %c0_i32_0 : i32, i32
  }
  func.func @transform_1(%arg0: i32) -> (i32, i32) {
    %c0_i32 = arith.constant 0 : i32
    %c0_i32_0 = arith.constant 0 : i32
    %c0_i32_1 = arith.constant 0 : i32
    return %c0_i32, %c0_i32_0 : i32, i32
  }
  func.func @transform_2(%arg0: i32) -> (i32, i32) {
    %c0_i32 = arith.constant 0 : i32
    %c0_i32_0 = arith.constant 0 : i32
    %c0_i32_1 = arith.constant 0 : i32
    return %c0_i32, %c0_i32_0 : i32, i32
  }
  func.func @transform_3(%arg0: i32) -> (i32, i32) {
    %c0_i32 = arith.constant 0 : i32
    %c0_i32_0 = arith.constant 0 : i32
    %c0_i32_1 = arith.constant 0 : i32
    return %c0_i32, %c0_i32_0 : i32, i32
  }
  func.func @transform_4(%arg0: i32) -> (i32, i32) {
    %c0_i32 = arith.constant 0 : i32
    %c0_i32_0 = arith.constant 0 : i32
    %c0_i32_1 = arith.constant 0 : i32
    return %c0_i32, %c0_i32_0 : i32, i32
  }
  func.func @transform_5(%arg0: i32) -> (i32, i32) {
    %c0_i32 = arith.constant 0 : i32
    %c0_i32_0 = arith.constant 0 : i32
    %c0_i32_1 = arith.constant 0 : i32
    return %c0_i32, %c0_i32_0 : i32, i32
  }
  func.func @transform_6(%arg0: i32) -> (i32, i32) {
    %c0_i32 = arith.constant 0 : i32
    %c0_i32_0 = arith.constant 0 : i32
    %c0_i32_1 = arith.constant 0 : i32
    return %c0_i32, %c0_i32_0 : i32, i32
  }
  func.func @transform_7(%arg0: i32) -> (i32, i32) {
    %c0_i32 = arith.constant 0 : i32
    %c0_i32_0 = arith.constant 0 : i32
    %c0_i32_1 = arith.constant 0 : i32
    return %c0_i32, %c0_i32_0 : i32, i32
  }
  func.func @transform_8(%arg0: i32) -> (i32, i32) {
    %c0_i32 = arith.constant 0 : i32
    %c0_i32_0 = arith.constant 0 : i32
    %c0_i32_1 = arith.constant 0 : i32
    return %c0_i32, %c0_i32_0 : i32, i32
  }
  func.func @transform_9(%arg0: i32) -> (i32, i32) {
    %c0_i32 = arith.constant 0 : i32
    %c0_i32_0 = arith.constant 0 : i32
    %c0_i32_1 = arith.constant 0 : i32
    return %c0_i32, %c0_i32_0 : i32, i32
  }
  func.func @transform_10(%arg0: i32) -> (i32, i32) {
    %c0_i32 = arith.constant 0 : i32
    %c0_i32_0 = arith.constant 0 : i32
    %c0_i32_1 = arith.constant 0 : i32
    return %c0_i32, %c0_i32_0 : i32, i32
  }
  func.func @transform_11(%arg0: i32) -> (i32, i32) {
    %c0_i32 = arith.constant 0 : i32
    %c0_i32_0 = arith.constant 0 : i32
    %c0_i32_1 = arith.constant 0 : i32
    return %c0_i32, %c0_i32_0 : i32, i32
  }
  func.func @transform_12(%arg0: i32) -> (i32, i32) {
    %c0_i32 = arith.constant 0 : i32
    %c0_i32_0 = arith.constant 0 : i32
    %c0_i32_1 = arith.constant 0 : i32
    return %c0_i32, %c0_i32_0 : i32, i32
  }
  func.func @transform_13(%arg0: i32) -> (i32, i32) {
    %c0_i32 = arith.constant 0 : i32
    %c0_i32_0 = arith.constant 0 : i32
    %c0_i32_1 = arith.constant 0 : i32
    return %c0_i32, %c0_i32_0 : i32, i32
  }
  func.func @transform_14(%arg0: i32) -> (i32, i32) {
    %c0_i32 = arith.constant 0 : i32
    %c0_i32_0 = arith.constant 0 : i32
    %c0_i32_1 = arith.constant 0 : i32
    return %c0_i32, %c0_i32_0 : i32, i32
  }
  func.func @transform_15(%arg0: i32) -> (i32, i32) {
    %c0_i32 = arith.constant 0 : i32
    %c0_i32_0 = arith.constant 0 : i32
    %c0_i32_1 = arith.constant 0 : i32
    return %c0_i32, %c0_i32_0 : i32, i32
  }
  func.func @transform_16(%arg0: i32) -> (i32, i32) {
    %c0_i32 = arith.constant 0 : i32
    %c0_i32_0 = arith.constant 0 : i32
    %c0_i32_1 = arith.constant 0 : i32
    return %c0_i32, %c0_i32_0 : i32, i32
  }
  func.func @transform_17(%arg0: i32) -> (i32, i32) {
    %c0_i32 = arith.constant 0 : i32
    %c0_i32_0 = arith.constant 0 : i32
    %c0_i32_1 = arith.constant 0 : i32
    return %c0_i32, %c0_i32_0 : i32, i32
  }
}

module attributes {stable_mosaic.version = 11 : i64} {
  func.func @_decoder_branch_kernel(%arg0: i32, %arg1: memref<64x128xf32, #tpu.memory_space<vmem>>, %arg2: memref<64x128xf32, #tpu.memory_space<vmem>>, %arg3: memref<64x128xf32, #tpu.memory_space<vmem>>, %arg4: memref<128x128xf32, #tpu.memory_space<vmem>>, %arg5: memref<128x128xbf16, #tpu.memory_space<vmem>>, %arg6: memref<1x128xf32, #tpu.memory_space<vmem>>, %arg7: memref<1x128xf32, #tpu.memory_space<vmem>>, %arg8: memref<128x384xbf16, #tpu.memory_space<vmem>>, %arg9: memref<1x384xf32, #tpu.memory_space<vmem>>, %arg10: memref<128x128xbf16, #tpu.memory_space<vmem>>, %arg11: memref<1x128xf32, #tpu.memory_space<vmem>>, %arg12: memref<128x128xbf16, #tpu.memory_space<vmem>>, %arg13: memref<1x128xf32, #tpu.memory_space<vmem>>, %arg14: memref<128x256xbf16, #tpu.memory_space<vmem>>, %arg15: memref<1x256xf32, #tpu.memory_space<vmem>>, %arg16: memref<128x128xbf16, #tpu.memory_space<vmem>>, %arg17: memref<1x128xf32, #tpu.memory_space<vmem>>, %arg18: memref<128x512xbf16, #tpu.memory_space<vmem>>, %arg19: memref<1x512xf32, #tpu.memory_space<vmem>>, %arg20: memref<512x128xbf16, #tpu.memory_space<vmem>>, %arg21: memref<1x128xf32, #tpu.memory_space<vmem>>, %arg22: memref<1x128xf32, #tpu.memory_space<vmem>>, %arg23: memref<1x128xf32, #tpu.memory_space<vmem>>, %arg24: memref<1x128xf32, #tpu.memory_space<vmem>>, %arg25: memref<1x128xf32, #tpu.memory_space<vmem>>, %arg26: memref<1x128xf32, #tpu.memory_space<vmem>>, %arg27: memref<1x128xf32, #tpu.memory_space<vmem>>, %arg28: memref<128x128xbf16, #tpu.memory_space<vmem>>, %arg29: memref<128x128xbf16, #tpu.memory_space<vmem>>, %arg30: memref<64x128xf32, #tpu.memory_space<vmem>>, %arg31: memref<64x128xf32, #tpu.memory_space<vmem>>, %arg32: memref<64x128xf32, #tpu.memory_space<vmem>>, %arg33: memref<64x256xf32, #tpu.memory_space<vmem>>) attributes {dimension_semantics = [#tpu.dimension_semantics<arbitrary>], iteration_bounds = array<i64: 2>, scalar_prefetch = 0 : i64, scratch_operands = 3 : i64, tpu.core_type = #tpu.core_type<tc>, window_params = [{pipeline_mode = #tpu.pipeline_mode<synchronous>, transform_indices = @transform_0, window_bounds = array<i64: 64, 128>}, {pipeline_mode = #tpu.pipeline_mode<synchronous>, transform_indices = @transform_1, window_bounds = array<i64: 64, 128>}, {pipeline_mode = #tpu.pipeline_mode<synchronous>, transform_indices = @transform_2, window_bounds = array<i64: 64, 128>}, {pipeline_mode = #tpu.pipeline_mode<synchronous>, transform_indices = @transform_3, window_bounds = array<i64: 128, 128>}, {pipeline_mode = #tpu.pipeline_mode<synchronous>, transform_indices = @transform_4, window_bounds = array<i64: 128, 128>}, {pipeline_mode = #tpu.pipeline_mode<synchronous>, transform_indices = @transform_5, window_bounds = array<i64: 1, 128>}, {pipeline_mode = #tpu.pipeline_mode<synchronous>, transform_indices = @transform_6, window_bounds = array<i64: 1, 128>}, {pipeline_mode = #tpu.pipeline_mode<synchronous>, transform_indices = @transform_7, window_bounds = array<i64: 128, 384>}, {pipeline_mode = #tpu.pipeline_mode<synchronous>, transform_indices = @transform_8, window_bounds = array<i64: 1, 384>}, {pipeline_mode = #tpu.pipeline_mode<synchronous>, transform_indices = @transform_9, window_bounds = array<i64: 128, 128>}, {pipeline_mode = #tpu.pipeline_mode<synchronous>, transform_indices = @transform_10, window_bounds = array<i64: 1, 128>}, {pipeline_mode = #tpu.pipeline_mode<synchronous>, transform_indices = @transform_11, window_bounds = array<i64: 128, 128>}, {pipeline_mode = #tpu.pipeline_mode<synchronous>, transform_indices = @transform_12, window_bounds = array<i64: 1, 128>}, {pipeline_mode = #tpu.pipeline_mode<synchronous>, transform_indices = @transform_13, window_bounds = array<i64: 128, 256>}, {pipeline_mode = #tpu.pipeline_mode<synchronous>, transform_indices = @transform_14, window_bounds = array<i64: 1, 256>}, {pipeline_mode = #tpu.pipeline_mode<synchronous>, transform_indices = @transform_15, window_bounds = array<i64: 128, 128>}, {pipeline_mode = #tpu.pipeline_mode<synchronous>, transform_indices = @transform_16, window_bounds = array<i64: 1, 128>}, {pipeline_mode = #tpu.pipeline_mode<synchronous>, transform_indices = @transform_17, window_bounds = array<i64: 128, 512>}, {pipeline_mode = #tpu.pipeline_mode<synchronous>, transform_indices = @transform_18, window_bounds = array<i64: 1, 512>}, {pipeline_mode = #tpu.pipeline_mode<synchronous>, transform_indices = @transform_19, window_bounds = array<i64: 512, 128>}, {pipeline_mode = #tpu.pipeline_mode<synchronous>, transform_indices = @transform_20, window_bounds = array<i64: 1, 128>}, {pipeline_mode = #tpu.pipeline_mode<synchronous>, transform_indices = @transform_21, window_bounds = array<i64: 1, 128>}, {pipeline_mode = #tpu.pipeline_mode<synchronous>, transform_indices = @transform_22, window_bounds = array<i64: 1, 128>}, {pipeline_mode = #tpu.pipeline_mode<synchronous>, transform_indices = @transform_23, window_bounds = array<i64: 1, 128>}, {pipeline_mode = #tpu.pipeline_mode<synchronous>, transform_indices = @transform_24, window_bounds = array<i64: 1, 128>}, {pipeline_mode = #tpu.pipeline_mode<synchronous>, transform_indices = @transform_25, window_bounds = array<i64: 1, 128>}, {pipeline_mode = #tpu.pipeline_mode<synchronous>, transform_indices = @transform_26, window_bounds = array<i64: 1, 128>}, {pipeline_mode = #tpu.pipeline_mode<synchronous>, transform_indices = @transform_27, window_bounds = array<i64: 128, 128>}, {pipeline_mode = #tpu.pipeline_mode<synchronous>, transform_indices = @transform_28, window_bounds = array<i64: 128, 128>}, {pipeline_mode = #tpu.pipeline_mode<synchronous>, transform_indices = @transform_29, window_bounds = array<i64: 64, 128>}]} {
    %c0 = arith.constant 0 : index
    %c0_0 = arith.constant 0 : index
    %0 = vector.load %arg4[%c0, %c0_0] : memref<128x128xf32, #tpu.memory_space<vmem>>, vector<128x128xf32>
    %1 = arith.truncf %0 : vector<128x128xf32> to vector<128x128xbf16>
    %c0_i32 = arith.constant 0 : i32
    %2 = arith.cmpi eq, %arg0, %c0_i32 : i32
    %3 = arith.extui %2 : i1 to i32
    %c0_i32_1 = arith.constant 0 : i32
    %4 = arith.cmpi ne, %3, %c0_i32_1 : i32
    scf.if %4 {
      %c0_102 = arith.constant 0 : index
      %c0_103 = arith.constant 0 : index
      %248 = vector.load %arg1[%c0_102, %c0_103] : memref<64x128xf32, #tpu.memory_space<vmem>>, vector<64x128xf32>
      %c0_104 = arith.constant 0 : index
      %c0_105 = arith.constant 0 : index
      %249 = vector.load %arg5[%c0_104, %c0_105] : memref<128x128xbf16, #tpu.memory_space<vmem>>, vector<128x128xbf16>
      %250 = arith.truncf %248 : vector<64x128xf32> to vector<64x128xbf16>
      %cst_106 = arith.constant dense<0.000000e+00> : vector<64x128xf32>
      %251 = tpu.matmul %250, %249, %cst_106 {dimension_numbers = #tpu.dot_dimension_numbers<[1], [0], [0], [1], [0, 0, 1, 1], [], []>} : vector<64x128xbf16>, vector<128x128xbf16>, vector<64x128xf32> -> vector<64x128xf32>
      %c0_107 = arith.constant 0 : index
      %c0_108 = arith.constant 0 : index
      %252 = vector.load %arg6[%c0_107, %c0_108] : memref<1x128xf32, #tpu.memory_space<vmem>>, vector<1x128xf32>
      %c0_109 = arith.constant 0 : index
      %c0_110 = arith.constant 0 : index
      %253 = vector.load %arg7[%c0_109, %c0_110] : memref<1x128xf32, #tpu.memory_space<vmem>>, vector<1x128xf32>
      %cst_111 = arith.constant dense<0.000000e+00> : vector<64xf32>
      %254 = vector.multi_reduction <add>, %251, %cst_111 [1] : vector<64x128xf32> to vector<64xf32>
      %255 = vector.shape_cast %254 : vector<64xf32> to vector<64x1xf32>
      %cst_112 = arith.constant 1.280000e+02 : f32
      %256 = vector.broadcast %cst_112 : f32 to vector<64x1xf32>
      %257 = arith.divf %255, %256 : vector<64x1xf32>
      %258 = vector.broadcast %257 : vector<64x1xf32> to vector<64x128xf32>
      %259 = arith.subf %251, %258 : vector<64x128xf32>
      %260 = arith.mulf %259, %259 : vector<64x128xf32>
      %cst_113 = arith.constant dense<0.000000e+00> : vector<64xf32>
      %261 = vector.multi_reduction <add>, %260, %cst_113 [1] : vector<64x128xf32> to vector<64xf32>
      %262 = vector.shape_cast %261 : vector<64xf32> to vector<64x1xf32>
      %cst_114 = arith.constant 1.280000e+02 : f32
      %263 = vector.broadcast %cst_114 : f32 to vector<64x1xf32>
      %264 = arith.divf %262, %263 : vector<64x1xf32>
      %cst_115 = arith.constant 9.99999997E-7 : f32
      %265 = vector.broadcast %cst_115 : f32 to vector<64x1xf32>
      %266 = arith.addf %264, %265 : vector<64x1xf32>
      %267 = math.rsqrt %266 : vector<64x1xf32>
      %268 = vector.broadcast %267 : vector<64x1xf32> to vector<64x128xf32>
      %269 = arith.mulf %259, %268 : vector<64x128xf32>
      %270 = vector.broadcast %252 : vector<1x128xf32> to vector<64x128xf32>
      %271 = arith.mulf %269, %270 : vector<64x128xf32>
      %272 = vector.broadcast %253 : vector<1x128xf32> to vector<64x128xf32>
      %273 = arith.addf %271, %272 : vector<64x128xf32>
      %c0_116 = arith.constant 0 : index
      %c0_117 = arith.constant 0 : index
      %274 = vector.load %arg3[%c0_116, %c0_117] : memref<64x128xf32, #tpu.memory_space<vmem>>, vector<64x128xf32>
      %275 = arith.addf %273, %274 : vector<64x128xf32>
      %c0_118 = arith.constant 0 : index
      %c0_119 = arith.constant 0 : index
      %276 = vector.load %arg14[%c0_118, %c0_119] : memref<128x256xbf16, #tpu.memory_space<vmem>>, vector<128x256xbf16>
      %277 = arith.truncf %275 : vector<64x128xf32> to vector<64x128xbf16>
      %cst_120 = arith.constant dense<0.000000e+00> : vector<64x256xf32>
      %278 = tpu.matmul %277, %276, %cst_120 {dimension_numbers = #tpu.dot_dimension_numbers<[1], [0], [0], [1], [0, 0, 1, 1], [], []>} : vector<64x128xbf16>, vector<128x256xbf16>, vector<64x256xf32> -> vector<64x256xf32>
      %c0_121 = arith.constant 0 : index
      %c0_122 = arith.constant 0 : index
      %279 = vector.load %arg15[%c0_121, %c0_122] : memref<1x256xf32, #tpu.memory_space<vmem>>, vector<1x256xf32>
      %280 = vector.broadcast %279 : vector<1x256xf32> to vector<64x256xf32>
      %281 = arith.addf %278, %280 : vector<64x256xf32>
      %c0_123 = arith.constant 0 : index
      %c0_124 = arith.constant 0 : index
      %282 = vector.load %arg33[%c0_123, %c0_124] : memref<64x256xf32, #tpu.memory_space<vmem>>, vector<64x256xf32>
      tpu.vector_store %arg33[%c0_123, %c0_124], %281 {strides = array<i32>} : memref<64x256xf32, #tpu.memory_space<vmem>>, vector<64x256xf32>,
      %c0_125 = arith.constant 0 : index
      %c0_126 = arith.constant 0 : index
      %283 = vector.load %arg2[%c0_125, %c0_126] : memref<64x128xf32, #tpu.memory_space<vmem>>, vector<64x128xf32>
      %c0_127 = arith.constant 0 : index
      %c0_128 = arith.constant 0 : index
      %284 = vector.load %arg31[%c0_127, %c0_128] : memref<64x128xf32, #tpu.memory_space<vmem>>, vector<64x128xf32>
      tpu.vector_store %arg31[%c0_127, %c0_128], %283 {strides = array<i32>} : memref<64x128xf32, #tpu.memory_space<vmem>>, vector<64x128xf32>,
      %cst_129 = arith.constant 0.000000e+00 : f32
      %285 = vector.broadcast %cst_129 : f32 to vector<64x128xf32>
      %c0_130 = arith.constant 0 : index
      %c0_131 = arith.constant 0 : index
      %286 = vector.load %arg32[%c0_130, %c0_131] : memref<64x128xf32, #tpu.memory_space<vmem>>, vector<64x128xf32>
      tpu.vector_store %arg32[%c0_130, %c0_131], %285 {strides = array<i32>} : memref<64x128xf32, #tpu.memory_space<vmem>>, vector<64x128xf32>,
    } else {
    }
    %c0_2 = arith.constant 0 : index
    %c0_3 = arith.constant 0 : index
    %5 = vector.load %arg31[%c0_2, %c0_3] : memref<64x128xf32, #tpu.memory_space<vmem>>, vector<64x128xf32>
    %c0_4 = arith.constant 0 : index
    %c0_5 = arith.constant 0 : index
    %6 = vector.load %arg8[%c0_4, %c0_5] : memref<128x384xbf16, #tpu.memory_space<vmem>>, vector<128x384xbf16>
    %7 = arith.truncf %5 : vector<64x128xf32> to vector<64x128xbf16>
    %cst = arith.constant dense<0.000000e+00> : vector<64x384xf32>
    %8 = tpu.matmul %7, %6, %cst {dimension_numbers = #tpu.dot_dimension_numbers<[1], [0], [0], [1], [0, 0, 1, 1], [], []>} : vector<64x128xbf16>, vector<128x384xbf16>, vector<64x384xf32> -> vector<64x384xf32>
    %c0_6 = arith.constant 0 : index
    %c0_7 = arith.constant 0 : index
    %9 = vector.load %arg9[%c0_6, %c0_7] : memref<1x384xf32, #tpu.memory_space<vmem>>, vector<1x384xf32>
    %10 = vector.broadcast %9 : vector<1x384xf32> to vector<64x384xf32>
    %11 = arith.addf %8, %10 : vector<64x384xf32>
    %12 = vector.extract_strided_slice %11 {offsets = [0, 0], sizes = [64, 128], strides = [1, 1]} : vector<64x384xf32> to vector<64x128xf32>
    %13 = vector.extract_strided_slice %11 {offsets = [0, 128], sizes = [64, 128], strides = [1, 1]} : vector<64x384xf32> to vector<64x128xf32>
    %14 = vector.extract_strided_slice %11 {offsets = [0, 256], sizes = [64, 128], strides = [1, 1]} : vector<64x384xf32> to vector<64x128xf32>
    %cst_8 = arith.constant 0.176776692 : f32
    %15 = vector.broadcast %cst_8 : f32 to vector<64x128xf32>
    %16 = arith.mulf %12, %15 : vector<64x128xf32>
    %17 = arith.truncf %16 : vector<64x128xf32> to vector<64x128xbf16>
    %18 = arith.truncf %13 : vector<64x128xf32> to vector<64x128xbf16>
    %19 = arith.truncf %14 : vector<64x128xf32> to vector<64x128xbf16>
    %20 = vector.extract_strided_slice %17 {offsets = [0, 0], sizes = [32, 128], strides = [1, 1]} : vector<64x128xbf16> to vector<32x128xbf16>
    %21 = vector.extract_strided_slice %18 {offsets = [0, 0], sizes = [32, 128], strides = [1, 1]} : vector<64x128xbf16> to vector<32x128xbf16>
    %22 = vector.extract_strided_slice %19 {offsets = [0, 0], sizes = [32, 128], strides = [1, 1]} : vector<64x128xbf16> to vector<32x128xbf16>
    %23 = tpu.concatenate %21, %21, %21, %21 in 0 : vector<32x128xbf16>, vector<32x128xbf16>, vector<32x128xbf16>, vector<32x128xbf16> -> vector<128x128xbf16>
    %24 = arith.mulf %23, %1 : vector<128x128xbf16>
    %25 = tpu.concatenate %22, %22, %22, %22 in 0 : vector<32x128xbf16>, vector<32x128xbf16>, vector<32x128xbf16>, vector<32x128xbf16> -> vector<128x128xbf16>
    %26 = arith.mulf %25, %1 : vector<128x128xbf16>
    %cst_9 = arith.constant dense<0.000000e+00> : vector<32x128xf32>
    %27 = tpu.matmul %20, %24, %cst_9 {dimension_numbers = #tpu.dot_dimension_numbers<[1], [1], [0], [0], [0, 0, 1, 0], [], []>} : vector<32x128xbf16>, vector<128x128xbf16>, vector<32x128xf32> -> vector<32x128xf32>
    %cst_10 = arith.constant dense<0xFF800000> : vector<32xf32>
    %28 = vector.multi_reduction <maximumf>, %27, %cst_10 [1] : vector<32x128xf32> to vector<32xf32>
    %29 = vector.shape_cast %28 : vector<32xf32> to vector<32x1xf32>
    %30 = vector.broadcast %29 : vector<32x1xf32> to vector<32x128xf32>
    %31 = arith.subf %27, %30 : vector<32x128xf32>
    %32 = math.exp %31 : vector<32x128xf32>
    %33 = arith.truncf %32 : vector<32x128xf32> to vector<32x128xbf16>
    %cst_11 = arith.constant dense<0.000000e+00> : vector<32x128xf32>
    %34 = tpu.matmul %33, %26, %cst_11 {dimension_numbers = #tpu.dot_dimension_numbers<[1], [0], [0], [1], [0, 0, 1, 1], [], []>} : vector<32x128xbf16>, vector<128x128xbf16>, vector<32x128xf32> -> vector<32x128xf32>
    %cst_12 = arith.constant dense<0.000000e+00> : vector<32x128xf32>
    %35 = tpu.matmul %32, %0, %cst_12 {dimension_numbers = #tpu.dot_dimension_numbers<[1], [0], [0], [1], [0, 0, 1, 1], [], []>} : vector<32x128xf32>, vector<128x128xf32>, vector<32x128xf32> -> vector<32x128xf32>
    %36 = tpu.reciprocal %35 {approx = true} : vector<32x128xf32> -> vector<32x128xf32>
    %37 = arith.mulf %34, %36 : vector<32x128xf32>
    %38 = vector.extract_strided_slice %17 {offsets = [32, 0], sizes = [32, 128], strides = [1, 1]} : vector<64x128xbf16> to vector<32x128xbf16>
    %39 = vector.extract_strided_slice %18 {offsets = [32, 0], sizes = [32, 128], strides = [1, 1]} : vector<64x128xbf16> to vector<32x128xbf16>
    %40 = vector.extract_strided_slice %19 {offsets = [32, 0], sizes = [32, 128], strides = [1, 1]} : vector<64x128xbf16> to vector<32x128xbf16>
    %41 = tpu.concatenate %39, %39, %39, %39 in 0 : vector<32x128xbf16>, vector<32x128xbf16>, vector<32x128xbf16>, vector<32x128xbf16> -> vector<128x128xbf16>
    %42 = arith.mulf %41, %1 : vector<128x128xbf16>
    %43 = tpu.concatenate %40, %40, %40, %40 in 0 : vector<32x128xbf16>, vector<32x128xbf16>, vector<32x128xbf16>, vector<32x128xbf16> -> vector<128x128xbf16>
    %44 = arith.mulf %43, %1 : vector<128x128xbf16>
    %cst_13 = arith.constant dense<0.000000e+00> : vector<32x128xf32>
    %45 = tpu.matmul %38, %42, %cst_13 {dimension_numbers = #tpu.dot_dimension_numbers<[1], [1], [0], [0], [0, 0, 1, 0], [], []>} : vector<32x128xbf16>, vector<128x128xbf16>, vector<32x128xf32> -> vector<32x128xf32>
    %cst_14 = arith.constant dense<0xFF800000> : vector<32xf32>
    %46 = vector.multi_reduction <maximumf>, %45, %cst_14 [1] : vector<32x128xf32> to vector<32xf32>
    %47 = vector.shape_cast %46 : vector<32xf32> to vector<32x1xf32>
    %48 = vector.broadcast %47 : vector<32x1xf32> to vector<32x128xf32>
    %49 = arith.subf %45, %48 : vector<32x128xf32>
    %50 = math.exp %49 : vector<32x128xf32>
    %51 = arith.truncf %50 : vector<32x128xf32> to vector<32x128xbf16>
    %cst_15 = arith.constant dense<0.000000e+00> : vector<32x128xf32>
    %52 = tpu.matmul %51, %44, %cst_15 {dimension_numbers = #tpu.dot_dimension_numbers<[1], [0], [0], [1], [0, 0, 1, 1], [], []>} : vector<32x128xbf16>, vector<128x128xbf16>, vector<32x128xf32> -> vector<32x128xf32>
    %cst_16 = arith.constant dense<0.000000e+00> : vector<32x128xf32>
    %53 = tpu.matmul %50, %0, %cst_16 {dimension_numbers = #tpu.dot_dimension_numbers<[1], [0], [0], [1], [0, 0, 1, 1], [], []>} : vector<32x128xf32>, vector<128x128xf32>, vector<32x128xf32> -> vector<32x128xf32>
    %54 = tpu.reciprocal %53 {approx = true} : vector<32x128xf32> -> vector<32x128xf32>
    %55 = arith.mulf %52, %54 : vector<32x128xf32>
    %56 = tpu.concatenate %37, %55 in 0 : vector<32x128xf32>, vector<32x128xf32> -> vector<64x128xf32>
    %c0_17 = arith.constant 0 : index
    %c0_18 = arith.constant 0 : index
    %57 = vector.load %arg10[%c0_17, %c0_18] : memref<128x128xbf16, #tpu.memory_space<vmem>>, vector<128x128xbf16>
    %58 = arith.truncf %56 : vector<64x128xf32> to vector<64x128xbf16>
    %cst_19 = arith.constant dense<0.000000e+00> : vector<64x128xf32>
    %59 = tpu.matmul %58, %57, %cst_19 {dimension_numbers = #tpu.dot_dimension_numbers<[1], [0], [0], [1], [0, 0, 1, 1], [], []>} : vector<64x128xbf16>, vector<128x128xbf16>, vector<64x128xf32> -> vector<64x128xf32>
    %c0_20 = arith.constant 0 : index
    %c0_21 = arith.constant 0 : index
    %60 = vector.load %arg11[%c0_20, %c0_21] : memref<1x128xf32, #tpu.memory_space<vmem>>, vector<1x128xf32>
    %61 = vector.broadcast %60 : vector<1x128xf32> to vector<64x128xf32>
    %62 = arith.addf %59, %61 : vector<64x128xf32>
    %63 = arith.addf %5, %62 : vector<64x128xf32>
    %c0_22 = arith.constant 0 : index
    %c0_23 = arith.constant 0 : index
    %64 = vector.load %arg22[%c0_22, %c0_23] : memref<1x128xf32, #tpu.memory_space<vmem>>, vector<1x128xf32>
    %c0_24 = arith.constant 0 : index
    %c0_25 = arith.constant 0 : index
    %65 = vector.load %arg23[%c0_24, %c0_25] : memref<1x128xf32, #tpu.memory_space<vmem>>, vector<1x128xf32>
    %cst_26 = arith.constant dense<0.000000e+00> : vector<64xf32>
    %66 = vector.multi_reduction <add>, %63, %cst_26 [1] : vector<64x128xf32> to vector<64xf32>
    %67 = vector.shape_cast %66 : vector<64xf32> to vector<64x1xf32>
    %cst_27 = arith.constant 1.280000e+02 : f32
    %68 = vector.broadcast %cst_27 : f32 to vector<64x1xf32>
    %69 = arith.divf %67, %68 : vector<64x1xf32>
    %70 = vector.broadcast %69 : vector<64x1xf32> to vector<64x128xf32>
    %71 = arith.subf %63, %70 : vector<64x128xf32>
    %72 = arith.mulf %71, %71 : vector<64x128xf32>
    %cst_28 = arith.constant dense<0.000000e+00> : vector<64xf32>
    %73 = vector.multi_reduction <add>, %72, %cst_28 [1] : vector<64x128xf32> to vector<64xf32>
    %74 = vector.shape_cast %73 : vector<64xf32> to vector<64x1xf32>
    %cst_29 = arith.constant 1.280000e+02 : f32
    %75 = vector.broadcast %cst_29 : f32 to vector<64x1xf32>
    %76 = arith.divf %74, %75 : vector<64x1xf32>
    %cst_30 = arith.constant 9.99999974E-6 : f32
    %77 = vector.broadcast %cst_30 : f32 to vector<64x1xf32>
    %78 = arith.addf %76, %77 : vector<64x1xf32>
    %79 = math.rsqrt %78 : vector<64x1xf32>
    %80 = vector.broadcast %79 : vector<64x1xf32> to vector<64x128xf32>
    %81 = arith.mulf %71, %80 : vector<64x128xf32>
    %82 = vector.broadcast %64 : vector<1x128xf32> to vector<64x128xf32>
    %83 = arith.mulf %81, %82 : vector<64x128xf32>
    %84 = vector.broadcast %65 : vector<1x128xf32> to vector<64x128xf32>
    %85 = arith.addf %83, %84 : vector<64x128xf32>
    %c0_31 = arith.constant 0 : index
    %c0_32 = arith.constant 0 : index
    %86 = vector.load %arg12[%c0_31, %c0_32] : memref<128x128xbf16, #tpu.memory_space<vmem>>, vector<128x128xbf16>
    %87 = arith.truncf %85 : vector<64x128xf32> to vector<64x128xbf16>
    %cst_33 = arith.constant dense<0.000000e+00> : vector<64x128xf32>
    %88 = tpu.matmul %87, %86, %cst_33 {dimension_numbers = #tpu.dot_dimension_numbers<[1], [0], [0], [1], [0, 0, 1, 1], [], []>} : vector<64x128xbf16>, vector<128x128xbf16>, vector<64x128xf32> -> vector<64x128xf32>
    %c0_34 = arith.constant 0 : index
    %c0_35 = arith.constant 0 : index
    %89 = vector.load %arg13[%c0_34, %c0_35] : memref<1x128xf32, #tpu.memory_space<vmem>>, vector<1x128xf32>
    %90 = vector.broadcast %89 : vector<1x128xf32> to vector<64x128xf32>
    %91 = arith.addf %88, %90 : vector<64x128xf32>
    %c0_36 = arith.constant 0 : index
    %c0_37 = arith.constant 0 : index
    %92 = vector.load %arg33[%c0_36, %c0_37] : memref<64x256xf32, #tpu.memory_space<vmem>>, vector<64x256xf32>
    %93 = vector.extract_strided_slice %92 {offsets = [0, 0], sizes = [64, 128], strides = [1, 1]} : vector<64x256xf32> to vector<64x128xf32>
    %94 = vector.extract_strided_slice %92 {offsets = [0, 128], sizes = [64, 128], strides = [1, 1]} : vector<64x256xf32> to vector<64x128xf32>
    %cst_38 = arith.constant 0.176776692 : f32
    %95 = vector.broadcast %cst_38 : f32 to vector<64x128xf32>
    %96 = arith.mulf %91, %95 : vector<64x128xf32>
    %97 = arith.truncf %96 : vector<64x128xf32> to vector<64x128xbf16>
    %98 = arith.truncf %93 : vector<64x128xf32> to vector<64x128xbf16>
    %99 = arith.truncf %94 : vector<64x128xf32> to vector<64x128xbf16>
    %100 = vector.extract_strided_slice %97 {offsets = [0, 0], sizes = [32, 128], strides = [1, 1]} : vector<64x128xbf16> to vector<32x128xbf16>
    %101 = vector.extract_strided_slice %98 {offsets = [0, 0], sizes = [32, 128], strides = [1, 1]} : vector<64x128xbf16> to vector<32x128xbf16>
    %102 = vector.extract_strided_slice %99 {offsets = [0, 0], sizes = [32, 128], strides = [1, 1]} : vector<64x128xbf16> to vector<32x128xbf16>
    %103 = tpu.concatenate %101, %101, %101, %101 in 0 : vector<32x128xbf16>, vector<32x128xbf16>, vector<32x128xbf16>, vector<32x128xbf16> -> vector<128x128xbf16>
    %104 = arith.mulf %103, %1 : vector<128x128xbf16>
    %105 = tpu.concatenate %102, %102, %102, %102 in 0 : vector<32x128xbf16>, vector<32x128xbf16>, vector<32x128xbf16>, vector<32x128xbf16> -> vector<128x128xbf16>
    %106 = arith.mulf %105, %1 : vector<128x128xbf16>
    %cst_39 = arith.constant dense<0.000000e+00> : vector<32x128xf32>
    %107 = tpu.matmul %100, %104, %cst_39 {dimension_numbers = #tpu.dot_dimension_numbers<[1], [1], [0], [0], [0, 0, 1, 0], [], []>} : vector<32x128xbf16>, vector<128x128xbf16>, vector<32x128xf32> -> vector<32x128xf32>
    %cst_40 = arith.constant dense<0xFF800000> : vector<32xf32>
    %108 = vector.multi_reduction <maximumf>, %107, %cst_40 [1] : vector<32x128xf32> to vector<32xf32>
    %109 = vector.shape_cast %108 : vector<32xf32> to vector<32x1xf32>
    %110 = vector.broadcast %109 : vector<32x1xf32> to vector<32x128xf32>
    %111 = arith.subf %107, %110 : vector<32x128xf32>
    %112 = math.exp %111 : vector<32x128xf32>
    %113 = arith.truncf %112 : vector<32x128xf32> to vector<32x128xbf16>
    %cst_41 = arith.constant dense<0.000000e+00> : vector<32x128xf32>
    %114 = tpu.matmul %113, %106, %cst_41 {dimension_numbers = #tpu.dot_dimension_numbers<[1], [0], [0], [1], [0, 0, 1, 1], [], []>} : vector<32x128xbf16>, vector<128x128xbf16>, vector<32x128xf32> -> vector<32x128xf32>
    %cst_42 = arith.constant dense<0.000000e+00> : vector<32x128xf32>
    %115 = tpu.matmul %112, %0, %cst_42 {dimension_numbers = #tpu.dot_dimension_numbers<[1], [0], [0], [1], [0, 0, 1, 1], [], []>} : vector<32x128xf32>, vector<128x128xf32>, vector<32x128xf32> -> vector<32x128xf32>
    %116 = tpu.reciprocal %115 {approx = true} : vector<32x128xf32> -> vector<32x128xf32>
    %117 = arith.mulf %114, %116 : vector<32x128xf32>
    %118 = vector.extract_strided_slice %97 {offsets = [32, 0], sizes = [32, 128], strides = [1, 1]} : vector<64x128xbf16> to vector<32x128xbf16>
    %119 = vector.extract_strided_slice %98 {offsets = [32, 0], sizes = [32, 128], strides = [1, 1]} : vector<64x128xbf16> to vector<32x128xbf16>
    %120 = vector.extract_strided_slice %99 {offsets = [32, 0], sizes = [32, 128], strides = [1, 1]} : vector<64x128xbf16> to vector<32x128xbf16>
    %121 = tpu.concatenate %119, %119, %119, %119 in 0 : vector<32x128xbf16>, vector<32x128xbf16>, vector<32x128xbf16>, vector<32x128xbf16> -> vector<128x128xbf16>
    %122 = arith.mulf %121, %1 : vector<128x128xbf16>
    %123 = tpu.concatenate %120, %120, %120, %120 in 0 : vector<32x128xbf16>, vector<32x128xbf16>, vector<32x128xbf16>, vector<32x128xbf16> -> vector<128x128xbf16>
    %124 = arith.mulf %123, %1 : vector<128x128xbf16>
    %cst_43 = arith.constant dense<0.000000e+00> : vector<32x128xf32>
    %125 = tpu.matmul %118, %122, %cst_43 {dimension_numbers = #tpu.dot_dimension_numbers<[1], [1], [0], [0], [0, 0, 1, 0], [], []>} : vector<32x128xbf16>, vector<128x128xbf16>, vector<32x128xf32> -> vector<32x128xf32>
    %cst_44 = arith.constant dense<0xFF800000> : vector<32xf32>
    %126 = vector.multi_reduction <maximumf>, %125, %cst_44 [1] : vector<32x128xf32> to vector<32xf32>
    %127 = vector.shape_cast %126 : vector<32xf32> to vector<32x1xf32>
    %128 = vector.broadcast %127 : vector<32x1xf32> to vector<32x128xf32>
    %129 = arith.subf %125, %128 : vector<32x128xf32>
    %130 = math.exp %129 : vector<32x128xf32>
    %131 = arith.truncf %130 : vector<32x128xf32> to vector<32x128xbf16>
    %cst_45 = arith.constant dense<0.000000e+00> : vector<32x128xf32>
    %132 = tpu.matmul %131, %124, %cst_45 {dimension_numbers = #tpu.dot_dimension_numbers<[1], [0], [0], [1], [0, 0, 1, 1], [], []>} : vector<32x128xbf16>, vector<128x128xbf16>, vector<32x128xf32> -> vector<32x128xf32>
    %cst_46 = arith.constant dense<0.000000e+00> : vector<32x128xf32>
    %133 = tpu.matmul %130, %0, %cst_46 {dimension_numbers = #tpu.dot_dimension_numbers<[1], [0], [0], [1], [0, 0, 1, 1], [], []>} : vector<32x128xf32>, vector<128x128xf32>, vector<32x128xf32> -> vector<32x128xf32>
    %134 = tpu.reciprocal %133 {approx = true} : vector<32x128xf32> -> vector<32x128xf32>
    %135 = arith.mulf %132, %134 : vector<32x128xf32>
    %136 = tpu.concatenate %117, %135 in 0 : vector<32x128xf32>, vector<32x128xf32> -> vector<64x128xf32>
    %c0_47 = arith.constant 0 : index
    %c0_48 = arith.constant 0 : index
    %137 = vector.load %arg16[%c0_47, %c0_48] : memref<128x128xbf16, #tpu.memory_space<vmem>>, vector<128x128xbf16>
    %138 = arith.truncf %136 : vector<64x128xf32> to vector<64x128xbf16>
    %cst_49 = arith.constant dense<0.000000e+00> : vector<64x128xf32>
    %139 = tpu.matmul %138, %137, %cst_49 {dimension_numbers = #tpu.dot_dimension_numbers<[1], [0], [0], [1], [0, 0, 1, 1], [], []>} : vector<64x128xbf16>, vector<128x128xbf16>, vector<64x128xf32> -> vector<64x128xf32>
    %c0_50 = arith.constant 0 : index
    %c0_51 = arith.constant 0 : index
    %140 = vector.load %arg17[%c0_50, %c0_51] : memref<1x128xf32, #tpu.memory_space<vmem>>, vector<1x128xf32>
    %141 = vector.broadcast %140 : vector<1x128xf32> to vector<64x128xf32>
    %142 = arith.addf %139, %141 : vector<64x128xf32>
    %143 = arith.addf %85, %142 : vector<64x128xf32>
    %c0_52 = arith.constant 0 : index
    %c0_53 = arith.constant 0 : index
    %144 = vector.load %arg24[%c0_52, %c0_53] : memref<1x128xf32, #tpu.memory_space<vmem>>, vector<1x128xf32>
    %c0_54 = arith.constant 0 : index
    %c0_55 = arith.constant 0 : index
    %145 = vector.load %arg25[%c0_54, %c0_55] : memref<1x128xf32, #tpu.memory_space<vmem>>, vector<1x128xf32>
    %cst_56 = arith.constant dense<0.000000e+00> : vector<64xf32>
    %146 = vector.multi_reduction <add>, %143, %cst_56 [1] : vector<64x128xf32> to vector<64xf32>
    %147 = vector.shape_cast %146 : vector<64xf32> to vector<64x1xf32>
    %cst_57 = arith.constant 1.280000e+02 : f32
    %148 = vector.broadcast %cst_57 : f32 to vector<64x1xf32>
    %149 = arith.divf %147, %148 : vector<64x1xf32>
    %150 = vector.broadcast %149 : vector<64x1xf32> to vector<64x128xf32>
    %151 = arith.subf %143, %150 : vector<64x128xf32>
    %152 = arith.mulf %151, %151 : vector<64x128xf32>
    %cst_58 = arith.constant dense<0.000000e+00> : vector<64xf32>
    %153 = vector.multi_reduction <add>, %152, %cst_58 [1] : vector<64x128xf32> to vector<64xf32>
    %154 = vector.shape_cast %153 : vector<64xf32> to vector<64x1xf32>
    %cst_59 = arith.constant 1.280000e+02 : f32
    %155 = vector.broadcast %cst_59 : f32 to vector<64x1xf32>
    %156 = arith.divf %154, %155 : vector<64x1xf32>
    %cst_60 = arith.constant 9.99999974E-6 : f32
    %157 = vector.broadcast %cst_60 : f32 to vector<64x1xf32>
    %158 = arith.addf %156, %157 : vector<64x1xf32>
    %159 = math.rsqrt %158 : vector<64x1xf32>
    %160 = vector.broadcast %159 : vector<64x1xf32> to vector<64x128xf32>
    %161 = arith.mulf %151, %160 : vector<64x128xf32>
    %162 = vector.broadcast %144 : vector<1x128xf32> to vector<64x128xf32>
    %163 = arith.mulf %161, %162 : vector<64x128xf32>
    %164 = vector.broadcast %145 : vector<1x128xf32> to vector<64x128xf32>
    %165 = arith.addf %163, %164 : vector<64x128xf32>
    %c0_61 = arith.constant 0 : index
    %c0_62 = arith.constant 0 : index
    %166 = vector.load %arg18[%c0_61, %c0_62] : memref<128x512xbf16, #tpu.memory_space<vmem>>, vector<128x512xbf16>
    %167 = arith.truncf %165 : vector<64x128xf32> to vector<64x128xbf16>
    %cst_63 = arith.constant dense<0.000000e+00> : vector<64x512xf32>
    %168 = tpu.matmul %167, %166, %cst_63 {dimension_numbers = #tpu.dot_dimension_numbers<[1], [0], [0], [1], [0, 0, 1, 1], [], []>} : vector<64x128xbf16>, vector<128x512xbf16>, vector<64x512xf32> -> vector<64x512xf32>
    %c0_64 = arith.constant 0 : index
    %c0_65 = arith.constant 0 : index
    %169 = vector.load %arg19[%c0_64, %c0_65] : memref<1x512xf32, #tpu.memory_space<vmem>>, vector<1x512xf32>
    %170 = vector.broadcast %169 : vector<1x512xf32> to vector<64x512xf32>
    %171 = arith.addf %168, %170 : vector<64x512xf32>
    %172 = math.absf %171 : vector<64x512xf32>
    %cst_66 = arith.constant 0.707106769 : f32
    %173 = vector.broadcast %cst_66 : f32 to vector<64x512xf32>
    %174 = arith.mulf %172, %173 : vector<64x512xf32>
    %cst_67 = arith.constant 0.327591091 : f32
    %175 = vector.broadcast %cst_67 : f32 to vector<64x512xf32>
    %176 = arith.mulf %175, %174 : vector<64x512xf32>
    %cst_68 = arith.constant 1.000000e+00 : f32
    %177 = vector.broadcast %cst_68 : f32 to vector<64x512xf32>
    %178 = arith.addf %177, %176 : vector<64x512xf32>
    %cst_69 = arith.constant 1.000000e+00 : f32
    %179 = vector.broadcast %cst_69 : f32 to vector<64x512xf32>
    %180 = arith.divf %179, %178 : vector<64x512xf32>
    %cst_70 = arith.constant 1.06140542 : f32
    %181 = vector.broadcast %cst_70 : f32 to vector<64x512xf32>
    %182 = arith.mulf %181, %180 : vector<64x512xf32>
    %cst_71 = arith.constant 1.45315206 : f32
    %183 = vector.broadcast %cst_71 : f32 to vector<64x512xf32>
    %184 = arith.subf %182, %183 : vector<64x512xf32>
    %185 = arith.mulf %184, %180 : vector<64x512xf32>
    %cst_72 = arith.constant 1.42141378 : f32
    %186 = vector.broadcast %cst_72 : f32 to vector<64x512xf32>
    %187 = arith.addf %185, %186 : vector<64x512xf32>
    %188 = arith.mulf %187, %180 : vector<64x512xf32>
    %cst_73 = arith.constant 0.284496725 : f32
    %189 = vector.broadcast %cst_73 : f32 to vector<64x512xf32>
    %190 = arith.subf %188, %189 : vector<64x512xf32>
    %191 = arith.mulf %190, %180 : vector<64x512xf32>
    %cst_74 = arith.constant 0.254829586 : f32
    %192 = vector.broadcast %cst_74 : f32 to vector<64x512xf32>
    %193 = arith.addf %191, %192 : vector<64x512xf32>
    %194 = arith.mulf %193, %180 : vector<64x512xf32>
    %cst_75 = arith.constant 0.000000e+00 : f32
    %195 = vector.broadcast %cst_75 : f32 to vector<64x512xf32>
    %196 = arith.subf %195, %174 : vector<64x512xf32>
    %197 = arith.mulf %196, %174 : vector<64x512xf32>
    %198 = math.exp %197 : vector<64x512xf32>
    %199 = arith.mulf %194, %198 : vector<64x512xf32>
    %cst_76 = arith.constant 1.000000e+00 : f32
    %200 = vector.broadcast %cst_76 : f32 to vector<64x512xf32>
    %201 = arith.subf %200, %199 : vector<64x512xf32>
    %cst_77 = arith.constant 0.000000e+00 : f32
    %202 = vector.broadcast %cst_77 : f32 to vector<64x512xf32>
    %203 = arith.cmpf oge, %171, %202 : vector<64x512xf32>
    %cst_78 = arith.constant 0.000000e+00 : f32
    %204 = vector.broadcast %cst_78 : f32 to vector<64x512xf32>
    %205 = arith.subf %204, %201 : vector<64x512xf32>
    %206 = arith.select %203, %201, %205 : vector<64x512xi1>, vector<64x512xf32>
    %cst_79 = arith.constant 5.000000e-01 : f32
    %207 = vector.broadcast %cst_79 : f32 to vector<64x512xf32>
    %208 = arith.mulf %207, %171 : vector<64x512xf32>
    %cst_80 = arith.constant 1.000000e+00 : f32
    %209 = vector.broadcast %cst_80 : f32 to vector<64x512xf32>
    %210 = arith.addf %209, %206 : vector<64x512xf32>
    %211 = arith.mulf %208, %210 : vector<64x512xf32>
    %c0_81 = arith.constant 0 : index
    %c0_82 = arith.constant 0 : index
    %212 = vector.load %arg20[%c0_81, %c0_82] : memref<512x128xbf16, #tpu.memory_space<vmem>>, vector<512x128xbf16>
    %213 = arith.truncf %211 : vector<64x512xf32> to vector<64x512xbf16>
    %cst_83 = arith.constant dense<0.000000e+00> : vector<64x128xf32>
    %214 = tpu.matmul %213, %212, %cst_83 {dimension_numbers = #tpu.dot_dimension_numbers<[1], [0], [0], [1], [0, 0, 1, 1], [], []>} : vector<64x512xbf16>, vector<512x128xbf16>, vector<64x128xf32> -> vector<64x128xf32>
    %c0_84 = arith.constant 0 : index
    %c0_85 = arith.constant 0 : index
    %215 = vector.load %arg21[%c0_84, %c0_85] : memref<1x128xf32, #tpu.memory_space<vmem>>, vector<1x128xf32>
    %216 = vector.broadcast %215 : vector<1x128xf32> to vector<64x128xf32>
    %217 = arith.addf %214, %216 : vector<64x128xf32>
    %218 = arith.addf %165, %217 : vector<64x128xf32>
    %c0_86 = arith.constant 0 : index
    %c0_87 = arith.constant 0 : index
    %219 = vector.load %arg26[%c0_86, %c0_87] : memref<1x128xf32, #tpu.memory_space<vmem>>, vector<1x128xf32>
    %c0_88 = arith.constant 0 : index
    %c0_89 = arith.constant 0 : index
    %220 = vector.load %arg27[%c0_88, %c0_89] : memref<1x128xf32, #tpu.memory_space<vmem>>, vector<1x128xf32>
    %cst_90 = arith.constant dense<0.000000e+00> : vector<64xf32>
    %221 = vector.multi_reduction <add>, %218, %cst_90 [1] : vector<64x128xf32> to vector<64xf32>
    %222 = vector.shape_cast %221 : vector<64xf32> to vector<64x1xf32>
    %cst_91 = arith.constant 1.280000e+02 : f32
    %223 = vector.broadcast %cst_91 : f32 to vector<64x1xf32>
    %224 = arith.divf %222, %223 : vector<64x1xf32>
    %225 = vector.broadcast %224 : vector<64x1xf32> to vector<64x128xf32>
    %226 = arith.subf %218, %225 : vector<64x128xf32>
    %227 = arith.mulf %226, %226 : vector<64x128xf32>
    %cst_92 = arith.constant dense<0.000000e+00> : vector<64xf32>
    %228 = vector.multi_reduction <add>, %227, %cst_92 [1] : vector<64x128xf32> to vector<64xf32>
    %229 = vector.shape_cast %228 : vector<64xf32> to vector<64x1xf32>
    %cst_93 = arith.constant 1.280000e+02 : f32
    %230 = vector.broadcast %cst_93 : f32 to vector<64x1xf32>
    %231 = arith.divf %229, %230 : vector<64x1xf32>
    %cst_94 = arith.constant 9.99999974E-6 : f32
    %232 = vector.broadcast %cst_94 : f32 to vector<64x1xf32>
    %233 = arith.addf %231, %232 : vector<64x1xf32>
    %234 = math.rsqrt %233 : vector<64x1xf32>
    %235 = vector.broadcast %234 : vector<64x1xf32> to vector<64x128xf32>
    %236 = arith.mulf %226, %235 : vector<64x128xf32>
    %237 = vector.broadcast %219 : vector<1x128xf32> to vector<64x128xf32>
    %238 = arith.mulf %236, %237 : vector<64x128xf32>
    %239 = vector.broadcast %220 : vector<1x128xf32> to vector<64x128xf32>
    %240 = arith.addf %238, %239 : vector<64x128xf32>
    %c0_95 = arith.constant 0 : index
    %c0_96 = arith.constant 0 : index
    %241 = vector.load %arg31[%c0_95, %c0_96] : memref<64x128xf32, #tpu.memory_space<vmem>>, vector<64x128xf32>
    tpu.vector_store %arg31[%c0_95, %c0_96], %240 {strides = array<i32>} : memref<64x128xf32, #tpu.memory_space<vmem>>, vector<64x128xf32>,
    %c0_97 = arith.constant 0 : index
    %c0_98 = arith.constant 0 : index
    %242 = vector.load %arg32[%c0_97, %c0_98] : memref<64x128xf32, #tpu.memory_space<vmem>>, vector<64x128xf32>
    %243 = arith.addf %242, %240 : vector<64x128xf32>
    %c0_99 = arith.constant 0 : index
    %c0_100 = arith.constant 0 : index
    %244 = vector.load %arg32[%c0_99, %c0_100] : memref<64x128xf32, #tpu.memory_space<vmem>>, vector<64x128xf32>
    tpu.vector_store %arg32[%c0_99, %c0_100], %243 {strides = array<i32>} : memref<64x128xf32, #tpu.memory_space<vmem>>, vector<64x128xf32>,
    %c1_i32 = arith.constant 1 : i32
    %245 = arith.cmpi eq, %arg0, %c1_i32 : i32
    %246 = arith.extui %245 : i1 to i32
    %c0_i32_101 = arith.constant 0 : i32
    %247 = arith.cmpi ne, %246, %c0_i32_101 : i32
    scf.if %247 {
      %c0_102 = arith.constant 0 : index
      %c0_103 = arith.constant 0 : index
      %248 = vector.load %arg32[%c0_102, %c0_103] : memref<64x128xf32, #tpu.memory_space<vmem>>, vector<64x128xf32>
      %cst_104 = arith.constant 5.000000e-01 : f32
      %249 = vector.broadcast %cst_104 : f32 to vector<64x128xf32>
      %250 = arith.mulf %248, %249 : vector<64x128xf32>
      %c0_105 = arith.constant 0 : index
      %c0_106 = arith.constant 0 : index
      %251 = vector.load %arg28[%c0_105, %c0_106] : memref<128x128xbf16, #tpu.memory_space<vmem>>, vector<128x128xbf16>
      %252 = arith.truncf %250 : vector<64x128xf32> to vector<64x128xbf16>
      %cst_107 = arith.constant dense<0.000000e+00> : vector<64x128xf32>
      %253 = tpu.matmul %252, %251, %cst_107 {dimension_numbers = #tpu.dot_dimension_numbers<[1], [0], [0], [1], [0, 0, 1, 1], [], []>} : vector<64x128xbf16>, vector<128x128xbf16>, vector<64x128xf32> -> vector<64x128xf32>
      %254 = math.absf %253 : vector<64x128xf32>
      %cst_108 = arith.constant 0.707106769 : f32
      %255 = vector.broadcast %cst_108 : f32 to vector<64x128xf32>
      %256 = arith.mulf %254, %255 : vector<64x128xf32>
      %cst_109 = arith.constant 0.327591091 : f32
      %257 = vector.broadcast %cst_109 : f32 to vector<64x128xf32>
      %258 = arith.mulf %257, %256 : vector<64x128xf32>
      %cst_110 = arith.constant 1.000000e+00 : f32
      %259 = vector.broadcast %cst_110 : f32 to vector<64x128xf32>
      %260 = arith.addf %259, %258 : vector<64x128xf32>
      %cst_111 = arith.constant 1.000000e+00 : f32
      %261 = vector.broadcast %cst_111 : f32 to vector<64x128xf32>
      %262 = arith.divf %261, %260 : vector<64x128xf32>
      %cst_112 = arith.constant 1.06140542 : f32
      %263 = vector.broadcast %cst_112 : f32 to vector<64x128xf32>
      %264 = arith.mulf %263, %262 : vector<64x128xf32>
      %cst_113 = arith.constant 1.45315206 : f32
      %265 = vector.broadcast %cst_113 : f32 to vector<64x128xf32>
      %266 = arith.subf %264, %265 : vector<64x128xf32>
      %267 = arith.mulf %266, %262 : vector<64x128xf32>
      %cst_114 = arith.constant 1.42141378 : f32
      %268 = vector.broadcast %cst_114 : f32 to vector<64x128xf32>
      %269 = arith.addf %267, %268 : vector<64x128xf32>
      %270 = arith.mulf %269, %262 : vector<64x128xf32>
      %cst_115 = arith.constant 0.284496725 : f32
      %271 = vector.broadcast %cst_115 : f32 to vector<64x128xf32>
      %272 = arith.subf %270, %271 : vector<64x128xf32>
      %273 = arith.mulf %272, %262 : vector<64x128xf32>
      %cst_116 = arith.constant 0.254829586 : f32
      %274 = vector.broadcast %cst_116 : f32 to vector<64x128xf32>
      %275 = arith.addf %273, %274 : vector<64x128xf32>
      %276 = arith.mulf %275, %262 : vector<64x128xf32>
      %cst_117 = arith.constant 0.000000e+00 : f32
      %277 = vector.broadcast %cst_117 : f32 to vector<64x128xf32>
      %278 = arith.subf %277, %256 : vector<64x128xf32>
      %279 = arith.mulf %278, %256 : vector<64x128xf32>
      %280 = math.exp %279 : vector<64x128xf32>
      %281 = arith.mulf %276, %280 : vector<64x128xf32>
      %cst_118 = arith.constant 1.000000e+00 : f32
      %282 = vector.broadcast %cst_118 : f32 to vector<64x128xf32>
      %283 = arith.subf %282, %281 : vector<64x128xf32>
      %cst_119 = arith.constant 0.000000e+00 : f32
      %284 = vector.broadcast %cst_119 : f32 to vector<64x128xf32>
      %285 = arith.cmpf oge, %253, %284 : vector<64x128xf32>
      %cst_120 = arith.constant 0.000000e+00 : f32
      %286 = vector.broadcast %cst_120 : f32 to vector<64x128xf32>
      %287 = arith.subf %286, %283 : vector<64x128xf32>
      %288 = arith.select %285, %283, %287 : vector<64x128xi1>, vector<64x128xf32>
      %cst_121 = arith.constant 5.000000e-01 : f32
      %289 = vector.broadcast %cst_121 : f32 to vector<64x128xf32>
      %290 = arith.mulf %289, %253 : vector<64x128xf32>
      %cst_122 = arith.constant 1.000000e+00 : f32
      %291 = vector.broadcast %cst_122 : f32 to vector<64x128xf32>
      %292 = arith.addf %291, %288 : vector<64x128xf32>
      %293 = arith.mulf %290, %292 : vector<64x128xf32>
      %c0_123 = arith.constant 0 : index
      %c0_124 = arith.constant 0 : index
      %294 = vector.load %arg29[%c0_123, %c0_124] : memref<128x128xbf16, #tpu.memory_space<vmem>>, vector<128x128xbf16>
      %295 = arith.truncf %293 : vector<64x128xf32> to vector<64x128xbf16>
      %cst_125 = arith.constant dense<0.000000e+00> : vector<64x128xf32>
      %296 = tpu.matmul %295, %294, %cst_125 {dimension_numbers = #tpu.dot_dimension_numbers<[1], [0], [0], [1], [0, 0, 1, 1], [], []>} : vector<64x128xbf16>, vector<128x128xbf16>, vector<64x128xf32> -> vector<64x128xf32>
      %c0_126 = arith.constant 0 : index
      %c0_127 = arith.constant 0 : index
      %297 = vector.load %arg30[%c0_126, %c0_127] : memref<64x128xf32, #tpu.memory_space<vmem>>, vector<64x128xf32>
      tpu.vector_store %arg30[%c0_126, %c0_127], %296 {strides = array<i32>} : memref<64x128xf32, #tpu.memory_space<vmem>>, vector<64x128xf32>,
    } else {
    }
    return
  }
  func.func @transform_0(%arg0: i32) -> (i32, i32) {
    %c0_i32 = arith.constant 0 : i32
    %c0_i32_0 = arith.constant 0 : i32
    %c0_i32_1 = arith.constant 0 : i32
    return %c0_i32, %c0_i32_0 : i32, i32
  }
  func.func @transform_1(%arg0: i32) -> (i32, i32) {
    %c0_i32 = arith.constant 0 : i32
    %c0_i32_0 = arith.constant 0 : i32
    %c0_i32_1 = arith.constant 0 : i32
    return %c0_i32, %c0_i32_0 : i32, i32
  }
  func.func @transform_2(%arg0: i32) -> (i32, i32) {
    %c0_i32 = arith.constant 0 : i32
    %c0_i32_0 = arith.constant 0 : i32
    %c0_i32_1 = arith.constant 0 : i32
    return %c0_i32, %c0_i32_0 : i32, i32
  }
  func.func @transform_3(%arg0: i32) -> (i32, i32) {
    %c0_i32 = arith.constant 0 : i32
    %c0_i32_0 = arith.constant 0 : i32
    %c0_i32_1 = arith.constant 0 : i32
    return %c0_i32, %c0_i32_0 : i32, i32
  }
  func.func @transform_4(%arg0: i32) -> (i32, i32) {
    %c0_i32 = arith.constant 0 : i32
    %c0_i32_0 = arith.constant 0 : i32
    %c0_i32_1 = arith.constant 0 : i32
    return %c0_i32, %c0_i32_0 : i32, i32
  }
  func.func @transform_5(%arg0: i32) -> (i32, i32) {
    %c0_i32 = arith.constant 0 : i32
    %c0_i32_0 = arith.constant 0 : i32
    %c0_i32_1 = arith.constant 0 : i32
    return %c0_i32, %c0_i32_0 : i32, i32
  }
  func.func @transform_6(%arg0: i32) -> (i32, i32) {
    %c0_i32 = arith.constant 0 : i32
    %c0_i32_0 = arith.constant 0 : i32
    %c0_i32_1 = arith.constant 0 : i32
    return %c0_i32, %c0_i32_0 : i32, i32
  }
  func.func @transform_7(%arg0: i32) -> (i32, i32) {
    %c0_i32 = arith.constant 0 : i32
    %c0_i32_0 = arith.constant 0 : i32
    %c0_i32_1 = arith.constant 0 : i32
    return %c0_i32, %c0_i32_0 : i32, i32
  }
  func.func @transform_8(%arg0: i32) -> (i32, i32) {
    %c0_i32 = arith.constant 0 : i32
    %c0_i32_0 = arith.constant 0 : i32
    %c0_i32_1 = arith.constant 0 : i32
    return %c0_i32, %c0_i32_0 : i32, i32
  }
  func.func @transform_9(%arg0: i32) -> (i32, i32) {
    %c0_i32 = arith.constant 0 : i32
    %c0_i32_0 = arith.constant 0 : i32
    %c0_i32_1 = arith.constant 0 : i32
    return %c0_i32, %c0_i32_0 : i32, i32
  }
  func.func @transform_10(%arg0: i32) -> (i32, i32) {
    %c0_i32 = arith.constant 0 : i32
    %c0_i32_0 = arith.constant 0 : i32
    %c0_i32_1 = arith.constant 0 : i32
    return %c0_i32, %c0_i32_0 : i32, i32
  }
  func.func @transform_11(%arg0: i32) -> (i32, i32) {
    %c0_i32 = arith.constant 0 : i32
    %c0_i32_0 = arith.constant 0 : i32
    %c0_i32_1 = arith.constant 0 : i32
    return %c0_i32, %c0_i32_0 : i32, i32
  }
  func.func @transform_12(%arg0: i32) -> (i32, i32) {
    %c0_i32 = arith.constant 0 : i32
    %c0_i32_0 = arith.constant 0 : i32
    %c0_i32_1 = arith.constant 0 : i32
    return %c0_i32, %c0_i32_0 : i32, i32
  }
  func.func @transform_13(%arg0: i32) -> (i32, i32) {
    %c0_i32 = arith.constant 0 : i32
    %c0_i32_0 = arith.constant 0 : i32
    %c0_i32_1 = arith.constant 0 : i32
    return %c0_i32, %c0_i32_0 : i32, i32
  }
  func.func @transform_14(%arg0: i32) -> (i32, i32) {
    %c0_i32 = arith.constant 0 : i32
    %c0_i32_0 = arith.constant 0 : i32
    %c0_i32_1 = arith.constant 0 : i32
    return %c0_i32, %c0_i32_0 : i32, i32
  }
  func.func @transform_15(%arg0: i32) -> (i32, i32) {
    %c0_i32 = arith.constant 0 : i32
    %c0_i32_0 = arith.constant 0 : i32
    %c0_i32_1 = arith.constant 0 : i32
    return %c0_i32, %c0_i32_0 : i32, i32
  }
  func.func @transform_16(%arg0: i32) -> (i32, i32) {
    %c0_i32 = arith.constant 0 : i32
    %c0_i32_0 = arith.constant 0 : i32
    %c0_i32_1 = arith.constant 0 : i32
    return %c0_i32, %c0_i32_0 : i32, i32
  }
  func.func @transform_17(%arg0: i32) -> (i32, i32) {
    %c0_i32 = arith.constant 0 : i32
    %c0_i32_0 = arith.constant 0 : i32
    %c0_i32_1 = arith.constant 0 : i32
    return %c0_i32, %c0_i32_0 : i32, i32
  }
  func.func @transform_18(%arg0: i32) -> (i32, i32) {
    %c0_i32 = arith.constant 0 : i32
    %c0_i32_0 = arith.constant 0 : i32
    %c0_i32_1 = arith.constant 0 : i32
    return %c0_i32, %c0_i32_0 : i32, i32
  }
  func.func @transform_19(%arg0: i32) -> (i32, i32) {
    %c0_i32 = arith.constant 0 : i32
    %c0_i32_0 = arith.constant 0 : i32
    %c0_i32_1 = arith.constant 0 : i32
    return %c0_i32, %c0_i32_0 : i32, i32
  }
  func.func @transform_20(%arg0: i32) -> (i32, i32) {
    %c0_i32 = arith.constant 0 : i32
    %c0_i32_0 = arith.constant 0 : i32
    %c0_i32_1 = arith.constant 0 : i32
    return %c0_i32, %c0_i32_0 : i32, i32
  }
  func.func @transform_21(%arg0: i32) -> (i32, i32) {
    %c0_i32 = arith.constant 0 : i32
    %c0_i32_0 = arith.constant 0 : i32
    %c0_i32_1 = arith.constant 0 : i32
    return %c0_i32, %c0_i32_0 : i32, i32
  }
  func.func @transform_22(%arg0: i32) -> (i32, i32) {
    %c0_i32 = arith.constant 0 : i32
    %c0_i32_0 = arith.constant 0 : i32
    %c0_i32_1 = arith.constant 0 : i32
    return %c0_i32, %c0_i32_0 : i32, i32
  }
  func.func @transform_23(%arg0: i32) -> (i32, i32) {
    %c0_i32 = arith.constant 0 : i32
    %c0_i32_0 = arith.constant 0 : i32
    %c0_i32_1 = arith.constant 0 : i32
    return %c0_i32, %c0_i32_0 : i32, i32
  }
  func.func @transform_24(%arg0: i32) -> (i32, i32) {
    %c0_i32 = arith.constant 0 : i32
    %c0_i32_0 = arith.constant 0 : i32
    %c0_i32_1 = arith.constant 0 : i32
    return %c0_i32, %c0_i32_0 : i32, i32
  }
  func.func @transform_25(%arg0: i32) -> (i32, i32) {
    %c0_i32 = arith.constant 0 : i32
    %c0_i32_0 = arith.constant 0 : i32
    %c0_i32_1 = arith.constant 0 : i32
    return %c0_i32, %c0_i32_0 : i32, i32
  }
  func.func @transform_26(%arg0: i32) -> (i32, i32) {
    %c0_i32 = arith.constant 0 : i32
    %c0_i32_0 = arith.constant 0 : i32
    %c0_i32_1 = arith.constant 0 : i32
    return %c0_i32, %c0_i32_0 : i32, i32
  }
  func.func @transform_27(%arg0: i32) -> (i32, i32) {
    %c0_i32 = arith.constant 0 : i32
    %c0_i32_0 = arith.constant 0 : i32
    %c0_i32_1 = arith.constant 0 : i32
    return %c0_i32, %c0_i32_0 : i32, i32
  }
  func.func @transform_28(%arg0: i32) -> (i32, i32) {
    %c0_i32 = arith.constant 0 : i32
    %c0_i32_0 = arith.constant 0 : i32
    %c0_i32_1 = arith.constant 0 : i32
    return %c0_i32, %c0_i32_0 : i32, i32
  }
  func.func @transform_29(%arg0: i32) -> (i32, i32) {
    %c0_i32 = arith.constant 0 : i32
    %c0_i32_0 = arith.constant 0 : i32
    %c0_i32_1 = arith.constant 0 : i32
    return %c0_i32, %c0_i32_0 : i32, i32
  }
}

</mosaic_0001>

<bundles_post_ra>
// kernel: selfsup_forward.3
= control target key start
LH: loop header
LB: loop body
LE: loop exit
PB: predicated region body
PF: predicated region fallthrough
CT: control target
= control target key end

     0   :  { %s7066_s0 = inlined_call_operand.vmem [shape: f32[64,128], index: 0, kind: input, shape index: {}]   ;;  %s7067_s1 = inlined_call_operand.vmem [shape: f32[64,128], index: 1, kind: input, shape index: {}]   ;;  %s7068_s2 = inlined_call_operand.vmem [shape: f32[128,128], index: 2, kind: input, shape index: {}]   ;;  %s7069_s3 = inlined_call_operand.vmem [shape: bf16[128,384], index: 3, kind: input, shape index: {}]   ;;  %s7070_s4 = inlined_call_operand.vmem [shape: f32[1,384], index: 4, kind: input, shape index: {}]   ;;  %s7071_s5 = inlined_call_operand.vmem [shape: bf16[128,128], index: 5, kind: input, shape index: {}]   ;;  %s7072_s6 = inlined_call_operand.vmem [shape: f32[1,128], index: 6, kind: input, shape index: {}]   ;;  %s7073_s7 = inlined_call_operand.vmem [shape: bf16[128,512], index: 7, kind: input, shape index: {}]   ;;  %s7074_s8 = inlined_call_operand.vmem [shape: f32[1,512], index: 8, kind: input, shape index: {}]   ;;  %s7075_s9 = inlined_call_operand.vmem [shape: bf16[512,128], index: 9, kind: input, shape index: {}]   ;;  %s7076_s10 = inlined_call_operand.vmem [shape: f32[1,128], index: 10, kind: input, shape index: {}]   ;;  %s7077_s11 = inlined_call_operand.vmem [shape: f32[1,128], index: 11, kind: input, shape index: {}]   ;;  %s7078_s12 = inlined_call_operand.vmem [shape: f32[1,128], index: 12, kind: input, shape index: {}]   ;;  %s7079_s13 = inlined_call_operand.vmem [shape: f32[1,128], index: 13, kind: input, shape index: {}]   ;;  %s7080_s14 = inlined_call_operand.vmem [shape: f32[1,128], index: 14, kind: input, shape index: {}]   ;;  %s7081_s15 = inlined_call_operand.vmem [shape: bf16[128,128], index: 15, kind: input, shape index: {}]   ;;  %s7082_s16 = inlined_call_operand.vmem [shape: bf16[128,128], index: 16, kind: input, shape index: {}]   ;;  %s7083_s17 = inlined_call_operand.hbm [shape: f32[64,128], index: 17, kind: output, shape index: {}]  }
   0x1   :  { %7100 = sst [smem:[#allocation30_spill]] %s7066_s0 }
   0x2   :  { %7101 = sst [smem:[#allocation31_spill]] %s7067_s1 }
   0x3   :  { %22 = vsyncpa [#allocation5], 0  ;;  %s5261_s24 = smov 0  }
   0x4 LB: > { %s5267_s25 = sadd.s32 4294967295, %s5164_s24   ;;  %p3999_p0 = scmp.ge.s32.totalorder %s5164_s24, 1  ;;  %s5164_s24 = sphi %s5261_s24, %s28_s24  }
   0x5   : > { %p473_p1 = scmp.lt.s32.totalorder %s5164_s24, 3 }
   0x7   : > { %p474_p2 = pnand %p3999_p0, %p473_p1 }
   0x9   : > { %477 = sbr.rel (%p474_p2) target bundleno = 3058 (0xbf2), region = 88 }
  0x10   : > { %v516_v0 = vld [vmem:[%s7068_s2] sm:$0xff]  ;;  %v517_v1 = vld [vmem:[%s7068_s2 + $0x8] sm:$0xff]  ;;  %v518_v2 = vld [vmem:[%s7068_s2 + $0x10] sm:$0xff]  ;;  %p4000_p3 = scmp.ne.s32.totalorder %s5267_s25, 0 }
  0x11   : > { %v519_v3 = vld [vmem:[%s7068_s2 + $0x18] sm:$0xff]  ;;  %v520_v4 = vld [vmem:[%s7068_s2 + $0x20] sm:$0xff]  ;;  %v521_v5 = vld [vmem:[%s7068_s2 + $0x28] sm:$0xff]  ;;  %v5289_v6 = vpack.c.bf16 %v517_v1, %v516_v0  ;;  %s7102_s1 = sld [smem:[#allocation30_spill]] (!%p4000_p3)  ;;  %s7103_s22 = sld [smem:[#allocation31_spill]] (!%p4000_p3)  ;;  %v5166_v31 = vmov (!%p4000_p3), 0.0  }
  0x12   : > { %v522_v7 = vld [vmem:[%s7068_s2 + $0x30] sm:$0xff]  ;;  %v523_v8 = vld [vmem:[%s7068_s2 + $0x38] sm:$0xff]  ;;  %v524_v9 = vld [vmem:[%s7068_s2 + $0x40] sm:$0xff]  ;;  %v5300_v10 = vpack.c.bf16 %v519_v3, %v518_v2  ;;  %v5302_v11 = vpack.c.bf16 %v521_v5, %v520_v4  ;;  %543 = sbr.rel (%p4000_p3) target bundleno = 32 (0x20), region = 92  ;;  %576 = vst [vmem:[#allocation3] sm:$0xff] (!%p4000_p3), %v5166_v31 }
  0x13   : > { %v525_v12 = vld [vmem:[%s7068_s2 + $0x48] sm:$0xff]  ;;  %v526_v13 = vld [vmem:[%s7068_s2 + $0x50] sm:$0xff]  ;;  %v527_v14 = vld [vmem:[%s7068_s2 + $0x58] sm:$0xff]  ;;  %v5313_v15 = vpack.c.bf16 %v523_v8, %v522_v7  ;;  %577 = vst [vmem:[#allocation3 + $0x8] sm:$0xff] (!%p4000_p3), %v5166_v31 }
  0x14   : > { %v528_v16 = vld [vmem:[%s7068_s2 + $0x60] sm:$0xff]  ;;  %v529_v17 = vld [vmem:[%s7068_s2 + $0x68] sm:$0xff]  ;;  %v530_v18 = vld [vmem:[%s7068_s2 + $0x70] sm:$0xff]  ;;  %v5324_v19 = vpack.c.bf16 %v525_v12, %v524_v9  ;;  %v5326_v20 = vpack.c.bf16 %v527_v14, %v526_v13  ;;  %578 = vst [vmem:[#allocation3 + $0x10] sm:$0xff] (!%p4000_p3), %v5166_v31 }
  0x15   : > { %v531_v21 = vld [vmem:[%s7068_s2 + $0x78] sm:$0xff]  ;;  %v5331_v22 = vpack.c.bf16 %v529_v17, %v528_v16  ;;  %579 = vst [vmem:[#allocation3 + $0x18] sm:$0xff] (!%p4000_p3), %v5166_v31  ;;  %580 = vst [vmem:[#allocation3 + $0x20] sm:$0xff] (!%p4000_p3), %v5166_v31 }
  0x16   : > { %v5333_v23 = vpack.c.bf16 %v531_v21, %v530_v18  ;;  %581 = vst [vmem:[#allocation3 + $0x28] sm:$0xff] (!%p4000_p3), %v5166_v31  ;;  %582 = vst [vmem:[#allocation3 + $0x30] sm:$0xff] (!%p4000_p3), %v5166_v31 }
  0x17   : > { %v544_v24 = vld [vmem:[%s7102_s1] sm:$0xff] (!%p4000_p3)  ;;  %v545_v26 = vld [vmem:[%s7102_s1 + $0x8] sm:$0xff] (!%p4000_p3)  ;;  %v546_v29 = vld [vmem:[%s7102_s1 + $0x10] sm:$0xff] (!%p4000_p3)  ;;  %583 = vst [vmem:[#allocation3 + $0x38] sm:$0xff] (!%p4000_p3), %v5166_v31 }
  0x18   : > { %v552_v25 = vld [vmem:[%s7103_s22] sm:$0xff] (!%p4000_p3)  ;;  %v553_v28 = vld [vmem:[%s7103_s22 + $0x8] sm:$0xff] (!%p4000_p3)  ;;  %v554_v30 = vld [vmem:[%s7103_s22 + $0x10] sm:$0xff] (!%p4000_p3) }
  0x19   : > { %v560_v27 = vadd.f32 %v552_v25, %v544_v24  ;;  %v561_v32 = vadd.f32 %v553_v28, %v545_v26  ;;  %v562_v33 = vadd.f32 %v554_v30, %v546_v29  ;;  %v547_v34 = vld [vmem:[%s7102_s1 + $0x18] sm:$0xff]  ;;  %v548_v36 = vld [vmem:[%s7102_s1 + $0x20] sm:$0xff]  ;;  %v549_v39 = vld [vmem:[%s7102_s1 + $0x28] sm:$0xff] }
  0x1a   : > { %v555_v35 = vld [vmem:[%s7103_s22 + $0x18] sm:$0xff]  ;;  %v556_v38 = vld [vmem:[%s7103_s22 + $0x20] sm:$0xff]  ;;  %v557_v40 = vld [vmem:[%s7103_s22 + $0x28] sm:$0xff] }
  0x1b   : > { %568 = vst [vmem:[#allocation2] sm:$0xff] %v560_v27  ;;  %v563_v37 = vadd.f32 %v555_v35, %v547_v34  ;;  %569 = vst [vmem:[#allocation2 + $0x8] sm:$0xff] %v561_v32  ;;  %v564_v41 = vadd.f32 %v556_v38, %v548_v36  ;;  %v565_v42 = vadd.f32 %v557_v40, %v549_v39  ;;  %v550_v43 = vld [vmem:[%s7102_s1 + $0x30] sm:$0xff]  ;;  %v551_v45 = vld [vmem:[%s7102_s1 + $0x38] sm:$0xff] }
  0x1c   : > { %570 = vst [vmem:[#allocation2 + $0x10] sm:$0xff] %v562_v33  ;;  %v558_v44 = vld [vmem:[%s7103_s22 + $0x30] sm:$0xff]  ;;  %v559_v47 = vld [vmem:[%s7103_s22 + $0x38] sm:$0xff] }
  0x1d   : > { %571 = vst [vmem:[#allocation2 + $0x18] sm:$0xff] %v563_v37  ;;  %v566_v46 = vadd.f32 %v558_v44, %v550_v43  ;;  %572 = vst [vmem:[#allocation2 + $0x20] sm:$0xff] %v564_v41  ;;  %v567_v48 = vadd.f32 %v559_v47, %v551_v45 }
  0x1e   : > { %573 = vst [vmem:[#allocation2 + $0x28] sm:$0xff] %v565_v42 }
  0x1f   : > { %574 = vst [vmem:[#allocation2 + $0x30] sm:$0xff] %v566_v46  ;;  %575 = vst [vmem:[#allocation2 + $0x38] sm:$0xff] %v567_v48 }
  0x20 PF: > { %v4763_v49 = vld [vmem:[%s7069_s3 + $0x4] ss:$12 sps:$4 sm:$0xff]   ;;  %v4765_v50 = vld [vmem:[%s7069_s3] ss:$12 sps:$4 sm:$0xff]   ;;  %v5167_v51 = vmov 0   ;;  %v630_v18 = vlaneseq  ;;  %p4167_p4 = scmp.ne.s32.totalorder %s5267_s25, 1 }
  0x21   : > { %805 = vmatprep.mubr.bf16.mxu0 %v5167_v51  ;;  %773 = vmatprep.subr.bf16.mxu0 %v4763_v49  ;;  %v4766_v52 = vld [vmem:[%s7069_s3 + $0x1c] ss:$12 sps:$4 sm:$0xff]   ;;  %v4768_v53 = vld [vmem:[%s7069_s3 + $0x18] ss:$12 sps:$4 sm:$0xff]   ;;  %v4769_v54 = vld [vmem:[%s7069_s3 + $0x34] ss:$12 sps:$4 sm:$0xff]  }
  0x22   : > { %774 = vmatpush1.bf16.msra.mxu0 %v4765_v50  ;;  %v4771_v55 = vld [vmem:[%s7069_s3 + $0x30] ss:$12 sps:$4 sm:$0xff]   ;;  %v4772_v56 = vld [vmem:[%s7069_s3 + $0x4c] ss:$12 sps:$4 sm:$0xff]   ;;  %v584_v57 = vld [vmem:[#allocation2] sm:$0xff]  ;;  %v5463_v21 = vshrl.u32 %v630_v18, 7 }
  0x23   : > { %775 = vmatprep.subr.bf16.mxu0 %v4766_v52  ;;  %v4774_v58 = vld [vmem:[%s7069_s3 + $0x48] ss:$12 sps:$4 sm:$0xff]   ;;  %v4775_v60 = vld [vmem:[%s7069_s3 + $0x64] ss:$12 sps:$4 sm:$0xff]   ;;  %v4777_v62 = vld [vmem:[%s7069_s3 + $0x60] ss:$12 sps:$4 sm:$0xff]  }
  0x24   : > { %v585_v59 = vld [vmem:[#allocation2 + $0x8] sm:$0xff]  ;;  %v4780_v0 = vld [vmem:[%s7069_s3 + $0x78] ss:$12 sps:$4 sm:$0xff]   ;;  %v4781_v1 = vld [vmem:[%s7069_s3 + $0x94] ss:$12 sps:$4 sm:$0xff]   ;;  %v632_v24 = vsub.s32 0, %v5463_v21 }
  0x25   : > { %v624_v61 = vpack.c.bf16 %v585_v59, %v584_v57  ;;  %v4778_v63 = vld [vmem:[%s7069_s3 + $0x7c] ss:$12 sps:$4 sm:$0xff]   ;;  %v4784_v3 = vld [vmem:[%s7069_s3 + $0xac] ss:$12 sps:$4 sm:$0xff]   ;;  %v5433_v5 = vld [vmem:[#allocation2 + $0x10] sm:$0xff]  ;;  %v636_v26 = vsub.s32 1, %v5463_v21 }
  0x26   : > { %776 = vmatpush1.bf16.msra.mxu0 %v4768_v53  ;;  %v4783_v2 = vld [vmem:[%s7069_s3 + $0x90] ss:$12 sps:$4 sm:$0xff]   ;;  %v4786_v4 = vld [vmem:[%s7069_s3 + $0xa8] ss:$12 sps:$4 sm:$0xff]   ;;  %v5442_v9 = vld [vmem:[#allocation2 + $0x20] sm:$0xff] }
  0x27   : > { %777 = vmatprep.subr.bf16.mxu0 %v4769_v54  ;;  %4428 = vmatprep.mubr.bf16.mxu1 %v624_v61  ;;  %v5435_v7 = vld [vmem:[#allocation2 + $0x18] sm:$0xff]  ;;  %v5444_v12 = vld [vmem:[#allocation2 + $0x28] sm:$0xff]  ;;  %v5452_v14 = vld [vmem:[#allocation2 + $0x30] sm:$0xff] }
  0x28   : > { %v5440_v8 = vpack.c.bf16 %v5435_v7, %v5433_v5  ;;  %v5450_v13 = vpack.c.bf16 %v5444_v12, %v5442_v9  ;;  %v5454_v16 = vld [vmem:[#allocation2 + $0x38] sm:$0xff]  ;;  %v5469_v25 = vld [vmem:[%s7070_s4] sm:$0x7]  ;;  %v4787_v35 = vld [vmem:[%s7069_s3 + $0x8] ss:$12 sps:$4 sm:$0xff]  }
  0x29   : > { %v5460_v17 = vpack.c.bf16 %v5454_v16, %v5452_v14  ;;  %v5475_v27 = vrot.slane %v5469_v25, %v632_v24  ;;  %v5480_v29 = vrot.slane %v5469_v25, %v636_v26  ;;  %v4788_v38 = vld [vmem:[%s7069_s3 + $0x20] ss:$12 sps:$4 sm:$0xff]   ;;  %4412 = vmatprep.subr.bf16.mxu1 %v4787_v35  ;;  %v4789_v48 = vld [vmem:[%s7069_s3 + $0x38] ss:$12 sps:$4 sm:$0xff]   ;;  %v4790_v52 = vld [vmem:[%s7069_s3 + $0x50] ss:$12 sps:$4 sm:$0xff]  }
  0x2a   : > { %778 = vmatpush1.bf16.msra.mxu0 %v4771_v55  ;;  %4413 = vmatpush3.bf16.msra.mxu1 %v4787_v35  ;;  %v4791_v59 = vld [vmem:[%s7069_s3 + $0x68] ss:$12 sps:$4 sm:$0xff]  }
  0x2b   : > { %779 = vmatprep.subr.bf16.mxu0 %v4772_v56  ;;  %4414 = vmatprep.subr.bf16.mxu1 %v4788_v38 }
  0x2e   : > { %780 = vmatpush1.bf16.msra.mxu0 %v4774_v58  ;;  %4415 = vmatpush3.bf16.msra.mxu1 %v4788_v38 }
  0x2f   : > { %781 = vmatprep.subr.bf16.mxu0 %v4775_v60  ;;  %4416 = vmatprep.subr.bf16.mxu1 %v4789_v48 }
  0x32   : > { %782 = vmatpush1.bf16.msra.mxu0 %v4777_v62  ;;  %4417 = vmatpush3.bf16.msra.mxu1 %v4789_v48 }
  0x33   : > { %783 = vmatprep.subr.bf16.mxu0 %v4778_v63  ;;  %4418 = vmatprep.subr.bf16.mxu1 %v4790_v52 }
  0x36   : > { %784 = vmatpush1.bf16.msra.mxu0 %v4780_v0  ;;  %4419 = vmatpush3.bf16.msra.mxu1 %v4790_v52 }
  0x37   : > { %785 = vmatprep.subr.bf16.mxu0 %v4781_v1  ;;  %4420 = vmatprep.subr.bf16.mxu1 %v4791_v59 }
  0x3a   : > { %786 = vmatpush1.bf16.msra.mxu0 %v4783_v2  ;;  %4421 = vmatpush3.bf16.msra.mxu1 %v4791_v59 }
  0x3b   : > { %787 = vmatprep.subr.bf16.mxu0 %v4784_v3 }
  0x3e   : > { %788 = vmatpush1.bf16.msra.mxu0 %v4786_v4 }
  0x41   : > { %806 = vmatmul.mubr.bf16.vlgmr.msra.gmra.mrb[0].mxu0 %v624_v61 }
  0x42   : > { %815 = vmatprep.mubr.bf16.mxu0 %v5167_v51 }
  0x49   : > { %816 = vmatmul.mubr.bf16.gmra.mrb[4].mxu0 %v5440_v8 }
  0x4a   : > { %825 = vmatprep.mubr.bf16.mxu0 %v5167_v51 }
  0x51   : > { %826 = vmatmul.mubr.bf16.gmra.mrb[8].mxu0 %v5450_v13 }
  0x52   : > { %835 = vmatprep.mubr.bf16.mxu0 %v5167_v51 }
  0x59   : > { %836 = vmatmul.mubr.bf16.gmra.mrb[12].mxu0 %v5460_v17 }
 0x114   : > { %v807_v28 = vpop.f32.mrb[0].mxu0 }
 0x115   : > { %v808_v30 = vadd.f32 %v807_v28, %v5475_v27  ;;  %v809_v31 = vpop.f32.mrb[1].mxu0  ;;  %v4792_v28 = vld [vmem:[%s7069_s3 + $0x80] ss:$12 sps:$4 sm:$0xff]  }
 0x116   : > { %v811_v32 = vpop.f32.mrb[2].mxu0  ;;  %v810_v36 = vadd.f32 %v809_v31, %v5480_v29  ;;  %4422 = vmatprep.subr.bf16.mxu1 %v4792_v28 }
 0x117   : > { %v812_v33 = vadd.f32 %v811_v32, %v5475_v27  ;;  %v813_v34 = vpop.f32.mrb[3].mxu0  ;;  %v911_v39 = vmul.f32 0.17677669, %v808_v30  ;;  %4423 = vmatpush3.bf16.msra.mxu1 %v4792_v28 }
 0x118   : > { %v814_v37 = vadd.f32 %v813_v34, %v5480_v29  ;;  %v4793_v34 = vld [vmem:[%s7069_s3 + $0x98] ss:$12 sps:$4 sm:$0xff]  }
 0x119   : > { %v912_v40 = vmul.f32 0.17677669, %v812_v33  ;;  %4424 = vmatprep.subr.bf16.mxu1 %v4793_v34 }
 0x11a   : > { %v5492_v41 = vpack.c.bf16 %v814_v37, %v810_v36 }
 0x11b   : > { %v919_v42 = vpack.c.bf16 %v912_v40, %v911_v39  ;;  %4425 = vmatpush3.bf16.msra.mxu1 %v4793_v34 }
 0x11c   : > { %v817_v43 = vpop.f32.mrb[4].mxu0  ;;  %v931_v44 = vmul.bf16 %v5492_v41, %v5289_v6  ;;  %v933_v0 = vmul.bf16 %v5492_v41, %v5302_v11 }
 0x11d   : > { %v818_v45 = vadd.f32 %v817_v43, %v5475_v27  ;;  %v819_v46 = vpop.f32.mrb[5].mxu0  ;;  %4452 = vmatprep.mubr.bf16.mxu0 %v919_v42 }
 0x11e   : > { %v821_v47 = vpop.f32.mrb[6].mxu0  ;;  %4436 = vmatprep.subr.bf16.mxu0 %v931_v44  ;;  %v820_v53 = vadd.f32 %v819_v46, %v5480_v29 }
 0x11f   : > { %v822_v49 = vadd.f32 %v821_v47, %v5475_v27  ;;  %v823_v50 = vpop.f32.mrb[7].mxu0  ;;  %4437 = vmatpush3.bf16.xpose.msra.mxu0 %v931_v44  ;;  %v5506_v55 = vmul.f32 0.17677669, %v818_v45  ;;  %v4794_v45 = vld [vmem:[%s7069_s3 + $0xb0] ss:$12 sps:$4 sm:$0xff]  }
 0x120   : > { %v824_v54 = vadd.f32 %v823_v50, %v5480_v29  ;;  %4426 = vmatprep.subr.bf16.mxu1 %v4794_v45  ;;  %v935_v50 = vmul.bf16 %v5492_v41, %v5324_v19 }
 0x121   : > { %v5508_v56 = vmul.f32 0.17677669, %v822_v49  ;;  %4427 = vmatpush3.bf16.msra.mxu1 %v4794_v45 }
 0x122   : > { %v924_v57 = vpack.c.bf16 %v824_v54, %v820_v53 }
 0x123   : > { %v920_v58 = vpack.c.bf16 %v5508_v56, %v5506_v55 }
 0x124   : > { %v932_v60 = vmul.bf16 %v924_v57, %v5300_v10  ;;  %v827_v61 = vpop.f32.mrb[8].mxu0  ;;  %v934_v38 = vmul.bf16 %v924_v57, %v5313_v15  ;;  %4429 = vmatmul.mubr.bf16.vlgmr.msra.gmra.mrb[0].mxu1 %v5440_v8  ;;  %v938_v52 = vmul.bf16 %v924_v57, %v5333_v23 }
 0x125   : > { %v828_v62 = vadd.f32 %v827_v61, %v5475_v27  ;;  %v829_v63 = vpop.f32.mrb[9].mxu0  ;;  %4432 = vmatprep.mubr.bf16.mxu1 %v5450_v13 }
 0x126   : > { %4438 = vmatprep.subr.bf16.mxu0 %v932_v60  ;;  %v830_v1 = vadd.f32 %v829_v63, %v5480_v29  ;;  %v831_v2 = vpop.f32.mrb[10].mxu0 }
 0x127   : > { %4439 = vmatpush3.bf16.xpose.msra.mxu0 %v932_v60  ;;  %v915_v3 = vmul.f32 0.17677669, %v828_v62  ;;  %v832_v4 = vadd.f32 %v831_v2, %v5475_v27  ;;  %v833_v18 = vpop.f32.mrb[11].mxu0 }
 0x128   : > { %4440 = vmatprep.subr.bf16.mxu0 %v933_v0  ;;  %v834_v30 = vadd.f32 %v833_v18, %v5480_v29 }
 0x129   : > { %v916_v31 = vmul.f32 0.17677669, %v832_v4 }
 0x12a   : > { %v925_v32 = vpack.c.bf16 %v834_v30, %v830_v1 }
 0x12b   : > { %v921_v33 = vpack.c.bf16 %v916_v31, %v915_v3 }
 0x12c   : > { %v837_v35 = vpop.f32.mrb[12].mxu0  ;;  %4433 = vmatmul.mubr.bf16.gmra.mrb[4].mxu1 %v5460_v17  ;;  %v1160_v53 = vmul.bf16 %v925_v32, %v5289_v6  ;;  %v1162_v13 = vmul.bf16 %v925_v32, %v5302_v11  ;;  %v1166_v55 = vmul.bf16 %v925_v32, %v5331_v22 }
 0x12d   : > { %v838_v36 = vadd.f32 %v837_v35, %v5475_v27  ;;  %v839_v37 = vpop.f32.mrb[13].mxu0 }
 0x12e   : > { %v840_v39 = vadd.f32 %v839_v37, %v5480_v29  ;;  %v841_v40 = vpop.f32.mrb[14].mxu0 }
 0x12f   : > { %4441 = vmatpush3.bf16.xpose.msra.mxu0 %v933_v0  ;;  %v917_v42 = vmul.f32 0.17677669, %v838_v36  ;;  %v842_v43 = vadd.f32 %v841_v40, %v5475_v27  ;;  %v843_v44 = vpop.f32.mrb[15].mxu0  ;;  %v936_v27 = vmul.bf16 %v924_v57, %v5326_v20  ;;  %v640_v57 = vsub.s32 2, %v5463_v21 }
 0x130   : > { %4442 = vmatprep.subr.bf16.mxu0 %v934_v38  ;;  %v844_v46 = vadd.f32 %v843_v44, %v5480_v29  ;;  %v937_v29 = vmul.bf16 %v5492_v41, %v5331_v22  ;;  %v1164_v41 = vmul.bf16 %v925_v32, %v5324_v19 }
 0x131   : > { %v918_v47 = vmul.f32 0.17677669, %v842_v43 }
 0x132   : > { %v926_v48 = vpack.c.bf16 %v844_v46, %v840_v39 }
 0x133   : > { %v922_v49 = vpack.c.bf16 %v918_v47, %v917_v42 }
 0x134   : > { %v1161_v8 = vmul.bf16 %v926_v48, %v5300_v10  ;;  %v1163_v17 = vmul.bf16 %v926_v48, %v5313_v15  ;;  %v1165_v54 = vmul.bf16 %v926_v48, %v5326_v20  ;;  %v1167_v56 = vmul.bf16 %v926_v48, %v5333_v23 }
 0x137   : > { %4443 = vmatpush3.bf16.xpose.msra.mxu0 %v934_v38 }
 0x138   : > { %4444 = vmatprep.subr.bf16.mxu0 %v935_v50 }
 0x13f   : > { %4445 = vmatpush3.bf16.xpose.msra.mxu0 %v935_v50 }
 0x140   : > { %4446 = vmatprep.subr.bf16.mxu0 %v936_v27 }
 0x147   : > { %4447 = vmatpush3.bf16.xpose.msra.mxu0 %v936_v27 }
 0x148   : > { %4448 = vmatprep.subr.bf16.mxu0 %v937_v29 }
 0x14f   : > { %4449 = vmatpush3.bf16.xpose.msra.mxu0 %v937_v29 }
 0x150   : > { %4450 = vmatprep.subr.bf16.mxu0 %v938_v52 }
 0x157   : > { %4451 = vmatpush3.bf16.xpose.msra.mxu0 %v938_v52 }
 0x158   : > { %4514 = vmatprep.subr.bf16.mxu0 %v1160_v53 }
 0x15e   : > { %4453 = vmatmul.mubr.bf16.vlgmr.msra.gmra.mrb[16].mxu0 %v920_v58  ;;  %v641_v58 = vrot.slane %v5469_v25, %v640_v57 }
 0x15f   : > { %4515 = vmatpush3.bf16.xpose.msra.mxu0 %v1160_v53  ;;  %4530 = vmatprep.mubr.bf16.mxu0 %v921_v33 }
 0x160   : > { %4516 = vmatprep.subr.bf16.mxu0 %v1161_v8 }
 0x167   : > { %4517 = vmatpush3.bf16.xpose.msra.mxu0 %v1161_v8 }
 0x168   : > { %4518 = vmatprep.subr.bf16.mxu0 %v1162_v13 }
 0x16f   : > { %4519 = vmatpush3.bf16.xpose.msra.mxu0 %v1162_v13 }
 0x170   : > { %4520 = vmatprep.subr.bf16.mxu0 %v1163_v17 }
 0x177   : > { %4521 = vmatpush3.bf16.xpose.msra.mxu0 %v1163_v17 }
 0x178   : > { %4522 = vmatprep.subr.bf16.mxu0 %v1164_v41 }
 0x17f   : > { %4523 = vmatpush3.bf16.xpose.msra.mxu0 %v1164_v41 }
 0x180   : > { %4524 = vmatprep.subr.bf16.mxu0 %v1165_v54 }
 0x187   : > { %4525 = vmatpush3.bf16.xpose.msra.mxu0 %v1165_v54 }
 0x188   : > { %4526 = vmatprep.subr.bf16.mxu0 %v1166_v55 }
 0x18f   : > { %4527 = vmatpush3.bf16.xpose.msra.mxu0 %v1166_v55 }
 0x190   : > { %4528 = vmatprep.subr.bf16.mxu0 %v1167_v56 }
 0x197   : > { %4529 = vmatpush3.bf16.xpose.msra.mxu0 %v1167_v56 }
 0x19e   : > { %4531 = vmatmul.mubr.bf16.vlgmr.msra.gmra.mrb[20].mxu0 %v922_v49 }
 0x1f7   : > { %v4430_v59 = vpop.f32.mrb[0].mxu1 }
 0x1f8   : > { %v889_v60 = vadd.f32 %v4430_v59, %v641_v58  ;;  %v880_v61 = vpop.f32.mrb[1].mxu1 }
 0x1f9   : > { %v881_v62 = vadd.f32 %v880_v61, %v641_v58  ;;  %v4431_v63 = vpop.f32.mrb[2].mxu1 }
 0x1fa   : > { %v892_v0 = vadd.f32 %v4431_v63, %v641_v58  ;;  %v883_v1 = vpop.f32.mrb[3].mxu1 }
 0x1fb   : > { %v884_v2 = vadd.f32 %v883_v1, %v641_v58 }
 0x1fc   : > { %v928_v3 = vpack.c.bf16 %v892_v0, %v889_v60 }
 0x1fd   : > { %v927_v4 = vpack.c.bf16 %v884_v2, %v881_v62 }
 0x1fe   : > { %v940_v28 = vmul.bf16 %v928_v3, %v5300_v10  ;;  %v942_v25 = vmul.bf16 %v928_v3, %v5313_v15  ;;  %v944_v32 = vmul.bf16 %v928_v3, %v5326_v20  ;;  %v946_v34 = vmul.bf16 %v928_v3, %v5333_v23 }
 0x1ff   : > { %v939_v18 = vmul.bf16 %v927_v4, %v5289_v6  ;;  %v941_v30 = vmul.bf16 %v927_v4, %v5302_v11  ;;  %v943_v31 = vmul.bf16 %v927_v4, %v5324_v19  ;;  %v945_v33 = vmul.bf16 %v927_v4, %v5331_v22  ;;  %v4434_v39 = vpop.f32.mrb[4].mxu1 }
 0x200   : > { %v896_v40 = vpop.f32.mrb[5].mxu1  ;;  %v905_v42 = vadd.f32 %v4434_v39, %v641_v58 }
 0x201   : > { %4456 = vmatprep.subr.bf16.mxu1 %v939_v18  ;;  %v897_v43 = vadd.f32 %v896_v40, %v641_v58  ;;  %v4435_v44 = vpop.f32.mrb[6].mxu1 }
 0x202   : > { %4457 = vmatpush3.bf16.msra.mxu1 %v939_v18  ;;  %v908_v45 = vadd.f32 %v4435_v44, %v641_v58  ;;  %v899_v46 = vpop.f32.mrb[7].mxu1 }
 0x203   : > { %4458 = vmatprep.subr.bf16.mxu1 %v940_v28  ;;  %v900_v47 = vadd.f32 %v899_v46, %v641_v58 }
 0x204   : > { %v5569_v48 = vpack.c.bf16 %v908_v45, %v905_v42 }
 0x205   : > { %v5571_v49 = vpack.c.bf16 %v900_v47, %v897_v43 }
 0x206   : > { %4459 = vmatpush3.bf16.msra.mxu1 %v940_v28  ;;  %v1169_v18 = vmul.bf16 %v5569_v48, %v5300_v10  ;;  %v1173_v43 = vmul.bf16 %v5569_v48, %v5326_v20  ;;  %v1175_v46 = vmul.bf16 %v5569_v48, %v5333_v23 }
 0x207   : > { %4460 = vmatprep.subr.bf16.mxu1 %v941_v30  ;;  %v1168_v4 = vmul.bf16 %v5571_v49, %v5289_v6  ;;  %v1170_v28 = vmul.bf16 %v5571_v49, %v5302_v11  ;;  %v1174_v45 = vmul.bf16 %v5571_v49, %v5331_v22 }
 0x20a   : > { %4461 = vmatpush3.bf16.msra.mxu1 %v941_v30  ;;  %v1171_v30 = vmul.bf16 %v5569_v48, %v5313_v15 }
 0x20b   : > { %4462 = vmatprep.subr.bf16.mxu1 %v942_v25 }
 0x20e   : > { %4463 = vmatpush3.bf16.msra.mxu1 %v942_v25 }
 0x20f   : > { %4464 = vmatprep.subr.bf16.mxu1 %v943_v31 }
 0x212   : > { %4465 = vmatpush3.bf16.msra.mxu1 %v943_v31 }
 0x213   : > { %4466 = vmatprep.subr.bf16.mxu1 %v944_v32 }
 0x216   : > { %4467 = vmatpush3.bf16.msra.mxu1 %v944_v32 }
 0x217   : > { %4468 = vmatprep.subr.bf16.mxu1 %v945_v33 }
 0x21a   : > { %4469 = vmatpush3.bf16.msra.mxu1 %v945_v33 }
 0x21b   : > { %4470 = vmatprep.subr.bf16.mxu1 %v946_v34 }
 0x21e   : > { %4471 = vmatpush3.bf16.msra.mxu1 %v946_v34 }
 0x21f   : > { %4665 = vmatprep.subr.bf16.mxu1 %v5289_v6 }
 0x231   : > { %v4454_v35 = vpop.f32.mrb[16].mxu0 }
 0x232   : > { %1000 = vmax.xlane.f32.xlu1 %v4454_v35  ;;  %v981_v36 = vpop.f32.mrb[17].mxu0 }
 0x233   : > { %996 = vmax.xlane.f32.xlu0 %v981_v36  ;;  %v4455_v37 = vpop.f32.mrb[18].mxu0 }
 0x234   : > { %v984_v38 = vpop.f32.mrb[19].mxu0 }
 0x236   : > { %1002 = vmax.xlane.f32.xlu1 %v4455_v37 }
 0x237   : > { %998 = vmax.xlane.f32.xlu0 %v984_v38 }
 0x271   : > { %v5573_v50 = vpop.f32.mrb[20].mxu0 }
 0x272   : > { %v5575_v27 = vpop.f32.mrb[21].mxu0 }
 0x273   : > { %1225 = vmax.xlane.f32.xlu0 %v5575_v27  ;;  %v5578_v29 = vpop.f32.mrb[22].mxu0 }
 0x274   : > { %v5580_v52 = vpop.f32.mrb[23].mxu0 }
 0x275   : > { %1227 = vmax.xlane.f32.xlu1 %v5580_v52 }
 0x277   : > { %1229 = vmax.xlane.f32.xlu0 %v5573_v50 }
 0x279   : > { %1231 = vmax.xlane.f32.xlu1 %v5578_v29 }
 0x2bf   : > { %v1001_v53 = vpop.xlane.xlu1 %1000 }
 0x2c0   : > { %v1006_v8 = vsub.f32 %v4454_v35, %v1001_v53  ;;  %v997_v13 = vpop.xlane.xlu0 %996  ;;  %v1172_v35 = vmul.bf16 %v5571_v49, %v5324_v19 }
 0x2c1   : > { %v1004_v17 = vsub.f32 %v981_v36, %v997_v13 }
 0x2c2   : > { %v1012_v41 = vmul.f32 1.442695, %v1006_v8 }
 0x2c3   : > { %v1008_v54 = vmul.f32 1.442695, %v1004_v17  ;;  %v1003_v55 = vpop.xlane.xlu1 %1002 }
 0x2c4   : > { %v1007_v56 = vsub.f32 %v4455_v37, %v1003_v55  ;;  %v999_v58 = vpop.xlane.xlu0 %998  ;;  %4883 = vpow2.f32 %v1012_v41 }
 0x2c5   : > { %v1005_v59 = vsub.f32 %v984_v38, %v999_v58  ;;  %4885 = vpow2.f32 %v1008_v54 }
 0x2c6   : > { %v1014_v60 = vmul.f32 1.442695, %v1007_v56 }
 0x2c7   : > { %v1010_v61 = vmul.f32 1.442695, %v1005_v59 }
 0x2c8   : > { %4887 = vpow2.f32 %v1014_v60 }
 0x2c9   : > { %4889 = vpow2.f32 %v1010_v61 }
 0x2ce   : > { %v4884_v62 = vpop.eup %4883 }
 0x2cf   : > { %v4886_v63 = vpop.eup %4885 }
 0x2d2   : > { %v4888_v0 = vpop.eup %4887 }
 0x2d3   : > { %v4890_v1 = vpop.eup %4889  ;;  %v1017_v2 = vpack.c.bf16 %v4888_v0, %v4884_v62 }
 0x2d4   : > { %v1016_v3 = vpack.c.bf16 %v4890_v1, %v4886_v63 }
 0x2d6   : > { %4472 = vmatprep.mubr.bf16.mxu1 %v1016_v3 }
 0x2d7   : > { %4473 = vmatmul.mubr.bf16.vlgmr.msra.gmra.mrb[8].mxu1 %v1017_v2 }
 0x2d8   : > { %4667 = vmatpush3.bf16.msra.mxu1 %v5289_v6  ;;  %4508 = vmatprep.mubr.f32.mxu1 %v4886_v63 }
 0x2d9   : > { %4669 = vmatprep.subr.bf16.mxu1 %v5300_v10 }
 0x2dc   : > { %4671 = vmatpush3.bf16.msra.mxu1 %v5300_v10 }
 0x2dd   : > { %4673 = vmatprep.subr.bf16.mxu1 %v5302_v11 }
 0x2e0   : > { %4675 = vmatpush3.bf16.msra.mxu1 %v5302_v11 }
 0x2e1   : > { %4677 = vmatprep.subr.bf16.mxu1 %v5313_v15 }
 0x2e4   : > { %4679 = vmatpush3.bf16.msra.mxu1 %v5313_v15 }
 0x2e5   : > { %4681 = vmatprep.subr.bf16.mxu1 %v5324_v19 }
 0x2e8   : > { %4683 = vmatpush3.bf16.msra.mxu1 %v5324_v19 }
 0x2e9   : > { %4685 = vmatprep.subr.bf16.mxu1 %v5326_v20 }
 0x2ec   : > { %4687 = vmatpush3.bf16.msra.mxu1 %v5326_v20 }
 0x2ed   : > { %4689 = vmatprep.subr.bf16.mxu1 %v5331_v22 }
 0x2f0   : > { %4691 = vmatpush3.bf16.msra.mxu1 %v5331_v22 }
 0x2f1   : > { %4693 = vmatprep.subr.bf16.mxu1 %v5333_v23 }
 0x2f4   : > { %4695 = vmatpush3.bf16.msra.mxu1 %v5333_v23 }
 0x2f5   : > { %4534 = vmatprep.subr.bf16.mxu1 %v1168_v4 }
 0x2f7   : > { %4509 = vmatmul.mubr.f32.vlgmr.msra.gmra.mrb[12].mxu1 %v4890_v1 }
 0x2f8   : > { %4511 = vmatprep.mubr.f32.mxu1 %v4884_v62  ;;  %4535 = vmatpush3.bf16.msra.mxu1 %v1168_v4 }
 0x2f9   : > { %4536 = vmatprep.subr.bf16.mxu1 %v1169_v18 }
 0x2fb   : > { %4512 = vmatmul.mubr.f32.gmra.mrb[14].mxu1 %v4888_v0 }
 0x2fc   : > { %4537 = vmatpush3.bf16.msra.mxu1 %v1169_v18 }
 0x2fd   : > { %4538 = vmatprep.subr.bf16.mxu1 %v1170_v28 }
 0x300   : > { %4539 = vmatpush3.bf16.msra.mxu1 %v1170_v28  ;;  %v1226_v25 = vpop.xlane.xlu0 %1225 }
 0x301   : > { %4540 = vmatprep.subr.bf16.mxu1 %v1171_v30  ;;  %v1233_v31 = vsub.f32 %v5575_v27, %v1226_v25 }
 0x302   : > { %v1228_v32 = vpop.xlane.xlu1 %1227 }
 0x303   : > { %v1237_v33 = vmul.f32 1.442695, %v1233_v31  ;;  %v1234_v34 = vsub.f32 %v5580_v52, %v1228_v32 }
 0x304   : > { %4541 = vmatpush3.bf16.msra.mxu1 %v1171_v30  ;;  %v1230_v36 = vpop.xlane.xlu0 %1229 }
 0x305   : > { %v1239_v37 = vmul.f32 1.442695, %v1234_v34  ;;  %4542 = vmatprep.subr.bf16.mxu1 %v1172_v35  ;;  %v1235_v38 = vsub.f32 %v5573_v50, %v1230_v36  ;;  %4891 = vpow2.f32 %v1237_v33 }
 0x306   : > { %v1232_v39 = vpop.xlane.xlu1 %1231 }
 0x307   : > { %4893 = vpow2.f32 %v1239_v37  ;;  %v1241_v40 = vmul.f32 1.442695, %v1235_v38  ;;  %v1236_v42 = vsub.f32 %v5578_v29, %v1232_v39 }
 0x308   : > { %4543 = vmatpush3.bf16.msra.mxu1 %v1172_v35 }
 0x309   : > { %v1243_v44 = vmul.f32 1.442695, %v1236_v42  ;;  %4544 = vmatprep.subr.bf16.mxu1 %v1173_v43  ;;  %4895 = vpow2.f32 %v1241_v40 }
 0x30b   : > { %4897 = vpow2.f32 %v1243_v44  ;;  %v4025_v44 = vld [vmem:[%s7072_s6] ss:$0 sm:$0xff] }
 0x30c   : > { %4545 = vmatpush3.bf16.msra.mxu1 %v1173_v43 }
 0x30d   : > { %4546 = vmatprep.subr.bf16.mxu1 %v1174_v45 }
 0x30f   : > { %v4892_v47 = vpop.eup %4891 }
 0x310   : > { %4547 = vmatpush3.bf16.msra.mxu1 %v1174_v45 }
 0x311   : > { %v4894_v50 = vpop.eup %4893  ;;  %4548 = vmatprep.subr.bf16.mxu1 %v1175_v46 }
 0x312   : > { %v1245_v27 = vpack.c.bf16 %v4894_v50, %v4892_v47 }
 0x313   : > { %v4896_v29 = vpop.eup %4895 }
 0x314   : > { %4549 = vmatpush3.bf16.msra.mxu1 %v1175_v46  ;;  %4550 = vmatprep.mubr.bf16.mxu1 %v1245_v27 }
 0x315   : > { %v4898_v52 = vpop.eup %4897  ;;  %4697 = vmatprep.subr.bf16.mxu1 %v5289_v6 }
 0x316   : > { %v1246_v53 = vpack.c.bf16 %v4898_v52, %v4896_v29 }
 0x318   : > { %4551 = vmatmul.mubr.bf16.vlgmr.msra.gmra.mrb[16].mxu1 %v1246_v53  ;;  %v5075_v53 = vld [vmem:[#allocation2] sm:$0xff] }
 0x319   : > { %4699 = vmatpush3.bf16.msra.mxu1 %v5289_v6  ;;  %4586 = vmatprep.mubr.f32.mxu1 %v4892_v47  ;;  %v4795_v6 = vld [vmem:[%s7071_s5] sm:$0xff]  }
 0x31a   : > { %4701 = vmatprep.subr.bf16.mxu1 %v5300_v10  ;;  %4592 = vmatprep.subr.bf16.mxu0 %v4795_v6 }
 0x31b   : > { %4593 = vmatpush3.bf16.msra.mxu0 %v4795_v6 }
 0x31d   : > { %4703 = vmatpush3.bf16.msra.mxu1 %v5300_v10  ;;  %v4796_v10 = vld [vmem:[%s7071_s5 + $0x8] sm:$0xff]  }
 0x31e   : > { %4705 = vmatprep.subr.bf16.mxu1 %v5302_v11  ;;  %4594 = vmatprep.subr.bf16.mxu0 %v4796_v10 }
 0x31f   : > { %4595 = vmatpush3.bf16.msra.mxu0 %v4796_v10 }
 0x321   : > { %4707 = vmatpush3.bf16.msra.mxu1 %v5302_v11  ;;  %v4797_v11 = vld [vmem:[%s7071_s5 + $0x10] sm:$0xff]  }
 0x322   : > { %4709 = vmatprep.subr.bf16.mxu1 %v5313_v15  ;;  %4596 = vmatprep.subr.bf16.mxu0 %v4797_v11 }
 0x323   : > { %4597 = vmatpush3.bf16.msra.mxu0 %v4797_v11  ;;  %v5076_v11 = vld [vmem:[#allocation2 + $0x8] sm:$0xff] }
 0x325   : > { %4711 = vmatpush3.bf16.msra.mxu1 %v5313_v15  ;;  %v4798_v15 = vld [vmem:[%s7071_s5 + $0x18] sm:$0xff]  }
 0x326   : > { %4713 = vmatprep.subr.bf16.mxu1 %v5324_v19  ;;  %4598 = vmatprep.subr.bf16.mxu0 %v4798_v15 }
 0x327   : > { %4599 = vmatpush3.bf16.msra.mxu0 %v4798_v15 }
 0x329   : > { %4715 = vmatpush3.bf16.msra.mxu1 %v5324_v19  ;;  %v4799_v19 = vld [vmem:[%s7071_s5 + $0x20] sm:$0xff]  }
 0x32a   : > { %4717 = vmatprep.subr.bf16.mxu1 %v5326_v20  ;;  %4600 = vmatprep.subr.bf16.mxu0 %v4799_v19 }
 0x32b   : > { %4601 = vmatpush3.bf16.msra.mxu0 %v4799_v19 }
 0x32d   : > { %4719 = vmatpush3.bf16.msra.mxu1 %v5326_v20  ;;  %v4800_v20 = vld [vmem:[%s7071_s5 + $0x28] sm:$0xff]  }
 0x32e   : > { %4721 = vmatprep.subr.bf16.mxu1 %v5331_v22  ;;  %4602 = vmatprep.subr.bf16.mxu0 %v4800_v20 }
 0x32f   : > { %4603 = vmatpush3.bf16.msra.mxu0 %v4800_v20 }
 0x331   : > { %4723 = vmatpush3.bf16.msra.mxu1 %v5331_v22  ;;  %v4801_v22 = vld [vmem:[%s7071_s5 + $0x30] sm:$0xff]  }
 0x332   : > { %4725 = vmatprep.subr.bf16.mxu1 %v5333_v23  ;;  %4604 = vmatprep.subr.bf16.mxu0 %v4801_v22 }
 0x333   : > { %4605 = vmatpush3.bf16.msra.mxu0 %v4801_v22 }
 0x335   : > { %4727 = vmatpush3.bf16.msra.mxu1 %v5333_v23  ;;  %v4802_v23 = vld [vmem:[%s7071_s5 + $0x38] sm:$0xff]  }
 0x336   : > { %4606 = vmatprep.subr.bf16.mxu0 %v4802_v23 }
 0x337   : > { %4607 = vmatpush3.bf16.msra.mxu0 %v4802_v23 }
 0x338   : > { %4587 = vmatmul.mubr.f32.vlgmr.msra.gmra.mrb[20].mxu1 %v4894_v50 }
 0x339   : > { %4589 = vmatprep.mubr.f32.mxu1 %v4896_v29 }
 0x33c   : > { %4590 = vmatmul.mubr.f32.gmra.mrb[22].mxu1 %v4898_v52 }
 0x33d   : > { %1906 = vmatprep.mubr.bf16.mxu1 %v5167_v51 }
 0x3aa   : > { %v4474_v48 = vpop.f32.mrb[8].mxu1 }
 0x3ab   : > { %v1052_v49 = vpop.f32.mrb[9].mxu1 }
 0x3ac   : > { %v4475_v8 = vpop.f32.mrb[10].mxu1 }
 0x3ad   : > { %v1055_v13 = vpop.f32.mrb[11].mxu1 }
 0x3ca   : > { %v4510_v17 = vpop.f32.mrb[12].mxu1 }
 0x3cb   : > { %4899 = vrcp.f32 %v4510_v17  ;;  %v1133_v41 = vpop.f32.mrb[13].mxu1 }
 0x3cc   : > { %4901 = vrcp.f32 %v1133_v41 }
 0x3ce   : > { %v4513_v54 = vpop.f32.mrb[14].mxu1 }
 0x3cf   : > { %4903 = vrcp.f32 %v4513_v54  ;;  %v1143_v55 = vpop.f32.mrb[15].mxu1 }
 0x3d0   : > { %4905 = vrcp.f32 %v1143_v55 }
 0x3d5   : > { %v4900_v56 = vpop.eup %4899 }
 0x3d6   : > { %v4902_v58 = vpop.eup %4901  ;;  %v1157_v59 = vmul.f32 %v4900_v56, %v1055_v13  ;;  %v4808_v56 = vld [vmem:[%s7073_s7 + $0xc] ss:$16 sps:$4 sm:$0xff]  }
 0x3d7   : > { %v1156_v60 = vmul.f32 %v4902_v58, %v1052_v49  ;;  %v4814_v58 = vld [vmem:[%s7073_s7 + $0x2c] ss:$16 sps:$4 sm:$0xff]   ;;  %1947 = vmatprep.subr.bf16.mxu0 %v4808_v56 }
 0x3d9   : > { %v4904_v61 = vpop.eup %4903  ;;  %v1405_v62 = vpack.c.bf16 %v1157_v59, %v1156_v60  ;;  %v4809_v59 = vld [vmem:[%s7073_s7 + $0x20] ss:$16 sps:$4 sm:$0xff]   ;;  %v4812_v60 = vld [vmem:[%s7073_s7 + $0x28] ss:$16 sps:$4 sm:$0xff]  }
 0x3da   : > { %v4906_v63 = vpop.eup %4905  ;;  %v1159_v0 = vmul.f32 %v4904_v61, %v4475_v8 }
 0x3db   : > { %4608 = vmatprep.mubr.bf16.mxu0 %v1405_v62  ;;  %v1158_v1 = vmul.f32 %v4906_v63, %v4474_v48 }
 0x3dd   : > { %v1406_v2 = vpack.c.bf16 %v1159_v0, %v1158_v1 }
 0x3df   : > { %4609 = vmatmul.mubr.bf16.vlgmr.msra.gmra.mrb[24].mxu0 %v1406_v2 }
 0x3eb   : > { %v4552_v3 = vpop.f32.mrb[16].mxu1 }
 0x3ec   : > { %v1281_v4 = vpop.f32.mrb[17].mxu1 }
 0x3ed   : > { %v4553_v18 = vpop.f32.mrb[18].mxu1 }
 0x3ee   : > { %v1284_v28 = vpop.f32.mrb[19].mxu1 }
 0x40b   : > { %v4588_v30 = vpop.f32.mrb[20].mxu1 }
 0x40c   : > { %4907 = vrcp.f32 %v4588_v30  ;;  %v1362_v25 = vpop.f32.mrb[21].mxu1 }
 0x40d   : > { %4909 = vrcp.f32 %v1362_v25 }
 0x40f   : > { %v4591_v31 = vpop.f32.mrb[22].mxu1 }
 0x410   : > { %4911 = vrcp.f32 %v4591_v31  ;;  %v1372_v32 = vpop.f32.mrb[23].mxu1 }
 0x411   : > { %4913 = vrcp.f32 %v1372_v32 }
 0x416   : > { %v4908_v33 = vpop.eup %4907 }
 0x417   : > { %v4910_v34 = vpop.eup %4909  ;;  %v1386_v35 = vmul.f32 %v4908_v33, %v1284_v28 }
 0x418   : > { %v1385_v36 = vmul.f32 %v4910_v34, %v1281_v4 }
 0x41a   : > { %v4912_v37 = vpop.eup %4911  ;;  %v1407_v38 = vpack.c.bf16 %v1386_v35, %v1385_v36  ;;  %v4817_v35 = vld [vmem:[%s7073_s7 + $0x44] ss:$16 sps:$4 sm:$0xff]   ;;  %v4820_v36 = vld [vmem:[%s7073_s7 + $0x4c] ss:$16 sps:$4 sm:$0xff]  }
 0x41b   : > { %v4914_v39 = vpop.eup %4913  ;;  %v1388_v40 = vmul.f32 %v4912_v37, %v4553_v18  ;;  %v4815_v37 = vld [vmem:[%s7073_s7 + $0x40] ss:$16 sps:$4 sm:$0xff]  }
 0x41c   : > { %4612 = vmatprep.mubr.bf16.mxu0 %v1407_v38  ;;  %v1387_v42 = vmul.f32 %v4914_v39, %v4552_v3  ;;  %v4818_v38 = vld [vmem:[%s7073_s7 + $0x48] ss:$16 sps:$4 sm:$0xff]   ;;  %v4823_v39 = vld [vmem:[%s7073_s7 + $0x64] ss:$16 sps:$4 sm:$0xff]  }
 0x41e   : > { %v1408_v43 = vpack.c.bf16 %v1388_v40, %v1387_v42  ;;  %v4826_v40 = vld [vmem:[%s7073_s7 + $0x6c] ss:$16 sps:$4 sm:$0xff]   ;;  %v4821_v42 = vld [vmem:[%s7073_s7 + $0x60] ss:$16 sps:$4 sm:$0xff]  }
 0x420   : > { %4613 = vmatmul.mubr.bf16.gmra.mrb[28].mxu0 %v1408_v43  ;;  %v4824_v43 = vld [vmem:[%s7073_s7 + $0x68] ss:$16 sps:$4 sm:$0xff]  }
 0x421   : > { %1979 = vmatprep.mubr.bf16.mxu0 %v5167_v51 }
 0x4b2   : > { %v4610_v45 = vpop.f32.mrb[24].mxu0 }
 0x4b3   : > { %v1498_v46 = vpop.f32.mrb[25].mxu0  ;;  %v1507_v29 = vadd.f32 %v4610_v45, %v4025_v44  ;;  %v4832_v45 = vld [vmem:[%s7073_s7 + $0x8c] ss:$16 sps:$4 sm:$0xff]  }
 0x4b4   : > { %v1499_v47 = vadd.f32 %v4025_v44, %v1498_v46  ;;  %v4611_v50 = vpop.f32.mrb[26].mxu0  ;;  %v4827_v46 = vld [vmem:[%s7073_s7 + $0x80] ss:$16 sps:$4 sm:$0xff]  }
 0x4b5   : > { %v1501_v27 = vpop.f32.mrb[27].mxu0  ;;  %v1510_v10 = vadd.f32 %v4611_v50, %v4025_v44  ;;  %v1531_v19 = vadd.f32 %v1507_v29, %v5433_v5  ;;  %v4835_v50 = vld [vmem:[%s7073_s7 + $0xa4] ss:$16 sps:$4 sm:$0xff]   ;;  %v4833_v29 = vld [vmem:[%s7073_s7 + $0xa0] ss:$16 sps:$4 sm:$0xff]  }
 0x4b6   : > { %v1502_v52 = vadd.f32 %v4025_v44, %v1501_v27  ;;  %v1529_v6 = vadd.f32 %v5075_v53, %v1499_v47  ;;  %v4830_v47 = vld [vmem:[%s7073_s7 + $0x88] ss:$16 sps:$4 sm:$0xff]   ;;  %v4838_v27 = vld [vmem:[%s7073_s7 + $0xac] ss:$16 sps:$4 sm:$0xff]   ;;  %v4841_v53 = vld [vmem:[%s7073_s7 + $0xc4] ss:$16 sps:$4 sm:$0xff]  }
 0x4b7   : > { %v1532_v20 = vadd.f32 %v1510_v10, %v5435_v7  ;;  %v4839_v10 = vld [vmem:[%s7073_s7 + $0xc0] ss:$16 sps:$4 sm:$0xff]  }
 0x4b8   : > { %1539 = vadd.xlane.f32.xlu0 %v1529_v6  ;;  %v1530_v15 = vadd.f32 %v5076_v11, %v1502_v52  ;;  %v4836_v52 = vld [vmem:[%s7073_s7 + $0xa8] ss:$16 sps:$4 sm:$0xff]  }
 0x4b9   : > { %v4842_v11 = vld [vmem:[%s7073_s7 + $0xc8] ss:$16 sps:$4 sm:$0xff]  }
 0x4ba   : > { %1541 = vadd.xlane.f32.xlu1 %v1530_v15 }
 0x4bc   : > { %1543 = vadd.xlane.f32.xlu0 %v1531_v19 }
 0x4be   : > { %1545 = vadd.xlane.f32.xlu1 %v1532_v20 }
 0x4f3   : > { %v4614_v22 = vpop.f32.mrb[28].mxu0 }
 0x4f4   : > { %v1514_v23 = vpop.f32.mrb[29].mxu0  ;;  %v1523_v13 = vadd.f32 %v4614_v22, %v4025_v44  ;;  %v4850_v22 = vld [vmem:[%s7073_s7 + $0xec] ss:$16 sps:$4 sm:$0xff]  }
 0x4f5   : > { %v1515_v48 = vadd.f32 %v4025_v44, %v1514_v23  ;;  %v4615_v49 = vpop.f32.mrb[30].mxu0 }
 0x4f6   : > { %v1517_v8 = vpop.f32.mrb[31].mxu0  ;;  %v1526_v54 = vadd.f32 %v4615_v49, %v4025_v44  ;;  %v5676_v5 = vadd.f32 %v1523_v13, %v5452_v14  ;;  %v4806_v14 = vld [vmem:[%s7073_s7 + $0x8] ss:$16 sps:$4 sm:$0xff]  }
 0x4f7   : > { %v1518_v17 = vadd.f32 %v4025_v44, %v1517_v8  ;;  %v5668_v41 = vadd.f32 %v1515_v48, %v5442_v9  ;;  %v4803_v9 = vld [vmem:[%s7073_s7] ss:$16 sps:$4 sm:$0xff]   ;;  %1948 = vmatpush1.bf16.msra.mxu0 %v4806_v14  ;;  %v4829_v44 = vld [vmem:[%s7073_s7 + $0x84] ss:$16 sps:$4 sm:$0xff]  }
 0x4f8   : > { %v5680_v7 = vadd.f32 %v1526_v54, %v5454_v16  ;;  %v4811_v16 = vld [vmem:[%s7073_s7 + $0x24] ss:$16 sps:$4 sm:$0xff]   ;;  %1949 = vmatprep.subr.bf16.mxu0 %v4814_v58 }
 0x4f9   : > { %1547 = vadd.xlane.f32.xlu0 %v5668_v41  ;;  %v5672_v55 = vadd.f32 %v1518_v17, %v5444_v12  ;;  %v4805_v12 = vld [vmem:[%s7073_s7 + $0x4] ss:$16 sps:$4 sm:$0xff]  }
 0x4fa   : > { %1874 = vmatprep.subr.bf16.mxu1 %v4805_v12 }
 0x4fb   : > { %1549 = vadd.xlane.f32.xlu1 %v5672_v55  ;;  %1875 = vmatpush1.bf16.msra.mxu1 %v4803_v9 }
 0x4fc   : > { %1876 = vmatprep.subr.bf16.mxu1 %v4811_v16  ;;  %1950 = vmatpush1.bf16.msra.mxu0 %v4812_v60 }
 0x4fd   : > { %1551 = vadd.xlane.f32.xlu0 %v5676_v5  ;;  %1951 = vmatprep.subr.bf16.mxu0 %v4820_v36 }
 0x4ff   : > { %1553 = vadd.xlane.f32.xlu1 %v5680_v7  ;;  %1877 = vmatpush1.bf16.msra.mxu1 %v4809_v59 }
 0x500   : > { %1878 = vmatprep.subr.bf16.mxu1 %v4817_v35  ;;  %1952 = vmatpush1.bf16.msra.mxu0 %v4818_v38 }
 0x501   : > { %1953 = vmatprep.subr.bf16.mxu0 %v4826_v40 }
 0x503   : > { %1879 = vmatpush1.bf16.msra.mxu1 %v4815_v37 }
 0x504   : > { %1880 = vmatprep.subr.bf16.mxu1 %v4823_v39  ;;  %1954 = vmatpush1.bf16.msra.mxu0 %v4824_v43  ;;  %v4035_v39 = vld [vmem:[%s7078_s12] ss:$0 sm:$0xff] }
 0x505   : > { %1955 = vmatprep.subr.bf16.mxu0 %v4832_v45 }
 0x507   : > { %1881 = vmatpush1.bf16.msra.mxu1 %v4821_v42 }
 0x508   : > { %1882 = vmatprep.subr.bf16.mxu1 %v4829_v44  ;;  %1956 = vmatpush1.bf16.msra.mxu0 %v4830_v47 }
 0x509   : > { %1957 = vmatprep.subr.bf16.mxu0 %v4838_v27 }
 0x50b   : > { %1883 = vmatpush1.bf16.msra.mxu1 %v4827_v46 }
 0x50c   : > { %1884 = vmatprep.subr.bf16.mxu1 %v4835_v50  ;;  %1958 = vmatpush1.bf16.msra.mxu0 %v4836_v52 }
 0x50f   : > { %1885 = vmatpush1.bf16.msra.mxu1 %v4833_v29 }
 0x510   : > { %1886 = vmatprep.subr.bf16.mxu1 %v4841_v53 }
 0x513   : > { %1887 = vmatpush1.bf16.msra.mxu1 %v4839_v10 }
 0x545   : > { %v1540_v61 = vpop.xlane.xlu0 %1539 }
 0x546   : > { %v1556_v62 = vmul.f32 0.0078125, %v1540_v61 }
 0x547   : > { %v1542_v63 = vpop.xlane.xlu1 %1541 }
 0x548   : > { %v5707_v0 = vsub.f32 %v1529_v6, %v1556_v62  ;;  %v1557_v1 = vmul.f32 0.0078125, %v1542_v63  ;;  %v4844_v6 = vld [vmem:[%s7073_s7 + $0xcc] ss:$16 sps:$4 sm:$0xff]  }
 0x549   : > { %v1544_v2 = vpop.xlane.xlu0 %1543  ;;  %1959 = vmatprep.subr.bf16.mxu0 %v4844_v6 }
 0x54a   : > { %v5709_v3 = vsub.f32 %v1530_v15, %v1557_v1  ;;  %v1558_v4 = vmul.f32 0.0078125, %v1544_v2  ;;  %v1572_v18 = vmul.f32 %v5707_v0, %v5707_v0  ;;  %1960 = vmatpush1.bf16.msra.mxu0 %v4842_v11  ;;  %v4845_v15 = vld [vmem:[%s7073_s7 + $0xe0] ss:$16 sps:$4 sm:$0xff]  }
 0x54b   : > { %v1546_v28 = vpop.xlane.xlu1 %1545  ;;  %1961 = vmatprep.subr.bf16.mxu0 %v4850_v22 }
 0x54c   : > { %v5713_v30 = vsub.f32 %v1531_v19, %v1558_v4  ;;  %v1559_v25 = vmul.f32 0.0078125, %v1546_v28  ;;  %1580 = vadd.xlane.f32.xlu0 %v1572_v18  ;;  %v1573_v31 = vmul.f32 %v5709_v3, %v5709_v3  ;;  %v4847_v19 = vld [vmem:[%s7073_s7 + $0xe4] ss:$16 sps:$4 sm:$0xff]  }
 0x54d   : > { %1888 = vmatprep.subr.bf16.mxu1 %v4847_v19 }
 0x54e   : > { %v5717_v32 = vsub.f32 %v1532_v20, %v1559_v25  ;;  %1582 = vadd.xlane.f32.xlu1 %v1573_v31  ;;  %v1574_v33 = vmul.f32 %v5713_v30, %v5713_v30  ;;  %v4848_v20 = vld [vmem:[%s7073_s7 + $0xe8] ss:$16 sps:$4 sm:$0xff]   ;;  %1889 = vmatpush1.bf16.msra.mxu1 %v4845_v15 }
 0x54f   : > { %1962 = vmatpush1.bf16.msra.mxu0 %v4848_v20 }
 0x550   : > { %1584 = vadd.xlane.f32.xlu0 %v1574_v33  ;;  %v1575_v34 = vmul.f32 %v5717_v32, %v5717_v32  ;;  %v4034_v33 = vld [vmem:[%s7077_s11] ss:$0 sm:$0xff] }
 0x552   : > { %1586 = vadd.xlane.f32.xlu1 %v1575_v34 }
 0x586   : > { %v1548_v23 = vpop.xlane.xlu0 %1547 }
 0x587   : > { %v1560_v48 = vmul.f32 0.0078125, %v1548_v23 }
 0x588   : > { %v1550_v49 = vpop.xlane.xlu1 %1549 }
 0x589   : > { %v5796_v8 = vsub.f32 %v5668_v41, %v1560_v48  ;;  %v1561_v13 = vmul.f32 0.0078125, %v1550_v49 }
 0x58a   : > { %v1552_v17 = vpop.xlane.xlu0 %1551 }
 0x58b   : > { %v5799_v54 = vsub.f32 %v5672_v55, %v1561_v13  ;;  %v1562_v9 = vmul.f32 0.0078125, %v1552_v17  ;;  %v1576_v12 = vmul.f32 %v5796_v8, %v5796_v8 }
 0x58c   : > { %v1554_v14 = vpop.xlane.xlu1 %1553 }
 0x58d   : > { %v5804_v56 = vsub.f32 %v5676_v5, %v1562_v9  ;;  %v1563_v16 = vmul.f32 0.0078125, %v1554_v14  ;;  %1588 = vadd.xlane.f32.xlu0 %v1576_v12  ;;  %v1577_v58 = vmul.f32 %v5799_v54, %v5799_v54 }
 0x58f   : > { %v5809_v41 = vsub.f32 %v5680_v7, %v1563_v16  ;;  %1590 = vadd.xlane.f32.xlu1 %v1577_v58  ;;  %v1578_v55 = vmul.f32 %v5804_v56, %v5804_v56 }
 0x591   : > { %1592 = vadd.xlane.f32.xlu0 %v1578_v55  ;;  %v1579_v59 = vmul.f32 %v5809_v41, %v5809_v41 }
 0x593   : > { %1594 = vadd.xlane.f32.xlu1 %v1579_v59 }
 0x5d9   : > { %v1581_v60 = vpop.xlane.xlu0 %1580 }
 0x5da   : > { %v1596_v5 = vmul.f32 0.0078125, %v1581_v60 }
 0x5db   : > { %v1583_v61 = vpop.xlane.xlu1 %1582 }
 0x5dc   : > { %v1604_v62 = vadd.f32 1e-05, %v1596_v5  ;;  %v1597_v63 = vmul.f32 0.0078125, %v1583_v61 }
 0x5dd   : > { %v1585_v1 = vpop.xlane.xlu0 %1584 }
 0x5de   : > { %4915 = vrsqrt.f32 %v1604_v62  ;;  %v1605_v2 = vadd.f32 1e-05, %v1597_v63  ;;  %v1598_v4 = vmul.f32 0.0078125, %v1585_v1  ;;  %v5865_v63 = vld [vmem:[%s7075_s9 + $0xc0] sm:$0xff]  }
 0x5df   : > { %v1587_v7 = vpop.xlane.xlu1 %1586  ;;  %v5873_v1 = vld [vmem:[%s7075_s9 + $0x80] sm:$0xff]   ;;  %4348 = vmatprep.subr.bf16.mxu0 %v5865_v63 }
 0x5e0   : > { %4917 = vrsqrt.f32 %v1605_v2  ;;  %v1606_v18 = vadd.f32 1e-05, %v1598_v4  ;;  %v1599_v28 = vmul.f32 0.0078125, %v1587_v7  ;;  %v4855_v2 = vld [vmem:[%s7075_s9 + $0x48] sm:$0xff]  }
 0x5e1   : > { %v5883_v4 = vld [vmem:[%s7075_s9 + $0xc8] sm:$0xff]  }
 0x5e2   : > { %4919 = vrsqrt.f32 %v1606_v18  ;;  %v1607_v25 = vadd.f32 1e-05, %v1599_v28  ;;  %v4857_v7 = vld [vmem:[%s7075_s9 + $0x8] sm:$0xff]   ;;  %v4859_v28 = vld [vmem:[%s7075_s9 + $0x50] sm:$0xff]  }
 0x5e3   : > { %v5891_v18 = vld [vmem:[%s7075_s9 + $0x88] sm:$0xff]  }
 0x5e4   : > { %4921 = vrsqrt.f32 %v1607_v25  ;;  %v5901_v25 = vld [vmem:[%s7075_s9 + $0xd0] sm:$0xff]  }
 0x5e8   : > { %v4916_v31 = vpop.eup %4915 }
 0x5e9   : > { %v1620_v34 = vmul.f32 %v4916_v31, %v5707_v0  ;;  %v4861_v31 = vld [vmem:[%s7075_s9 + $0x10] sm:$0xff]  }
 0x5ea   : > { %v4918_v35 = vpop.eup %4917 }
 0x5eb   : > { %v1634_v36 = vmul.f32 %v4034_v33, %v1620_v34  ;;  %v1621_v37 = vmul.f32 %v4918_v35, %v5709_v3  ;;  %v4863_v34 = vld [vmem:[%s7075_s9 + $0x58] sm:$0xff]  }
 0x5ec   : > { %v4920_v38 = vpop.eup %4919  ;;  %v5919_v35 = vld [vmem:[%s7075_s9 + $0xd8] sm:$0xff]  }
 0x5ed   : > { %v1635_v40 = vmul.f32 %v4034_v33, %v1621_v37  ;;  %v5823_v43 = vadd.f32 %v4035_v39, %v1634_v36  ;;  %v1622_v45 = vmul.f32 %v4920_v38, %v5713_v30  ;;  %v4865_v36 = vld [vmem:[%s7075_s9 + $0x18] sm:$0xff]   ;;  %v4867_v38 = vld [vmem:[%s7075_s9 + $0x60] sm:$0xff]  }
 0x5ee   : > { %v4922_v42 = vpop.eup %4921  ;;  %v5927_v37 = vld [vmem:[%s7075_s9 + $0x98] sm:$0xff]  }
 0x5ef   : > { %7104 = vst [vmem:[#allocation7_spill] sm:$0xff] %v5823_v43  ;;  %v5825_v44 = vadd.f32 %v4035_v39, %v1635_v40  ;;  %v1623_v46 = vmul.f32 %v4922_v42, %v5717_v32  ;;  %v1636_v3 = vmul.f32 %v4034_v33, %v1622_v45  ;;  %7112 = vst [vmem:[#allocation15_spill] sm:$0xff] %v5927_v37  ;;  %v4869_v40 = vld [vmem:[%s7075_s9 + $0x20] sm:$0xff]   ;;  %v4871_v45 = vld [vmem:[%s7075_s9 + $0x68] sm:$0xff]  }
 0x5f0   : > { %v5945_v42 = vld [vmem:[%s7075_s9 + $0xa0] sm:$0xff]  }
 0x5f1   : > { %7105 = vst [vmem:[#allocation8_spill] sm:$0xff] %v5825_v44  ;;  %v1688_v0 = vpack.c.bf16 %v5825_v44, %v5823_v43  ;;  %v1637_v47 = vmul.f32 %v4034_v33, %v1623_v46  ;;  %v5835_v27 = vadd.f32 %v4035_v39, %v1636_v3  ;;  %7114 = vst [vmem:[#allocation17_spill] sm:$0xff] %v5945_v42  ;;  %v5955_v46 = vld [vmem:[%s7075_s9 + $0xe8] sm:$0xff]   ;;  %v4875_v3 = vld [vmem:[%s7075_s9 + $0x70] sm:$0xff]  }
 0x5f2   : > { %7115 = vst [vmem:[#allocation18_spill] sm:$0xff] %v5955_v46 }
 0x5f3   : > { %1907 = vmatmul.mubr.bf16.vlgmr.msra.gmra.mrb[24].mxu1 %v1688_v0  ;;  %1980 = vmatmul.mubr.bf16.vlgmr.msra.gmra.mrb[32].mxu0 %v1688_v0  ;;  %v5833_v50 = vadd.f32 %v4035_v39, %v1637_v47  ;;  %7107 = vst [vmem:[#allocation10_spill] sm:$0xff] %v5835_v27  ;;  %v4873_v0 = vld [vmem:[%s7075_s9 + $0x28] sm:$0xff]  }
 0x5f4   : > { %1916 = vmatprep.mubr.bf16.mxu1 %v5167_v51  ;;  %1989 = vmatprep.mubr.bf16.mxu0 %v5167_v51  ;;  %v5963_v47 = vld [vmem:[%s7075_s9 + $0xa8] sm:$0xff]  }
 0x5f5   : > { %7106 = vst [vmem:[#allocation9_spill] sm:$0xff] %v5833_v50  ;;  %v1689_v30 = vpack.c.bf16 %v5833_v50, %v5835_v27  ;;  %4349 = vmatpush3.bf16.msra.mxu0 %v5873_v1  ;;  %7116 = vst [vmem:[#allocation19_spill] sm:$0xff] %v5963_v47 }
 0x5f6   : > { %4350 = vmatprep.subr.bf16.mxu0 %v5883_v4 }
 0x5f9   : > { %4351 = vmatpush3.bf16.msra.mxu0 %v5891_v18 }
 0x5fa   : > { %4352 = vmatprep.subr.bf16.mxu0 %v5901_v25 }
 0x5fb   : > { %1917 = vmatmul.mubr.bf16.gmra.mrb[28].mxu1 %v1689_v30  ;;  %1990 = vmatmul.mubr.bf16.gmra.mrb[36].mxu0 %v1689_v30  ;;  %v5973_v30 = vld [vmem:[%s7075_s9 + $0xf0] sm:$0xff]  }
 0x5fc   : > { %1926 = vmatprep.mubr.bf16.mxu1 %v5167_v51  ;;  %1999 = vmatprep.mubr.bf16.mxu0 %v5167_v51  ;;  %7117 = vst [vmem:[#allocation20_spill] sm:$0xff] %v5973_v30 }
 0x61a   : > { %v1589_v32 = vpop.xlane.xlu0 %1588 }
 0x61b   : > { %v1600_v29 = vmul.f32 0.0078125, %v1589_v32  ;;  %v4877_v32 = vld [vmem:[%s7075_s9 + $0x30] sm:$0xff]  }
 0x61c   : > { %v1591_v52 = vpop.xlane.xlu1 %1590 }
 0x61d   : > { %v1608_v53 = vadd.f32 1e-05, %v1600_v29  ;;  %v1601_v6 = vmul.f32 0.0078125, %v1591_v52  ;;  %v4878_v29 = vld [vmem:[%s7075_s9 + $0xb0] sm:$0xff]   ;;  %v4879_v52 = vld [vmem:[%s7075_s9 + $0x78] sm:$0xff]  }
 0x61e   : > { %v1593_v10 = vpop.xlane.xlu0 %1592 }
 0x61f   : > { %4923 = vrsqrt.f32 %v1608_v53  ;;  %v1609_v11 = vadd.f32 1e-05, %v1601_v6  ;;  %v1602_v15 = vmul.f32 0.0078125, %v1593_v10  ;;  %v4880_v53 = vld [vmem:[%s7075_s9 + $0xf8] sm:$0xff]  }
 0x620   : > { %v1595_v19 = vpop.xlane.xlu1 %1594  ;;  %v4881_v6 = vld [vmem:[%s7075_s9 + $0x38] sm:$0xff]  }
 0x621   : > { %4925 = vrsqrt.f32 %v1609_v11  ;;  %v1610_v20 = vadd.f32 1e-05, %v1602_v15  ;;  %v1603_v22 = vmul.f32 0.0078125, %v1595_v19  ;;  %v4882_v10 = vld [vmem:[%s7075_s9 + $0xb8] sm:$0xff]   ;;  %v1692_v11 = vld [vmem:[%s7074_s8] sm:$0xf] }
 0x622   : > { %v1708_v15 = vsub.s32 3, %v5463_v21  ;;  %v6001_v19 = vrot.slane %v1692_v11, %v632_v24 }
 0x623   : > { %4927 = vrsqrt.f32 %v1610_v20  ;;  %v1611_v23 = vadd.f32 1e-05, %v1603_v22  ;;  %v6005_v20 = vrot.slane %v1692_v11, %v640_v57  ;;  %v6009_v22 = vrot.slane %v1692_v11, %v636_v26 }
 0x625   : > { %4929 = vrsqrt.f32 %v1611_v23  ;;  %v6011_v23 = vrot.slane %v1692_v11, %v1708_v15 }
 0x629   : > { %v4924_v48 = vpop.eup %4923 }
 0x62a   : > { %v1624_v49 = vmul.f32 %v4924_v48, %v5796_v8 }
 0x62b   : > { %v4926_v13 = vpop.eup %4925 }
 0x62c   : > { %v1625_v17 = vmul.f32 %v4926_v13, %v5799_v54  ;;  %v1638_v9 = vmul.f32 %v4034_v33, %v1624_v49 }
 0x62d   : > { %v4928_v12 = vpop.eup %4927 }
 0x62e   : > { %v1639_v14 = vmul.f32 %v4034_v33, %v1625_v17  ;;  %v5843_v58 = vadd.f32 %v4035_v39, %v1638_v9  ;;  %v1626_v59 = vmul.f32 %v4928_v12, %v5804_v56 }
 0x62f   : > { %v4930_v16 = vpop.eup %4929 }
 0x630   : > { %7108 = vst [vmem:[#allocation11_spill] sm:$0xff] %v5843_v58  ;;  %v5845_v55 = vadd.f32 %v4035_v39, %v1639_v14  ;;  %v1627_v60 = vmul.f32 %v4930_v16, %v5809_v41  ;;  %v1640_v8 = vmul.f32 %v4034_v33, %v1626_v59  ;;  %v4851_v41 = vld [vmem:[%s7075_s9 + $0x40] sm:$0xff]  }
 0x631   : > { %4308 = vmatprep.subr.bf16.mxu1 %v4851_v41 }
 0x632   : > { %7109 = vst [vmem:[#allocation12_spill] sm:$0xff] %v5845_v55  ;;  %v1690_v5 = vpack.c.bf16 %v5845_v55, %v5843_v58  ;;  %v1641_v61 = vmul.f32 %v4034_v33, %v1627_v60  ;;  %v5855_v62 = vadd.f32 %v4035_v39, %v1640_v8  ;;  %v5909_v33 = vld [vmem:[%s7075_s9 + $0x90] sm:$0xff]  }
 0x633   : > { %4353 = vmatpush3.bf16.msra.mxu0 %v5909_v33 }
 0x634   : > { %1927 = vmatmul.mubr.bf16.gmra.mrb[32].mxu1 %v1690_v5  ;;  %2000 = vmatmul.mubr.bf16.gmra.mrb[40].mxu0 %v1690_v5  ;;  %v5853_v54 = vadd.f32 %v4035_v39, %v1641_v61  ;;  %7111 = vst [vmem:[#allocation14_spill] sm:$0xff] %v5855_v62  ;;  %v5937_v39 = vld [vmem:[%s7075_s9 + $0xe0] sm:$0xff]  }
 0x635   : > { %1936 = vmatprep.mubr.bf16.mxu1 %v5167_v51  ;;  %2009 = vmatprep.mubr.bf16.mxu0 %v5167_v51  ;;  %v4853_v51 = vld [vmem:[%s7075_s9] sm:$0xff]   ;;  %7113 = vst [vmem:[#allocation16_spill] sm:$0xff] %v5937_v39 }
 0x636   : > { %7110 = vst [vmem:[#allocation13_spill] sm:$0xff] %v5853_v54  ;;  %v1691_v56 = vpack.c.bf16 %v5853_v54, %v5855_v62  ;;  %4309 = vmatpush3.bf16.msra.mxu1 %v4853_v51  ;;  %4354 = vmatprep.subr.bf16.mxu0 %v5919_v35 }
 0x637   : > { %4310 = vmatprep.subr.bf16.mxu1 %v4855_v2  ;;  %4355 = vmatpush3.bf16.msra.mxu0 %v5927_v37 }
 0x638   : > { %4356 = vmatprep.subr.bf16.mxu0 %v5937_v39 }
 0x63a   : > { %4311 = vmatpush3.bf16.msra.mxu1 %v4857_v7 }
 0x63b   : > { %4312 = vmatprep.subr.bf16.mxu1 %v4859_v28  ;;  %4357 = vmatpush3.bf16.msra.mxu0 %v5945_v42 }
 0x63c   : > { %1937 = vmatmul.mubr.bf16.gmra.mrb[36].mxu1 %v1691_v56  ;;  %2010 = vmatmul.mubr.bf16.gmra.mrb[44].mxu0 %v1691_v56 }
 0x63d   : > { %4358 = vmatprep.subr.bf16.mxu0 %v5955_v46 }
 0x63e   : > { %4313 = vmatpush3.bf16.msra.mxu1 %v4861_v31 }
 0x63f   : > { %4314 = vmatprep.subr.bf16.mxu1 %v4863_v34  ;;  %4359 = vmatpush3.bf16.msra.mxu0 %v5963_v47 }
 0x640   : > { %4360 = vmatprep.subr.bf16.mxu0 %v5973_v30 }
 0x642   : > { %4315 = vmatpush3.bf16.msra.mxu1 %v4865_v36 }
 0x643   : > { %4316 = vmatprep.subr.bf16.mxu1 %v4867_v38  ;;  %4361 = vmatpush3.bf16.msra.mxu0 %v4878_v29 }
 0x644   : > { %4362 = vmatprep.subr.bf16.mxu0 %v4880_v53 }
 0x646   : > { %4317 = vmatpush3.bf16.msra.mxu1 %v4869_v40 }
 0x647   : > { %4318 = vmatprep.subr.bf16.mxu1 %v4871_v45  ;;  %4363 = vmatpush3.bf16.msra.mxu0 %v4882_v10 }
 0x64a   : > { %4319 = vmatpush3.bf16.msra.mxu1 %v4873_v0 }
 0x64b   : > { %4320 = vmatprep.subr.bf16.mxu1 %v4875_v3 }
 0x64e   : > { %4321 = vmatpush3.bf16.msra.mxu1 %v4877_v32 }
 0x64f   : > { %4322 = vmatprep.subr.bf16.mxu1 %v4879_v52 }
 0x652   : > { %4323 = vmatpush3.bf16.msra.mxu1 %v4881_v6 }
 0x653   : > { %4728 = vmatprep.subr.bf16.mxu1 %v5865_v63 }
 0x6c6   : > { %v1908_v48 = vpop.f32.mrb[24].mxu1  ;;  %v1981_v49 = vpop.f32.mrb[32].mxu0 }
 0x6c7   : > { %v6014_v13 = vadd.f32 %v1908_v48, %v6001_v19  ;;  %v6017_v17 = vadd.f32 %v1981_v49, %v6005_v20  ;;  %v1910_v24 = vpop.f32.mrb[25].mxu1  ;;  %v1983_v9 = vpop.f32.mrb[33].mxu0 }
 0x6c8   : > { %v6020_v12 = vadd.f32 %v1910_v24, %v6009_v22  ;;  %v6023_v57 = vadd.f32 %v1983_v9, %v6011_v23  ;;  %v1912_v21 = vpop.f32.mrb[26].mxu1  ;;  %v1985_v26 = vpop.f32.mrb[34].mxu0 }
 0x6c9   : > { %v2020_v14 = vand.u32 2147483647, %v6014_v13  ;;  %v2022_v16 = vand.u32 2147483647, %v6017_v17  ;;  %v1914_v60 = vpop.f32.mrb[27].mxu1  ;;  %v1987_v41 = vpop.f32.mrb[35].mxu0  ;;  %v6030_v2 = vadd.f32 %v1912_v21, %v6001_v19  ;;  %v6047_v10 = vadd.f32 %v1985_v26, %v6005_v20 }
 0x6ca   : > { %v2021_v59 = vand.u32 2147483647, %v6020_v12  ;;  %v2023_v56 = vand.u32 2147483647, %v6023_v57  ;;  %v6054_v48 = vadd.f32 %v1914_v60, %v6009_v22  ;;  %vm2692_vm0 = vcmp.ge.f32.partialorder %v6014_v13, 0.0 }
 0x6cb   : > { %v2052_v5 = vmul.f32 0.70710677, %v2020_v14  ;;  %v2054_v61 = vmul.f32 0.70710677, %v2022_v16  ;;  %v2024_v32 = vand.u32 2147483647, %v6030_v2  ;;  %v6059_v14 = vadd.f32 %v1987_v41, %v6011_v23 }
 0x6cc   : > { %v2053_v8 = vmul.f32 0.70710677, %v2021_v59  ;;  %v6032_v28 = vmul.f32 0.70710677, %v2023_v56  ;;  %v2026_v24 = vand.u32 2147483647, %v6047_v10 }
 0x6cd   : > { %v2084_v63 = vmul.f32 0.3275911, %v2052_v5  ;;  %v2086_v51 = vmul.f32 0.3275911, %v2054_v61  ;;  %v2056_v6 = vmul.f32 0.70710677, %v2024_v32 }
 0x6ce   : > { %v2085_v7 = vmul.f32 0.3275911, %v2053_v8  ;;  %v1918_v36 = vpop.f32.mrb[28].mxu1  ;;  %v6034_v38 = vpop.f32.mrb[36].mxu0  ;;  %v2087_v40 = vmul.f32 0.3275911, %v6032_v28 }
 0x6cf   : > { %v2116_v31 = vadd.f32 1.0, %v2084_v63  ;;  %v2118_v34 = vadd.f32 1.0, %v2086_v51  ;;  %v6037_v45 = vpop.f32.mrb[29].mxu1  ;;  %v6039_v0 = vpop.f32.mrb[37].mxu0  ;;  %v2088_v49 = vmul.f32 0.3275911, %v2056_v6 }
 0x6d0   : > { %v2117_v3 = vadd.f32 1.0, %v2085_v7  ;;  %v6042_v29 = vpop.f32.mrb[30].mxu1  ;;  %v6044_v52 = vpop.f32.mrb[38].mxu0  ;;  %v2119_v53 = vadd.f32 1.0, %v2087_v40  ;;  %v2500_v9 = vsub.f32 0.0, %v2052_v5  ;;  %v2502_v59 = vsub.f32 0.0, %v2054_v61 }
 0x6d1   : > { %4931 = vrcp.f32 %v2116_v31  ;;  %v6049_v11 = vpop.f32.mrb[31].mxu1  ;;  %v6051_v15 = vpop.f32.mrb[39].mxu0  ;;  %v2025_v21 = vand.u32 2147483647, %v6054_v48  ;;  %v2120_v26 = vadd.f32 1.0, %v2088_v49  ;;  %v2501_v41 = vsub.f32 0.0, %v2053_v8 }
 0x6d2   : > { %4933 = vrcp.f32 %v2118_v34  ;;  %v2058_v16 = vmul.f32 0.70710677, %v2026_v24  ;;  %v2532_v60 = vmul.f32 %v2500_v9, %v2052_v5  ;;  %v2027_v7 = vand.u32 2147483647, %v6059_v14 }
 0x6d3   : > { %4935 = vrcp.f32 %v2117_v3  ;;  %v6061_v56 = vmul.f32 0.70710677, %v2025_v21  ;;  %v6068_v34 = vmul.f32 0.5, %v6014_v13  ;;  %v2504_v9 = vsub.f32 0.0, %v2056_v6 }
 0x6d4   : > { %4937 = vrcp.f32 %v2119_v53  ;;  %v2090_v63 = vmul.f32 0.3275911, %v2058_v16  ;;  %v2534_v53 = vmul.f32 %v2502_v59, %v2054_v61  ;;  %v6073_v24 = vmul.f32 0.70710677, %v2027_v7 }
 0x6d5   : > { %4939 = vrcp.f32 %v2120_v26  ;;  %v2089_v51 = vmul.f32 0.3275911, %v6061_v56  ;;  %v6077_v21 = vadd.f32 %v1918_v36, %v6001_v19  ;;  %v2564_v54 = vmul.f32 1.442695, %v2532_v60 }
 0x6d6   : > { %v2122_v40 = vadd.f32 1.0, %v2090_v63  ;;  %v2091_v63 = vmul.f32 0.3275911, %v6073_v24  ;;  %v2533_v58 = vmul.f32 %v2501_v41, %v2053_v8  ;;  %v2506_v61 = vsub.f32 0.0, %v2058_v16 }
 0x6d7   : > { %v2121_v49 = vadd.f32 1.0, %v2089_v51  ;;  %v2028_v59 = vand.u32 2147483647, %v6077_v21  ;;  %vm2694_vm1 = vcmp.ge.f32.partialorder %v6017_v17, 0.0  ;;  %vm2696_vm2 = vcmp.ge.f32.partialorder %v6030_v2, 0.0 }
 0x6d8   : > { %4941 = vrcp.f32 %v2122_v40  ;;  %v2503_v40 = vsub.f32 0.0, %v6032_v28  ;;  %v2123_v36 = vadd.f32 1.0, %v2091_v63  ;;  %v2538_v43 = vmul.f32 %v2506_v61, %v2058_v16 }
 0x6d9   : > { %4943 = vrcp.f32 %v2121_v49  ;;  %v2536_v49 = vmul.f32 %v2504_v9, %v2056_v6  ;;  %v6089_v27 = vmul.f32 0.70710677, %v2028_v59  ;;  %v2566_v59 = vmul.f32 1.442695, %v2533_v58 }
 0x6da   : > { %4945 = vrcp.f32 %v2123_v36  ;;  %v2576_v47 = vmul.f32 1.442695, %v2538_v43  ;;  %v2507_v43 = vsub.f32 0.0, %v6073_v24  ;;  %vm2698_vm3 = vcmp.ge.f32.partialorder %v6047_v10, 0.0 }
 0x6db   : > { %v6065_v31 = vpop.eup %4931  ;;  %4947 = vpow2.f32 %v2564_v54  ;;  %v2092_v63 = vmul.f32 0.3275911, %v6089_v27  ;;  %vm2693_vm4 = vcmp.ge.f32.partialorder %v6020_v12, 0.0  ;;  %vm2695_vm5 = vcmp.ge.f32.partialorder %v6023_v57, 0.0 }
 0x6dc   : > { %v6070_v3 = vpop.eup %4933  ;;  %v2212_v32 = vmul.f32 1.0614054, %v6065_v31  ;;  %vm2697_vm6 = vcmp.ge.f32.partialorder %v6054_v48, 0.0  ;;  %vm2699_vm7 = vcmp.ge.f32.partialorder %v6059_v14, 0.0  ;;  %vm2700_vm8 = vcmp.ge.f32.partialorder %v6077_v21, 0.0 }
 0x6dd   : > { %v2214_v5 = vmul.f32 1.0614054, %v6070_v3  ;;  %v6080_v62 = vpop.eup %4935 }
 0x6de   : > { %v4068_v26 = vadd.f32 -1.4531521, %v2212_v32  ;;  %v2213_v7 = vmul.f32 1.0614054, %v6080_v62  ;;  %v6086_v50 = vpop.eup %4937  ;;  %v2568_v32 = vmul.f32 1.442695, %v2534_v53 }
 0x6df   : > { %v4070_v55 = vadd.f32 -1.4531521, %v2214_v5  ;;  %v2215_v41 = vmul.f32 1.0614054, %v6086_v50  ;;  %v6092_v44 = vpop.eup %4939 }
 0x6e0   : > { %v2276_v51 = vmul.f32 %v6065_v31, %v4068_v26  ;;  %v4069_v8 = vadd.f32 -1.4531521, %v2213_v7  ;;  %v2216_v6 = vmul.f32 1.0614054, %v6092_v44  ;;  %4949 = vpow2.f32 %v2568_v32 }
 0x6e1   : > { %v2278_v60 = vmul.f32 %v6070_v3, %v4070_v55  ;;  %v4071_v53 = vadd.f32 -1.4531521, %v2215_v41 }
 0x6e2   : > { %v2308_v5 = vadd.f32 1.4214138, %v2276_v51  ;;  %v2277_v55 = vmul.f32 %v6080_v62, %v4069_v8  ;;  %v2572_v51 = vmul.f32 1.442695, %v2536_v49  ;;  %v6100_v16 = vpop.eup %4941  ;;  %v2124_v8 = vadd.f32 1.0, %v2092_v63 }
 0x6e3   : > { %v2310_v26 = vadd.f32 1.4214138, %v2278_v60  ;;  %v2279_v54 = vmul.f32 %v6086_v50, %v4071_v53  ;;  %v4072_v60 = vadd.f32 -1.4531521, %v2216_v6  ;;  %v6103_v41 = vpop.eup %4943  ;;  %v2535_v63 = vmul.f32 %v2503_v40, %v6032_v28 }
 0x6e4   : > { %v2340_v30 = vmul.f32 %v6065_v31, %v2308_v5  ;;  %v2309_v36 = vadd.f32 1.4214138, %v2277_v55  ;;  %v2505_v5 = vsub.f32 0.0, %v6061_v56  ;;  %v2217_v55 = vmul.f32 1.0614054, %v6103_v41 }
 0x6e5   : > { %v2342_v9 = vmul.f32 %v6070_v3, %v2310_v26  ;;  %v2311_v58 = vadd.f32 1.4214138, %v2279_v54  ;;  %v2218_v26 = vmul.f32 1.0614054, %v6100_v16  ;;  %4951 = vpow2.f32 %v2572_v51  ;;  %v6113_v54 = vpop.eup %4945 }
 0x6e6   : > { %v4100_v7 = vadd.f32 -0.28449672, %v2340_v30  ;;  %v2341_v32 = vmul.f32 %v6080_v62, %v2309_v36  ;;  %v2280_v30 = vmul.f32 %v6092_v44, %v4072_v60  ;;  %v4073_v36 = vadd.f32 -1.4531521, %v2217_v55  ;;  %v4948_v37 = vpop.eup %4947 }
 0x6e7   : > { %v4102_v61 = vadd.f32 -0.28449672, %v2342_v9  ;;  %4953 = vrcp.f32 %v2124_v8  ;;  %v2219_v40 = vmul.f32 1.0614054, %v6113_v54  ;;  %v2537_v8 = vmul.f32 %v2505_v5, %v6061_v56 }
 0x6e8   : > { %v2404_v46 = vmul.f32 %v6065_v31, %v4100_v7  ;;  %v4101_v6 = vadd.f32 -0.28449672, %v2341_v32  ;;  %v2312_v9 = vadd.f32 1.4214138, %v2280_v30  ;;  %v4074_v7 = vadd.f32 -1.4531521, %v2218_v26 }
 0x6e9   : > { %v2406_v49 = vmul.f32 %v6070_v3, %v4102_v61  ;;  %v2343_v61 = vmul.f32 %v6086_v50, %v2311_v58  ;;  %v2281_v28 = vmul.f32 %v6103_v41, %v4073_v36  ;;  %4955 = vpow2.f32 %v2566_v59 }
 0x6ea   : > { %v2436_v53 = vadd.f32 0.2548296, %v2404_v46  ;;  %v2344_v39 = vmul.f32 %v6092_v44, %v2312_v9  ;;  %v2282_v32 = vmul.f32 %v6100_v16, %v4074_v7  ;;  %v2405_v30 = vmul.f32 %v6080_v62, %v4101_v6  ;;  %v4950_v58 = vpop.eup %4949 }
 0x6eb   : > { %v2438_v42 = vadd.f32 0.2548296, %v2406_v49  ;;  %v2313_v26 = vadd.f32 1.4214138, %v2281_v28  ;;  %v4075_v55 = vadd.f32 -1.4531521, %v2219_v40  ;;  %4957 = vpow2.f32 %v2576_v47 }
 0x6ec   : > { %v2468_v60 = vmul.f32 %v6065_v31, %v2436_v53  ;;  %v4104_v31 = vadd.f32 -0.28449672, %v2344_v39  ;;  %v2314_v49 = vadd.f32 1.4214138, %v2282_v32  ;;  %v2539_v6 = vmul.f32 %v2507_v43, %v6073_v24 }
 0x6ed   : > { %v2470_v46 = vmul.f32 %v6070_v3, %v2438_v42  ;;  %v4103_v3 = vadd.f32 -0.28449672, %v2343_v61  ;;  %v2345_v7 = vmul.f32 %v6103_v41, %v2313_v26  ;;  %v2437_v59 = vadd.f32 0.2548296, %v2405_v30 }
 0x6ee   : > { %v2628_v51 = vmul.f32 %v4948_v37, %v2468_v60  ;;  %v2408_v53 = vmul.f32 %v6092_v44, %v4104_v31  ;;  %v2346_v37 = vmul.f32 %v6100_v16, %v2314_v49  ;;  %v2570_v39 = vmul.f32 1.442695, %v2535_v63 }
 0x6ef   : > { %v2630_v9 = vmul.f32 %v4950_v58, %v2470_v46  ;;  %v4105_v28 = vadd.f32 -0.28449672, %v2345_v7  ;;  %v2283_v56 = vmul.f32 %v6113_v54, %v4075_v55  ;;  %v6132_v5 = vmul.f32 0.5, %v6017_v17  ;;  %v4952_v40 = vpop.eup %4951 }
 0x6f0   : > { %v2660_v42 = vsub.f32 1.0, %v2628_v51  ;;  %v2440_v36 = vadd.f32 0.2548296, %v2408_v53  ;;  %v4106_v32 = vadd.f32 -0.28449672, %v2346_v37  ;;  %v2407_v47 = vmul.f32 %v6086_v50, %v4103_v3 }
 0x6f1   : > { %v2574_v46 = vmul.f32 1.442695, %v2537_v8  ;;  %v2662_v24 = vsub.f32 1.0, %v2630_v9  ;;  %v2578_v63 = vmul.f32 1.442695, %v2539_v6  ;;  %v6138_v51 = vpop.eup %4953  ;;  %v2469_v30 = vmul.f32 %v6080_v62, %v2437_v59 }
 0x6f2   : > { %v2724_v60 = vsub.f32 0.0, %v2660_v42  ;;  %v2472_v61 = vmul.f32 %v6092_v44, %v2440_v36  ;;  %v2410_v43 = vmul.f32 %v6100_v16, %v4106_v32  ;;  %4959 = vpow2.f32 %v2570_v39 }
 0x6f3   : > { %v6143_v58 = vadd.f32 %v6034_v38, %v6005_v20  ;;  %v2409_v26 = vmul.f32 %v6103_v41, %v4105_v28  ;;  %v2315_v8 = vadd.f32 1.4214138, %v2283_v56  ;;  %v4956_v55 = vpop.eup %4955  ;;  %v2439_v3 = vadd.f32 0.2548296, %v2407_v47 }
 0x6f4   : > { %v2632_v31 = vmul.f32 %v4952_v40, %v2472_v61  ;;  %v2756_v44 = vsel %vm2692_vm0, %v2660_v42, %v2724_v60  ;;  %v2442_v49 = vadd.f32 0.2548296, %v2410_v43  ;;  %v2792_v9 = vmul.f32 0.5, %v6030_v2 }
 0x6f5   : > { %4961 = vpow2.f32 %v2574_v46  ;;  %v2726_v62 = vsub.f32 0.0, %v2662_v24  ;;  %v2347_v7 = vmul.f32 %v6113_v54, %v2315_v8  ;;  %v4958_v38 = vpop.eup %4957  ;;  %v2820_v6 = vadd.f32 1.0, %v2756_v44 }
 0x6f6   : > { %v2664_v53 = vsub.f32 1.0, %v2632_v31  ;;  %v2474_v37 = vmul.f32 %v6100_v16, %v2442_v49  ;;  %4963 = vpow2.f32 %v2578_v63  ;;  %v2220_v42 = vmul.f32 1.0614054, %v6138_v51 }
 0x6f7   : > { %v2030_v59 = vand.u32 2147483647, %v6143_v58  ;;  %v6153_v39 = vmul.f32 %v4956_v55, %v2469_v30  ;;  %v2441_v60 = vadd.f32 0.2548296, %v2409_v26  ;;  %v4107_v32 = vadd.f32 -0.28449672, %v2347_v7 }
 0x6f8   : > { %v2728_v13 = vsub.f32 0.0, %v2664_v53  ;;  %v2634_v36 = vmul.f32 %v4958_v38, %v2474_v37  ;;  %v2471_v28 = vmul.f32 %v6086_v50, %v2439_v3  ;;  %v4076_v56 = vadd.f32 -1.4531521, %v2220_v42 }
 0x6f9   : > { %v6158_v47 = vmul.f32 0.70710677, %v2030_v59  ;;  %v2758_v61 = vsel %vm2694_vm1, %v2662_v24, %v2726_v62  ;;  %v2411_v43 = vmul.f32 %v6113_v54, %v4107_v32  ;;  %v6164_v63 = vmul.f32 %v2820_v6, %v6068_v34 }
 0x6fa   : > { %v2760_v16 = vsel %vm2696_vm2, %v2664_v53, %v2728_v13  ;;  %v2666_v40 = vsub.f32 1.0, %v2634_v36  ;;  %v2284_v30 = vmul.f32 %v6138_v51, %v4076_v56  ;;  %v6170_v2 = vadd.f32 %v6037_v45, %v6009_v22 }
 0x6fb   : > { %v2824_v46 = vadd.f32 1.0, %v2760_v16  ;;  %v2094_v50 = vmul.f32 0.3275911, %v6158_v47  ;;  %v2473_v17 = vmul.f32 %v6103_v41, %v2441_v60  ;;  %v2443_v24 = vadd.f32 0.2548296, %v2411_v43 }
 0x6fc   : > { %v2730_v44 = vsub.f32 0.0, %v2666_v40  ;;  %v4960_v49 = vpop.eup %4959  ;;  %v2822_v26 = vadd.f32 1.0, %v2758_v61  ;;  %v2029_v8 = vand.u32 2147483647, %v6170_v2  ;;  %v2794_v45 = vmul.f32 0.5, %v6047_v10 }
 0x6fd   : > { %v6172_v31 = vmul.f32 %v2824_v46, %v2792_v9  ;;  %v2126_v34 = vadd.f32 1.0, %v2094_v50  ;;  %v2508_v53 = vsub.f32 0.0, %v6089_v27  ;;  %v2661_v62 = vsub.f32 1.0, %v6153_v39 }
 0x6fe   : > { %v2762_v3 = vsel %vm2698_vm3, %v2666_v40, %v2730_v44  ;;  %v2316_v37 = vadd.f32 1.4214138, %v2284_v30  ;;  %v2631_v38 = vmul.f32 %v4960_v49, %v2471_v28  ;;  %v2475_v13 = vmul.f32 %v6113_v54, %v2443_v24 }
 0x6ff   : > { %v4962_v9 = vpop.eup %4961  ;;  %v2826_v41 = vadd.f32 1.0, %v2762_v3  ;;  %4965 = vrcp.f32 %v2126_v34  ;;  %v6186_v42 = vmul.f32 0.70710677, %v2029_v8  ;;  %v6189_v10 = vmul.f32 %v2822_v26, %v6132_v5 }
 0x700   : > { %v4964_v7 = vpop.eup %4963  ;;  %v6183_v6 = vmul.f32 %v4962_v9, %v2473_v17  ;;  %v6192_v59 = vmul.f32 0.5, %v6020_v12  ;;  %v6198_v36 = vadd.f32 %v6039_v0, %v6011_v23  ;;  %v6201_v60 = vmul.f32 0.5, %v6023_v57 }
 0x701   : > { %v6194_v39 = vmul.f32 %v2826_v41, %v2794_v45  ;;  %v6204_v32 = vmul.f32 0.5, %v6054_v48  ;;  %v2540_v54 = vmul.f32 %v2508_v53, %v6089_v27  ;;  %v2093_v5 = vmul.f32 0.3275911, %v6186_v42 }
 0x702   : > { %v2725_v28 = vsub.f32 0.0, %v2661_v62  ;;  %v2348_v56 = vmul.f32 %v6138_v51, %v2316_v37  ;;  %v2031_v0 = vand.u32 2147483647, %v6198_v36  ;;  %v2663_v61 = vsub.f32 1.0, %v2631_v38 }
 0x703   : > { %v2665_v46 = vsub.f32 1.0, %v6183_v6  ;;  %v2635_v40 = vmul.f32 %v4964_v7, %v2475_v13  ;;  %v2125_v43 = vadd.f32 1.0, %v2093_v5  ;;  %v2510_v50 = vsub.f32 0.0, %v6158_v47 }
 0x704   : > { %v6220_v44 = vmul.f32 0.70710677, %v2031_v0  ;;  %v6224_v17 = vadd.f32 %v6042_v29, %v6001_v19  ;;  %v6228_v24 = vadd.f32 %v6044_v52, %v6005_v20  ;;  %v6235_v34 = vmul.f32 0.5, %v6059_v14 }
 0x705   : > { %v2580_v8 = vmul.f32 1.442695, %v2540_v54  ;;  %v6238_v3 = vmul.f32 0.5, %v6077_v21  ;;  %4967 = vrcp.f32 %v2125_v43  ;;  %v4108_v52 = vadd.f32 -0.28449672, %v2348_v56 }
 0x706   : > { %v2095_v53 = vmul.f32 0.3275911, %v6220_v44  ;;  %v2757_v37 = vsel %vm2693_vm4, %v2661_v62, %v2725_v28  ;;  %v2727_v7 = vsub.f32 0.0, %v2663_v61  ;;  %v2667_v38 = vsub.f32 1.0, %v2635_v40 }
 0x707   : > { %v6215_v27 = vpop.f32.mrb[32].mxu1  ;;  %v6217_v30 = vpop.f32.mrb[40].mxu0  ;;  %v2032_v6 = vand.u32 2147483647, %v6224_v17  ;;  %v2729_v54 = vsub.f32 0.0, %v2665_v46  ;;  %v2542_v5 = vmul.f32 %v2510_v50, %v6158_v47  ;;  %v2509_v16 = vsub.f32 0.0, %v6186_v42 }
 0x708   : > { %v6230_v49 = vpop.f32.mrb[33].mxu1  ;;  %v6232_v26 = vpop.f32.mrb[41].mxu0  ;;  %v2127_v0 = vadd.f32 1.0, %v2095_v53  ;;  %v2034_v56 = vand.u32 2147483647, %v6228_v24  ;;  %v6261_v12 = vadd.f32 %v6049_v11, %v6009_v22  ;;  %v2821_v62 = vadd.f32 1.0, %v2757_v37 }
 0x709   : > { %v6240_v45 = vpop.f32.mrb[34].mxu1  ;;  %v6242_v29 = vpop.f32.mrb[42].mxu0  ;;  %v2064_v55 = vmul.f32 0.70710677, %v2032_v6  ;;  %v2412_v28 = vmul.f32 %v6138_v51, %v4108_v52  ;;  %v2759_v47 = vsel %vm2695_vm5, %v2663_v61, %v2727_v7  ;;  %v2731_v50 = vsub.f32 0.0, %v2667_v38 }
 0x70a   : > { %7118 = vst [vmem:[#allocation21_spill] sm:$0xff] %v6242_v29  ;;  %v6246_v9 = vpop.f32.mrb[35].mxu1  ;;  %v6248_v41 = vpop.f32.mrb[43].mxu0  ;;  %4969 = vrcp.f32 %v2127_v0  ;;  %v6264_v40 = vmul.f32 0.70710677, %v2034_v56  ;;  %v2541_v0 = vmul.f32 %v2509_v16, %v6186_v42  ;;  %v2823_v48 = vadd.f32 1.0, %v2759_v47 }
 0x70b   : > { %7119 = vst [vmem:[#allocation22_spill] sm:$0xff] %v6246_v9  ;;  %7120 = vst [vmem:[#allocation23_spill] sm:$0xff] %v6248_v41  ;;  %v6253_v13 = vpop.eup %4965  ;;  %v2096_v41 = vmul.f32 0.3275911, %v2064_v55  ;;  %v2761_v9 = vsel %vm2697_vm6, %v2665_v46, %v2729_v54  ;;  %v2584_v6 = vmul.f32 1.442695, %v2542_v5  ;;  %4971 = vpow2.f32 %v2580_v8 }
 0x70c   : > { %v2222_v43 = vmul.f32 1.0614054, %v6253_v13  ;;  %v2098_v29 = vmul.f32 0.3275911, %v6264_v40  ;;  %v2033_v57 = vand.u32 2147483647, %v6261_v12  ;;  %v2763_v42 = vsel %vm2699_vm7, %v2667_v38, %v2731_v50 }
 0x70d   : > { %v2128_v56 = vadd.f32 1.0, %v2096_v41  ;;  %v2444_v46 = vadd.f32 0.2548296, %v2412_v28  ;;  %v2511_v41 = vsub.f32 0.0, %v6220_v44  ;;  %v2582_v47 = vmul.f32 1.442695, %v2541_v0 }
 0x70e   : > { %v4078_v53 = vadd.f32 -1.4531521, %v2222_v43  ;;  %v2130_v54 = vadd.f32 1.0, %v2098_v29  ;;  %v6294_v8 = vmul.f32 0.70710677, %v2033_v57  ;;  %v6299_v14 = vadd.f32 %v6051_v15, %v6011_v23 }
 0x70f   : > { %v6271_v11 = vpop.f32.mrb[36].mxu1  ;;  %v6273_v37 = vpop.f32.mrb[44].mxu0  ;;  %4973 = vrcp.f32 %v2128_v56  ;;  %v2827_v50 = vadd.f32 1.0, %v2763_v42  ;;  %v2476_v56 = vmul.f32 %v6138_v51, %v2444_v46  ;;  %v2543_v57 = vmul.f32 %v2511_v41, %v6220_v44 }
 0x710   : > { %7121 = vst [vmem:[#allocation24_spill] sm:$0xff] %v6273_v37  ;;  %v2286_v52 = vmul.f32 %v6253_v13, %v4078_v53  ;;  %v6278_v61 = vpop.f32.mrb[37].mxu1  ;;  %v6280_v7 = vpop.f32.mrb[45].mxu0  ;;  %4975 = vrcp.f32 %v2130_v54  ;;  %vm2702_vm9 = vcmp.ge.f32.partialorder %v6143_v58, 0.0  ;;  %vm2704_vm10 = vcmp.ge.f32.partialorder %v6224_v17, 0.0 }
 0x711   : > { %7122 = vst [vmem:[#allocation25_spill] sm:$0xff] %v6280_v7  ;;  %v6282_v5 = vpop.f32.mrb[38].mxu1  ;;  %v6284_v43 = vpop.f32.mrb[46].mxu0  ;;  %v2825_v7 = vadd.f32 1.0, %v2761_v9  ;;  %4977 = vpow2.f32 %v2584_v6  ;;  %v2097_v9 = vmul.f32 0.3275911, %v6294_v8 }
 0x712   : > { %7123 = vst [vmem:[#allocation26_spill] sm:$0xff] %v6282_v5  ;;  %7124 = vst [vmem:[#allocation27_spill] sm:$0xff] %v6284_v43  ;;  %v6286_v37 = vpop.eup %4967  ;;  %v2318_v16 = vadd.f32 1.4214138, %v2286_v52  ;;  %v6291_v53 = vpop.f32.mrb[39].mxu1  ;;  %v2512_v43 = vsub.f32 0.0, %v2064_v55  ;;  %v2853_v5 = vmul.f32 %v2821_v62, %v6192_v59  ;;  %v2859_v59 = vmul.f32 %v2827_v50, %v6235_v34 }
 0x713   : > { %7125 = vst [vmem:[#allocation28_spill] sm:$0xff] %v6291_v53  ;;  %v2221_v28 = vmul.f32 1.0614054, %v6286_v37  ;;  %v6301_v38 = vpop.f32.mrb[47].mxu0  ;;  %v2129_v15 = vadd.f32 1.0, %v2097_v9  ;;  %v2857_v42 = vmul.f32 %v2825_v7, %v6204_v32  ;;  %v2855_v9 = vmul.f32 %v2823_v48, %v6201_v60 }
 0x714   : > { %v2350_v29 = vmul.f32 %v6253_v13, %v2318_v16  ;;  %7126 = vst [vmem:[#allocation29_spill] sm:$0xff] %v6301_v38  ;;  %v2035_v16 = vand.u32 2147483647, %v6299_v14  ;;  %v6307_v0 = vpop.eup %4969  ;;  %v2514_v38 = vsub.f32 0.0, %v6264_v40  ;;  %v6323_v7 = vadd.f32 %v6215_v27, %v6001_v19 }
 0x715   : > { %v4077_v52 = vadd.f32 -1.4531521, %v2221_v28  ;;  %v2223_v6 = vmul.f32 1.0614054, %v6307_v0  ;;  %v2544_v28 = vmul.f32 %v2512_v43, %v2064_v55  ;;  %4979 = vrcp.f32 %v2129_v15  ;;  %v4972_v32 = vpop.eup %4971 }
 0x716   : > { %v4110_v54 = vadd.f32 -0.28449672, %v2350_v29  ;;  %v6314_v51 = vmul.f32 0.70710677, %v2035_v16  ;;  %v2949_v41 = vpack.c.bf16 %v2857_v42, %v2853_v5  ;;  %4981 = vpow2.f32 %v2582_v47 }
 0x717   : > { %v2285_v53 = vmul.f32 %v6286_v37, %v4077_v52  ;;  %v4079_v29 = vadd.f32 -1.4531521, %v2223_v6  ;;  %v2586_v55 = vmul.f32 1.442695, %v2543_v57  ;;  %v2951_v16 = vpack.c.bf16 %v2859_v59, %v2855_v9 }
 0x718   : > { %v2414_v44 = vmul.f32 %v6253_v13, %v4110_v54  ;;  %v2099_v52 = vmul.f32 0.3275911, %v6314_v51  ;;  %3195 = vmatprep.mubr.bf16.mxu1 %v2949_v41  ;;  %v7127_v60 = vpack.c.bf16 %v6172_v31, %v6164_v63  ;;  %v2546_v50 = vmul.f32 %v2514_v38, %v6264_v40 }
 0x719   : > { %v2317_v46 = vadd.f32 1.4214138, %v2285_v53  ;;  %v6325_v43 = vpop.eup %4973  ;;  %v2287_v5 = vmul.f32 %v6307_v0, %v4079_v29  ;;  %v2588_v53 = vmul.f32 1.442695, %v2544_v28  ;;  %v2036_v27 = vand.u32 2147483647, %v6323_v7  ;;  %3260 = vmatprep.mubr.bf16.mxu0 %v2951_v16 }
 0x71a   : > { %v2131_v54 = vadd.f32 1.0, %v2099_v52  ;;  %3196 = vmatmul.mubr.bf16.vlgmr.msra.gmra.mrb[40].mxu1 %v7127_v60  ;;  %v6331_v34 = vpop.eup %4975  ;;  %v2224_v47 = vmul.f32 1.0614054, %v6325_v43  ;;  %v2446_v57 = vadd.f32 0.2548296, %v2414_v44  ;;  %v2513_v28 = vsub.f32 0.0, %v6294_v8 }
 0x71b   : > { %v2349_v62 = vmul.f32 %v6286_v37, %v2317_v46  ;;  %4736 = vmatpush3.bf16.msra.mxu1 %v5873_v1  ;;  %v2319_v15 = vadd.f32 1.4214138, %v2287_v5  ;;  %v2226_v42 = vmul.f32 1.0614054, %v6331_v34  ;;  %v4978_v63 = vpop.eup %4977  ;;  %v7128_v40 = vpack.c.bf16 %v6194_v39, %v6189_v10 }
 0x71c   : > { %4983 = vrcp.f32 %v2131_v54  ;;  %4729 = vmatprep.subr.bf16.mxu1 %v5883_v4  ;;  %v4080_v6 = vadd.f32 -1.4531521, %v2224_v47  ;;  %v6344_v38 = vmul.f32 0.70710677, %v2036_v27  ;;  %v6346_v1 = vmul.f32 %v4972_v32, %v2476_v56 }
 0x71d   : > { %v4109_v48 = vadd.f32 -0.28449672, %v2349_v62  ;;  %3261 = vmatmul.mubr.bf16.vlgmr.msra.gmra.mrb[48].mxu0 %v7128_v40  ;;  %v6349_v44 = vmul.f32 0.5, %v6143_v58  ;;  %v2351_v46 = vmul.f32 %v6307_v0, %v2319_v15  ;;  %v4082_v4 = vadd.f32 -1.4531521, %v2226_v42 }
 0x71e   : > { %4985 = vpow2.f32 %v2586_v55  ;;  %v2288_v41 = vmul.f32 %v6325_v43, %v4080_v6  ;;  %v2592_v29 = vmul.f32 1.442695, %v2546_v50  ;;  %v2100_v52 = vmul.f32 0.3275911, %v6344_v38 }
 0x71f   : > { %v2413_v31 = vmul.f32 %v6286_v37, %v4109_v48  ;;  %4737 = vmatpush3.bf16.msra.mxu1 %v5891_v18  ;;  %v2478_v10 = vmul.f32 %v6253_v13, %v2446_v57  ;;  %v4111_v9 = vadd.f32 -0.28449672, %v2351_v46  ;;  %v2290_v56 = vmul.f32 %v6331_v34, %v4082_v4  ;;  %v6358_v59 = vpop.eup %4979 }
 0x720   : > { %4730 = vmatprep.subr.bf16.mxu1 %v5901_v25  ;;  %v2320_v32 = vadd.f32 1.4214138, %v2288_v41  ;;  %4987 = vpow2.f32 %v2588_v53  ;;  %v2545_v62 = vmul.f32 %v2513_v28, %v6294_v8  ;;  %v2132_v55 = vadd.f32 1.0, %v2100_v52  ;;  %v4982_v16 = vpop.eup %4981 }
 0x721   : > { %v2445_v39 = vadd.f32 0.2548296, %v2413_v31  ;;  %v2415_v5 = vmul.f32 %v6307_v0, %v4111_v9  ;;  %v2322_v18 = vadd.f32 1.4214138, %v2290_v56  ;;  %v2225_v13 = vmul.f32 1.0614054, %v6358_v59 }
 0x722   : > { %v2515_v54 = vsub.f32 0.0, %v6314_v51  ;;  %v2668_v60 = vsub.f32 1.0, %v6346_v1  ;;  %v6367_v25 = vmul.f32 0.5, %v6170_v2  ;;  %v2352_v53 = vmul.f32 %v6325_v43, %v2320_v32  ;;  %v7129_v1 = vld [vmem:[#allocation15_spill] sm:$0xff] }
 0x723   : > { %4989 = vpow2.f32 %v2592_v29  ;;  %4738 = vmatpush3.bf16.msra.mxu1 %v5909_v33  ;;  %v6371_v8 = vmul.f32 %v4978_v63, %v2478_v10  ;;  %v2477_v48 = vmul.f32 %v6286_v37, %v2445_v39  ;;  %v2354_v47 = vmul.f32 %v6331_v34, %v2322_v18  ;;  %v7130_v29 = vld [vmem:[#allocation16_spill] sm:$0xff] }
 0x724   : > { %v4081_v50 = vadd.f32 -1.4531521, %v2225_v13  ;;  %4731 = vmatprep.subr.bf16.mxu1 %v5919_v35  ;;  %v4112_v27 = vadd.f32 -0.28449672, %v2352_v53  ;;  %v2590_v57 = vmul.f32 1.442695, %v2545_v62  ;;  %4991 = vrcp.f32 %v2132_v55 }
 0x725   : > { %v6378_v15 = vadd.f32 %v6217_v30, %v6005_v20  ;;  %v2447_v31 = vadd.f32 0.2548296, %v2415_v5  ;;  %v4114_v33 = vadd.f32 -0.28449672, %v2354_v47  ;;  %v2547_v37 = vmul.f32 %v2515_v54, %v6314_v51  ;;  %v7132_v47 = vld [vmem:[#allocation18_spill] sm:$0xff] }
 0x726   : > { %v6380_v42 = vpop.eup %4983  ;;  %v2289_v63 = vmul.f32 %v6358_v59, %v4081_v50  ;;  %v2732_v6 = vsub.f32 0.0, %v2668_v60  ;;  %v2416_v35 = vmul.f32 %v6325_v43, %v4112_v27  ;;  %v2670_v30 = vsub.f32 1.0, %v6371_v8 }
 0x727   : > { %v2227_v28 = vmul.f32 1.0614054, %v6380_v42  ;;  %v2038_v40 = vand.u32 2147483647, %v6378_v15  ;;  %4739 = vmatpush3.bf16.msra.mxu1 %v7129_v1  ;;  %v6390_v46 = vmul.f32 %v4982_v16, %v2477_v48  ;;  %v2418_v4 = vmul.f32 %v6331_v34, %v4114_v33  ;;  %v7131_v16 = vld [vmem:[#allocation17_spill] sm:$0xff] }
 0x728   : > { %v2321_v41 = vadd.f32 1.4214138, %v2289_v63  ;;  %4732 = vmatprep.subr.bf16.mxu1 %v7130_v29  ;;  %v4986_v51 = vpop.eup %4985  ;;  %v2448_v52 = vadd.f32 0.2548296, %v2416_v35  ;;  %4993 = vpow2.f32 %v2590_v57  ;;  %v2479_v9 = vmul.f32 %v6307_v0, %v2447_v31  ;;  %v7133_v35 = vld [vmem:[#allocation19_spill] sm:$0xff] }
 0x729   : > { %v4083_v10 = vadd.f32 -1.4531521, %v2227_v28  ;;  %v6394_v39 = vmul.f32 0.70710677, %v2038_v40  ;;  %v2450_v56 = vadd.f32 0.2548296, %v2418_v4  ;;  %v2764_v5 = vsel %vm2700_vm8, %v2668_v60, %v2732_v6 }
 0x72a   : > { %v2353_v32 = vmul.f32 %v6358_v59, %v2321_v41  ;;  %v2594_v62 = vmul.f32 1.442695, %v2547_v37  ;;  %v4988_v55 = vpop.eup %4987  ;;  %vm2701_vm11 = vcmp.ge.f32.partialorder %v6170_v2, 0.0  ;;  %v2480_v18 = vmul.f32 %v6325_v43, %v2448_v52  ;;  %v7134_v4 = vld [vmem:[#allocation20_spill] sm:$0xff] }
 0x72b   : > { %v2291_v13 = vmul.f32 %v6380_v42, %v4083_v10  ;;  %v2102_v54 = vmul.f32 0.3275911, %v6394_v39  ;;  %4740 = vmatpush3.bf16.msra.mxu1 %v7131_v16  ;;  %v2734_v0 = vsub.f32 0.0, %v2670_v30  ;;  %v2669_v53 = vsub.f32 1.0, %v6390_v46 }
 0x72c   : > { %v2482_v8 = vmul.f32 %v6331_v34, %v2450_v56  ;;  %v4113_v48 = vadd.f32 -0.28449672, %v2353_v32  ;;  %4733 = vmatprep.subr.bf16.mxu1 %v7132_v47  ;;  %v2640_v60 = vmul.f32 %v4988_v55, %v2480_v18  ;;  %v2800_v50 = vmul.f32 0.5, %v6224_v17  ;;  %v5078_v17 = vld [vmem:[%s7075_s9 + $0xf8] sm:$0xff]  }
 0x72d   : > { %v4990_v21 = vpop.eup %4989  ;;  %v2323_v27 = vadd.f32 1.4214138, %v2291_v13  ;;  %v2134_v43 = vadd.f32 1.0, %v2102_v54  ;;  %v6410_v57 = vmul.f32 %v4986_v51, %v2479_v9  ;;  %4995 = vpow2.f32 %v2594_v62 }
 0x72e   : > { %v2642_v31 = vmul.f32 %v4990_v21, %v2482_v8  ;;  %v2417_v33 = vmul.f32 %v6358_v59, %v4113_v48  ;;  %v6413_v63 = vpop.eup %4991  ;;  %v2828_v37 = vadd.f32 1.0, %v2764_v5  ;;  %v2672_v6 = vsub.f32 1.0, %v2640_v60  ;;  %v5077_v5 = vld [vmem:[%s7075_s9 + $0xb0] sm:$0xff]  }
 0x72f   : > { %v2355_v34 = vmul.f32 %v6380_v42, %v2323_v27  ;;  %4997 = vrcp.f32 %v2134_v43  ;;  %4741 = vmatpush3.bf16.msra.mxu1 %v7133_v35  ;;  %v2766_v28 = vsel %vm2702_vm9, %v2670_v30, %v2734_v0  ;;  %v2733_v40 = vsub.f32 0.0, %v2669_v53 }
 0x730   : > { %v2674_v1 = vsub.f32 1.0, %v2642_v31  ;;  %v2449_v46 = vadd.f32 0.2548296, %v2417_v33  ;;  %4734 = vmatprep.subr.bf16.mxu1 %v7134_v4  ;;  %vm2703_vm12 = vcmp.ge.f32.partialorder %v6198_v36, 0.0  ;;  %v2736_v41 = vsub.f32 0.0, %v2672_v6 }
 0x731   : > { %vm2706_vm13 = vcmp.ge.f32.partialorder %v6228_v24, 0.0  ;;  %v2802_v29 = vmul.f32 0.5, %v6228_v24  ;;  %v4115_v51 = vadd.f32 -0.28449672, %v2355_v34  ;;  %v2671_v52 = vsub.f32 1.0, %v6410_v57 }
 0x732   : > { %v2738_v10 = vsub.f32 0.0, %v2674_v1  ;;  %v2481_v9 = vmul.f32 %v6358_v59, %v2449_v46  ;;  %v2228_v58 = vmul.f32 1.0614054, %v6413_v63  ;;  %v4994_v30 = vpop.eup %4993  ;;  %v2830_v56 = vadd.f32 1.0, %v2766_v28 }
 0x733   : > { %v2768_v32 = vsel %vm2704_vm10, %v2672_v6, %v2736_v41  ;;  %v2419_v62 = vmul.f32 %v6380_v42, %v4115_v51  ;;  %v6430_v55 = vmul.f32 %v2828_v37, %v6238_v3  ;;  %4742 = vmatpush3.bf16.msra.mxu1 %v5077_v5  ;;  %v2765_v59 = vsel %vm2701_vm11, %v2669_v53, %v2733_v40 }
 0x734   : > { %v2832_v18 = vadd.f32 1.0, %v2768_v32  ;;  %v2770_v13 = vsel %vm2706_vm13, %v2674_v1, %v2738_v10  ;;  %v2641_v54 = vmul.f32 %v4994_v30, %v2481_v9  ;;  %4735 = vmatprep.subr.bf16.mxu1 %v5078_v17  ;;  %v6444_v0 = vadd.f32 %v6230_v49, %v6009_v22  ;;  %v5079_v49 = vld [vmem:[%s7075_s9 + $0xb8] sm:$0xff]  }
 0x735   : > { %v2834_v3 = vadd.f32 1.0, %v2770_v13  ;;  %v2451_v16 = vadd.f32 0.2548296, %v2419_v62  ;;  %v6448_v2 = vadd.f32 %v6232_v26, %v6011_v23  ;;  %v2735_v53 = vsub.f32 0.0, %v2671_v52 }
 0x736   : > { %v2673_v8 = vsub.f32 1.0, %v2641_v54  ;;  %v4084_v24 = vadd.f32 -1.4531521, %v2228_v58  ;;  %v2864_v48 = vmul.f32 %v2832_v18, %v2800_v50  ;;  %v2862_v21 = vmul.f32 %v2830_v56, %v6349_v44  ;;  %v7135_v18 = vld [vmem:[#allocation21_spill] sm:$0xff] }
 0x737   : > { %v2483_v47 = vmul.f32 %v6380_v42, %v2451_v16  ;;  %v2866_v60 = vmul.f32 %v2834_v3, %v2802_v29  ;;  %v2037_v27 = vand.u32 2147483647, %v6444_v0  ;;  %4743 = vmatpush3.bf16.msra.mxu1 %v5079_v49  ;;  %v4996_v43 = vpop.eup %4995  ;;  %v2829_v57 = vadd.f32 1.0, %v2765_v59 }
 0x738   : > { %vm2705_vm14 = vcmp.ge.f32.partialorder %v6261_v12, 0.0  ;;  %v2737_v26 = vsub.f32 0.0, %v2673_v8  ;;  %v2952_v31 = vpack.c.bf16 %v2864_v48, %v6430_v55  ;;  %v2039_v37 = vand.u32 2147483647, %v6448_v2 }
 0x739   : > { %v6458_v50 = vpop.eup %4997  ;;  %v2643_v42 = vmul.f32 %v4996_v43, %v2483_v47  ;;  %v2954_v33 = vpack.c.bf16 %v2866_v60, %v2862_v21  ;;  %v6460_v44 = vmul.f32 0.70710677, %v2037_v27  ;;  %v2767_v6 = vsel %vm2703_vm12, %v2671_v52, %v2735_v53  ;;  %v7136_v43 = vld [vmem:[#allocation22_spill] sm:$0xff] }
 0x73a   : > { %v2769_v34 = vsel %vm2705_vm14, %v2673_v8, %v2737_v26  ;;  %v2801_v35 = vmul.f32 0.5, %v6261_v12  ;;  %v2230_v28 = vmul.f32 1.0614054, %v6458_v50  ;;  %v2292_v46 = vmul.f32 %v6413_v63, %v4084_v24 }
 0x73b   : > { %v2833_v40 = vadd.f32 1.0, %v2769_v34  ;;  %v2675_v1 = vsub.f32 1.0, %v2643_v42  ;;  %v2101_v4 = vmul.f32 0.3275911, %v6460_v44  ;;  %v2799_v41 = vmul.f32 0.5, %v6198_v36 }
 0x73c   : > { %v2861_v29 = vmul.f32 %v2829_v57, %v6367_v25  ;;  %v4086_v51 = vadd.f32 -1.4531521, %v2230_v28  ;;  %v6471_v10 = vmul.f32 0.70710677, %v2039_v37  ;;  %v6475_v12 = vadd.f32 %v6240_v45, %v6001_v19  ;;  %v7137_v37 = vld [vmem:[#allocation23_spill] sm:$0xff] }
 0x73d   : > { %v2739_v9 = vsub.f32 0.0, %v2675_v1  ;;  %v2865_v52 = vmul.f32 %v2833_v40, %v2801_v35  ;;  %v2133_v58 = vadd.f32 1.0, %v2101_v4  ;;  %v2831_v30 = vadd.f32 1.0, %v2767_v6 }
 0x73e   : > { %vm2707_vm15 = vcmp.ge.f32.partialorder %v6299_v14, 0.0  ;;  %v2803_v56 = vmul.f32 0.5, %v6299_v14  ;;  %v2103_v32 = vmul.f32 0.3275911, %v6471_v10  ;;  %v2324_v25 = vadd.f32 1.4214138, %v2292_v46 }
 0x73f   : > { %v2771_v36 = vsel %vm2707_vm15, %v2675_v1, %v2739_v9  ;;  %v2953_v62 = vpack.c.bf16 %v2865_v52, %v2861_v29  ;;  %4999 = vrcp.f32 %v2133_v58  ;;  %v2294_v5 = vmul.f32 %v6458_v50, %v4086_v51 }
 0x740   : > { %v2835_v55 = vadd.f32 1.0, %v2771_v36  ;;  %v2135_v59 = vadd.f32 1.0, %v2103_v32  ;;  %v6483_v13 = vadd.f32 %v7135_v18, %v6005_v20  ;;  %v2516_v45 = vsub.f32 0.0, %v6344_v38 }
 0x741   : > { %3203 = vmatprep.mubr.bf16.mxu1 %v2953_v62  ;;  %v2040_v54 = vand.u32 2147483647, %v6475_v12  ;;  %v2863_v14 = vmul.f32 %v2831_v30, %v2799_v41  ;;  %v2356_v3 = vmul.f32 %v6413_v63, %v2324_v25  ;;  %v2326_v8 = vadd.f32 1.4214138, %v2294_v5 }
 0x742   : > { %v2867_v17 = vmul.f32 %v2835_v55, %v2803_v56  ;;  %3204 = vmatmul.mubr.bf16.gmra.mrb[44].mxu1 %v2952_v31  ;;  %5001 = vrcp.f32 %v2135_v59  ;;  %v2518_v24 = vsub.f32 0.0, %v6394_v39  ;;  %v2042_v48 = vand.u32 2147483647, %v6483_v13 }
 0x743   : > { %v6488_v16 = vmul.f32 0.70710677, %v2040_v54  ;;  %v2548_v47 = vmul.f32 %v2516_v45, %v6344_v38  ;;  %v4116_v27 = vadd.f32 -0.28449672, %v2356_v3  ;;  %v6496_v57 = vadd.f32 %v7136_v43, %v6009_v22 }
 0x744   : > { %v2955_v53 = vpack.c.bf16 %v2867_v17, %v2863_v14  ;;  %v2074_v60 = vmul.f32 0.70710677, %v2042_v48  ;;  %v2358_v26 = vmul.f32 %v6458_v50, %v2326_v8  ;;  %v2550_v31 = vmul.f32 %v2518_v24, %v6394_v39 }
 0x745   : > { %v2104_v21 = vmul.f32 0.3275911, %v6488_v16  ;;  %v6502_v6 = vadd.f32 %v7137_v37, %v6011_v23  ;;  %v2596_v34 = vmul.f32 1.442695, %v2548_v47  ;;  %v2420_v28 = vmul.f32 %v6413_v63, %v4116_v27 }
 0x746   : > { %3268 = vmatprep.mubr.bf16.mxu0 %v2955_v53  ;;  %v2106_v42 = vmul.f32 0.3275911, %v2074_v60  ;;  %v4118_v46 = vadd.f32 -0.28449672, %v2358_v26  ;;  %v2600_v4 = vmul.f32 1.442695, %v2550_v31  ;;  %v6524_v25 = vadd.f32 %v6271_v11, %v6001_v19 }
 0x747   : > { %3269 = vmatmul.mubr.bf16.gmra.mrb[52].mxu0 %v2954_v33  ;;  %v2136_v49 = vadd.f32 1.0, %v2104_v21  ;;  %v2041_v33 = vand.u32 2147483647, %v6496_v57  ;;  %v2043_v39 = vand.u32 2147483647, %v6502_v6  ;;  %v2517_v29 = vsub.f32 0.0, %v6460_v44 }
 0x748   : > { %v2138_v35 = vadd.f32 1.0, %v2106_v42  ;;  %v2452_v52 = vadd.f32 0.2548296, %v2420_v28  ;;  %v2422_v56 = vmul.f32 %v6458_v50, %v4118_v46  ;;  %v2519_v55 = vsub.f32 0.0, %v6471_v10  ;;  %v7138_v42 = vld [vmem:[#allocation24_spill] sm:$0xff] }
 0x749   : > { %v6504_v38 = vpop.eup %4999  ;;  %5003 = vrcp.f32 %v2136_v49  ;;  %v6509_v1 = vmul.f32 0.70710677, %v2041_v33  ;;  %v6516_v9 = vmul.f32 0.70710677, %v2043_v39  ;;  %v2549_v62 = vmul.f32 %v2517_v29, %v6460_v44 }
 0x74a   : > { %v2229_v40 = vmul.f32 1.0614054, %v6504_v38  ;;  %5005 = vrcp.f32 %v2138_v35  ;;  %v2522_v5 = vsub.f32 0.0, %v2074_v60  ;;  %v2484_v45 = vmul.f32 %v6413_v63, %v2452_v52 }
 0x74b   : > { %5007 = vpow2.f32 %v2596_v34  ;;  %v2105_v51 = vmul.f32 0.3275911, %v6509_v1  ;;  %v2107_v36 = vmul.f32 0.3275911, %v6516_v9  ;;  %v2044_v14 = vand.u32 2147483647, %v6524_v25 }
 0x74c   : > { %v6512_v41 = vpop.eup %5001  ;;  %v4085_v58 = vadd.f32 -1.4531521, %v2229_v40  ;;  %5009 = vpow2.f32 %v2600_v4  ;;  %v2454_v17 = vadd.f32 0.2548296, %v2422_v56  ;;  %v6534_v11 = vmul.f32 0.5, %v6323_v7 }
 0x74d   : > { %v2137_v30 = vadd.f32 1.0, %v2105_v51  ;;  %v2231_v32 = vmul.f32 1.0614054, %v6512_v41  ;;  %v2139_v59 = vadd.f32 1.0, %v2107_v36  ;;  %v6537_v53 = vmul.f32 0.5, %v6378_v15 }
 0x74e   : > { %v2293_v54 = vmul.f32 %v6504_v38, %v4085_v58  ;;  %v2598_v8 = vmul.f32 1.442695, %v2549_v62  ;;  %v6539_v24 = vmul.f32 0.70710677, %v2044_v14  ;;  %v6544_v63 = vmul.f32 0.5, %v6444_v0 }
 0x74f   : > { %5011 = vrcp.f32 %v2137_v30  ;;  %v4087_v3 = vadd.f32 -1.4531521, %v2231_v32  ;;  %v2551_v47 = vmul.f32 %v2519_v55, %v6471_v10  ;;  %v2554_v27 = vmul.f32 %v2522_v5, %v2074_v60 }
 0x750   : > { %5013 = vrcp.f32 %v2139_v59  ;;  %v2325_v43 = vadd.f32 1.4214138, %v2293_v54  ;;  %v2108_v31 = vmul.f32 0.3275911, %v6539_v24  ;;  %v6551_v37 = vadd.f32 %v7138_v42, %v6005_v20 }
 0x751   : > { %v2486_v33 = vmul.f32 %v6458_v50, %v2454_v17  ;;  %v2295_v35 = vmul.f32 %v6512_v41, %v4087_v3  ;;  %5015 = vpow2.f32 %v2598_v8  ;;  %v2602_v46 = vmul.f32 1.442695, %v2551_v47 }
 0x752   : > { %v2140_v28 = vadd.f32 1.0, %v2108_v31  ;;  %v2046_v40 = vand.u32 2147483647, %v6551_v37  ;;  %v6560_v4 = vmul.f32 0.5, %v6448_v2  ;;  %v2520_v29 = vsub.f32 0.0, %v6488_v16 }
 0x753   : > { %v6527_v18 = vpop.eup %5003  ;;  %v2608_v51 = vmul.f32 1.442695, %v2554_v27  ;;  %v2357_v50 = vmul.f32 %v6504_v38, %v2325_v43  ;;  %v2327_v32 = vadd.f32 1.4214138, %v2295_v35  ;;  %v6572_v5 = vmul.f32 0.5, %v6475_v12 }
 0x754   : > { %v2232_v44 = vmul.f32 1.0614054, %v6527_v18  ;;  %v6541_v48 = vpop.eup %5005  ;;  %5017 = vrcp.f32 %v2140_v28  ;;  %v6567_v30 = vmul.f32 0.70710677, %v2046_v40  ;;  %v2552_v14 = vmul.f32 %v2520_v29, %v6488_v16 }
 0x755   : > { %v5008_v49 = vpop.eup %5007  ;;  %v2234_v26 = vmul.f32 1.0614054, %v6541_v48  ;;  %5019 = vpow2.f32 %v2608_v51  ;;  %v2521_v3 = vsub.f32 0.0, %v6509_v1  ;;  %vm2710_vm0 = vcmp.ge.f32.partialorder %v6378_v15, 0.0 }
 0x756   : > { %v4088_v21 = vadd.f32 -1.4531521, %v2232_v44  ;;  %v6553_v34 = vmul.f32 %v5008_v49, %v2484_v45  ;;  %v5010_v39 = vpop.eup %5009  ;;  %v2110_v45 = vmul.f32 0.3275911, %v6567_v30  ;;  %v4117_v44 = vadd.f32 -0.28449672, %v2357_v50 }
 0x757   : > { %v4090_v60 = vadd.f32 -1.4531521, %v2234_v26  ;;  %v2646_v56 = vmul.f32 %v5010_v39, %v2486_v33  ;;  %v2359_v49 = vmul.f32 %v6512_v41, %v2327_v32  ;;  %v6591_v33 = vadd.f32 %v6278_v61, %v6009_v22 }
 0x758   : > { %v2296_v10 = vmul.f32 %v6527_v18, %v4088_v21  ;;  %v2676_v55 = vsub.f32 1.0, %v6553_v34  ;;  %v2142_v21 = vadd.f32 1.0, %v2110_v45  ;;  %v2421_v40 = vmul.f32 %v6504_v38, %v4117_v44 }
 0x759   : > { %v6563_v52 = vpop.eup %5011  ;;  %v2298_v58 = vmul.f32 %v6541_v48, %v4090_v60  ;;  %v2678_v27 = vsub.f32 1.0, %v2646_v56  ;;  %v2523_v60 = vsub.f32 0.0, %v6516_v9  ;;  %v2604_v39 = vmul.f32 1.442695, %v2552_v14 }
 0x75a   : > { %v2328_v36 = vadd.f32 1.4214138, %v2296_v10  ;;  %v2233_v62 = vmul.f32 1.0614054, %v6563_v52  ;;  %v6575_v54 = vpop.eup %5013  ;;  %v6587_v16 = vsub.f32 0.0, %v2676_v55  ;;  %v2553_v10 = vmul.f32 %v2521_v3, %v6509_v1 }
 0x75b   : > { %v2330_v59 = vadd.f32 1.4214138, %v2298_v58  ;;  %v2235_v47 = vmul.f32 1.0614054, %v6575_v54  ;;  %5021 = vrcp.f32 %v2142_v21  ;;  %v5016_v28 = vpop.eup %5015  ;;  %v2742_v50 = vsub.f32 0.0, %v2678_v27 }
 0x75c   : > { %v4089_v17 = vadd.f32 -1.4531521, %v2233_v62  ;;  %v2360_v43 = vmul.f32 %v6527_v18, %v2328_v36  ;;  %v4119_v58 = vadd.f32 -0.28449672, %v2359_v49  ;;  %v2045_v62 = vand.u32 2147483647, %v6591_v33 }
 0x75d   : > { %v2362_v8 = vmul.f32 %v6541_v48, %v2330_v59  ;;  %v4091_v42 = vadd.f32 -1.4531521, %v2235_v47  ;;  %5023 = vpow2.f32 %v2602_v46  ;;  %v2606_v45 = vmul.f32 1.442695, %v2553_v10 }
 0x75e   : > { %v2297_v26 = vmul.f32 %v6563_v52, %v4089_v17  ;;  %v4120_v56 = vadd.f32 -0.28449672, %v2360_v43  ;;  %v6599_v32 = vpop.eup %5017  ;;  %v2555_v14 = vmul.f32 %v2523_v60, %v6516_v9  ;;  %v2453_v17 = vadd.f32 0.2548296, %v2421_v40  ;;  %v7139_v40 = vld [vmem:[#allocation25_spill] sm:$0xff] }
 0x75f   : > { %v4122_v31 = vadd.f32 -0.28449672, %v2362_v8  ;;  %v2299_v51 = vmul.f32 %v6575_v54, %v4091_v42  ;;  %v6605_v8 = vmul.f32 0.70710677, %v2045_v62  ;;  %v5020_v47 = vpop.eup %5019  ;;  %vm2708_vm1 = vcmp.ge.f32.partialorder %v6323_v7, 0.0 }
 0x760   : > { %v2329_v35 = vadd.f32 1.4214138, %v2297_v26  ;;  %v2423_v21 = vmul.f32 %v6512_v41, %v4119_v58  ;;  %v2424_v49 = vmul.f32 %v6527_v18, %v4120_v56  ;;  %vm2714_vm2 = vcmp.ge.f32.partialorder %v6483_v13, 0.0 }
 0x761   : > { %v2426_v29 = vmul.f32 %v6541_v48, %v4122_v31  ;;  %v2331_v1 = vadd.f32 1.4214138, %v2299_v51  ;;  %v2236_v46 = vmul.f32 1.0614054, %v6599_v32  ;;  %v2774_v9 = vsel %vm2710_vm0, %v2678_v27, %v2742_v50 }
 0x762   : > { %v2361_v61 = vmul.f32 %v6563_v52, %v2329_v35  ;;  %5025 = vpow2.f32 %v2604_v39  ;;  %v2109_v43 = vmul.f32 0.3275911, %v6605_v8  ;;  %v2610_v42 = vmul.f32 1.442695, %v2555_v14 }
 0x763   : > { %v2458_v36 = vadd.f32 0.2548296, %v2426_v29  ;;  %v2363_v44 = vmul.f32 %v6575_v54, %v2331_v1  ;;  %5027 = vpow2.f32 %v2606_v45  ;;  %v2485_v35 = vmul.f32 %v6504_v38, %v2453_v17 }
 0x764   : > { %v4121_v59 = vadd.f32 -0.28449672, %v2361_v61  ;;  %v2141_v60 = vadd.f32 1.0, %v2109_v43  ;;  %v6619_v29 = vadd.f32 %v7139_v40, %v6011_v23  ;;  %v2455_v15 = vadd.f32 0.2548296, %v2423_v21 }
 0x765   : > { %v2490_v3 = vmul.f32 %v6541_v48, %v2458_v36  ;;  %v4123_v31 = vadd.f32 -0.28449672, %v2363_v44  ;;  %v6621_v51 = vpop.eup %5021  ;;  %v2456_v27 = vadd.f32 0.2548296, %v2424_v49  ;;  %v4092_v39 = vadd.f32 -1.4531521, %v2236_v46 }
 0x766   : > { %v2425_v26 = vmul.f32 %v6563_v52, %v4121_v59  ;;  %v2838_v50 = vadd.f32 1.0, %v2774_v9  ;;  %v2524_v56 = vsub.f32 0.0, %v6539_v24  ;;  %5029 = vrcp.f32 %v2141_v60 }
 0x767   : > { %v2650_v48 = vmul.f32 %v5020_v47, %v2490_v3  ;;  %v2810_v61 = vmul.f32 0.5, %v6483_v13  ;;  %v2427_v38 = vmul.f32 %v6575_v54, %v4123_v31  ;;  %5031 = vpow2.f32 %v2610_v42  ;;  %v5024_v14 = vpop.eup %5023 }
 0x768   : > { %v2457_v36 = vadd.f32 0.2548296, %v2425_v26  ;;  %v2645_v1 = vmul.f32 %v5016_v28, %v2485_v35  ;;  %v2238_v59 = vmul.f32 1.0614054, %v6621_v51  ;;  %v2047_v45 = vand.u32 2147483647, %v6619_v29 }
 0x769   : > { %v2682_v10 = vsub.f32 1.0, %v2650_v48  ;;  %v2487_v17 = vmul.f32 %v6512_v41, %v2455_v15  ;;  %v2488_v3 = vmul.f32 %v6527_v18, %v2456_v27  ;;  %v2300_v47 = vmul.f32 %v6599_v32, %v4092_v39 }
 0x76a   : > { %v2772_v28 = vsel %vm2708_vm1, %v2676_v55, %v6587_v16  ;;  %v6639_v13 = vmul.f32 %v2838_v50, %v6537_v53  ;;  %v2556_v21 = vmul.f32 %v2524_v56, %v6539_v24  ;;  %v6642_v49 = vmul.f32 0.70710677, %v2047_v45  ;;  %v7140_v53 = vld [vmem:[#allocation26_spill] sm:$0xff]  ;;  %v7142_v45 = vld [vmem:[#allocation28_spill] sm:$0xff] }
 0x76b   : > { %v2746_v58 = vsub.f32 0.0, %v2682_v10  ;;  %vm2709_vm3 = vcmp.ge.f32.partialorder %v6444_v0, 0.0  ;;  %v2489_v18 = vmul.f32 %v6563_v52, %v2457_v36  ;;  %v2459_v46 = vadd.f32 0.2548296, %v2427_v38  ;;  %v7143_v0 = vld [vmem:[#allocation29_spill] sm:$0xff] }
 0x76c   : > { %v2526_v9 = vsub.f32 0.0, %v6567_v30  ;;  %v5026_v34 = vpop.eup %5025  ;;  %v2677_v48 = vsub.f32 1.0, %v2645_v1  ;;  %v4094_v7 = vadd.f32 -1.4531521, %v2238_v59  ;;  %v2111_v55 = vmul.f32 0.3275911, %v6642_v49 }
 0x76d   : > { %v2778_v62 = vsel %vm2714_vm2, %v2682_v10, %v2746_v58  ;;  %v6652_v16 = vadd.f32 %v7140_v53, %v6001_v19  ;;  %v5028_v24 = vpop.eup %5027  ;;  %v2647_v43 = vmul.f32 %v5024_v14, %v2487_v17  ;;  %v2648_v26 = vmul.f32 %v5026_v34, %v2488_v3 }
 0x76e   : > { %v2842_v44 = vadd.f32 1.0, %v2778_v62  ;;  %v2332_v42 = vadd.f32 1.4214138, %v2300_v47  ;;  %v6656_v52 = vadd.f32 1.0, %v2772_v28  ;;  %v6659_v35 = vmul.f32 0.5, %v6496_v57  ;;  %v7141_v62 = vld [vmem:[#allocation27_spill] sm:$0xff] }
 0x76f   : > { %v2612_v10 = vmul.f32 1.442695, %v2556_v21  ;;  %v2143_v60 = vadd.f32 1.0, %v2111_v55  ;;  %v2649_v40 = vmul.f32 %v5028_v24, %v2489_v18  ;;  %v2491_v15 = vmul.f32 %v6575_v54, %v2459_v46 }
 0x770   : > { %v6645_v41 = vmul.f32 %v2842_v44, %v2810_v61  ;;  %v2558_v19 = vmul.f32 %v2526_v9, %v6567_v30  ;;  %v2048_v27 = vand.u32 2147483647, %v6652_v16  ;;  %v6664_v39 = vpop.eup %5029  ;;  %v2741_v50 = vsub.f32 0.0, %v2677_v48 }
 0x771   : > { %vm2711_vm4 = vcmp.ge.f32.partialorder %v6448_v2, 0.0  ;;  %v6668_v58 = vmul.f32 0.5, %v6502_v6  ;;  %v2302_v56 = vmul.f32 %v6621_v51, %v4094_v7  ;;  %5033 = vrcp.f32 %v2143_v60  ;;  %v5032_v61 = vpop.eup %5031 }
 0x772   : > { %v2958_v31 = vpack.c.bf16 %v6645_v41, %v6639_v13  ;;  %v2679_v36 = vsub.f32 1.0, %v2647_v43  ;;  %v2680_v38 = vsub.f32 1.0, %v2648_v26  ;;  %vm2712_vm5 = vcmp.ge.f32.partialorder %v6475_v12, 0.0 }
 0x773   : > { %v2364_v30 = vmul.f32 %v6599_v32, %v2332_v42  ;;  %v2237_v54 = vmul.f32 1.0614054, %v6664_v39  ;;  %vm2713_vm6 = vcmp.ge.f32.partialorder %v6496_v57, 0.0  ;;  %5035 = vpow2.f32 %v2612_v10 }
 0x774   : > { %v6675_v1 = vmul.f32 0.70710677, %v2048_v27  ;;  %v6679_v59 = vadd.f32 %v7141_v62, %v6005_v20  ;;  %v6683_v14 = vadd.f32 %v7142_v45, %v6009_v22  ;;  %v2681_v17 = vsub.f32 1.0, %v2649_v40 }
 0x775   : > { %v2651_v3 = vmul.f32 %v5032_v61, %v2491_v15  ;;  %v2616_v44 = vmul.f32 1.442695, %v2558_v19  ;;  %v4093_v47 = vadd.f32 -1.4531521, %v2237_v54  ;;  %v2773_v28 = vsel %vm2709_vm3, %v2677_v48, %v2741_v50 }
 0x776   : > { %v2334_v21 = vadd.f32 1.4214138, %v2302_v56  ;;  %v2112_v18 = vmul.f32 0.3275911, %v6675_v1  ;;  %v2050_v46 = vand.u32 2147483647, %v6679_v59  ;;  %v6696_v48 = vadd.f32 %v7143_v0, %v6011_v23 }
 0x777   : > { %v2743_v9 = vsub.f32 0.0, %v2679_v36  ;;  %v2744_v34 = vsub.f32 0.0, %v2680_v38  ;;  %v4124_v20 = vadd.f32 -0.28449672, %v2364_v30  ;;  %v2525_v7 = vsub.f32 0.0, %v6605_v8 }
 0x778   : > { %vm2715_vm7 = vcmp.ge.f32.partialorder %v6502_v6, 0.0  ;;  %v2144_v22 = vadd.f32 1.0, %v2112_v18  ;;  %v6691_v55 = vmul.f32 0.70710677, %v2050_v46  ;;  %v2049_v53 = vand.u32 2147483647, %v6683_v14 }
 0x779   : > { %v2745_v24 = vsub.f32 0.0, %v2681_v17  ;;  %v2683_v43 = vsub.f32 1.0, %v2651_v3  ;;  %5037 = vpow2.f32 %v2616_v44  ;;  %v2301_v26 = vmul.f32 %v6664_v39, %v4093_v47 }
 0x77a   : > { %v2837_v42 = vadd.f32 1.0, %v2773_v28  ;;  %v2366_v10 = vmul.f32 %v6621_v51, %v2334_v21  ;;  %5039 = vrcp.f32 %v2144_v22  ;;  %v2114_v60 = vmul.f32 0.3275911, %v6691_v55 }
 0x77b   : > { %v2775_v40 = vsel %vm2711_vm4, %v2679_v36, %v2743_v9  ;;  %v2428_v15 = vmul.f32 %v6599_v32, %v4124_v20  ;;  %v2557_v19 = vmul.f32 %v2525_v7, %v6605_v8  ;;  %v6705_v23 = vmul.f32 0.70710677, %v2049_v53  ;;  %v6707_v27 = vpop.eup %5033 }
 0x77c   : > { %v2776_v50 = vsel %vm2712_vm5, %v2680_v38, %v2744_v34  ;;  %v2527_v56 = vsub.f32 0.0, %v6642_v49  ;;  %v2146_v61 = vadd.f32 1.0, %v2114_v60  ;;  %v2051_v30 = vand.u32 2147483647, %v6696_v48 }
 0x77d   : > { %v2777_v2 = vsel %vm2713_vm6, %v2681_v17, %v2745_v24  ;;  %v2747_v36 = vsub.f32 0.0, %v2683_v43  ;;  %v2333_v54 = vadd.f32 1.4214138, %v2301_v26  ;;  %v2239_v62 = vmul.f32 1.0614054, %v6707_v27  ;;  %v5036_v8 = vpop.eup %5035 }
 0x77e   : > { %v4126_v45 = vadd.f32 -0.28449672, %v2366_v10  ;;  %5041 = vrcp.f32 %v2146_v61  ;;  %v2113_v3 = vmul.f32 0.3275911, %v6705_v23  ;;  %v6717_v44 = vmul.f32 0.70710677, %v2051_v30 }
 0x77f   : > { %v2839_v12 = vadd.f32 1.0, %v2775_v40  ;;  %v2460_v38 = vadd.f32 0.2548296, %v2428_v15  ;;  %v4095_v47 = vadd.f32 -1.4531521, %v2239_v62  ;;  %v2528_v28 = vsub.f32 0.0, %v6675_v1 }
 0x780   : > { %v2841_v21 = vadd.f32 1.0, %v2777_v2  ;;  %v2559_v57 = vmul.f32 %v2527_v56, %v6642_v49  ;;  %v2145_v17 = vadd.f32 1.0, %v2113_v3  ;;  %v2115_v18 = vmul.f32 0.3275911, %v6717_v44 }
 0x781   : > { %v2840_v46 = vadd.f32 1.0, %v2776_v50  ;;  %v2779_v9 = vsel %vm2715_vm7, %v2683_v43, %v2747_v36  ;;  %v2365_v34 = vmul.f32 %v6664_v39, %v2333_v54  ;;  %v2303_v20 = vmul.f32 %v6707_v27, %v4095_v47 }
 0x782   : > { %v2430_v7 = vmul.f32 %v6621_v51, %v4126_v45  ;;  %v2614_v22 = vmul.f32 1.442695, %v2557_v19  ;;  %5043 = vrcp.f32 %v2145_v17  ;;  %v2147_v53 = vadd.f32 1.0, %v2115_v18 }
 0x783   : > { %v5038_v0 = vpop.eup %5037  ;;  %v2492_v24 = vmul.f32 %v6599_v32, %v2460_v38  ;;  %v2335_v49 = vadd.f32 1.4214138, %v2303_v20  ;;  %v2560_v26 = vmul.f32 %v2528_v28, %v6675_v1  ;;  %v2530_v10 = vsub.f32 0.0, %v6691_v55 }
 0x784   : > { %v6730_v60 = vpop.eup %5039  ;;  %v2843_v6 = vadd.f32 1.0, %v2779_v9  ;;  %v2618_v43 = vmul.f32 1.442695, %v2559_v57  ;;  %v2869_v40 = vmul.f32 %v2837_v42, %v6544_v63  ;;  %v2873_v15 = vmul.f32 %v2841_v21, %v6659_v35 }
 0x785   : > { %v4125_v50 = vadd.f32 -0.28449672, %v2365_v34  ;;  %v2367_v19 = vmul.f32 %v6707_v27, %v2335_v49  ;;  %v2240_v56 = vmul.f32 1.0614054, %v6730_v60  ;;  %5045 = vrcp.f32 %v2147_v53 }
 0x786   : > { %v2462_v32 = vadd.f32 0.2548296, %v2430_v7  ;;  %v2957_v61 = vpack.c.bf16 %v2873_v15, %v2869_v40  ;;  %v2868_v1 = vmul.f32 %v6656_v52, %v6534_v11  ;;  %v2872_v30 = vmul.f32 %v2840_v46, %v6572_v5 }
 0x787   : > { %v4096_v2 = vadd.f32 -1.4531521, %v2240_v56  ;;  %v2620_v36 = vmul.f32 1.442695, %v2560_v26  ;;  %v2562_v54 = vmul.f32 %v2530_v10, %v6691_v55  ;;  %v2529_v63 = vsub.f32 0.0, %v6705_v23 }
 0x788   : > { %v6741_v35 = vpop.eup %5041  ;;  %v4127_v42 = vadd.f32 -0.28449672, %v2367_v19  ;;  %3211 = vmatprep.mubr.bf16.mxu1 %v2957_v61  ;;  %v2956_v62 = vpack.c.bf16 %v2872_v30, %v2868_v1  ;;  %v6744_v45 = vmul.f32 %v2839_v12, %v6560_v4  ;;  %v6747_v3 = vmul.f32 %v2843_v6, %v6668_v58 }
 0x789   : > { %v2429_v11 = vmul.f32 %v6664_v39, %v4125_v50  ;;  %v2304_v5 = vmul.f32 %v6730_v60, %v4096_v2  ;;  %v2242_v52 = vmul.f32 1.0614054, %v6741_v35  ;;  %v2652_v55 = vmul.f32 %v5036_v8, %v2492_v24 }
 0x78a   : > { %v2494_v38 = vmul.f32 %v6621_v51, %v2462_v32  ;;  %5047 = vpow2.f32 %v2614_v22  ;;  %3212 = vmatmul.mubr.bf16.gmra.mrb[48].mxu1 %v2956_v62  ;;  %v2959_v47 = vpack.c.bf16 %v6747_v3, %v6744_v45  ;;  %v2531_v58 = vsub.f32 0.0, %v6717_v44 }
 0x78b   : > { %5049 = vpow2.f32 %v2618_v43  ;;  %v2336_v4 = vadd.f32 1.4214138, %v2304_v5  ;;  %v4098_v12 = vadd.f32 -1.4531521, %v2242_v52  ;;  %v2431_v21 = vmul.f32 %v6707_v27, %v4127_v42 }
 0x78c   : > { %v6756_v28 = vpop.eup %5043  ;;  %5051 = vpow2.f32 %v2620_v36  ;;  %v2624_v57 = vmul.f32 1.442695, %v2562_v54  ;;  %v2561_v8 = vmul.f32 %v2529_v63, %v6705_v23  ;;  %v2461_v17 = vadd.f32 0.2548296, %v2429_v11 }
 0x78d   : > { %v2368_v51 = vmul.f32 %v6730_v60, %v2336_v4  ;;  %v2306_v18 = vmul.f32 %v6741_v35, %v4098_v12  ;;  %v2241_v46 = vmul.f32 1.0614054, %v6756_v28  ;;  %v2684_v9 = vsub.f32 1.0, %v2652_v55 }
 0x78e   : > { %v2654_v34 = vmul.f32 %v5038_v0, %v2494_v38  ;;  %v2563_v24 = vmul.f32 %v2531_v58, %v6717_v44  ;;  %v2463_v49 = vadd.f32 0.2548296, %v2431_v21  ;;  %5053 = vpow2.f32 %v2624_v57 }
 0x78f   : > { %v6763_v20 = vpop.eup %5045  ;;  %v4128_v7 = vadd.f32 -0.28449672, %v2368_v51  ;;  %v2338_v22 = vadd.f32 1.4214138, %v2306_v18  ;;  %v4097_v53 = vadd.f32 -1.4531521, %v2241_v46  ;;  %v2493_v10 = vmul.f32 %v6664_v39, %v2461_v17 }
 0x790   : > { %v2622_v26 = vmul.f32 1.442695, %v2561_v8  ;;  %v2243_v23 = vmul.f32 1.0614054, %v6763_v20  ;;  %v2748_v40 = vsub.f32 0.0, %v2684_v9  ;;  %v2686_v44 = vsub.f32 1.0, %v2654_v34 }
 0x791   : > { %v2432_v6 = vmul.f32 %v6730_v60, %v4128_v7  ;;  %v2370_v43 = vmul.f32 %v6741_v35, %v2338_v22  ;;  %v2305_v0 = vmul.f32 %v6756_v28, %v4097_v53  ;;  %v2626_v56 = vmul.f32 1.442695, %v2563_v24 }
 0x792   : > { %v4099_v15 = vadd.f32 -1.4531521, %v2243_v23  ;;  %v2495_v61 = vmul.f32 %v6707_v27, %v2463_v49  ;;  %5055 = vpow2.f32 %v2622_v26  ;;  %vm2716_vm8 = vcmp.ge.f32.partialorder %v6524_v25, 0.0 }
 0x793   : > { %v2464_v50 = vadd.f32 0.2548296, %v2432_v6  ;;  %v4130_v19 = vadd.f32 -0.28449672, %v2370_v43  ;;  %v2337_v1 = vadd.f32 1.4214138, %v2305_v0  ;;  %v2780_v11 = vsel %vm2716_vm8, %v2684_v9, %v2748_v40 }
 0x794   : > { %v5048_v32 = vpop.eup %5047  ;;  %v2307_v30 = vmul.f32 %v6763_v20, %v4099_v15  ;;  %5057 = vpow2.f32 %v2626_v56  ;;  %v2750_v27 = vsub.f32 0.0, %v2686_v44  ;;  %v2812_v57 = vmul.f32 0.5, %v6524_v25 }
 0x795   : > { %v5050_v2 = vpop.eup %5049  ;;  %v2653_v39 = vmul.f32 %v5048_v32, %v2493_v10  ;;  %v2496_v36 = vmul.f32 %v6730_v60, %v2464_v50  ;;  %v2434_v54 = vmul.f32 %v6741_v35, %v4130_v19  ;;  %v2369_v42 = vmul.f32 %v6756_v28, %v2337_v1 }
 0x796   : > { %v5052_v63 = vpop.eup %5051  ;;  %v2339_v62 = vadd.f32 1.4214138, %v2307_v30  ;;  %v2655_v55 = vmul.f32 %v5050_v2, %v2495_v61  ;;  %vm2718_vm9 = vcmp.ge.f32.partialorder %v6551_v37, 0.0  ;;  %v2844_v51 = vadd.f32 1.0, %v2780_v11 }
 0x797   : > { %v2656_v5 = vmul.f32 %v5052_v63, %v2496_v36  ;;  %v2466_v52 = vadd.f32 0.2548296, %v2434_v54  ;;  %v4129_v38 = vadd.f32 -0.28449672, %v2369_v42  ;;  %v2685_v12 = vsub.f32 1.0, %v2653_v39 }
 0x798   : > { %v2371_v4 = vmul.f32 %v6763_v20, %v2339_v62  ;;  %v5054_v21 = vpop.eup %5053  ;;  %vm2720_vm10 = vcmp.ge.f32.partialorder %v6652_v16, 0.0  ;;  %v2782_v9 = vsel %vm2718_vm9, %v2686_v44, %v2750_v27  ;;  %v2687_v34 = vsub.f32 1.0, %v2655_v55 }
 0x799   : > { %v2688_v60 = vsub.f32 1.0, %v2656_v5  ;;  %v2498_v58 = vmul.f32 %v6741_v35, %v2466_v52  ;;  %v2433_v8 = vmul.f32 %v6756_v28, %v4129_v38  ;;  %vm2717_vm11 = vcmp.ge.f32.partialorder %v6591_v33, 0.0 }
 0x79a   : > { %v4131_v17 = vadd.f32 -0.28449672, %v2371_v4  ;;  %v2749_v35 = vsub.f32 0.0, %v2685_v12  ;;  %v2816_v24 = vmul.f32 0.5, %v6652_v16  ;;  %v2846_v6 = vadd.f32 1.0, %v2782_v9 }
 0x79b   : > { %v2752_v18 = vsub.f32 0.0, %v2688_v60  ;;  %v2658_v46 = vmul.f32 %v5054_v21, %v2498_v58  ;;  %v2465_v7 = vadd.f32 0.2548296, %v2433_v8  ;;  %vm2722_vm12 = vcmp.ge.f32.partialorder %v6679_v59, 0.0 }
 0x79c   : > { %v2435_v22 = vmul.f32 %v6763_v20, %v4131_v17  ;;  %v5056_v10 = vpop.eup %5055  ;;  %v2876_v0 = vmul.f32 %v2844_v51, %v2812_v57  ;;  %v2751_v40 = vsub.f32 0.0, %v2687_v34  ;;  %v2814_v32 = vmul.f32 0.5, %v6551_v37 }
 0x79d   : > { %v2784_v53 = vsel %vm2720_vm10, %v2688_v60, %v2752_v18  ;;  %v2690_v25 = vsub.f32 1.0, %v2658_v46  ;;  %v2497_v26 = vmul.f32 %v6756_v28, %v2465_v7  ;;  %v2781_v16 = vsel %vm2717_vm11, %v2685_v12, %v2749_v35  ;;  %v7144_v35 = vld [vmem:[#allocation7_spill] sm:$0xff] }
 0x79e   : > { %v2848_v49 = vadd.f32 1.0, %v2784_v53  ;;  %v2467_v23 = vadd.f32 0.2548296, %v2435_v22  ;;  %v5058_v56 = vpop.eup %5057  ;;  %v2818_v28 = vmul.f32 0.5, %v6679_v59  ;;  %vm2719_vm13 = vcmp.ge.f32.partialorder %v6619_v29, 0.0 }
 0x79f   : > { %v2754_v43 = vsub.f32 0.0, %v2690_v25  ;;  %v2657_v15 = vmul.f32 %v5056_v10, %v2497_v26  ;;  %v2878_v39 = vmul.f32 %v2846_v6, %v2814_v32  ;;  %v2783_v36 = vsel %vm2719_vm13, %v2687_v34, %v2751_v40 }
 0x7a0   : > { %v2499_v50 = vmul.f32 %v6763_v20, %v2467_v23  ;;  %v2880_v19 = vmul.f32 %v2848_v49, %v2816_v24  ;;  %v2845_v42 = vadd.f32 1.0, %v2781_v16  ;;  %vm2721_vm14 = vcmp.ge.f32.partialorder %v6683_v14, 0.0 }
 0x7a1   : > { %v2786_v44 = vsel %vm2722_vm12, %v2690_v25, %v2754_v43  ;;  %v2689_v1 = vsub.f32 1.0, %v2657_v15  ;;  %v2813_v37 = vmul.f32 0.5, %v6591_v33  ;;  %v2847_v59 = vadd.f32 1.0, %v2783_v36  ;;  %v7145_v25 = vld [vmem:[#allocation8_spill] sm:$0xff] }
 0x7a2   : > { %v2850_v61 = vadd.f32 1.0, %v2786_v44  ;;  %v2659_v30 = vmul.f32 %v5058_v56, %v2499_v50  ;;  %v2960_v2 = vpack.c.bf16 %v2880_v19, %v2876_v0  ;;  %v2817_v52 = vmul.f32 0.5, %v6683_v14  ;;  %v6809_v14 = vld [vmem:[%s7076_s10] ss:$0 sm:$0xff] }
 0x7a3   : > { %v2753_v54 = vsub.f32 0.0, %v2689_v1  ;;  %vm2723_vm15 = vcmp.ge.f32.partialorder %v6696_v48, 0.0  ;;  %v2815_v55 = vmul.f32 0.5, %v6619_v29  ;;  %v2819_v4 = vmul.f32 0.5, %v6696_v48 }
 0x7a4   : > { %v2691_v20 = vsub.f32 1.0, %v2659_v30  ;;  %v2882_v63 = vmul.f32 %v2850_v61, %v2818_v28  ;;  %v2877_v60 = vmul.f32 %v2845_v42, %v2813_v37  ;;  %v7146_v61 = vld [vmem:[#allocation10_spill] sm:$0xff]  ;;  %v7147_v30 = vld [vmem:[#allocation9_spill] sm:$0xff] }
 0x7a5   : > { %v2785_v62 = vsel %vm2721_vm14, %v2689_v1, %v2753_v54  ;;  %v2879_v57 = vmul.f32 %v2847_v59, %v2815_v55 }
 0x7a6   : > { %v2755_v11 = vsub.f32 0.0, %v2691_v20  ;;  %v2962_v5 = vpack.c.bf16 %v2882_v63, %v2878_v39  ;;  %v2849_v27 = vadd.f32 1.0, %v2785_v62 }
 0x7a8   : > { %v2787_v38 = vsel %vm2723_vm15, %v2691_v20, %v2755_v11  ;;  %v2881_v58 = vmul.f32 %v2849_v27, %v2817_v52 }
 0x7a9   : > { %v2851_v12 = vadd.f32 1.0, %v2787_v38 }
 0x7aa   : > { %v2961_v21 = vpack.c.bf16 %v2881_v58, %v2877_v60 }
 0x7ab   : > { %v2883_v33 = vmul.f32 %v2851_v12, %v2819_v4 }
 0x7ac   : > { %3219 = vmatprep.mubr.bf16.mxu1 %v2961_v21 }
 0x7ad   : > { %v2963_v8 = vpack.c.bf16 %v2883_v33, %v2879_v57  ;;  %3220 = vmatmul.mubr.bf16.gmra.mrb[52].mxu1 %v2960_v2 }
 0x7ae   : > { %3276 = vmatprep.mubr.bf16.mxu1 %v2959_v47 }
 0x7b5   : > { %3277 = vmatmul.mubr.bf16.vlgmr.msra.gmra.mrb[56].mxu1 %v2958_v31 }
 0x7b6   : > { %3284 = vmatprep.mubr.bf16.mxu1 %v2963_v8 }
 0x7bd   : > { %3285 = vmatmul.mubr.bf16.gmra.mrb[60].mxu1 %v2962_v5 }
 0x7ed   : > { %v4324_v29 = vpop.f32.mrb[40].mxu1 }
 0x7ee   : > { %v4325_v48 = vpop.f32.mrb[41].mxu1 }
 0x7ef   : > { %v4326_v17 = vadd.f32 %v4325_v48, %v4324_v29  ;;  %v4327_v51 = vpop.f32.mrb[42].mxu1  ;;  %v7148_v29 = vld [vmem:[#allocation11_spill] sm:$0xff] }
 0x7f0   : > { %v4364_v18 = vpop.f32.mrb[48].mxu0  ;;  %v4328_v46 = vpop.f32.mrb[43].mxu1 }
 0x7f1   : > { %v3198_v45 = vadd.f32 %v4326_v17, %v6809_v14  ;;  %v4365_v3 = vpop.f32.mrb[49].mxu0  ;;  %v4329_v47 = vadd.f32 %v4328_v46, %v4327_v51 }
 0x7f2   : > { %v4366_v9 = vadd.f32 %v4365_v3, %v4364_v18  ;;  %v4367_v13 = vpop.f32.mrb[50].mxu0  ;;  %v7149_v18 = vld [vmem:[#allocation12_spill] sm:$0xff] }
 0x7f3   : > { %v3201_v41 = vadd.f32 %v4329_v47, %v6809_v14  ;;  %v4368_v31 = vpop.f32.mrb[51].mxu0 }
 0x7f4   : > { %v3263_v34 = vadd.f32 %v4366_v9, %v3198_v45  ;;  %v4369_v7 = vadd.f32 %v4368_v31, %v4367_v13 }
 0x7f6   : > { %v3266_v22 = vadd.f32 %v4369_v7, %v3201_v41  ;;  %v6814_v53 = vadd.f32 %v3263_v34, %v7144_v35 }
 0x7f8   : > { %3303 = vadd.xlane.f32.xlu0 %v6814_v53  ;;  %v6818_v24 = vadd.f32 %v3266_v22, %v7145_v25 }
 0x7fa   : > { %3305 = vadd.xlane.f32.xlu1 %v6818_v24 }
 0x815   : > { %v4330_v49 = vpop.f32.mrb[44].mxu1 }
 0x816   : > { %v4331_v26 = vpop.f32.mrb[45].mxu1 }
 0x817   : > { %v4332_v23 = vadd.f32 %v4331_v26, %v4330_v49  ;;  %v4333_v10 = vpop.f32.mrb[46].mxu1  ;;  %v7150_v49 = vld [vmem:[#allocation14_spill] sm:$0xff] }
 0x818   : > { %v4334_v6 = vpop.f32.mrb[47].mxu1 }
 0x819   : > { %v4335_v43 = vadd.f32 %v4334_v6, %v4333_v10  ;;  %v3206_v40 = vadd.f32 %v4332_v23, %v6809_v14  ;;  %v7151_v10 = vld [vmem:[#allocation13_spill] sm:$0xff] }
 0x81a   : > { %v4370_v0 = vpop.f32.mrb[52].mxu0 }
 0x81b   : > { %v4371_v15 = vpop.f32.mrb[53].mxu0  ;;  %v3209_v56 = vadd.f32 %v4335_v43, %v6809_v14 }
 0x81c   : > { %v4372_v50 = vadd.f32 %v4371_v15, %v4370_v0  ;;  %v4373_v19 = vpop.f32.mrb[54].mxu0 }
 0x81d   : > { %v4374_v32 = vpop.f32.mrb[55].mxu0 }
 0x81e   : > { %v3271_v16 = vadd.f32 %v4372_v50, %v3206_v40  ;;  %v4375_v44 = vadd.f32 %v4374_v32, %v4373_v19 }
 0x820   : > { %v3274_v28 = vadd.f32 %v4375_v44, %v3209_v56  ;;  %v3295_v1 = vadd.f32 %v3271_v16, %v7146_v61 }
 0x822   : > { %3307 = vadd.xlane.f32.xlu0 %v3295_v1  ;;  %v3296_v2 = vadd.f32 %v3274_v28, %v7147_v30 }
 0x824   : > { %3309 = vadd.xlane.f32.xlu1 %v3296_v2 }
 0x85d   : > { %v4336_v39 = vpop.f32.mrb[48].mxu1 }
 0x85e   : > { %v4337_v36 = vpop.f32.mrb[49].mxu1 }
 0x85f   : > { %v4338_v54 = vadd.f32 %v4337_v36, %v4336_v39  ;;  %v4339_v20 = vpop.f32.mrb[50].mxu1 }
 0x860   : > { %v4340_v63 = vpop.f32.mrb[51].mxu1 }
 0x861   : > { %v4341_v42 = vadd.f32 %v4340_v63, %v4339_v20  ;;  %v3214_v38 = vadd.f32 %v4338_v54, %v6809_v14 }
 0x863   : > { %v3217_v58 = vadd.f32 %v4341_v42, %v6809_v14 }
 0x880   : > { %v4342_v37 = vpop.f32.mrb[52].mxu1 }
 0x881   : > { %v4343_v62 = vpop.f32.mrb[53].mxu1 }
 0x882   : > { %v4344_v11 = vadd.f32 %v4343_v62, %v4342_v37  ;;  %v4345_v5 = vpop.f32.mrb[54].mxu1 }
 0x883   : > { %v4346_v59 = vpop.f32.mrb[55].mxu1 }
 0x884   : > { %v4347_v52 = vadd.f32 %v4346_v59, %v4345_v5  ;;  %v3222_v47 = vadd.f32 %v4344_v11, %v6809_v14 }
 0x885   : > { %v3304_v33 = vpop.xlane.xlu0 %3303 }
 0x886   : > { %v3319_v45 = vmul.f32 0.0078125, %v3304_v33  ;;  %v3225_v34 = vadd.f32 %v4347_v52, %v6809_v14  ;;  %v3427_v33 = vld [vmem:[#allocation3] sm:$0xff] }
 0x887   : > { %v3306_v17 = vpop.xlane.xlu1 %3305 }
 0x888   : > { %v4376_v27 = vpop.f32.mrb[56].mxu1  ;;  %v3320_v41 = vmul.f32 0.0078125, %v3306_v17  ;;  %v3327_v35 = vsub.f32 %v6814_v53, %v3319_v45  ;;  %v3428_v17 = vld [vmem:[#allocation3 + $0x8] sm:$0xff] }
 0x889   : > { %v4377_v55 = vpop.f32.mrb[57].mxu1 }
 0x88a   : > { %v4378_v4 = vadd.f32 %v4377_v55, %v4376_v27  ;;  %v4379_v12 = vpop.f32.mrb[58].mxu1  ;;  %v3328_v23 = vsub.f32 %v6818_v24, %v3320_v41  ;;  %v3335_v43 = vmul.f32 %v3327_v35, %v3327_v35 }
 0x88b   : > { %v4380_v60 = vpop.f32.mrb[59].mxu1 }
 0x88c   : > { %v3279_v21 = vadd.f32 %v4378_v4, %v3214_v38  ;;  %v4381_v57 = vadd.f32 %v4380_v60, %v4379_v12  ;;  %v3336_v0 = vmul.f32 %v3328_v23, %v3328_v23  ;;  %v6858_v4 = vld [vmem:[%s7079_s13] ss:$0 sm:$0xff] }
 0x88e   : > { %v3282_v8 = vadd.f32 %v4381_v57, %v3217_v58  ;;  %v3297_v48 = vadd.f32 %v3279_v21, %v7148_v29  ;;  %v6863_v58 = vld [vmem:[%s7080_s14] ss:$0 sm:$0xff] }
 0x890   : > { %v4382_v51 = vpop.f32.mrb[60].mxu1  ;;  %3311 = vadd.xlane.f32.xlu0 %v3297_v48  ;;  %v3298_v46 = vadd.f32 %v3282_v8, %v7149_v18 }
 0x891   : > { %v4383_v3 = vpop.f32.mrb[61].mxu1 }
 0x892   : > { %v4384_v9 = vadd.f32 %v4383_v3, %v4382_v51  ;;  %v4385_v13 = vpop.f32.mrb[62].mxu1  ;;  %3313 = vadd.xlane.f32.xlu1 %v3298_v46 }
 0x893   : > { %v4386_v31 = vpop.f32.mrb[63].mxu1 }
 0x894   : > { %v3287_v7 = vadd.f32 %v4384_v9, %v3222_v47  ;;  %v4387_v22 = vadd.f32 %v4386_v31, %v4385_v13 }
 0x896   : > { %v3290_v25 = vadd.f32 %v4387_v22, %v3225_v34  ;;  %v3299_v26 = vadd.f32 %v3287_v7, %v7150_v49 }
 0x898   : > { %3315 = vadd.xlane.f32.xlu0 %v3299_v26  ;;  %v3300_v6 = vadd.f32 %v3290_v25, %v7151_v10 }
 0x89a   : > { %3317 = vadd.xlane.f32.xlu1 %v3300_v6 }
 0x89c   : > { %3343 = vadd.xlane.f32.xlu0 %v3335_v43 }
 0x89e   : > { %3345 = vadd.xlane.f32.xlu1 %v3336_v0 }
 0x8af   : > { %v3308_v40 = vpop.xlane.xlu0 %3307 }
 0x8b0   : > { %v3321_v15 = vmul.f32 0.0078125, %v3308_v40 }
 0x8b1   : > { %v3310_v14 = vpop.xlane.xlu1 %3309 }
 0x8b2   : > { %v3329_v50 = vsub.f32 %v3295_v1, %v3321_v15  ;;  %v3322_v19 = vmul.f32 0.0078125, %v3310_v14 }
 0x8b4   : > { %v6835_v56 = vsub.f32 %v3296_v2, %v3322_v19  ;;  %v3337_v53 = vmul.f32 %v3329_v50, %v3329_v50 }
 0x8b6   : > { %3347 = vadd.xlane.f32.xlu0 %v3337_v53  ;;  %v3338_v24 = vmul.f32 %v6835_v56, %v6835_v56 }
 0x8b8   : > { %3349 = vadd.xlane.f32.xlu1 %v3338_v24 }
 0x91d   : > { %v3312_v32 = vpop.xlane.xlu0 %3311 }
 0x91e   : > { %v3323_v16 = vmul.f32 0.0078125, %v3312_v32 }
 0x91f   : > { %v3314_v44 = vpop.xlane.xlu1 %3313 }
 0x920   : > { %v6839_v28 = vsub.f32 %v3297_v48, %v3323_v16  ;;  %v3324_v61 = vmul.f32 0.0078125, %v3314_v44 }
 0x922   : > { %v6841_v30 = vsub.f32 %v3298_v46, %v3324_v61  ;;  %v3339_v1 = vmul.f32 %v6839_v28, %v6839_v28 }
 0x924   : > { %3351 = vadd.xlane.f32.xlu0 %v3339_v1  ;;  %v3340_v2 = vmul.f32 %v6841_v30, %v6841_v30 }
 0x925   : > { %v3316_v39 = vpop.xlane.xlu0 %3315 }
 0x926   : > { %v3325_v36 = vmul.f32 0.0078125, %v3316_v39  ;;  %3353 = vadd.xlane.f32.xlu1 %v3340_v2 }
 0x927   : > { %v3318_v54 = vpop.xlane.xlu1 %3317 }
 0x928   : > { %v6847_v20 = vsub.f32 %v3299_v26, %v3325_v36  ;;  %v3326_v63 = vmul.f32 0.0078125, %v3318_v54  ;;  %v3430_v26 = vld [vmem:[#allocation3 + $0x18] sm:$0xff]  ;;  %v3431_v36 = vld [vmem:[#allocation3 + $0x20] sm:$0xff] }
 0x929   : > { %v3344_v42 = vpop.xlane.xlu0 %3343 }
 0x92a   : > { %v6849_v37 = vsub.f32 %v3300_v6, %v3326_v63  ;;  %v3341_v62 = vmul.f32 %v6847_v20, %v6847_v20  ;;  %v3359_v11 = vmul.f32 0.0078125, %v3344_v42  ;;  %v3432_v42 = vld [vmem:[#allocation3 + $0x28] sm:$0xff] }
 0x92b   : > { %v3346_v5 = vpop.xlane.xlu1 %3345 }
 0x92c   : > { %3355 = vadd.xlane.f32.xlu0 %v3341_v62  ;;  %v3342_v59 = vmul.f32 %v6849_v37, %v6849_v37  ;;  %v3367_v52 = vadd.f32 1e-05, %v3359_v11  ;;  %v3360_v27 = vmul.f32 0.0078125, %v3346_v5 }
 0x92e   : > { %3357 = vadd.xlane.f32.xlu1 %v3342_v59  ;;  %5059 = vrsqrt.f32 %v3367_v52  ;;  %v3368_v55 = vadd.f32 1e-05, %v3360_v27 }
 0x930   : > { %5061 = vrsqrt.f32 %v3368_v55  ;;  %v3433_v55 = vld [vmem:[#allocation3 + $0x30] sm:$0xff] }
 0x938   : > { %v5060_v38 = vpop.eup %5059 }
 0x939   : > { %v3383_v12 = vmul.f32 %v5060_v38, %v3327_v35  ;;  %v3429_v35 = vld [vmem:[#allocation3 + $0x10] sm:$0xff] }
 0x93a   : > { %v5062_v60 = vpop.eup %5061 }
 0x93b   : > { %v3397_v21 = vmul.f32 %v6858_v4, %v3383_v12  ;;  %v3384_v57 = vmul.f32 %v5062_v60, %v3328_v23  ;;  %v3434_v60 = vld [vmem:[#allocation3 + $0x38] sm:$0xff] }
 0x93d   : > { %v3411_v8 = vadd.f32 %v6863_v58, %v3397_v21  ;;  %v3398_v29 = vmul.f32 %v6858_v4, %v3384_v57 }
 0x93f   : > { %3419 = vst [vmem:[#allocation2] sm:$0xff] %v3411_v8  ;;  %v3435_v18 = vadd.f32 %v3427_v33, %v3411_v8  ;;  %v3412_v46 = vadd.f32 %v6863_v58, %v3398_v29 }
 0x941   : > { %3443 = vst [vmem:[#allocation3] sm:$0xff] %v3435_v18  ;;  %3420 = vst [vmem:[#allocation2 + $0x8] sm:$0xff] %v3412_v46  ;;  %v3436_v9 = vadd.f32 %v3428_v17, %v3412_v46  ;;  %v5085_v46 = vld [vmem:[%s7081_s15 + $0x28] sm:$0xff] (!%p4167_p4)  }
 0x943   : > { %v3348_v48 = vpop.xlane.xlu0 %3347  ;;  %3444 = vst [vmem:[#allocation3 + $0x8] sm:$0xff] %v3436_v9  ;;  %v5087_v9 = vld [vmem:[%s7081_s15 + $0x38] sm:$0xff] (!%p4167_p4)  }
 0x944   : > { %v3361_v51 = vmul.f32 0.0078125, %v3348_v48 }
 0x945   : > { %v3350_v45 = vpop.xlane.xlu1 %3349 }
 0x946   : > { %v3369_v3 = vadd.f32 1e-05, %v3361_v51  ;;  %v3362_v47 = vmul.f32 0.0078125, %v3350_v45  ;;  %v5084_v51 = vld [vmem:[%s7081_s15 + $0x20] sm:$0xff] (!%p4167_p4)   ;;  %v5086_v45 = vld [vmem:[%s7081_s15 + $0x30] sm:$0xff] (!%p4167_p4)  }
 0x948   : > { %5063 = vrsqrt.f32 %v3369_v3  ;;  %v3370_v13 = vadd.f32 1e-05, %v3362_v47  ;;  %v3455_v8 = vld [vmem:[#allocation3] sm:$0xff] (!%p4167_p4) }
 0x949   : > { %v3463_v48 = vmul.f32 (!%p4167_p4), 0.5, %v3455_v8 }
 0x94a   : > { %5065 = vrsqrt.f32 %v3370_v13  ;;  %v3456_v29 = vld [vmem:[#allocation3 + $0x8] sm:$0xff] (!%p4167_p4) }
 0x94b   : > { %v3464_v17 = vmul.f32 (!%p4167_p4), 0.5, %v3456_v29 }
 0x94d   : > { %v3487_v18 = vpack.c.bf16 (!%p4167_p4), %v3464_v17, %v3463_v48 }
 0x94f   : > { %4632 = vmatprep.mubr.bf16.mxu0 (!%p4167_p4), %v3487_v18 }
 0x952   : > { %v5064_v41 = vpop.eup %5063 }
 0x953   : > { %v3385_v31 = vmul.f32 %v5064_v41, %v3329_v50 }
 0x954   : > { %v5066_v34 = vpop.eup %5065 }
 0x955   : > { %v3399_v7 = vmul.f32 %v6858_v4, %v3385_v31  ;;  %v3386_v22 = vmul.f32 %v5066_v34, %v6835_v56 }
 0x957   : > { %v3413_v25 = vadd.f32 %v6863_v58, %v3399_v7  ;;  %v3400_v49 = vmul.f32 %v6858_v4, %v3386_v22 }
 0x959   : > { %3421 = vst [vmem:[#allocation2 + $0x10] sm:$0xff] %v3413_v25  ;;  %v3437_v23 = vadd.f32 %v3429_v35, %v3413_v25  ;;  %v3414_v10 = vadd.f32 %v6863_v58, %v3400_v49 }
 0x95b   : > { %3445 = vst [vmem:[#allocation3 + $0x10] sm:$0xff] %v3437_v23  ;;  %3422 = vst [vmem:[#allocation2 + $0x18] sm:$0xff] %v3414_v10  ;;  %v3438_v6 = vadd.f32 %v3430_v26, %v3414_v10 }
 0x95d   : > { %3446 = vst [vmem:[#allocation3 + $0x18] sm:$0xff] %v3438_v6 }
 0x962   : > { %v3457_v3 = vld [vmem:[#allocation3 + $0x10] sm:$0xff] (!%p4167_p4) }
 0x963   : > { %v3465_v31 = vmul.f32 (!%p4167_p4), 0.5, %v3457_v3 }
 0x964   : > { %v3458_v47 = vld [vmem:[#allocation3 + $0x18] sm:$0xff] (!%p4167_p4) }
 0x965   : > { %v3466_v34 = vmul.f32 (!%p4167_p4), 0.5, %v3458_v47 }
 0x967   : > { %v3488_v35 = vpack.c.bf16 (!%p4167_p4), %v3466_v34, %v3465_v31 }
 0x9b1   : > { %v3352_v43 = vpop.xlane.xlu0 %3351 }
 0x9b2   : > { %v3363_v0 = vmul.f32 0.0078125, %v3352_v43  ;;  %v5088_v43 = vld [vmem:[%s7082_s16] sm:$0xff] (!%p4167_p4)  }
 0x9b3   : > { %v3354_v40 = vpop.xlane.xlu1 %3353  ;;  %4640 = vmatprep.subr.bf16.mxu1 (!%p4167_p4), %v5088_v43 }
 0x9b4   : > { %v3371_v15 = vadd.f32 1e-05, %v3363_v0  ;;  %v3364_v14 = vmul.f32 0.0078125, %v3354_v40  ;;  %4641 = vmatpush3.bf16.msra.mxu1 (!%p4167_p4), %v5088_v43  ;;  %v5089_v0 = vld [vmem:[%s7082_s16 + $0x8] sm:$0xff] (!%p4167_p4)   ;;  %v5090_v40 = vld [vmem:[%s7082_s16 + $0x10] sm:$0xff] (!%p4167_p4)  }
 0x9b5   : > { %4642 = vmatprep.subr.bf16.mxu1 (!%p4167_p4), %v5089_v0 }
 0x9b6   : > { %5067 = vrsqrt.f32 %v3371_v15  ;;  %v3372_v50 = vadd.f32 1e-05, %v3364_v14  ;;  %v5091_v15 = vld [vmem:[%s7082_s16 + $0x18] sm:$0xff] (!%p4167_p4)   ;;  %v5092_v14 = vld [vmem:[%s7082_s16 + $0x20] sm:$0xff] (!%p4167_p4)  }
 0x9b8   : > { %5069 = vrsqrt.f32 %v3372_v50  ;;  %4643 = vmatpush3.bf16.msra.mxu1 (!%p4167_p4), %v5089_v0  ;;  %v5093_v50 = vld [vmem:[%s7082_s16 + $0x28] sm:$0xff] (!%p4167_p4)  }
 0x9b9   : > { %v3356_v19 = vpop.xlane.xlu0 %3355  ;;  %4644 = vmatprep.subr.bf16.mxu1 (!%p4167_p4), %v5090_v40 }
 0x9ba   : > { %v3365_v56 = vmul.f32 0.0078125, %v3356_v19  ;;  %v5094_v19 = vld [vmem:[%s7082_s16 + $0x30] sm:$0xff] (!%p4167_p4)  }
 0x9bb   : > { %v3358_v53 = vpop.xlane.xlu1 %3357 }
 0x9bc   : > { %v3373_v24 = vadd.f32 1e-05, %v3365_v56  ;;  %v3366_v32 = vmul.f32 0.0078125, %v3358_v53  ;;  %4645 = vmatpush3.bf16.msra.mxu1 (!%p4167_p4), %v5090_v40  ;;  %v5095_v56 = vld [vmem:[%s7082_s16 + $0x38] sm:$0xff] (!%p4167_p4)  }
 0x9bd   : > { %4646 = vmatprep.subr.bf16.mxu1 (!%p4167_p4), %v5091_v15 }
 0x9be   : > { %5071 = vrsqrt.f32 %v3373_v24  ;;  %v3374_v16 = vadd.f32 1e-05, %v3366_v32 }
 0x9c0   : > { %v5068_v44 = vpop.eup %5067  ;;  %5073 = vrsqrt.f32 %v3374_v16  ;;  %4647 = vmatpush3.bf16.msra.mxu1 (!%p4167_p4), %v5091_v15 }
 0x9c1   : > { %v3387_v61 = vmul.f32 %v5068_v44, %v6839_v28  ;;  %4648 = vmatprep.subr.bf16.mxu1 (!%p4167_p4), %v5092_v14 }
 0x9c2   : > { %v5070_v1 = vpop.eup %5069 }
 0x9c3   : > { %v3401_v2 = vmul.f32 %v6858_v4, %v3387_v61  ;;  %v3388_v39 = vmul.f32 %v5070_v1, %v6841_v30 }
 0x9c4   : > { %4649 = vmatpush3.bf16.msra.mxu1 (!%p4167_p4), %v5092_v14 }
 0x9c5   : > { %v3415_v54 = vadd.f32 %v6863_v58, %v3401_v2  ;;  %v3402_v63 = vmul.f32 %v6858_v4, %v3388_v39  ;;  %4650 = vmatprep.subr.bf16.mxu1 (!%p4167_p4), %v5093_v50 }
 0x9c7   : > { %3423 = vst [vmem:[#allocation2 + $0x20] sm:$0xff] %v3415_v54  ;;  %v3439_v62 = vadd.f32 %v3431_v36, %v3415_v54  ;;  %v3416_v11 = vadd.f32 %v6863_v58, %v3402_v63 }
 0x9c8   : > { %v5072_v5 = vpop.eup %5071  ;;  %4651 = vmatpush3.bf16.msra.mxu1 (!%p4167_p4), %v5093_v50 }
 0x9c9   : > { %3447 = vst [vmem:[#allocation3 + $0x20] sm:$0xff] %v3439_v62  ;;  %3424 = vst [vmem:[#allocation2 + $0x28] sm:$0xff] %v3416_v11  ;;  %v3440_v59 = vadd.f32 %v3432_v42, %v3416_v11  ;;  %v3389_v28 = vmul.f32 %v5072_v5, %v6847_v20  ;;  %v5080_v20 = vld [vmem:[%s7081_s15] sm:$0xff] (!%p4167_p4)   ;;  %4652 = vmatprep.subr.bf16.mxu1 (!%p4167_p4), %v5094_v19 }
 0x9ca   : > { %v5074_v52 = vpop.eup %5073  ;;  %4616 = vmatprep.subr.bf16.mxu0 (!%p4167_p4), %v5080_v20 }
 0x9cb   : > { %3448 = vst [vmem:[#allocation3 + $0x28] sm:$0xff] %v3440_v59  ;;  %v3403_v30 = vmul.f32 %v6858_v4, %v3389_v28  ;;  %v3390_v27 = vmul.f32 %v5074_v52, %v6849_v37  ;;  %v5081_v37 = vld [vmem:[%s7081_s15 + $0x8] sm:$0xff] (!%p4167_p4)   ;;  %4617 = vmatpush3.bf16.msra.mxu0 (!%p4167_p4), %v5080_v20 }
 0x9cc   : > { %4618 = vmatprep.subr.bf16.mxu0 (!%p4167_p4), %v5081_v37  ;;  %4653 = vmatpush3.bf16.msra.mxu1 (!%p4167_p4), %v5094_v19 }
 0x9cd   : > { %v3417_v38 = vadd.f32 %v6863_v58, %v3403_v30  ;;  %v3404_v12 = vmul.f32 %v6858_v4, %v3390_v27  ;;  %3454 = sbr.rel (%p4167_p4) target bundleno = 3032 (0xbd8), region = 96  ;;  %v5082_v4 = vld [vmem:[%s7081_s15 + $0x10] sm:$0xff] (!%p4167_p4)   ;;  %4654 = vmatprep.subr.bf16.mxu1 (!%p4167_p4), %v5095_v56 }
 0x9cf   : > { %3425 = vst [vmem:[#allocation2 + $0x30] sm:$0xff] %v3417_v38  ;;  %v3441_v21 = vadd.f32 %v3433_v55, %v3417_v38  ;;  %v3418_v57 = vadd.f32 %v6863_v58, %v3404_v12  ;;  %4619 = vmatpush3.bf16.msra.mxu0 (!%p4167_p4), %v5081_v37  ;;  %v5083_v58 = vld [vmem:[%s7081_s15 + $0x18] sm:$0xff] (!%p4167_p4)  }
 0x9d0   : > { %4620 = vmatprep.subr.bf16.mxu0 (!%p4167_p4), %v5082_v4  ;;  %v3459_v13 = vld [vmem:[#allocation3 + $0x20] sm:$0xff] (!%p4167_p4)  ;;  %4655 = vmatpush3.bf16.msra.mxu1 (!%p4167_p4), %v5095_v56 }
 0x9d1   : > { %3449 = vst [vmem:[#allocation3 + $0x30] sm:$0xff] %v3441_v21  ;;  %3426 = vst [vmem:[#allocation2 + $0x38] sm:$0xff] %v3418_v57  ;;  %v3442_v33 = vadd.f32 %v3434_v60, %v3418_v57  ;;  %v3467_v7 = vmul.f32 (!%p4167_p4), 0.5, %v3459_v13 }
 0x9d2   : > { %v3460_v41 = vld [vmem:[#allocation3 + $0x28] sm:$0xff] (!%p4167_p4) }
 0x9d3   : > { %3450 = vst [vmem:[#allocation3 + $0x38] sm:$0xff] %v3442_v33  ;;  %4621 = vmatpush3.bf16.msra.mxu0 (!%p4167_p4), %v5082_v4  ;;  %v3468_v22 = vmul.f32 (!%p4167_p4), 0.5, %v3460_v41 }
 0x9d4   : > { %4622 = vmatprep.subr.bf16.mxu0 %v5083_v58 }
 0x9d5   : > { %v3489_v25 = vpack.c.bf16 %v3468_v22, %v3467_v7 }
 0x9d7   : > { %4623 = vmatpush3.bf16.msra.mxu0 %v5083_v58 }
 0x9d8   : > { %4624 = vmatprep.subr.bf16.mxu0 %v5084_v51  ;;  %v3461_v49 = vld [vmem:[#allocation3 + $0x30] sm:$0xff] }
 0x9d9   : > { %v3469_v23 = vmul.f32 0.5, %v3461_v49 }
 0x9da   : > { %v3462_v26 = vld [vmem:[#allocation3 + $0x38] sm:$0xff] }
 0x9db   : > { %4625 = vmatpush3.bf16.msra.mxu0 %v5084_v51  ;;  %v3470_v10 = vmul.f32 0.5, %v3462_v26 }
 0x9dc   : > { %4626 = vmatprep.subr.bf16.mxu0 %v5085_v46 }
 0x9dd   : > { %v3490_v6 = vpack.c.bf16 %v3470_v10, %v3469_v23 }
 0x9df   : > { %4627 = vmatpush3.bf16.msra.mxu0 %v5085_v46 }
 0x9e0   : > { %4628 = vmatprep.subr.bf16.mxu0 %v5086_v45 }
 0x9e3   : > { %4629 = vmatpush3.bf16.msra.mxu0 %v5086_v45 }
 0x9e4   : > { %4630 = vmatprep.subr.bf16.mxu0 %v5087_v9 }
 0x9e7   : > { %4631 = vmatpush3.bf16.msra.mxu0 %v5087_v9 }
 0x9ea   : > { %4633 = vmatmul.mubr.bf16.vlgmr.msra.gmra.mrb[0].mxu0 %v3488_v35 }
 0x9eb   : > { %4636 = vmatprep.mubr.bf16.mxu0 %v3489_v25 }
 0x9f2   : > { %4637 = vmatmul.mubr.bf16.gmra.mrb[4].mxu0 %v3490_v6 }
 0xabd   : > { %v6935_v53 = vpop.f32.mrb[0].mxu0 }
 0xabe   : > { %v3606_v24 = vand.u32 2147483647, %v6935_v53  ;;  %v6938_v32 = vpop.f32.mrb[1].mxu0  ;;  %vm3774_vm0 = vcmp.ge.f32.partialorder %v6935_v53, 0.0 }
 0xabf   : > { %v3604_v16 = vand.u32 2147483647, %v6938_v32  ;;  %v6941_v44 = vpop.f32.mrb[2].mxu0  ;;  %vm3772_vm1 = vcmp.ge.f32.partialorder %v6938_v32, 0.0 }
 0xac0   : > { %v3614_v61 = vmul.f32 0.70710677, %v3606_v24  ;;  %v3607_v1 = vand.u32 2147483647, %v6941_v44  ;;  %v6944_v39 = vpop.f32.mrb[3].mxu0  ;;  %vm3775_vm2 = vcmp.ge.f32.partialorder %v6941_v44, 0.0 }
 0xac1   : > { %v3612_v2 = vmul.f32 0.70710677, %v3604_v16  ;;  %v3605_v42 = vand.u32 2147483647, %v6944_v39  ;;  %vm3773_vm3 = vcmp.ge.f32.partialorder %v6944_v39, 0.0 }
 0xac2   : > { %v3622_v36 = vmul.f32 0.3275911, %v3614_v61  ;;  %v3615_v54 = vmul.f32 0.70710677, %v3607_v1  ;;  %v3726_v52 = vsub.f32 0.0, %v3614_v61 }
 0xac3   : > { %v3620_v63 = vmul.f32 0.3275911, %v3612_v2  ;;  %v3613_v59 = vmul.f32 0.70710677, %v3605_v42  ;;  %v3724_v55 = vsub.f32 0.0, %v3612_v2 }
 0xac4   : > { %v3630_v62 = vadd.f32 1.0, %v3622_v36  ;;  %v3623_v11 = vmul.f32 0.3275911, %v3615_v54  ;;  %v3734_v33 = vmul.f32 %v3726_v52, %v3614_v61  ;;  %v3727_v58 = vsub.f32 0.0, %v3615_v54 }
 0xac5   : > { %v3628_v5 = vadd.f32 1.0, %v3620_v63  ;;  %v6947_v28 = vpop.f32.mrb[4].mxu0  ;;  %v3621_v38 = vmul.f32 0.3275911, %v3613_v59  ;;  %v3732_v4 = vmul.f32 %v3724_v55, %v3612_v2  ;;  %v3725_v29 = vsub.f32 0.0, %v3613_v59 }
 0xac6   : > { %5096 = vrcp.f32 %v3630_v62  ;;  %v3631_v30 = vadd.f32 1.0, %v3623_v11  ;;  %v6949_v27 = vpop.f32.mrb[5].mxu0  ;;  %v3610_v60 = vand.u32 2147483647, %v6947_v28  ;;  %v3744_v18 = vmul.f32 1.442695, %v3734_v33 }
 0xac7   : > { %5098 = vrcp.f32 %v3628_v5  ;;  %v6951_v12 = vpop.f32.mrb[6].mxu0  ;;  %v3629_v57 = vadd.f32 1.0, %v3621_v38  ;;  %v3608_v37 = vand.u32 2147483647, %v6949_v27  ;;  %v3740_v47 = vmul.f32 1.442695, %v3732_v4 }
 0xac8   : > { %v6954_v21 = vpop.f32.mrb[7].mxu0  ;;  %5100 = vrcp.f32 %v3631_v30  ;;  %v3618_v20 = vmul.f32 0.70710677, %v3610_v60  ;;  %v3611_v8 = vand.u32 2147483647, %v6951_v12  ;;  %v3735_v9 = vmul.f32 %v3727_v58, %v3615_v54 }
 0xac9   : > { %5102 = vrcp.f32 %v3629_v57  ;;  %v3616_v17 = vmul.f32 0.70710677, %v3608_v37  ;;  %v3609_v41 = vand.u32 2147483647, %v6954_v21  ;;  %v3733_v34 = vmul.f32 %v3725_v29, %v3613_v59 }
 0xaca   : > { %v3626_v48 = vmul.f32 0.3275911, %v3618_v20  ;;  %v3619_v51 = vmul.f32 0.70710677, %v3611_v8  ;;  %v3730_v45 = vsub.f32 0.0, %v3618_v20  ;;  %vm3778_vm4 = vcmp.ge.f32.partialorder %v6947_v28, 0.0 }
 0xacb   : > { %v3624_v3 = vmul.f32 0.3275911, %v3616_v17  ;;  %v3728_v22 = vsub.f32 0.0, %v3616_v17  ;;  %v3617_v26 = vmul.f32 0.70710677, %v3609_v41  ;;  %vm3776_vm5 = vcmp.ge.f32.partialorder %v6949_v27, 0.0 }
 0xacc   : > { %v3634_v46 = vadd.f32 1.0, %v3626_v48  ;;  %v3627_v13 = vmul.f32 0.3275911, %v3619_v51  ;;  %v3738_v23 = vmul.f32 %v3730_v45, %v3618_v20  ;;  %v3731_v10 = vsub.f32 0.0, %v3619_v51 }
 0xacd   : > { %v3632_v7 = vadd.f32 1.0, %v3624_v3  ;;  %v3746_v0 = vmul.f32 1.442695, %v3735_v9  ;;  %v3625_v40 = vmul.f32 0.3275911, %v3617_v26  ;;  %v3736_v50 = vmul.f32 %v3728_v22, %v3616_v17 }
 0xace   : > { %5104 = vrcp.f32 %v3634_v46  ;;  %v3635_v49 = vadd.f32 1.0, %v3627_v13  ;;  %v3742_v14 = vmul.f32 1.442695, %v3733_v34  ;;  %v3729_v19 = vsub.f32 0.0, %v3617_v26 }
 0xacf   : > { %5106 = vpow2.f32 %v3744_v18  ;;  %v3633_v61 = vadd.f32 1.0, %v3625_v40  ;;  %v3752_v2 = vmul.f32 1.442695, %v3738_v23  ;;  %v3739_v36 = vmul.f32 %v3731_v10, %v3619_v51 }
 0xad0   : > { %v6959_v31 = vpop.eup %5096  ;;  %5108 = vrcp.f32 %v3632_v7  ;;  %v3748_v11 = vmul.f32 1.442695, %v3736_v50  ;;  %v3737_v5 = vmul.f32 %v3729_v19, %v3617_v26  ;;  %v6985_v45 = vmul.f32 0.5, %v6935_v53 }
 0xad1   : > { %v6961_v35 = vpop.eup %5098  ;;  %v3654_v25 = vmul.f32 1.0614054, %v6959_v31  ;;  %5110 = vrcp.f32 %v3635_v49  ;;  %v3754_v60 = vmul.f32 1.442695, %v3739_v36  ;;  %vm3779_vm6 = vcmp.ge.f32.partialorder %v6951_v12, 0.0 }
 0xad2   : > { %v3652_v6 = vmul.f32 1.0614054, %v6961_v35  ;;  %v6965_v15 = vpop.eup %5100  ;;  %5112 = vpow2.f32 %v3740_v47  ;;  %v3750_v8 = vmul.f32 1.442695, %v3737_v5  ;;  %vm3777_vm7 = vcmp.ge.f32.partialorder %v6954_v21, 0.0 }
 0xad3   : > { %v4178_v43 = vadd.f32 -1.4531521, %v3654_v25  ;;  %v3655_v16 = vmul.f32 1.0614054, %v6965_v15  ;;  %v6969_v1 = vpop.eup %5102  ;;  %5114 = vrcp.f32 %v3633_v61 }
 0xad4   : > { %v4176_v56 = vadd.f32 -1.4531521, %v3652_v6  ;;  %v3653_v62 = vmul.f32 1.0614054, %v6969_v1  ;;  %5116 = vpow2.f32 %v3746_v0 }
 0xad5   : > { %v3670_v24 = vmul.f32 %v6959_v31, %v4178_v43  ;;  %v4179_v42 = vadd.f32 -1.4531521, %v3655_v16  ;;  %5118 = vpow2.f32 %v3742_v14 }
 0xad6   : > { %v3668_v54 = vmul.f32 %v6961_v35, %v4176_v56  ;;  %v4177_v55 = vadd.f32 -1.4531521, %v3653_v62  ;;  %5120 = vpow2.f32 %v3752_v2 }
 0xad7   : > { %v3678_v63 = vadd.f32 1.4214138, %v3670_v24  ;;  %v3671_v30 = vmul.f32 %v6965_v15, %v4179_v42  ;;  %5122 = vpow2.f32 %v3748_v11 }
 0xad8   : > { %v3676_v59 = vadd.f32 1.4214138, %v3668_v54  ;;  %v6975_v38 = vpop.eup %5104  ;;  %v3669_v4 = vmul.f32 %v6969_v1, %v4177_v55  ;;  %5124 = vpow2.f32 %v3754_v60 }
 0xad9   : > { %v3686_v52 = vmul.f32 %v6959_v31, %v3678_v63  ;;  %v3679_v20 = vadd.f32 1.4214138, %v3671_v30  ;;  %v3658_v37 = vmul.f32 1.0614054, %v6975_v38  ;;  %v5107_v58 = vpop.eup %5106  ;;  %5126 = vpow2.f32 %v3750_v8 }
 0xada   : > { %v3684_v57 = vmul.f32 %v6961_v35, %v3676_v59  ;;  %v6980_v48 = vpop.eup %5108  ;;  %v3677_v46 = vadd.f32 1.4214138, %v3669_v4 }
 0xadb   : > { %v4186_v33 = vadd.f32 -0.28449672, %v3686_v52  ;;  %v3687_v51 = vmul.f32 %v6965_v15, %v3679_v20  ;;  %v4182_v18 = vadd.f32 -1.4531521, %v3658_v37  ;;  %v3656_v3 = vmul.f32 1.0614054, %v6980_v48  ;;  %v6989_v9 = vpop.eup %5110 }
 0xadc   : > { %v4184_v29 = vadd.f32 -0.28449672, %v3684_v57  ;;  %v3685_v7 = vmul.f32 %v6969_v1, %v3677_v46  ;;  %v5113_v22 = vpop.eup %5112  ;;  %v3659_v49 = vmul.f32 1.0614054, %v6989_v9 }
 0xadd   : > { %v3702_v17 = vmul.f32 %v6959_v31, %v4186_v33  ;;  %v4187_v41 = vadd.f32 -0.28449672, %v3687_v51  ;;  %v3674_v34 = vmul.f32 %v6975_v38, %v4182_v18  ;;  %v4180_v25 = vadd.f32 -1.4531521, %v3656_v3  ;;  %v6995_v23 = vpop.eup %5114 }
 0xade   : > { %v3700_v47 = vmul.f32 %v6961_v35, %v4184_v29  ;;  %v4185_v0 = vadd.f32 -0.28449672, %v3685_v7  ;;  %v5117_v40 = vpop.eup %5116  ;;  %v4183_v50 = vadd.f32 -1.4531521, %v3659_v49  ;;  %v3657_v19 = vmul.f32 1.0614054, %v6995_v23 }
 0xadf   : > { %v3710_v13 = vadd.f32 0.2548296, %v3702_v17  ;;  %v3703_v6 = vmul.f32 %v6965_v15, %v4187_v41  ;;  %v3682_v43 = vadd.f32 1.4214138, %v3674_v34  ;;  %v3672_v14 = vmul.f32 %v6980_v48, %v4180_v25  ;;  %v5119_v24 = vpop.eup %5118 }
 0xae0   : > { %v3708_v26 = vadd.f32 0.2548296, %v3700_v47  ;;  %v5121_v36 = vpop.eup %5120  ;;  %v3675_v63 = vmul.f32 %v6989_v9, %v4183_v50  ;;  %v4181_v42 = vadd.f32 -1.4531521, %v3657_v19 }
 0xae1   : > { %v3718_v10 = vmul.f32 %v6959_v31, %v3710_v13  ;;  %v3711_v61 = vadd.f32 0.2548296, %v3703_v6  ;;  %v3690_v2 = vmul.f32 %v6975_v38, %v3682_v43  ;;  %v3701_v31 = vmul.f32 %v6969_v1, %v4185_v0  ;;  %v5123_v52 = vpop.eup %5122 }
 0xae2   : > { %v3716_v56 = vmul.f32 %v6961_v35, %v3708_v26  ;;  %v3680_v54 = vadd.f32 1.4214138, %v3672_v14  ;;  %v3683_v55 = vadd.f32 1.4214138, %v3675_v63  ;;  %v3673_v60 = vmul.f32 %v6995_v23, %v4181_v42 }
 0xae3   : > { %v3758_v16 = vmul.f32 %v5107_v58, %v3718_v10  ;;  %v3719_v35 = vmul.f32 %v6965_v15, %v3711_v61  ;;  %v4190_v5 = vadd.f32 -0.28449672, %v3690_v2  ;;  %v3709_v59 = vadd.f32 0.2548296, %v3701_v31  ;;  %v5125_v58 = vpop.eup %5124 }
 0xae4   : > { %v3756_v62 = vmul.f32 %v5113_v22, %v3716_v56  ;;  %v3688_v30 = vmul.f32 %v6980_v48, %v3680_v54  ;;  %v3691_v29 = vmul.f32 %v6989_v9, %v3683_v55  ;;  %v3681_v15 = vadd.f32 1.4214138, %v3673_v60  ;;  %v5127_v47 = vpop.eup %5126 }
 0xae5   : > { %v3766_v11 = vsub.f32 1.0, %v3758_v16  ;;  %v3759_v20 = vmul.f32 %v5117_v40, %v3719_v35  ;;  %v3706_v37 = vmul.f32 %v6975_v38, %v4190_v5  ;;  %v3717_v4 = vmul.f32 %v6969_v1, %v3709_v59 }
 0xae6   : > { %v3764_v57 = vsub.f32 1.0, %v3756_v62  ;;  %v4188_v8 = vadd.f32 -0.28449672, %v3688_v30  ;;  %v3799_v13 = vmul.f32 0.5, %v6941_v44  ;;  %v4191_v34 = vadd.f32 -0.28449672, %v3691_v29 }
 0xae7   : > { %v3782_v33 = vsub.f32 0.0, %v3766_v11  ;;  %v3767_v18 = vsub.f32 1.0, %v3759_v20  ;;  %v3714_v46 = vadd.f32 0.2548296, %v3706_v37  ;;  %v3757_v3 = vmul.f32 %v5119_v24, %v3717_v4 }
 0xae8   : > { %v3780_v17 = vsub.f32 0.0, %v3764_v57  ;;  %v3704_v41 = vmul.f32 %v6980_v48, %v4188_v8  ;;  %v3689_v1 = vmul.f32 %v6995_v23, %v3681_v15  ;;  %v3707_v53 = vmul.f32 %v6989_v9, %v4191_v34 }
 0xae9   : > { %v3790_v51 = vsel %vm3774_vm0, %v3766_v11, %v3782_v33  ;;  %v3783_v22 = vsub.f32 0.0, %v3767_v18  ;;  %v3722_v25 = vmul.f32 %v6975_v38, %v3714_v46  ;;  %v3765_v49 = vsub.f32 1.0, %v3757_v3 }
 0xaea   : > { %v3806_v7 = vadd.f32 1.0, %v3790_v51  ;;  %v3712_v26 = vadd.f32 0.2548296, %v3704_v41  ;;  %v4189_v10 = vadd.f32 -0.28449672, %v3689_v1  ;;  %v3788_v6 = vsel %vm3772_vm1, %v3764_v57, %v3780_v17 }
 0xaeb   : > { %v3791_v43 = vsel %vm3775_vm2, %v3767_v18, %v3783_v22  ;;  %v3762_v0 = vmul.f32 %v5121_v36, %v3722_v25  ;;  %v3781_v40 = vsub.f32 0.0, %v3765_v49  ;;  %v3715_v19 = vadd.f32 0.2548296, %v3707_v53 }
 0xaec   : > { %v3807_v14 = vadd.f32 1.0, %v3791_v43  ;;  %v3720_v50 = vmul.f32 %v6980_v48, %v3712_v26  ;;  %v3705_v38 = vmul.f32 %v6995_v23, %v4189_v10  ;;  %v3814_v56 = vmul.f32 %v3806_v7, %v6985_v45 }
 0xaed   : > { %v3770_v24 = vsub.f32 1.0, %v3762_v0  ;;  %v3789_v16 = vsel %vm3773_vm3, %v3765_v49, %v3781_v40  ;;  %v3804_v61 = vadd.f32 1.0, %v3788_v6  ;;  %v3723_v44 = vmul.f32 %v6989_v9, %v3715_v19 }
 0xaee   : > { %v3815_v2 = vmul.f32 %v3807_v14, %v3799_v13  ;;  %v3760_v31 = vmul.f32 %v5123_v52, %v3720_v50  ;;  %v3713_v54 = vadd.f32 0.2548296, %v3705_v38  ;;  %v3796_v63 = vmul.f32 0.5, %v6938_v32 }
 0xaef   : > { %v3797_v36 = vmul.f32 0.5, %v6944_v39  ;;  %v3786_v42 = vsub.f32 0.0, %v3770_v24  ;;  %v3805_v62 = vadd.f32 1.0, %v3789_v16  ;;  %v3763_v11 = vmul.f32 %v5125_v58, %v3723_v44 }
 0xaf0   : > { %v3768_v48 = vsub.f32 1.0, %v3760_v31  ;;  %v3721_v35 = vmul.f32 %v6995_v23, %v3713_v54  ;;  %v3837_v5 = vpack.c.bf16 %v3815_v2, %v3814_v56  ;;  %v3812_v45 = vmul.f32 %v3804_v61, %v3796_v63 }
 0xaf1   : > { %v3813_v59 = vmul.f32 %v3805_v62, %v3797_v36  ;;  %v3794_v30 = vsel %vm3778_vm4, %v3770_v24, %v3786_v42  ;;  %v3771_v55 = vsub.f32 1.0, %v3763_v11  ;;  %v3802_v23 = vmul.f32 0.5, %v6947_v28 }
 0xaf2   : > { %v3784_v52 = vsub.f32 0.0, %v3768_v48  ;;  %v3761_v9 = vmul.f32 %v5127_v47, %v3721_v35  ;;  %v3810_v33 = vadd.f32 1.0, %v3794_v30  ;;  %v3803_v58 = vmul.f32 0.5, %v6951_v12 }
 0xaf3   : > { %v3836_v32 = vpack.c.bf16 %v3813_v59, %v3812_v45  ;;  %v3787_v39 = vsub.f32 0.0, %v3771_v55  ;;  %v3800_v29 = vmul.f32 0.5, %v6949_v27  ;;  %v3801_v18 = vmul.f32 0.5, %v6954_v21 }
 0xaf4   : > { %v3792_v60 = vsel %vm3776_vm5, %v3768_v48, %v3784_v52  ;;  %v3769_v57 = vsub.f32 1.0, %v3761_v9  ;;  %v3818_v17 = vmul.f32 %v3810_v33, %v3802_v23 }
 0xaf5   : > { %4656 = vmatprep.mubr.bf16.mxu1 %v3836_v32  ;;  %v3795_v20 = vsel %vm3779_vm6, %v3771_v55, %v3787_v39  ;;  %v3808_v4 = vadd.f32 1.0, %v3792_v60 }
 0xaf6   : > { %v3785_v37 = vsub.f32 0.0, %v3769_v57  ;;  %4657 = vmatmul.mubr.bf16.vlgmr.msra.gmra.mrb[0].mxu1 %v3837_v5  ;;  %v3811_v8 = vadd.f32 1.0, %v3795_v20 }
 0xaf7   : > { %v3816_v3 = vmul.f32 %v3808_v4, %v3800_v29 }
 0xaf8   : > { %v3793_v15 = vsel %vm3777_vm7, %v3769_v57, %v3785_v37  ;;  %v3819_v51 = vmul.f32 %v3811_v8, %v3803_v58 }
 0xaf9   : > { %v3809_v46 = vadd.f32 1.0, %v3793_v15 }
 0xafa   : > { %v3839_v28 = vpack.c.bf16 %v3819_v51, %v3818_v17 }
 0xafb   : > { %v3817_v47 = vmul.f32 %v3809_v46, %v3801_v18 }
 0xafd   : > { %v3838_v13 = vpack.c.bf16 %v3817_v47, %v3816_v3 }
 0xaff   : > { %4660 = vmatprep.mubr.bf16.mxu1 %v3838_v13 }
 0xb00   : > { %4661 = vmatmul.mubr.bf16.gmra.mrb[4].mxu1 %v3839_v28 }
 0xbc9   : > { %v4658_v41 = vpop.f32.mrb[0].mxu1 }
 0xbca   : > { %3955 = vst [vmem:[#allocation4 + $0x10] sm:$0xff] %v4658_v41  ;;  %v3922_v12 = vpop.f32.mrb[1].mxu1 }
 0xbcb   : > { %3953 = vst [vmem:[#allocation4] sm:$0xff] %v3922_v12  ;;  %v4659_v34 = vpop.f32.mrb[2].mxu1 }
 0xbcc   : > { %3956 = vst [vmem:[#allocation4 + $0x18] sm:$0xff] %v4659_v34  ;;  %v3925_v1 = vpop.f32.mrb[3].mxu1 }
 0xbcd   : > { %3954 = vst [vmem:[#allocation4 + $0x8] sm:$0xff] %v3925_v1 }
 0xbd3   : > { %v4662_v27 = vpop.f32.mrb[4].mxu1 }
 0xbd4   : > { %3959 = vst [vmem:[#allocation4 + $0x30] sm:$0xff] %v4662_v27  ;;  %v3938_v7 = vpop.f32.mrb[5].mxu1 }
 0xbd5   : > { %3957 = vst [vmem:[#allocation4 + $0x20] sm:$0xff] %v3938_v7  ;;  %v4663_v21 = vpop.f32.mrb[6].mxu1 }
 0xbd6   : > { %3960 = vst [vmem:[#allocation4 + $0x38] sm:$0xff] %v4663_v21  ;;  %v3941_v22 = vpop.f32.mrb[7].mxu1 }
 0xbd7   : > { %3958 = vst [vmem:[#allocation4 + $0x28] sm:$0xff] %v3941_v22 }
 0xbd8 PF: > { %p4748_p5 = scmp.eq.s32.totalorder %s5267_s25, 1  ;;  %s5168_s21 = smov [#allocation4]  }
 0xbd9   : > { %s3967_s23 = sshll.u32 %s5168_s21, 4  ;;  %s3968_s23 = int_to_ptr.vmem [resolvable:$true] %s3967_s23 }
 0xbda   : > { %s5128_s26 = scalar_lea.vmem %s3968_s23, 1024  ;;  %p5135_p9 = scmp.lt.s32.totalorder %s3968_s23, %s3968_s23 }
 0xbdb   : > { %p5129_p6 = scmp.ne.s32.totalorder %s3968_s23, %s5128_s26  ;;  %p5136_p10 = scmp.lt.s32.totalorder %s5128_s26, %s5128_s26 }
 0xbdd   : > { %p5130_p7 = pnand %p5129_p6, %p4748_p5  ;;  %p5137_p11 = por %p5136_p10, %p5135_p9 }
 0xbdf   : > { %p5131_p8 = pneg %p5130_p7 }
 0xbe1   : > { %p5138_p12 = pnand %p5137_p11, %p5131_p8 }
 0xbe3   : > { %5141 = shalt.err (!%p5138_p12)
}
 0xbe4   : > { %s5142_s29 = scalar_lea.hbm %s7083_s17, 1024 }
 0xbe5   : > { %p5143_p13 = scmp.ne.s32.totalorder %s7083_s17, %s5142_s29  ;;  %p5148_p2 = scmp.lt.u32.totalorder %s5142_s29, %s7083_s17 }
 0xbe7   : > { %p5144_p0 = pnand %p5143_p13, %p4748_p5 }
 0xbe9   : > { %p5145_p1 = pneg %p5144_p0 }
 0xbeb   : > { %p5150_p3 = pnand %p5148_p2, %p5145_p1 }
 0xbed   : > { %5153 = shalt.err (!%p5150_p3)
}
 0xbee   : > { %s5169_s20 = smov 128   ;;  %s5170_s21 = smov 8  }
 0xbef   : > { %4745 = dma.vmem_to_hbm [thread:$0]  (%p4748_p5), %s3968_s23, 1024, %s7083_s17, [#allocation5], %s5169_s20, %s5169_s20, %s5170_s21  }
 0xbf0   : > { %5159 = dma.done.wait (%p4748_p5), [#allocation5], 1024  }
 0xbf1   : > { %5161 = vsyncadd (%p4748_p5), [#allocation5], 4294966272 }
 0xbf2 PF: > { %s28_s24 = sadd.s32 1, %s5164_s24  }
 0xbf3   : > { %p25_p4 = scmp.ge.s32.totalorder %s28_s24, 4  }
 0xbf5   :  { %27 = sbr.rel (!%p25_p4) target bundleno = 4 (0x4), region = 120 }
 0xbfc   :  { %3983 = vsyncpa [#allocation5], 1 }
 0xbfd   :  { %3985 = vsyncpa [#allocation5 + $0x1], 1 }

// kernel: selfsup_forward.2
= control target key start
LH: loop header
LB: loop body
LE: loop exit
PB: predicated region body
PF: predicated region fallthrough
CT: control target
= control target key end

     0   :  { %s8353_s6 = smov 1   ;;  %s8354_s10 = smov 2   ;;  %s10479_s0 = inlined_call_operand.smem [shape: u32[30], index: -1, kind: input, shape index: {}] }
   0x1   :  { %s8411_s5 = sld [smem:[%s10479_s0]]   ;;  %s8355_s14 = smov 3  }
   0x2   :  { %s8416_s9 = sld [smem:[%s10479_s0 + %s8353_s6]]   ;;  %s8356_s18 = smov 4  }
   0x3   :  { %s8421_s13 = sld [smem:[%s10479_s0 + %s8354_s10]]   ;;  %s8357_s22 = smov 5  }
   0x4   :  { %s8426_s17 = sld [smem:[%s10479_s0 + %s8355_s14]]   ;;  %s8358_s26 = smov 6  }
   0x5   :  { %s8431_s21 = sld [smem:[%s10479_s0 + %s8356_s18]]   ;;  %s8359_s30 = smov 7  }
   0x6   :  { %s8436_s25 = sld [smem:[%s10479_s0 + %s8357_s22]]   ;;  %s8360_s4 = smov 8  }
   0x7   :  { %s8441_s29 = sld [smem:[%s10479_s0 + %s8358_s26]]   ;;  %s8361_s10 = smov 9  }
   0x8   :  { %10509 = sst [smem:[#allocation35_spill]] %s8416_s9  ;;  %s8362_s15 = smov 10  }
   0x9   :  { %10510 = sst [smem:[#allocation36_spill]] %s8421_s13  ;;  %s8363_s20 = smov 11  }
   0xa   :  { %s8446_s3 = sld [smem:[%s10479_s0 + %s8359_s30]]   ;;  %s8364_s26 = smov 12  }
   0xb   :  { %s8451_s8 = sld [smem:[%s10479_s0 + %s8360_s4]]   ;;  %s8365_s1 = smov 13  }
   0xc   :  { %10511 = sst [smem:[#allocation37_spill]] %s8436_s25  ;;  %s8366_s7 = smov 14  }
   0xd   :  { %10512 = sst [smem:[#allocation38_spill]] %s8441_s29  ;;  %s8368_s22 = smov 16  }
   0xe   :  { %s8456_s14 = sld [smem:[%s10479_s0 + %s8361_s10]]   ;;  %s8369_s28 = smov 17  }
   0xf   :  { %s8461_s19 = sld [smem:[%s10479_s0 + %s8362_s15]]   ;;  %s8367_s15 = smov 15  }
  0x10   :  { %10513 = sst [smem:[#allocation39_spill]] %s8446_s3 }
  0x11   :  { %10514 = sst [smem:[#allocation40_spill]] %s8451_s8 }
  0x12   :  { %s8466_s24 = sld [smem:[%s10479_s0 + %s8363_s20]]  }
  0x13   :  { %s8471_s30 = sld [smem:[%s10479_s0 + %s8364_s26]]  }
  0x14   :  { %10515 = sst [smem:[#allocation41_spill]] %s8456_s14 }
  0x15   :  { %10516 = sst [smem:[#allocation42_spill]] %s8461_s19 }
  0x16   :  { %s8476_s6 = sld [smem:[%s10479_s0 + %s8365_s1]]  }
  0x17   :  { %s8481_s12 = sld [smem:[%s10479_s0 + %s8366_s7]]   ;;  %s8370_s7 = smov 18  }
  0x18   :  { %s8486_s20 = sld [smem:[%s10479_s0 + %s8367_s15]]   ;;  %s8371_s15 = smov 19  }
  0x19   :  { %s8491_s27 = sld [smem:[%s10479_s0 + %s8368_s22]]   ;;  %s8372_s22 = smov 20  }
  0x1a   :  { %s8496_s4 = sld [smem:[%s10479_s0 + %s8369_s28]]   ;;  %s8373_s28 = smov 21  }
  0x1b   :  { %s8501_s19 = sld [smem:[%s10479_s0 + %s8370_s7]]   ;;  %s8374_s7 = smov 22  }
  0x1c   :  { %10517 = sst [smem:[#allocation43_spill]] %s8476_s6 }
  0x1d   :  { %s8506_s14 = sld [smem:[%s10479_s0 + %s8371_s15]]   ;;  %s8375_s15 = smov 23  }
  0x1e   :  { %s8511_s8 = sld [smem:[%s10479_s0 + %s8372_s22]]   ;;  %s8376_s22 = smov 24  }
  0x1f   :  { %s8521_s3 = sld [smem:[%s10479_s0 + %s8374_s7]]   ;;  %s8378_s7 = smov 26  }
  0x20   :  { %10518 = sst [smem:[#allocation44_spill]] %s8496_s4 }
  0x21   :  { %s8516_s4 = sld [smem:[%s10479_s0 + %s8373_s28]]   ;;  %s8377_s28 = smov 25  }
  0x22   :  { %s8531_s9 = sld [smem:[%s10479_s0 + %s8376_s22]]   ;;  %s8380_s22 = smov 28  }
  0x23   :  { %10519 = sst [smem:[#allocation45_spill]] %s8506_s14 }
  0x24   :  { %s8526_s14 = sld [smem:[%s10479_s0 + %s8375_s15]]   ;;  %s8379_s15 = smov 27  }
  0x25   :  { %s8536_s13 = sld [smem:[%s10479_s0 + %s8377_s28]]   ;;  %s8381_s28 = smov 29  }
  0x26   :  { %s8541_s29 = sld [smem:[%s10479_s0 + %s8378_s7]]  }
  0x27   :  { %10520 = sst [smem:[#allocation46_spill]] %s8516_s4 }
  0x28   :  { %10522 = sst [smem:[#allocation48_spill]] %s8531_s9 }
  0x29   :  { %s8551_s25 = sld [smem:[%s10479_s0 + %s8380_s22]]  }
  0x2a   :  { %10521 = sst [smem:[#allocation47_spill]] %s8526_s14 }
  0x2b   :  { %s8546_s14 = sld [smem:[%s10479_s0 + %s8379_s15]]  }
  0x2c   :  { %s8556_s6 = sld [smem:[%s10479_s0 + %s8381_s28]]  }
  0x2d   :  { %64 = vsyncpa [#allocation6], 0 }
  0x2e   :  { %65 = vsyncpa [#allocation9], 0 }
  0x2f   :  { %66 = vsyncpa [#allocation12], 0 }
  0x30   :  { %67 = vsyncpa [#allocation15], 0 }
  0x31   :  { %68 = vsyncpa [#allocation18], 0 }
  0x32   :  { %69 = vsyncpa [#allocation21], 0 }
  0x33   :  { %70 = vsyncpa [#allocation24], 0 }
  0x34   :  { %71 = vsyncpa [#allocation7], 0  ;;  %s8558_s7 = smov 0  }
  0x35 LB: > { %s10523_s9 = sld [smem:[#allocation48_spill]]  ;;  %s10524_s4 = sld [smem:[#allocation46_spill]]  ;;  %s8351_s7 = sphi %s8558_s7, %s77_s7  }
  0x36   : > { %s8382_s0 = smov [#allocation8]   ;;  %s8564_s11 = sadd.s32 4294967295, %s8351_s7  }
  0x37   : > { %s771_s10 = sshll.u32 %s8382_s0, 4  ;;  %p6037_p0 = scmp.ge.s32.totalorder %s8351_s7, 1  ;;  %s8570_s10 = int_to_ptr.vmem [resolvable:$true] %s771_s10 }
  0x38   : > { %p712_p1 = scmp.lt.s32.totalorder %s8351_s7, 3  ;;  %p10487_p3 = scmp.eq.s32.totalorder %s8564_s11, 0 }
  0x39   : > { %s8383_s16 = smov [#allocation11]   ;;  %s8384_s23 = smov [#allocation14]  }
  0x3a   : > { %p8572_p4 = pnand %p6037_p0, %p712_p1  ;;  %s795_s18 = sshll.u32 %s8383_s16, 4  ;;  %s8578_s18 = int_to_ptr.vmem [resolvable:$true] %s795_s18 }
  0x3b   : > { %s823_s26 = sshll.u32 %s8384_s23, 4  ;;  %s8385_s28 = smov [#allocation17]   ;;  %s8586_s26 = int_to_ptr.vmem [resolvable:$true] %s823_s26 }
  0x3c   : > { %s10525_s15 = scalar_select %p8572_p4, 1, 0 }
  0x3d   : > { %p7319_p5 = pneg %p8572_p4  ;;  %s8588_s1 = sshll.u32 %s8385_s28, 4  ;;  %s849_s1 = int_to_ptr.vmem [resolvable:$true] %s8588_s1 }
  0x3e   : > { %s7923_s2 = scalar_lea.hbm %s8471_s30, 16 }
  0x3f   : > { %p8582_p6 = pnand %p10487_p3, %p7319_p5  ;;  %p7924_p7 = scmp.ne.s32.totalorder %s8471_s30, %s7923_s2 }
  0x40   : > { %p7930_p11 = scmp.lt.u32.totalorder %s7923_s2, %s8471_s30 }
  0x41   : > { %p8594_p8 = pneg %p8582_p6 }
  0x43   : > { %p7926_p9 = pnand %p8594_p8, %p7924_p7 }
  0x45   : > { %p7927_p10 = pneg %p7926_p9 }
  0x47   : > { %p7932_p12 = pnand %p7930_p11, %p7927_p10 }
  0x49   : > { %7935 = shalt.err (!%p7932_p12)
}
  0x4a   : > { %s7936_s16 = scalar_lea.vmem %s8570_s10, 16  ;;  %s7943_s23 = scalar_lea.vmem %s8570_s10, 32 }
  0x4b   : > { %p7937_p13 = scmp.ne.s32.totalorder %s8570_s10, %s7936_s16  ;;  %p7944_p5 = scmp.lt.s32.totalorder %s8570_s10, %s8570_s10 }
  0x4c   : > { %p7945_p2 = scmp.lt.s32.totalorder %s7943_s23, %s7936_s16 }
  0x4d   : > { %p7939_p0 = pnand %p7937_p13, %p8594_p8 }
  0x4e   : > { %p7946_p3 = por %p7945_p2, %p7944_p5 }
  0x4f   : > { %p7940_p1 = pneg %p7939_p0 }
  0x51   : > { %p7947_p7 = pnand %p7946_p3, %p7940_p1 }
  0x53   : > { %7950 = shalt.err (!%p7947_p7)
}
  0x54   : > { %7325 = dma.hbm_to_vmem [thread:$0]  (!%p8582_p6), %s8471_s30, 16, %s8570_s10, [#allocation9]  }
  0x55   : > { %s7951_s28 = scalar_lea.hbm %s8486_s20, 1024 }
  0x56   : > { %p7952_p9 = scmp.ne.s32.totalorder %s8486_s20, %s7951_s28  ;;  %p7958_p12 = scmp.lt.u32.totalorder %s7951_s28, %s8486_s20 }
  0x58   : > { %p7954_p10 = pnand %p7952_p9, %p8594_p8 }
  0x5a   : > { %p7955_p11 = pneg %p7954_p10 }
  0x5c   : > { %p7960_p13 = pnand %p7958_p12, %p7955_p11 }
  0x5e   : > { %7963 = shalt.err (!%p7960_p13)
}
  0x5f   : > { %s7964_s2 = scalar_lea.vmem %s8578_s18, 1024  ;;  %p7972_p1 = scmp.lt.s32.totalorder %s8578_s18, %s8578_s18 }
  0x60   : > { %p7965_p2 = scmp.ne.s32.totalorder %s8578_s18, %s7964_s2  ;;  %p7973_p5 = scmp.lt.s32.totalorder %s7964_s2, %s7964_s2 }
  0x62   : > { %p7967_p3 = pnand %p7965_p2, %p8594_p8  ;;  %p7974_p7 = por %p7973_p5, %p7972_p1 }
  0x64   : > { %p7968_p0 = pneg %p7967_p3 }
  0x66   : > { %p7975_p4 = pnand %p7974_p7, %p7968_p0 }
  0x68   : > { %7978 = shalt.err (!%p7975_p4)
}
  0x69   : > { %s10489_s10 = smov 64   ;;  %s10491_s16 = smov 4  }
  0x6a   : > { %7331 = dma.hbm_to_vmem [thread:$0]  (!%p8582_p6), %s8486_s20, 1024, %s8578_s18, [#allocation12], %s10489_s10, %s10489_s10, %s10491_s16  }
  0x6b   : > { %s7979_s23 = scalar_lea.hbm %s8501_s19, 64 }
  0x6c   : > { %p7980_p9 = scmp.ne.s32.totalorder %s8501_s19, %s7979_s23  ;;  %p7986_p4 = scmp.lt.u32.totalorder %s7979_s23, %s8501_s19 }
  0x6e   : > { %p7982_p10 = pnand %p7980_p9, %p8594_p8 }
  0x70   : > { %p7983_p11 = pneg %p7982_p10 }
  0x72   : > { %p7988_p12 = pnand %p7986_p4, %p7983_p11 }
  0x74   : > { %7991 = shalt.err (!%p7988_p12)
}
  0x75   : > { %s7992_s28 = scalar_lea.vmem %s8586_s26, 64  ;;  %p8000_p0 = scmp.lt.s32.totalorder %s8586_s26, %s8586_s26 }
  0x76   : > { %p7993_p13 = scmp.ne.s32.totalorder %s8586_s26, %s7992_s28  ;;  %p8001_p1 = scmp.lt.s32.totalorder %s7992_s28, %s7992_s28 }
  0x78   : > { %p7995_p2 = pnand %p7993_p13, %p8594_p8  ;;  %p8002_p5 = por %p8001_p1, %p8000_p0 }
  0x7a   : > { %p7996_p3 = pneg %p7995_p2 }
  0x7c   : > { %p8003_p7 = pnand %p8002_p5, %p7996_p3 }
  0x7e   : > { %8006 = shalt.err (!%p8003_p7)
}
  0x7f   : > { %7337 = dma.hbm_to_vmem [thread:$0]  (!%p8582_p6), %s8501_s19, 64, %s8586_s26, [#allocation15]  }
  0x80   : > { %s8007_s18 = scalar_lea.hbm %s10524_s4, 16 }
  0x81   : > { %p8008_p9 = scmp.ne.s32.totalorder %s10524_s4, %s8007_s18  ;;  %p8014_p4 = scmp.lt.u32.totalorder %s8007_s18, %s10524_s4 }
  0x83   : > { %p8010_p10 = pnand %p8008_p9, %p8594_p8 }
  0x85   : > { %p8011_p11 = pneg %p8010_p10 }
  0x87   : > { %p8016_p12 = pnand %p8014_p4, %p8011_p11 }
  0x89   : > { %8019 = shalt.err (!%p8016_p12)
}
  0x8a   : > { %s8020_s2 = scalar_lea.vmem %s849_s1, 16  ;;  %s8027_s23 = scalar_lea.vmem %s849_s1, 32 }
  0x8b   : > { %p8021_p13 = scmp.ne.s32.totalorder %s849_s1, %s8020_s2  ;;  %p8028_p0 = scmp.lt.s32.totalorder %s849_s1, %s849_s1 }
  0x8c   : > { %p8029_p1 = scmp.lt.s32.totalorder %s8027_s23, %s8020_s2 }
  0x8d   : > { %p8023_p2 = pnand %p8021_p13, %p8594_p8 }
  0x8e   : > { %p8030_p5 = por %p8029_p1, %p8028_p0 }
  0x8f   : > { %p8024_p3 = pneg %p8023_p2 }
  0x91   : > { %p8031_p7 = pnand %p8030_p5, %p8024_p3 }
  0x93   : > { %8034 = shalt.err (!%p8031_p7)
}
  0x94   : > { %7343 = dma.hbm_to_vmem [thread:$0]  (!%p8582_p6), %s10524_s4, 16, %s849_s1, [#allocation18]  }
  0x95   : > { %s8388_s26 = smov [#allocation20]   ;;  %s8389_s18 = smov [#allocation23]  }
  0x96   : > { %s873_s28 = sshll.u32 %s8388_s26, 4  ;;  %s895_s10 = sshll.u32 %s8389_s18, 4  ;;  %s874_s28 = int_to_ptr.vmem [resolvable:$true] %s873_s28  ;;  %s896_s10 = int_to_ptr.vmem [resolvable:$true] %s895_s10 }
  0x97   : > { %s8035_s16 = scalar_lea.hbm %s10523_s9, 16 }
  0x98   : > { %p8036_p9 = scmp.ne.s32.totalorder %s10523_s9, %s8035_s16  ;;  %p8042_p4 = scmp.lt.u32.totalorder %s8035_s16, %s10523_s9 }
  0x9a   : > { %p8038_p10 = pnand %p8036_p9, %p8594_p8 }
  0x9c   : > { %p8039_p11 = pneg %p8038_p10 }
  0x9e   : > { %p8044_p12 = pnand %p8042_p4, %p8039_p11 }
  0xa0   : > { %8047 = shalt.err (!%p8044_p12)
}
  0xa1   : > { %s8048_s2 = scalar_lea.vmem %s874_s28, 16  ;;  %s8055_s1 = scalar_lea.vmem %s874_s28, 32 }
  0xa2   : > { %p8049_p13 = scmp.ne.s32.totalorder %s874_s28, %s8048_s2  ;;  %p8056_p0 = scmp.lt.s32.totalorder %s874_s28, %s874_s28 }
  0xa3   : > { %p8057_p1 = scmp.lt.s32.totalorder %s8055_s1, %s8048_s2 }
  0xa4   : > { %p8051_p2 = pnand %p8049_p13, %p8594_p8 }
  0xa5   : > { %p8058_p5 = por %p8057_p1, %p8056_p0 }
  0xa6   : > { %p8052_p3 = pneg %p8051_p2 }
  0xa8   : > { %p8059_p7 = pnand %p8058_p5, %p8052_p3 }
  0xaa   : > { %8062 = shalt.err (!%p8059_p7)
}
  0xab   : > { %7349 = dma.hbm_to_vmem [thread:$0]  (!%p8582_p6), %s10523_s9, 16, %s874_s28, [#allocation21]  }
  0xac   : > { %s8063_s16 = scalar_lea.hbm %s8541_s29, 16 }
  0xad   : > { %p8064_p9 = scmp.ne.s32.totalorder %s8541_s29, %s8063_s16  ;;  %p8070_p4 = scmp.lt.u32.totalorder %s8063_s16, %s8541_s29 }
  0xaf   : > { %p8066_p10 = pnand %p8064_p9, %p8594_p8 }
  0xb1   : > { %p8067_p11 = pneg %p8066_p10 }
  0xb3   : > { %p8072_p12 = pnand %p8070_p4, %p8067_p11 }
  0xb5   : > { %8075 = shalt.err (!%p8072_p12)
}
  0xb6   : > { %s8076_s23 = scalar_lea.vmem %s896_s10, 16  ;;  %s8083_s26 = scalar_lea.vmem %s896_s10, 32 }
  0xb7   : > { %p8077_p13 = scmp.ne.s32.totalorder %s896_s10, %s8076_s23  ;;  %p8084_p0 = scmp.lt.s32.totalorder %s896_s10, %s896_s10 }
  0xb8   : > { %p8085_p1 = scmp.lt.s32.totalorder %s8083_s26, %s8076_s23 }
  0xb9   : > { %p8079_p2 = pnand %p8077_p13, %p8594_p8 }
  0xba   : > { %p8086_p5 = por %p8085_p1, %p8084_p0 }
  0xbb   : > { %p8080_p3 = pneg %p8079_p2 }
  0xbd   : > { %p8087_p7 = pnand %p8086_p5, %p8080_p3 }
  0xbf   : > { %8090 = shalt.err (!%p8087_p7)
}
  0xc0   : > { %7355 = dma.hbm_to_vmem [thread:$0]  (!%p8582_p6), %s8541_s29, 16, %s896_s10, [#allocation24]  }
  0xc1   : > { %s8390_s28 = smov [#allocation5]   ;;  %s8391_s2 = smov [#allocation10]  }
  0xc2   : > { %s757_s18 = sshll.u32 %s8390_s28, 4  ;;  %s785_s1 = sshll.u32 %s8391_s2, 4  ;;  %s758_s18 = int_to_ptr.vmem [resolvable:$true] %s757_s18  ;;  %s786_s1 = int_to_ptr.vmem [resolvable:$true] %s785_s1 }
  0xc3   : > { %s8091_s16 = scalar_lea.hbm %s8466_s24, 1024 }
  0xc4   : > { %p8092_p9 = scmp.ne.s32.totalorder %s8466_s24, %s8091_s16  ;;  %p8098_p4 = scmp.lt.u32.totalorder %s8091_s16, %s8466_s24 }
  0xc6   : > { %p8094_p10 = pnand %p8092_p9, %p8594_p8 }
  0xc8   : > { %p8095_p11 = pneg %p8094_p10 }
  0xca   : > { %p8100_p12 = pnand %p8098_p4, %p8095_p11 }
  0xcc   : > { %8103 = shalt.err (!%p8100_p12)
}
  0xcd   : > { %s8104_s23 = scalar_lea.vmem %s758_s18, 1024  ;;  %p8112_p0 = scmp.lt.s32.totalorder %s758_s18, %s758_s18 }
  0xce   : > { %p8105_p13 = scmp.ne.s32.totalorder %s758_s18, %s8104_s23  ;;  %p8113_p1 = scmp.lt.s32.totalorder %s8104_s23, %s8104_s23 }
  0xd0   : > { %p8107_p2 = pnand %p8105_p13, %p8594_p8  ;;  %p8114_p5 = por %p8113_p1, %p8112_p0 }
  0xd2   : > { %p8108_p3 = pneg %p8107_p2 }
  0xd4   : > { %p8115_p7 = pnand %p8114_p5, %p8108_p3 }
  0xd6   : > { %8118 = shalt.err (!%p8115_p7)
}
  0xd7   : > { %s10528_s10 = smov 4   ;;  %s10529_s26 = smov 64  }
  0xd8   : > { %7322 = dma.hbm_to_vmem [thread:$0]  (!%p8582_p6), %s8466_s24, 1024, %s758_s18, [#allocation6], %s10529_s26, %s10529_s26, %s10528_s10  }
  0xd9   : > { %s8119_s28 = scalar_lea.hbm %s8481_s12, 32 }
  0xda   : > { %p8120_p9 = scmp.ne.s32.totalorder %s8481_s12, %s8119_s28  ;;  %p8126_p4 = scmp.lt.u32.totalorder %s8119_s28, %s8481_s12 }
  0xdc   : > { %p8122_p10 = pnand %p8120_p9, %p8594_p8 }
  0xde   : > { %p8123_p11 = pneg %p8122_p10 }
  0xe0   : > { %p8128_p12 = pnand %p8126_p4, %p8123_p11 }
  0xe2   : > { %8131 = shalt.err (!%p8128_p12)
}
  0xe3   : > { %s8132_s2 = scalar_lea.vmem %s786_s1, 32  ;;  %p8140_p0 = scmp.lt.s32.totalorder %s786_s1, %s786_s1 }
  0xe4   : > { %p8133_p13 = scmp.ne.s32.totalorder %s786_s1, %s8132_s2  ;;  %p8141_p1 = scmp.lt.s32.totalorder %s8132_s2, %s8132_s2 }
  0xe6   : > { %p8135_p2 = pnand %p8133_p13, %p8594_p8  ;;  %p8142_p5 = por %p8141_p1, %p8140_p0 }
  0xe8   : > { %p8136_p3 = pneg %p8135_p2 }
  0xea   : > { %p8143_p7 = pnand %p8142_p5, %p8136_p3 }
  0xec   : > { %8146 = shalt.err (!%p8143_p7)
}
  0xed   : > { %7328 = dma.hbm_to_vmem [thread:$0]  (!%p8582_p6), %s8481_s12, 32, %s786_s1, [#allocation9]  }
  0xee   : > { %s8392_s18 = smov [#allocation13]   ;;  %s8393_s23 = smov [#allocation16]  }
  0xef   : > { %s809_s16 = sshll.u32 %s8392_s18, 4  ;;  %s837_s28 = sshll.u32 %s8393_s23, 4  ;;  %s810_s16 = int_to_ptr.vmem [resolvable:$true] %s809_s16  ;;  %s838_s28 = int_to_ptr.vmem [resolvable:$true] %s837_s28 }
  0xf0   : > { %s8147_s4 = scalar_lea.hbm %s8491_s27, 16 }
  0xf1   : > { %p8148_p9 = scmp.ne.s32.totalorder %s8491_s27, %s8147_s4  ;;  %p8154_p4 = scmp.lt.u32.totalorder %s8147_s4, %s8491_s27 }
  0xf3   : > { %p8150_p10 = pnand %p8148_p9, %p8594_p8 }
  0xf5   : > { %p8151_p11 = pneg %p8150_p10 }
  0xf7   : > { %p8156_p12 = pnand %p8154_p4, %p8151_p11 }
  0xf9   : > { %8159 = shalt.err (!%p8156_p12)
}
  0xfa   : > { %s8160_s2 = scalar_lea.vmem %s810_s16, 16  ;;  %s8167_s1 = scalar_lea.vmem %s810_s16, 32 }
  0xfb   : > { %p8161_p13 = scmp.ne.s32.totalorder %s810_s16, %s8160_s2  ;;  %p8168_p0 = scmp.lt.s32.totalorder %s810_s16, %s810_s16 }
  0xfc   : > { %p8169_p1 = scmp.lt.s32.totalorder %s8167_s1, %s8160_s2 }
  0xfd   : > { %p8163_p2 = pnand %p8161_p13, %p8594_p8 }
  0xfe   : > { %p8170_p5 = por %p8169_p1, %p8168_p0 }
  0xff   : > { %p8164_p3 = pneg %p8163_p2 }
 0x101   : > { %p8171_p7 = pnand %p8170_p5, %p8164_p3 }
 0x103   : > { %8174 = shalt.err (!%p8171_p7)
}
 0x104   : > { %7334 = dma.hbm_to_vmem [thread:$0]  (!%p8582_p6), %s8491_s27, 16, %s810_s16, [#allocation12]  }
 0x105   : > { %s8175_s4 = scalar_lea.hbm %s8511_s8, 16 }
 0x106   : > { %p8176_p9 = scmp.ne.s32.totalorder %s8511_s8, %s8175_s4  ;;  %p8182_p4 = scmp.lt.u32.totalorder %s8175_s4, %s8511_s8 }
 0x108   : > { %p8178_p10 = pnand %p8176_p9, %p8594_p8 }
 0x10a   : > { %p8179_p11 = pneg %p8178_p10 }
 0x10c   : > { %p8184_p12 = pnand %p8182_p4, %p8179_p11 }
 0x10e   : > { %8187 = shalt.err (!%p8184_p12)
}
 0x10f   : > { %s8188_s18 = scalar_lea.vmem %s838_s28, 16  ;;  %s8195_s23 = scalar_lea.vmem %s838_s28, 32 }
 0x110   : > { %p8189_p13 = scmp.ne.s32.totalorder %s838_s28, %s8188_s18  ;;  %p8196_p0 = scmp.lt.s32.totalorder %s838_s28, %s838_s28 }
 0x111   : > { %p8197_p1 = scmp.lt.s32.totalorder %s8195_s23, %s8188_s18 }
 0x112   : > { %p8191_p2 = pnand %p8189_p13, %p8594_p8 }
 0x113   : > { %p8198_p5 = por %p8197_p1, %p8196_p0 }
 0x114   : > { %p8192_p3 = pneg %p8191_p2 }
 0x116   : > { %p8199_p7 = pnand %p8198_p5, %p8192_p3 }
 0x118   : > { %8202 = shalt.err (!%p8199_p7)
}
 0x119   : > { %7340 = dma.hbm_to_vmem [thread:$0]  (!%p8582_p6), %s8511_s8, 16, %s838_s28, [#allocation15]  }
 0x11a   : > { %s8394_s16 = smov [#allocation19]   ;;  %s8395_s1 = smov [#allocation22]  }
 0x11b   : > { %s859_s2 = sshll.u32 %s8394_s16, 4  ;;  %s884_s4 = sshll.u32 %s8395_s1, 4  ;;  %s860_s2 = int_to_ptr.vmem [resolvable:$true] %s859_s2  ;;  %s885_s4 = int_to_ptr.vmem [resolvable:$true] %s884_s4 }
 0x11c   : > { %s8203_s9 = scalar_lea.hbm %s8521_s3, 16 }
 0x11d   : > { %p8204_p9 = scmp.ne.s32.totalorder %s8521_s3, %s8203_s9  ;;  %p8210_p4 = scmp.lt.u32.totalorder %s8203_s9, %s8521_s3 }
 0x11f   : > { %p8206_p10 = pnand %p8204_p9, %p8594_p8 }
 0x121   : > { %p8207_p11 = pneg %p8206_p10 }
 0x123   : > { %p8212_p12 = pnand %p8210_p4, %p8207_p11 }
 0x125   : > { %8215 = shalt.err (!%p8212_p12)
}
 0x126   : > { %s8216_s18 = scalar_lea.vmem %s860_s2, 16  ;;  %s8223_s28 = scalar_lea.vmem %s860_s2, 32 }
 0x127   : > { %p8217_p13 = scmp.ne.s32.totalorder %s860_s2, %s8216_s18  ;;  %p8224_p0 = scmp.lt.s32.totalorder %s860_s2, %s860_s2 }
 0x128   : > { %p8225_p1 = scmp.lt.s32.totalorder %s8223_s28, %s8216_s18 }
 0x129   : > { %p8219_p2 = pnand %p8217_p13, %p8594_p8 }
 0x12a   : > { %p8226_p5 = por %p8225_p1, %p8224_p0 }
 0x12b   : > { %p8220_p3 = pneg %p8219_p2 }
 0x12d   : > { %p8227_p7 = pnand %p8226_p5, %p8220_p3 }
 0x12f   : > { %8230 = shalt.err (!%p8227_p7)
}
 0x130   : > { %7346 = dma.hbm_to_vmem [thread:$0]  (!%p8582_p6), %s8521_s3, 16, %s860_s2, [#allocation18]  }
 0x131   : > { %s8231_s9 = scalar_lea.hbm %s8536_s13, 16 }
 0x132   : > { %p8232_p9 = scmp.ne.s32.totalorder %s8536_s13, %s8231_s9  ;;  %p8238_p4 = scmp.lt.u32.totalorder %s8231_s9, %s8536_s13 }
 0x134   : > { %p8234_p10 = pnand %p8232_p9, %p8594_p8 }
 0x136   : > { %p8235_p11 = pneg %p8234_p10 }
 0x138   : > { %p8240_p12 = pnand %p8238_p4, %p8235_p11 }
 0x13a   : > { %8243 = shalt.err (!%p8240_p12)
}
 0x13b   : > { %s8244_s23 = scalar_lea.vmem %s885_s4, 16  ;;  %s8251_s16 = scalar_lea.vmem %s885_s4, 32 }
 0x13c   : > { %p8245_p13 = scmp.ne.s32.totalorder %s885_s4, %s8244_s23  ;;  %p8252_p0 = scmp.lt.s32.totalorder %s885_s4, %s885_s4 }
 0x13d   : > { %p8253_p1 = scmp.lt.s32.totalorder %s8251_s16, %s8244_s23 }
 0x13e   : > { %p8247_p2 = pnand %p8245_p13, %p8594_p8 }
 0x13f   : > { %p8254_p5 = por %p8253_p1, %p8252_p0 }
 0x140   : > { %p8248_p3 = pneg %p8247_p2 }
 0x142   : > { %p8255_p7 = pnand %p8254_p5, %p8248_p3 }
 0x144   : > { %8258 = shalt.err (!%p8255_p7)
}
 0x145   : > { %7352 = dma.hbm_to_vmem [thread:$0]  (!%p8582_p6), %s8536_s13, 16, %s885_s4, [#allocation21]  }
 0x146   : > { %s8396_s2 = smov [#allocation25]   ;;  %s8259_s18 = scalar_lea.hbm %s8551_s25, 1024 }
 0x147   : > { %s908_s1 = sshll.u32 %s8396_s2, 4  ;;  %p8260_p9 = scmp.ne.s32.totalorder %s8551_s25, %s8259_s18  ;;  %s909_s1 = int_to_ptr.vmem [resolvable:$true] %s908_s1 }
 0x148   : > { %p8266_p4 = scmp.lt.u32.totalorder %s8259_s18, %s8551_s25 }
 0x149   : > { %p8262_p10 = pnand %p8260_p9, %p8594_p8 }
 0x14b   : > { %p8263_p11 = pneg %p8262_p10 }
 0x14d   : > { %p8268_p12 = pnand %p8266_p4, %p8263_p11 }
 0x14f   : > { %8271 = shalt.err (!%p8268_p12)
}
 0x150   : > { %s8272_s28 = scalar_lea.vmem %s909_s1, 1024  ;;  %p8280_p0 = scmp.lt.s32.totalorder %s909_s1, %s909_s1 }
 0x151   : > { %p8273_p13 = scmp.ne.s32.totalorder %s909_s1, %s8272_s28  ;;  %p8281_p1 = scmp.lt.s32.totalorder %s8272_s28, %s8272_s28 }
 0x153   : > { %p8275_p2 = pnand %p8273_p13, %p8594_p8  ;;  %p8282_p5 = por %p8281_p1, %p8280_p0 }
 0x155   : > { %p8276_p3 = pneg %p8275_p2 }
 0x157   : > { %p8283_p7 = pnand %p8282_p5, %p8276_p3 }
 0x159   : > { %8286 = shalt.err (!%p8283_p7)
}
 0x15a   : > { %7358 = dma.hbm_to_vmem [thread:$0]  (!%p8582_p6), %s8551_s25, 1024, %s909_s1, [#allocation24], %s10529_s26, %s10529_s26, %s10528_s10  }
 0x15b   : > { %p10530_p9 = scmp.ne.s32.totalorder %s10525_s15, 0 }
 0x15d   : > { %924 = sbr.rel (%p10530_p9) target bundleno = 5623 (0x15f7), region = 136 }
 0x164   : > { %p10531_p10 = scmp.eq.s32.totalorder %s8564_s11, 0 }
 0x166   : > { %8318 = dma.done.wait (%p10531_p10), [#allocation6], 1024   ;;  %p10532_p8 = pmov %p10531_p10 }
 0x168   : > { %8320 = vsyncadd (%p10532_p8), [#allocation6], 4294966272  ;;  %p10533_p11 = pmov %p10532_p8 }
 0x169   : > { %p10534_p4 = pmov %p10532_p8 }
 0x16a   : > { %8322 = dma.done.wait (%p10533_p11), [#allocation9], 48  }
 0x16b   : > { %8324 = vsyncadd (%p10534_p4), [#allocation9], 4294967248  ;;  %p10535_p12 = pmov %p10534_p4 }
 0x16c   : > { %p10536_p6 = pmov %p10534_p4 }
 0x16d   : > { %8326 = dma.done.wait (%p10535_p12), [#allocation12], 1040  }
 0x16e   : > { %8328 = vsyncadd (%p10536_p6), [#allocation12], 4294966256  ;;  %p10537_p13 = pmov %p10534_p4 }
 0x16f   : > { %p10538_p2 = pmov %p10534_p4 }
 0x170   : > { %8330 = dma.done.wait (%p10537_p13), [#allocation15], 80  }
 0x171   : > { %8332 = vsyncadd (%p10538_p2), [#allocation15], 4294967216  ;;  %p10539_p3 = pmov %p10538_p2 }
 0x172   : > { %p10540_p0 = pmov %p10538_p2 }
 0x173   : > { %8334 = dma.done.wait (%p10539_p3), [#allocation18], 32  }
 0x174   : > { %8336 = vsyncadd (%p10540_p0), [#allocation18], 4294967264  ;;  %p10541_p1 = pmov %p10540_p0 }
 0x175   : > { %p10542_p5 = pmov %p10540_p0 }
 0x176   : > { %8338 = dma.done.wait (%p10541_p1), [#allocation21], 32  }
 0x177   : > { %8340 = vsyncadd (%p10542_p5), [#allocation21], 4294967264  ;;  %p10543_p7 = pmov %p10540_p0 }
 0x178   : > { %p10544_p9 = pmov %p10540_p0 }
 0x179   : > { %8342 = dma.done.wait (%p10543_p7), [#allocation24], 1040  }
 0x17a   : > { %8344 = vsyncadd (%p10544_p9), [#allocation24], 4294966256  ;;  %v1039_v0 = vld [vmem:[%s8426_s17] sm:$0xff]  ;;  %v1040_v1 = vld [vmem:[%s8426_s17 + $0x8] sm:$0xff]  ;;  %p10545_p10 = scmp.ne.s32.totalorder %s8564_s11, 0 }
 0x17b   : > { %v1041_v2 = vld [vmem:[%s8426_s17 + $0x10] sm:$0xff]  ;;  %v1042_v3 = vld [vmem:[%s8426_s17 + $0x18] sm:$0xff]  ;;  %v1043_v4 = vld [vmem:[%s8426_s17 + $0x20] sm:$0xff]  ;;  %v8788_v6 = vpack.c.bf16 %v1040_v1, %v1039_v0  ;;  %s10546_s15 = sld [smem:[#allocation43_spill]] (!%p10545_p10)  ;;  %s10547_s22 = sld [smem:[#allocation37_spill]] (!%p10545_p10) }
 0x17c   : > { %v1044_v5 = vld [vmem:[%s8426_s17 + $0x28] sm:$0xff]  ;;  %v1045_v7 = vld [vmem:[%s8426_s17 + $0x30] sm:$0xff]  ;;  %v1046_v8 = vld [vmem:[%s8426_s17 + $0x38] sm:$0xff]  ;;  %v8793_v10 = vpack.c.bf16 %v1042_v3, %v1041_v2  ;;  %1066 = sbr.rel (%p10545_p10) target bundleno = 1191 (0x4a7), region = 192  ;;  %s10548_s0 = sld [smem:[#allocation38_spill]] (!%p10545_p10) }
 0x17d   : > { %v1047_v9 = vld [vmem:[%s8426_s17 + $0x40] sm:$0xff]  ;;  %v8795_v11 = vpack.c.bf16 %v1044_v5, %v1043_v4  ;;  %v1048_v12 = vld [vmem:[%s8426_s17 + $0x48] sm:$0xff]  ;;  %v1049_v13 = vld [vmem:[%s8426_s17 + $0x50] sm:$0xff]  ;;  %v8800_v15 = vpack.c.bf16 %v1046_v8, %v1045_v7  ;;  %s10549_s10 = sld [smem:[#allocation36_spill]] (!%p10545_p10)  ;;  %s10550_s26 = sld [smem:[#allocation35_spill]] (!%p10545_p10) }
 0x17e   : > { %v1050_v14 = vld [vmem:[%s8426_s17 + $0x58] sm:$0xff]  ;;  %v1051_v16 = vld [vmem:[%s8426_s17 + $0x60] sm:$0xff]  ;;  %v1052_v17 = vld [vmem:[%s8426_s17 + $0x68] sm:$0xff]  ;;  %v8805_v19 = vpack.c.bf16 %v1048_v12, %v1047_v9 }
 0x17f   : > { %v1053_v18 = vld [vmem:[%s8426_s17 + $0x70] sm:$0xff]  ;;  %v8807_v20 = vpack.c.bf16 %v1050_v14, %v1049_v13  ;;  %v1054_v21 = vld [vmem:[%s8426_s17 + $0x78] sm:$0xff]  ;;  %v8810_v22 = vpack.c.bf16 %v1052_v17, %v1051_v16  ;;  %v7445_v24 = vld [vmem:[%s8431_s21] sm:$0xff] (!%p10545_p10)  }
 0x180   : > { %v8812_v23 = vpack.c.bf16 %v1054_v21, %v1053_v18  ;;  %v7446_v25 = vld [vmem:[%s8431_s21 + $0x8] sm:$0xff] (!%p10545_p10)   ;;  %6639 = vmatprep.subr.bf16.mxu0 (!%p10545_p10), %v7445_v24  ;;  %v7447_v26 = vld [vmem:[%s8431_s21 + $0x10] sm:$0xff] (!%p10545_p10)   ;;  %v7448_v27 = vld [vmem:[%s8431_s21 + $0x18] sm:$0xff] (!%p10545_p10)  }
 0x181   : > { %6640 = vmatpush3.bf16.msra.mxu0 (!%p10545_p10), %v7445_v24  ;;  %v1067_v28 = vld [vmem:[%s8411_s5] sm:$0xff] (!%p10545_p10)  ;;  %v1068_v29 = vld [vmem:[%s8411_s5 + $0x8] sm:$0xff] (!%p10545_p10)  ;;  %v7451_v33 = vld [vmem:[%s8431_s21 + $0x30] sm:$0xff] (!%p10545_p10)  }
 0x182   : > { %6641 = vmatprep.subr.bf16.mxu0 (!%p10545_p10), %v7446_v25  ;;  %v1091_v30 = vpack.c.bf16 (!%p10545_p10), %v1068_v29, %v1067_v28  ;;  %v7449_v31 = vld [vmem:[%s8431_s21 + $0x20] sm:$0xff] (!%p10545_p10)   ;;  %v7450_v32 = vld [vmem:[%s8431_s21 + $0x28] sm:$0xff] (!%p10545_p10)   ;;  %v7452_v34 = vld [vmem:[%s8431_s21 + $0x38] sm:$0xff] (!%p10545_p10)  }
 0x183   : > { %v1069_v35 = vld [vmem:[%s8411_s5 + $0x10] sm:$0xff]  ;;  %v1070_v36 = vld [vmem:[%s8411_s5 + $0x18] sm:$0xff]  ;;  %v1071_v37 = vld [vmem:[%s8411_s5 + $0x20] sm:$0xff] }
 0x184   : > { %6655 = vmatprep.mubr.bf16.mxu0 %v1091_v30  ;;  %v1072_v38 = vld [vmem:[%s8411_s5 + $0x28] sm:$0xff]  ;;  %v1092_v39 = vpack.c.bf16 %v1070_v36, %v1069_v35  ;;  %v1073_v41 = vld [vmem:[%s8411_s5 + $0x30] sm:$0xff]  ;;  %v1074_v42 = vld [vmem:[%s8411_s5 + $0x38] sm:$0xff] }
 0x185   : > { %6642 = vmatpush3.bf16.msra.mxu0 %v7446_v25  ;;  %v1093_v40 = vpack.c.bf16 %v1072_v38, %v1071_v37  ;;  %v1094_v43 = vpack.c.bf16 %v1074_v42, %v1073_v41  ;;  %v7453_v52 = vld [vmem:[%s10546_s15 + $0x4] ss:$8 sps:$4 sm:$0xff]   ;;  %v7455_v53 = vld [vmem:[%s10546_s15] ss:$8 sps:$4 sm:$0xff]   ;;  %v7456_v29 = vld [vmem:[%s10546_s15 + $0x14] ss:$8 sps:$4 sm:$0xff]  }
 0x186   : > { %6643 = vmatprep.subr.bf16.mxu0 %v7447_v26  ;;  %1455 = vmatprep.subr.bf16.mxu1 %v7453_v52  ;;  %v7464_v35 = vld [vmem:[%s10546_s15 + $0x30] ss:$8 sps:$4 sm:$0xff]   ;;  %v7465_v36 = vld [vmem:[%s10546_s15 + $0x44] ss:$8 sps:$4 sm:$0xff]   ;;  %v7467_v37 = vld [vmem:[%s10546_s15 + $0x40] ss:$8 sps:$4 sm:$0xff]  }
 0x187   : > { %1456 = vmatpush1.bf16.msra.mxu1 %v7455_v53  ;;  %v7468_v38 = vld [vmem:[%s10546_s15 + $0x54] ss:$8 sps:$4 sm:$0xff]   ;;  %v7473_v41 = vld [vmem:[%s10546_s15 + $0x60] ss:$8 sps:$4 sm:$0xff]  }
 0x188   : > { %1457 = vmatprep.subr.bf16.mxu1 %v7456_v29  ;;  %v7474_v42 = vld [vmem:[%s10546_s15 + $0x74] ss:$8 sps:$4 sm:$0xff]  }
 0x189   : > { %6644 = vmatpush3.bf16.msra.mxu0 %v7447_v26 }
 0x18a   : > { %6645 = vmatprep.subr.bf16.mxu0 %v7448_v27 }
 0x18d   : > { %6646 = vmatpush3.bf16.msra.mxu0 %v7448_v27 }
 0x18e   : > { %6647 = vmatprep.subr.bf16.mxu0 %v7449_v31 }
 0x191   : > { %6648 = vmatpush3.bf16.msra.mxu0 %v7449_v31  ;;  %v7458_v31 = vld [vmem:[%s10546_s15 + $0x10] ss:$8 sps:$4 sm:$0xff]  }
 0x192   : > { %6649 = vmatprep.subr.bf16.mxu0 %v7450_v32  ;;  %1458 = vmatpush1.bf16.msra.mxu1 %v7458_v31 }
 0x195   : > { %6650 = vmatpush3.bf16.msra.mxu0 %v7450_v32  ;;  %v7459_v32 = vld [vmem:[%s10546_s15 + $0x24] ss:$8 sps:$4 sm:$0xff]  }
 0x196   : > { %6651 = vmatprep.subr.bf16.mxu0 %v7451_v33  ;;  %1459 = vmatprep.subr.bf16.mxu1 %v7459_v32 }
 0x199   : > { %6652 = vmatpush3.bf16.msra.mxu0 %v7451_v33  ;;  %v7461_v33 = vld [vmem:[%s10546_s15 + $0x20] ss:$8 sps:$4 sm:$0xff]  }
 0x19a   : > { %6653 = vmatprep.subr.bf16.mxu0 %v7452_v34  ;;  %1460 = vmatpush1.bf16.msra.mxu1 %v7461_v33  ;;  %v1328_v33 = vld [vmem:[%s10549_s10 + $0x8] sm:$0xff] }
 0x19d   : > { %6654 = vmatpush3.bf16.msra.mxu0 %v7452_v34  ;;  %v7462_v34 = vld [vmem:[%s10546_s15 + $0x34] ss:$8 sps:$4 sm:$0xff]  }
 0x19e   : > { %1461 = vmatprep.subr.bf16.mxu1 %v7462_v34 }
 0x19f   : > { %1462 = vmatpush1.bf16.msra.mxu1 %v7464_v35 }
 0x1a0   : > { %6656 = vmatmul.mubr.bf16.vlgmr.msra.gmra.mrb[0].mxu0 %v1092_v39  ;;  %1463 = vmatprep.subr.bf16.mxu1 %v7465_v36  ;;  %v7470_v39 = vld [vmem:[%s10546_s15 + $0x50] ss:$8 sps:$4 sm:$0xff]  }
 0x1a1   : > { %6659 = vmatprep.mubr.bf16.mxu0 %v1093_v40  ;;  %v7471_v40 = vld [vmem:[%s10546_s15 + $0x64] ss:$8 sps:$4 sm:$0xff]  }
 0x1a3   : > { %1464 = vmatpush1.bf16.msra.mxu1 %v7467_v37 }
 0x1a4   : > { %1465 = vmatprep.subr.bf16.mxu1 %v7468_v38 }
 0x1a7   : > { %1466 = vmatpush1.bf16.msra.mxu1 %v7470_v39 }
 0x1a8   : > { %6660 = vmatmul.mubr.bf16.gmra.mrb[4].mxu0 %v1094_v43  ;;  %1467 = vmatprep.subr.bf16.mxu1 %v7471_v40  ;;  %v7476_v43 = vld [vmem:[%s10546_s15 + $0x70] ss:$8 sps:$4 sm:$0xff]  }
 0x1ab   : > { %1468 = vmatpush1.bf16.msra.mxu1 %v7473_v41 }
 0x1ac   : > { %1469 = vmatprep.subr.bf16.mxu1 %v7474_v42 }
 0x1af   : > { %1470 = vmatpush1.bf16.msra.mxu1 %v7476_v43  ;;  %v1330_v43 = vld [vmem:[%s10549_s10 + $0x18] sm:$0xff] }
 0x273   : > { %v6657_v44 = vpop.f32.mrb[0].mxu0 }
 0x274   : > { %1214 = vadd.xlane.f32.xlu1 %v6657_v44  ;;  %v1177_v45 = vpop.f32.mrb[1].mxu0 }
 0x275   : > { %1210 = vadd.xlane.f32.xlu0 %v1177_v45  ;;  %v6658_v46 = vpop.f32.mrb[2].mxu0 }
 0x276   : > { %v1180_v47 = vpop.f32.mrb[3].mxu0 }
 0x278   : > { %1216 = vadd.xlane.f32.xlu1 %v6658_v46 }
 0x279   : > { %1212 = vadd.xlane.f32.xlu0 %v1180_v47 }
 0x27b   : > { %v6661_v48 = vpop.f32.mrb[4].mxu0 }
 0x27c   : > { %v1193_v49 = vpop.f32.mrb[5].mxu0 }
 0x27d   : > { %1218 = vadd.xlane.f32.xlu0 %v1193_v49  ;;  %v6662_v50 = vpop.f32.mrb[6].mxu0 }
 0x27e   : > { %v1196_v51 = vpop.f32.mrb[7].mxu0 }
 0x27f   : > { %1220 = vadd.xlane.f32.xlu1 %v1196_v51 }
 0x281   : > { %1222 = vadd.xlane.f32.xlu0 %v6661_v48 }
 0x283   : > { %1224 = vadd.xlane.f32.xlu1 %v6662_v50 }
 0x301   : > { %v1215_v54 = vpop.xlane.xlu1 %1214 }
 0x302   : > { %v1211_v55 = vpop.xlane.xlu0 %1210  ;;  %v1229_v56 = vmul.f32 0.0078125, %v1215_v54 }
 0x303   : > { %v1227_v57 = vmul.f32 0.0078125, %v1211_v55 }
 0x304   : > { %v8836_v61 = vsub.f32 %v6657_v44, %v1229_v56  ;;  %v8397_v44 = vmov 0  }
 0x305   : > { %v8834_v58 = vsub.f32 %v1177_v45, %v1227_v57  ;;  %v1217_v59 = vpop.xlane.xlu1 %1216  ;;  %1487 = vmatprep.mubr.bf16.mxu1 %v8397_v44 }
 0x306   : > { %v1213_v60 = vpop.xlane.xlu0 %1212  ;;  %v1230_v62 = vmul.f32 0.0078125, %v1217_v59  ;;  %v1245_v5 = vmul.f32 %v8836_v61, %v8836_v61 }
 0x307   : > { %v1228_v63 = vmul.f32 0.0078125, %v1213_v60  ;;  %v1243_v0 = vmul.f32 %v8834_v58, %v8834_v58 }
 0x308   : > { %v8842_v3 = vsub.f32 %v6658_v46, %v1230_v62 }
 0x309   : > { %v8840_v1 = vsub.f32 %v1180_v47, %v1228_v63  ;;  %1251 = vadd.xlane.f32.xlu0 %v1243_v0 }
 0x30a   : > { %v1219_v2 = vpop.xlane.xlu0 %1218  ;;  %v1246_v18 = vmul.f32 %v8842_v3, %v8842_v3 }
 0x30b   : > { %v1231_v4 = vmul.f32 0.0078125, %v1219_v2  ;;  %v1244_v7 = vmul.f32 %v8840_v1, %v8840_v1 }
 0x30c   : > { %v1221_v8 = vpop.xlane.xlu1 %1220 }
 0x30d   : > { %v8848_v9 = vsub.f32 %v1193_v49, %v1231_v4  ;;  %v1232_v12 = vmul.f32 0.0078125, %v1221_v8  ;;  %1255 = vadd.xlane.f32.xlu0 %v1245_v5  ;;  %1253 = vadd.xlane.f32.xlu1 %v1244_v7  ;;  %v6074_v7 = vld [vmem:[%s10547_s22] ss:$0 sm:$0xff] }
 0x30e   : > { %v1223_v13 = vpop.xlane.xlu0 %1222 }
 0x30f   : > { %v8850_v14 = vsub.f32 %v1196_v51, %v1232_v12  ;;  %v1233_v16 = vmul.f32 0.0078125, %v1223_v13  ;;  %v1247_v17 = vmul.f32 %v8848_v9, %v8848_v9 }
 0x310   : > { %v1225_v21 = vpop.xlane.xlu1 %1224 }
 0x311   : > { %v8856_v24 = vsub.f32 %v6661_v48, %v1233_v16  ;;  %v1234_v25 = vmul.f32 0.0078125, %v1225_v21  ;;  %1259 = vadd.xlane.f32.xlu0 %v1247_v17  ;;  %1257 = vadd.xlane.f32.xlu1 %v1246_v18  ;;  %v1248_v28 = vmul.f32 %v8850_v14, %v8850_v14 }
 0x313   : > { %v8858_v26 = vsub.f32 %v6662_v50, %v1234_v25  ;;  %v1249_v27 = vmul.f32 %v8856_v24, %v8856_v24  ;;  %v6075_v25 = vld [vmem:[%s10548_s0] ss:$0 sm:$0xff] }
 0x315   : > { %1263 = vadd.xlane.f32.xlu0 %v1249_v27  ;;  %1261 = vadd.xlane.f32.xlu1 %v1248_v28  ;;  %v1250_v30 = vmul.f32 %v8858_v26, %v8858_v26 }
 0x319   : > { %1265 = vadd.xlane.f32.xlu1 %v1250_v30 }
 0x396   : > { %v1252_v45 = vpop.xlane.xlu0 %1251 }
 0x397   : > { %v1267_v46 = vmul.f32 0.0078125, %v1252_v45 }
 0x399   : > { %v1275_v47 = vadd.f32 1e-06, %v1267_v46 }
 0x39a   : > { %v1256_v48 = vpop.xlane.xlu0 %1255  ;;  %v1254_v49 = vpop.xlane.xlu1 %1253 }
 0x39b   : > { %7477 = vrsqrt.f32 %v1275_v47  ;;  %v1269_v50 = vmul.f32 0.0078125, %v1256_v48  ;;  %v1268_v51 = vmul.f32 0.0078125, %v1254_v49 }
 0x39d   : > { %v1277_v52 = vadd.f32 1e-06, %v1269_v50  ;;  %v1276_v53 = vadd.f32 1e-06, %v1268_v51 }
 0x39e   : > { %v1260_v54 = vpop.xlane.xlu0 %1259  ;;  %v1258_v55 = vpop.xlane.xlu1 %1257 }
 0x39f   : > { %7479 = vrsqrt.f32 %v1277_v52  ;;  %v1271_v56 = vmul.f32 0.0078125, %v1260_v54  ;;  %v1270_v57 = vmul.f32 0.0078125, %v1258_v55  ;;  %v1332_v55 = vld [vmem:[%s10549_s10 + $0x28] sm:$0xff] }
 0x3a0   : > { %7481 = vrsqrt.f32 %v1276_v53 }
 0x3a1   : > { %v1278_v59 = vadd.f32 1e-06, %v1270_v57  ;;  %v1279_v62 = vadd.f32 1e-06, %v1271_v56  ;;  %v1331_v57 = vld [vmem:[%s10549_s10 + $0x20] sm:$0xff] }
 0x3a2   : > { %v1262_v60 = vpop.xlane.xlu1 %1261  ;;  %v1264_v2 = vpop.xlane.xlu0 %1263 }
 0x3a3   : > { %v1272_v63 = vmul.f32 0.0078125, %v1262_v60  ;;  %7483 = vrsqrt.f32 %v1278_v59  ;;  %v1273_v13 = vmul.f32 0.0078125, %v1264_v2  ;;  %v1334_v2 = vld [vmem:[%s10549_s10 + $0x38] sm:$0xff] }
 0x3a4   : > { %7485 = vrsqrt.f32 %v1279_v62 }
 0x3a5   : > { %v7478_v0 = vpop.eup %7477  ;;  %v1280_v4 = vadd.f32 1e-06, %v1272_v63  ;;  %v1281_v28 = vadd.f32 1e-06, %v1273_v13  ;;  %v1544_v13 = vld [vmem:[%s10550_s26] sm:$0xff] }
 0x3a6   : > { %v1266_v5 = vpop.xlane.xlu1 %1265  ;;  %v1291_v8 = vmul.f32 %v7478_v0, %v8834_v58  ;;  %v1327_v58 = vld [vmem:[%s10549_s10] sm:$0xff]  ;;  %1552 = vst [vmem:[#allocation2] sm:$0xff] %v1544_v13 }
 0x3a7   : > { %v1274_v12 = vmul.f32 0.0078125, %v1266_v5  ;;  %7487 = vrsqrt.f32 %v1280_v4  ;;  %v1333_v4 = vld [vmem:[%s10549_s10 + $0x30] sm:$0xff] }
 0x3a8   : > { %v1305_v17 = vmul.f32 %v6074_v7, %v1291_v8 }
 0x3a9   : > { %v7480_v16 = vpop.eup %7479  ;;  %v1282_v21 = vadd.f32 1e-06, %v1274_v12 }
 0x3aa   : > { %v7482_v18 = vpop.eup %7481  ;;  %v1319_v30 = vadd.f32 %v6075_v25, %v1305_v17  ;;  %v1293_v31 = vmul.f32 %v7480_v16, %v8836_v61  ;;  %v1545_v16 = vld [vmem:[%s10550_s26 + $0x8] sm:$0xff]  ;;  %v1546_v17 = vld [vmem:[%s10550_s26 + $0x10] sm:$0xff] }
 0x3ab   : > { %v1292_v27 = vmul.f32 %v7482_v18, %v8840_v1  ;;  %7489 = vrsqrt.f32 %v1282_v21  ;;  %v1547_v18 = vld [vmem:[%s10550_s26 + $0x18] sm:$0xff]  ;;  %v1549_v21 = vld [vmem:[%s10550_s26 + $0x28] sm:$0xff]  ;;  %1553 = vst [vmem:[#allocation2 + $0x8] sm:$0xff] %v1545_v16  ;;  %1554 = vst [vmem:[#allocation2 + $0x10] sm:$0xff] %v1546_v17 }
 0x3ac   : > { %7491 = vrsqrt.f32 %v1281_v28  ;;  %v1335_v37 = vadd.f32 %v1327_v58, %v1319_v30  ;;  %v1307_v39 = vmul.f32 %v6074_v7, %v1293_v31  ;;  %1555 = vst [vmem:[#allocation2 + $0x18] sm:$0xff] %v1547_v18  ;;  %1557 = vst [vmem:[#allocation2 + $0x28] sm:$0xff] %v1549_v21  ;;  %v1365_v28 = vlaneseq  ;;  %v1363_v31 = vld [vmem:[#allocation10] sm:$0x3] }
 0x3ad   : > { %v1306_v29 = vmul.f32 %v6074_v7, %v1292_v27  ;;  %v7484_v32 = vpop.eup %7483  ;;  %v8398_v27 = vmov 0.0  }
 0x3ae   : > { %v1294_v35 = vmul.f32 %v7484_v32, %v8842_v3  ;;  %v7486_v36 = vpop.eup %7485  ;;  %v1321_v45 = vadd.f32 %v6075_v25, %v1307_v39  ;;  %v1329_v3 = vld [vmem:[%s10549_s10 + $0x10] sm:$0xff]  ;;  %1560 = vst [vmem:[#allocation3] sm:$0xff] %v8398_v27  ;;  %1561 = vst [vmem:[#allocation3 + $0x8] sm:$0xff] %v8398_v27 }
 0x3af   : > { %v1320_v34 = vadd.f32 %v6075_v25, %v1306_v29  ;;  %v1295_v46 = vmul.f32 %v7486_v36, %v8848_v9  ;;  %1562 = vst [vmem:[#allocation3 + $0x10] sm:$0xff] %v8398_v27  ;;  %1563 = vst [vmem:[#allocation3 + $0x18] sm:$0xff] %v8398_v27  ;;  %v1366_v29 = vshrl.u32 %v1365_v28, 7 }
 0x3b0   : > { %v1308_v1 = vmul.f32 %v6074_v7, %v1294_v35  ;;  %v1337_v50 = vadd.f32 %v1329_v3, %v1321_v45  ;;  %1564 = vst [vmem:[#allocation3 + $0x20] sm:$0xff] %v8398_v27  ;;  %1565 = vst [vmem:[#allocation3 + $0x28] sm:$0xff] %v8398_v27 }
 0x3b1   : > { %v1336_v38 = vadd.f32 %v1328_v33, %v1320_v34  ;;  %v7488_v40 = vpop.eup %7487  ;;  %v1309_v51 = vmul.f32 %v6074_v7, %v1295_v46  ;;  %1566 = vst [vmem:[#allocation3 + $0x30] sm:$0xff] %v8398_v27  ;;  %1567 = vst [vmem:[#allocation3 + $0x38] sm:$0xff] %v8398_v27  ;;  %v1367_v30 = vsub.s32 0, %v1366_v29  ;;  %v1371_v32 = vsub.s32 1, %v1366_v29 }
 0x3b2   : > { %v1322_v42 = vadd.f32 %v6075_v25, %v1308_v1  ;;  %v1296_v61 = vmul.f32 %v7488_v40, %v8850_v14 }
 0x3b3   : > { %v1359_v41 = vpack.c.bf16 %v1336_v38, %v1335_v37  ;;  %v1323_v9 = vadd.f32 %v6075_v25, %v1309_v51  ;;  %v1368_v58 = vrot.slane %v1363_v31, %v1367_v30  ;;  %v1372_v33 = vrot.slane %v1363_v31, %v1371_v32 }
 0x3b4   : > { %v1338_v47 = vadd.f32 %v1330_v43, %v1322_v42  ;;  %v1310_v48 = vmul.f32 %v6074_v7, %v1296_v61 }
 0x3b5   : > { %1488 = vmatmul.mubr.bf16.vlgmr.msra.gmra.mrb[0].mxu1 %v1359_v41  ;;  %v7490_v49 = vpop.eup %7489  ;;  %v1339_v62 = vadd.f32 %v1331_v57, %v1323_v9 }
 0x3b6   : > { %1497 = vmatprep.mubr.bf16.mxu1 %v8397_v44  ;;  %v7492_v52 = vpop.eup %7491  ;;  %v1298_v53 = vmul.f32 %v7490_v49, %v8858_v26  ;;  %v1360_v14 = vpack.c.bf16 %v1338_v47, %v1337_v50  ;;  %v1324_v54 = vadd.f32 %v6075_v25, %v1310_v48 }
 0x3b7   : > { %v1297_v56 = vmul.f32 %v7492_v52, %v8856_v24 }
 0x3b8   : > { %v1340_v59 = vadd.f32 %v1332_v55, %v1324_v54  ;;  %v1312_v60 = vmul.f32 %v6074_v7, %v1298_v53 }
 0x3b9   : > { %v1311_v63 = vmul.f32 %v6074_v7, %v1297_v56  ;;  %v1548_v7 = vld [vmem:[%s10550_s26 + $0x20] sm:$0xff] }
 0x3ba   : > { %v1361_v26 = vpack.c.bf16 %v1340_v59, %v1339_v62  ;;  %v1326_v0 = vadd.f32 %v6075_v25, %v1312_v60  ;;  %1556 = vst [vmem:[#allocation2 + $0x20] sm:$0xff] %v1548_v7 }
 0x3bb   : > { %v1325_v24 = vadd.f32 %v6075_v25, %v1311_v63  ;;  %v1551_v25 = vld [vmem:[%s10550_s26 + $0x38] sm:$0xff] }
 0x3bc   : > { %v1342_v5 = vadd.f32 %v1334_v2, %v1326_v0  ;;  %1559 = vst [vmem:[#allocation2 + $0x38] sm:$0xff] %v1551_v25 }
 0x3bd   : > { %1498 = vmatmul.mubr.bf16.gmra.mrb[4].mxu1 %v1360_v14  ;;  %v1341_v8 = vadd.f32 %v1333_v4, %v1325_v24 }
 0x3be   : > { %1507 = vmatprep.mubr.bf16.mxu1 %v8397_v44 }
 0x3bf   : > { %v1362_v12 = vpack.c.bf16 %v1342_v5, %v1341_v8 }
 0x3c5   : > { %1508 = vmatmul.mubr.bf16.gmra.mrb[8].mxu1 %v1361_v26 }
 0x3c6   : > { %1517 = vmatprep.mubr.bf16.mxu1 %v8397_v44  ;;  %v1550_v44 = vld [vmem:[%s10550_s26 + $0x30] sm:$0xff] }
 0x3c7   : > { %1558 = vst [vmem:[#allocation2 + $0x30] sm:$0xff] %v1550_v44 }
 0x3cd   : > { %1518 = vmatmul.mubr.bf16.gmra.mrb[12].mxu1 %v1362_v12 }
 0x488   : > { %v1489_v34 = vpop.f32.mrb[0].mxu1 }
 0x489   : > { %v1490_v35 = vadd.f32 %v1489_v34, %v1368_v58  ;;  %v1491_v36 = vpop.f32.mrb[1].mxu1 }
 0x48a   : > { %v1492_v37 = vadd.f32 %v1491_v36, %v1372_v33  ;;  %v1493_v38 = vpop.f32.mrb[2].mxu1 }
 0x48b   : > { %1528 = vst [vmem:[#allocation4] sm:$0xff] %v1490_v35  ;;  %v1494_v39 = vadd.f32 %v1493_v38, %v1368_v58  ;;  %v1495_v1 = vpop.f32.mrb[3].mxu1 }
 0x48c   : > { %1529 = vst [vmem:[#allocation4 + $0x8] sm:$0xff] %v1492_v37  ;;  %v1496_v40 = vadd.f32 %v1495_v1, %v1372_v33 }
 0x48d   : > { %1530 = vst [vmem:[#allocation4 + $0x10] sm:$0xff] %v1494_v39 }
 0x48e   : > { %1531 = vst [vmem:[#allocation4 + $0x18] sm:$0xff] %v1496_v40 }
 0x490   : > { %v1499_v41 = vpop.f32.mrb[4].mxu1 }
 0x491   : > { %v1500_v42 = vadd.f32 %v1499_v41, %v1368_v58  ;;  %v1501_v61 = vpop.f32.mrb[5].mxu1 }
 0x492   : > { %v1502_v43 = vadd.f32 %v1501_v61, %v1372_v33  ;;  %v1503_v45 = vpop.f32.mrb[6].mxu1 }
 0x493   : > { %1532 = vst [vmem:[#allocation4 + $0x20] sm:$0xff] %v1500_v42  ;;  %v1504_v46 = vadd.f32 %v1503_v45, %v1368_v58  ;;  %v1505_v3 = vpop.f32.mrb[7].mxu1 }
 0x494   : > { %1533 = vst [vmem:[#allocation4 + $0x28] sm:$0xff] %v1502_v43  ;;  %v1506_v47 = vadd.f32 %v1505_v3, %v1372_v33 }
 0x495   : > { %1534 = vst [vmem:[#allocation4 + $0x30] sm:$0xff] %v1504_v46 }
 0x496   : > { %1535 = vst [vmem:[#allocation4 + $0x38] sm:$0xff] %v1506_v47 }
 0x498   : > { %v1509_v48 = vpop.f32.mrb[8].mxu1 }
 0x499   : > { %v1510_v49 = vadd.f32 %v1509_v48, %v1368_v58  ;;  %v1511_v50 = vpop.f32.mrb[9].mxu1 }
 0x49a   : > { %v1512_v51 = vadd.f32 %v1511_v50, %v1372_v33  ;;  %v1513_v52 = vpop.f32.mrb[10].mxu1 }
 0x49b   : > { %1536 = vst [vmem:[#allocation4 + $0x40] sm:$0xff] %v1510_v49  ;;  %v1514_v53 = vadd.f32 %v1513_v52, %v1368_v58  ;;  %v1515_v14 = vpop.f32.mrb[11].mxu1 }
 0x49c   : > { %1537 = vst [vmem:[#allocation4 + $0x48] sm:$0xff] %v1512_v51  ;;  %v1516_v54 = vadd.f32 %v1515_v14, %v1372_v33 }
 0x49d   : > { %1538 = vst [vmem:[#allocation4 + $0x50] sm:$0xff] %v1514_v53 }
 0x49e   : > { %1539 = vst [vmem:[#allocation4 + $0x58] sm:$0xff] %v1516_v54 }
 0x4a0   : > { %v1519_v55 = vpop.f32.mrb[12].mxu1 }
 0x4a1   : > { %v1520_v56 = vadd.f32 %v1519_v55, %v1368_v58  ;;  %v1521_v9 = vpop.f32.mrb[13].mxu1 }
 0x4a2   : > { %v1522_v57 = vadd.f32 %v1521_v9, %v1372_v33  ;;  %v1523_v59 = vpop.f32.mrb[14].mxu1 }
 0x4a3   : > { %1540 = vst [vmem:[#allocation4 + $0x60] sm:$0xff] %v1520_v56  ;;  %v1524_v60 = vadd.f32 %v1523_v59, %v1368_v58  ;;  %v1525_v62 = vpop.f32.mrb[15].mxu1 }
 0x4a4   : > { %1541 = vst [vmem:[#allocation4 + $0x68] sm:$0xff] %v1522_v57  ;;  %v1526_v63 = vadd.f32 %v1525_v62, %v1372_v33 }
 0x4a5   : > { %1542 = vst [vmem:[#allocation4 + $0x70] sm:$0xff] %v1524_v60 }
 0x4a6   : > { %1543 = vst [vmem:[#allocation4 + $0x78] sm:$0xff] %v1526_v63 }
 0x4a7 PF: > { %s10551_s4 = sld [smem:[#allocation39_spill]]  ;;  %v8399_v2 = vmov 0   ;;  %v1568_v13 = vld [vmem:[#allocation2] sm:$0xff]  ;;  %v1569_v17 = vld [vmem:[#allocation2 + $0x8] sm:$0xff]  ;;  %v8927_v31 = vld [vmem:[#allocation2 + $0x10] sm:$0xff]  ;;  %s10552_s9 = sld [smem:[#allocation40_spill]]  ;;  %v1614_v39 = vlaneseq }
 0x4a8   : > { %1789 = vmatprep.mubr.bf16.mxu0 %v8399_v2  ;;  %v1608_v7 = vpack.c.bf16 %v1569_v17, %v1568_v13  ;;  %v1571_v32 = vld [vmem:[#allocation2 + $0x18] sm:$0xff]  ;;  %v8933_v33 = vld [vmem:[#allocation2 + $0x20] sm:$0xff]  ;;  %v8935_v34 = vld [vmem:[#allocation2 + $0x28] sm:$0xff]  ;;  %s10553_s23 = sld [smem:[#allocation41_spill]]  ;;  %s10554_s16 = sld [smem:[#allocation42_spill]] }
 0x4a9   : > { %v8931_v58 = vpack.c.bf16 %v1571_v32, %v8927_v31  ;;  %v8941_v35 = vpack.c.bf16 %v8935_v34, %v8933_v33  ;;  %v8943_v36 = vld [vmem:[#allocation2 + $0x30] sm:$0xff]  ;;  %v8945_v37 = vld [vmem:[#allocation2 + $0x38] sm:$0xff]  ;;  %v8954_v1 = vshrl.u32 %v1614_v39, 7  ;;  %s10555_s2 = sld [smem:[#allocation44_spill]]  ;;  %s10556_s1 = sld [smem:[#allocation47_spill]] }
 0x4aa   : > { %6679 = vmatprep.mubr.bf16.mxu1 %v1608_v7  ;;  %v8951_v38 = vpack.c.bf16 %v8945_v37, %v8943_v36  ;;  %s10562_s18 = sld [smem:[#allocation45_spill]]  ;;  %p6278_p8 = scmp.ne.s32.totalorder %s8564_s11, 1 }
 0x4ab   : > { %v1616_v40 = vsub.s32 0, %v8954_v1  ;;  %v1620_v42 = vsub.s32 1, %v8954_v1 }
 0x4ad   : > { %v7493_v26 = vld [vmem:[%s10551_s4 + $0x4] ss:$12 sps:$4 sm:$0xff]   ;;  %v7495_v0 = vld [vmem:[%s10551_s4] ss:$12 sps:$4 sm:$0xff]   ;;  %v7496_v24 = vld [vmem:[%s10551_s4 + $0x1c] ss:$12 sps:$4 sm:$0xff]  }
 0x4ae   : > { %1757 = vmatprep.subr.bf16.mxu0 %v7493_v26  ;;  %v7498_v4 = vld [vmem:[%s10551_s4 + $0x18] ss:$12 sps:$4 sm:$0xff]   ;;  %v7499_v5 = vld [vmem:[%s10551_s4 + $0x34] ss:$12 sps:$4 sm:$0xff]   ;;  %v7501_v8 = vld [vmem:[%s10551_s4 + $0x30] ss:$12 sps:$4 sm:$0xff]  }
 0x4af   : > { %1758 = vmatpush1.bf16.msra.mxu0 %v7495_v0  ;;  %v7502_v12 = vld [vmem:[%s10551_s4 + $0x4c] ss:$12 sps:$4 sm:$0xff]   ;;  %v7504_v16 = vld [vmem:[%s10551_s4 + $0x48] ss:$12 sps:$4 sm:$0xff]   ;;  %v7505_v18 = vld [vmem:[%s10551_s4 + $0x64] ss:$12 sps:$4 sm:$0xff]  }
 0x4b0   : > { %1759 = vmatprep.subr.bf16.mxu0 %v7496_v24  ;;  %v7507_v21 = vld [vmem:[%s10551_s4 + $0x60] ss:$12 sps:$4 sm:$0xff]   ;;  %v7508_v27 = vld [vmem:[%s10551_s4 + $0x7c] ss:$12 sps:$4 sm:$0xff]   ;;  %v7510_v44 = vld [vmem:[%s10551_s4 + $0x78] ss:$12 sps:$4 sm:$0xff]  }
 0x4b1   : > { %v7511_v25 = vld [vmem:[%s10551_s4 + $0x94] ss:$12 sps:$4 sm:$0xff]   ;;  %v7513_v28 = vld [vmem:[%s10551_s4 + $0x90] ss:$12 sps:$4 sm:$0xff]   ;;  %v7514_v29 = vld [vmem:[%s10551_s4 + $0xac] ss:$12 sps:$4 sm:$0xff]  }
 0x4b2   : > { %v7516_v30 = vld [vmem:[%s10551_s4 + $0xa8] ss:$12 sps:$4 sm:$0xff]   ;;  %v8958_v41 = vld [vmem:[%s10552_s9] sm:$0x7]  ;;  %v7519_v63 = vld [vmem:[%s10551_s4 + $0x38] ss:$12 sps:$4 sm:$0xff]  }
 0x4b3   : > { %1760 = vmatpush1.bf16.msra.mxu0 %v7498_v4  ;;  %v8964_v61 = vrot.slane %v8958_v41, %v1616_v40  ;;  %v8969_v45 = vrot.slane %v8958_v41, %v1620_v42  ;;  %v7517_v50 = vld [vmem:[%s10551_s4 + $0x8] ss:$12 sps:$4 sm:$0xff]   ;;  %v7518_v53 = vld [vmem:[%s10551_s4 + $0x20] ss:$12 sps:$4 sm:$0xff]   ;;  %v7520_v24 = vld [vmem:[%s10551_s4 + $0x50] ss:$12 sps:$4 sm:$0xff]  }
 0x4b4   : > { %1761 = vmatprep.subr.bf16.mxu0 %v7499_v5  ;;  %6663 = vmatprep.subr.bf16.mxu1 %v7517_v50  ;;  %v7521_v17 = vld [vmem:[%s10551_s4 + $0x68] ss:$12 sps:$4 sm:$0xff]   ;;  %v7522_v39 = vld [vmem:[%s10551_s4 + $0x80] ss:$12 sps:$4 sm:$0xff]  }
 0x4b5   : > { %6664 = vmatpush3.bf16.msra.mxu1 %v7517_v50 }
 0x4b6   : > { %6665 = vmatprep.subr.bf16.mxu1 %v7518_v53 }
 0x4b7   : > { %1762 = vmatpush1.bf16.msra.mxu0 %v7501_v8 }
 0x4b8   : > { %1763 = vmatprep.subr.bf16.mxu0 %v7502_v12 }
 0x4b9   : > { %6666 = vmatpush3.bf16.msra.mxu1 %v7518_v53 }
 0x4ba   : > { %6667 = vmatprep.subr.bf16.mxu1 %v7519_v63 }
 0x4bb   : > { %1764 = vmatpush1.bf16.msra.mxu0 %v7504_v16 }
 0x4bc   : > { %1765 = vmatprep.subr.bf16.mxu0 %v7505_v18 }
 0x4bd   : > { %6668 = vmatpush3.bf16.msra.mxu1 %v7519_v63 }
 0x4be   : > { %6669 = vmatprep.subr.bf16.mxu1 %v7520_v24 }
 0x4bf   : > { %1766 = vmatpush1.bf16.msra.mxu0 %v7507_v21 }
 0x4c0   : > { %1767 = vmatprep.subr.bf16.mxu0 %v7508_v27 }
 0x4c1   : > { %6670 = vmatpush3.bf16.msra.mxu1 %v7520_v24 }
 0x4c2   : > { %6671 = vmatprep.subr.bf16.mxu1 %v7521_v17 }
 0x4c3   : > { %1768 = vmatpush1.bf16.msra.mxu0 %v7510_v44 }
 0x4c4   : > { %1769 = vmatprep.subr.bf16.mxu0 %v7511_v25 }
 0x4c5   : > { %6672 = vmatpush3.bf16.msra.mxu1 %v7521_v17 }
 0x4c6   : > { %6673 = vmatprep.subr.bf16.mxu1 %v7522_v39 }
 0x4c7   : > { %1770 = vmatpush1.bf16.msra.mxu0 %v7513_v28 }
 0x4c8   : > { %1771 = vmatprep.subr.bf16.mxu0 %v7514_v29 }
 0x4c9   : > { %6674 = vmatpush3.bf16.msra.mxu1 %v7522_v39 }
 0x4cb   : > { %1772 = vmatpush1.bf16.msra.mxu0 %v7516_v30 }
 0x4ce   : > { %1790 = vmatmul.mubr.bf16.vlgmr.msra.gmra.mrb[0].mxu0 %v1608_v7 }
 0x4cf   : > { %1799 = vmatprep.mubr.bf16.mxu0 %v8399_v2 }
 0x4d6   : > { %1800 = vmatmul.mubr.bf16.gmra.mrb[4].mxu0 %v8931_v58 }
 0x4d7   : > { %1809 = vmatprep.mubr.bf16.mxu0 %v8399_v2 }
 0x4de   : > { %1810 = vmatmul.mubr.bf16.gmra.mrb[8].mxu0 %v8941_v35 }
 0x4df   : > { %1819 = vmatprep.mubr.bf16.mxu0 %v8399_v2 }
 0x4e6   : > { %1820 = vmatmul.mubr.bf16.gmra.mrb[12].mxu0 %v8951_v38 }
 0x5a1   : > { %v1791_v43 = vpop.f32.mrb[0].mxu0 }
 0x5a2   : > { %v1792_v46 = vadd.f32 %v1791_v43, %v8964_v61  ;;  %v1793_v3 = vpop.f32.mrb[1].mxu0 }
 0x5a3   : > { %v1795_v47 = vpop.f32.mrb[2].mxu0  ;;  %v1794_v51 = vadd.f32 %v1793_v3, %v8969_v45 }
 0x5a4   : > { %v1796_v48 = vadd.f32 %v1795_v47, %v8964_v61  ;;  %v1797_v49 = vpop.f32.mrb[3].mxu0  ;;  %v1895_v14 = vmul.f32 0.17677669, %v1792_v46 }
 0x5a5   : > { %v1798_v52 = vadd.f32 %v1797_v49, %v8969_v45 }
 0x5a6   : > { %v1896_v54 = vmul.f32 0.17677669, %v1796_v48  ;;  %v7523_v48 = vld [vmem:[%s10551_s4 + $0x98] ss:$12 sps:$4 sm:$0xff]  }
 0x5a7   : > { %v8977_v55 = vpack.c.bf16 %v1798_v52, %v1794_v51  ;;  %6675 = vmatprep.subr.bf16.mxu1 %v7523_v48 }
 0x5a8   : > { %v1903_v56 = vpack.c.bf16 %v1896_v54, %v1895_v14  ;;  %6676 = vmatpush3.bf16.msra.mxu1 %v7523_v48 }
 0x5a9   : > { %v1801_v9 = vpop.f32.mrb[4].mxu0  ;;  %v1915_v57 = vmul.bf16 %v8977_v55, %v8788_v6  ;;  %v1917_v44 = vmul.bf16 %v8977_v55, %v8795_v11 }
 0x5aa   : > { %v1802_v59 = vadd.f32 %v1801_v9, %v8964_v61  ;;  %v1803_v60 = vpop.f32.mrb[5].mxu0  ;;  %6703 = vmatprep.mubr.bf16.mxu0 %v1903_v56 }
 0x5ab   : > { %v1805_v62 = vpop.f32.mrb[6].mxu0  ;;  %6687 = vmatprep.subr.bf16.mxu0 %v1915_v57  ;;  %v1804_v4 = vadd.f32 %v1803_v60, %v8969_v45 }
 0x5ac   : > { %v1806_v26 = vadd.f32 %v1805_v62, %v8964_v61  ;;  %v1807_v0 = vpop.f32.mrb[7].mxu0  ;;  %6688 = vmatpush3.bf16.xpose.msra.mxu0 %v1915_v57  ;;  %v8987_v8 = vmul.f32 0.17677669, %v1802_v59  ;;  %v7524_v57 = vld [vmem:[%s10551_s4 + $0xb0] ss:$12 sps:$4 sm:$0xff]  }
 0x5ad   : > { %v1808_v5 = vadd.f32 %v1807_v0, %v8969_v45  ;;  %6677 = vmatprep.subr.bf16.mxu1 %v7524_v57 }
 0x5ae   : > { %v8989_v12 = vmul.f32 0.17677669, %v1806_v26  ;;  %v1919_v26 = vmul.bf16 %v8977_v55, %v8805_v19  ;;  %6678 = vmatpush3.bf16.msra.mxu1 %v7524_v57 }
 0x5af   : > { %v1908_v13 = vpack.c.bf16 %v1808_v5, %v1804_v4 }
 0x5b0   : > { %v1904_v16 = vpack.c.bf16 %v8989_v12, %v8987_v8  ;;  %v1624_v12 = vsub.s32 2, %v8954_v1 }
 0x5b1   : > { %v1916_v18 = vmul.bf16 %v1908_v13, %v8793_v10  ;;  %v1811_v7 = vpop.f32.mrb[8].mxu0  ;;  %v1918_v52 = vmul.bf16 %v1908_v13, %v8800_v15  ;;  %6680 = vmatmul.mubr.bf16.vlgmr.msra.gmra.mrb[0].mxu1 %v8931_v58  ;;  %v1922_v0 = vmul.bf16 %v1908_v13, %v8812_v23 }
 0x5b2   : > { %v1812_v21 = vadd.f32 %v1811_v7, %v8964_v61  ;;  %v1813_v27 = vpop.f32.mrb[9].mxu0  ;;  %6683 = vmatprep.mubr.bf16.mxu1 %v8941_v35 }
 0x5b3   : > { %6689 = vmatprep.subr.bf16.mxu0 %v1916_v18  ;;  %v1814_v25 = vadd.f32 %v1813_v27, %v8969_v45  ;;  %v1815_v28 = vpop.f32.mrb[10].mxu0 }
 0x5b4   : > { %6690 = vmatpush3.bf16.xpose.msra.mxu0 %v1916_v18  ;;  %v1899_v29 = vmul.f32 0.17677669, %v1812_v21  ;;  %v1816_v30 = vadd.f32 %v1815_v28, %v8964_v61  ;;  %v1817_v32 = vpop.f32.mrb[11].mxu0 }
 0x5b5   : > { %6691 = vmatprep.subr.bf16.mxu0 %v1917_v44  ;;  %v1818_v43 = vadd.f32 %v1817_v32, %v8969_v45 }
 0x5b6   : > { %v1900_v46 = vmul.f32 0.17677669, %v1816_v30 }
 0x5b7   : > { %v1909_v3 = vpack.c.bf16 %v1818_v43, %v1814_v25 }
 0x5b8   : > { %v1905_v47 = vpack.c.bf16 %v1900_v46, %v1899_v29 }
 0x5b9   : > { %v1821_v49 = vpop.f32.mrb[12].mxu0  ;;  %6684 = vmatmul.mubr.bf16.gmra.mrb[4].mxu1 %v8951_v38  ;;  %v2144_v24 = vmul.bf16 %v1909_v3, %v8788_v6  ;;  %v2146_v35 = vmul.bf16 %v1909_v3, %v8795_v11  ;;  %v2150_v5 = vmul.bf16 %v1909_v3, %v8810_v22 }
 0x5ba   : > { %v1822_v50 = vadd.f32 %v1821_v49, %v8964_v61  ;;  %v1823_v51 = vpop.f32.mrb[13].mxu0 }
 0x5bb   : > { %v1824_v53 = vadd.f32 %v1823_v51, %v8969_v45  ;;  %v1825_v14 = vpop.f32.mrb[14].mxu0 }
 0x5bc   : > { %6692 = vmatpush3.bf16.xpose.msra.mxu0 %v1917_v44  ;;  %v1901_v54 = vmul.f32 0.17677669, %v1822_v50  ;;  %v1826_v56 = vadd.f32 %v1825_v14, %v8964_v61  ;;  %v1827_v9 = vpop.f32.mrb[15].mxu0  ;;  %v1920_v61 = vmul.bf16 %v1908_v13, %v8807_v20  ;;  %v1625_v13 = vrot.slane %v8958_v41, %v1624_v12 }
 0x5bd   : > { %6693 = vmatprep.subr.bf16.mxu0 %v1918_v52  ;;  %v1828_v59 = vadd.f32 %v1827_v9, %v8969_v45  ;;  %v1921_v45 = vmul.bf16 %v8977_v55, %v8810_v22  ;;  %v2148_v55 = vmul.bf16 %v1909_v3, %v8805_v19 }
 0x5be   : > { %v1902_v60 = vmul.f32 0.17677669, %v1826_v56 }
 0x5bf   : > { %v1910_v62 = vpack.c.bf16 %v1828_v59, %v1824_v53 }
 0x5c0   : > { %v1906_v63 = vpack.c.bf16 %v1902_v60, %v1901_v54 }
 0x5c1   : > { %v2145_v58 = vmul.bf16 %v1910_v62, %v8793_v10  ;;  %v2147_v38 = vmul.bf16 %v1910_v62, %v8800_v15  ;;  %v2149_v4 = vmul.bf16 %v1910_v62, %v8807_v20  ;;  %v2151_v8 = vmul.bf16 %v1910_v62, %v8812_v23 }
 0x5c4   : > { %6694 = vmatpush3.bf16.xpose.msra.mxu0 %v1918_v52 }
 0x5c5   : > { %6695 = vmatprep.subr.bf16.mxu0 %v1919_v26 }
 0x5cc   : > { %6696 = vmatpush3.bf16.xpose.msra.mxu0 %v1919_v26 }
 0x5cd   : > { %6697 = vmatprep.subr.bf16.mxu0 %v1920_v61 }
 0x5d4   : > { %6698 = vmatpush3.bf16.xpose.msra.mxu0 %v1920_v61 }
 0x5d5   : > { %6699 = vmatprep.subr.bf16.mxu0 %v1921_v45 }
 0x5dc   : > { %6700 = vmatpush3.bf16.xpose.msra.mxu0 %v1921_v45 }
 0x5dd   : > { %6701 = vmatprep.subr.bf16.mxu0 %v1922_v0 }
 0x5e4   : > { %6702 = vmatpush3.bf16.xpose.msra.mxu0 %v1922_v0 }
 0x5e5   : > { %6765 = vmatprep.subr.bf16.mxu0 %v2144_v24 }
 0x5eb   : > { %6704 = vmatmul.mubr.bf16.vlgmr.msra.gmra.mrb[16].mxu0 %v1904_v16 }
 0x5ec   : > { %6766 = vmatpush3.bf16.xpose.msra.mxu0 %v2144_v24  ;;  %6781 = vmatprep.mubr.bf16.mxu0 %v1905_v47 }
 0x5ed   : > { %6767 = vmatprep.subr.bf16.mxu0 %v2145_v58 }
 0x5f4   : > { %6768 = vmatpush3.bf16.xpose.msra.mxu0 %v2145_v58 }
 0x5f5   : > { %6769 = vmatprep.subr.bf16.mxu0 %v2146_v35 }
 0x5fc   : > { %6770 = vmatpush3.bf16.xpose.msra.mxu0 %v2146_v35 }
 0x5fd   : > { %6771 = vmatprep.subr.bf16.mxu0 %v2147_v38 }
 0x604   : > { %6772 = vmatpush3.bf16.xpose.msra.mxu0 %v2147_v38 }
 0x605   : > { %6773 = vmatprep.subr.bf16.mxu0 %v2148_v55 }
 0x60c   : > { %6774 = vmatpush3.bf16.xpose.msra.mxu0 %v2148_v55 }
 0x60d   : > { %6775 = vmatprep.subr.bf16.mxu0 %v2149_v4 }
 0x614   : > { %6776 = vmatpush3.bf16.xpose.msra.mxu0 %v2149_v4 }
 0x615   : > { %6777 = vmatprep.subr.bf16.mxu0 %v2150_v5 }
 0x61c   : > { %6778 = vmatpush3.bf16.xpose.msra.mxu0 %v2150_v5 }
 0x61d   : > { %6779 = vmatprep.subr.bf16.mxu0 %v2151_v8 }
 0x624   : > { %6780 = vmatpush3.bf16.xpose.msra.mxu0 %v2151_v8 }
 0x62b   : > { %6782 = vmatmul.mubr.bf16.vlgmr.msra.gmra.mrb[20].mxu0 %v1906_v63 }
 0x684   : > { %v6681_v16 = vpop.f32.mrb[0].mxu1 }
 0x685   : > { %v1873_v17 = vadd.f32 %v6681_v16, %v1625_v13  ;;  %v1864_v18 = vpop.f32.mrb[1].mxu1 }
 0x686   : > { %v1865_v7 = vadd.f32 %v1864_v18, %v1625_v13  ;;  %v6682_v21 = vpop.f32.mrb[2].mxu1 }
 0x687   : > { %v1876_v27 = vadd.f32 %v6682_v21, %v1625_v13  ;;  %v1867_v44 = vpop.f32.mrb[3].mxu1 }
 0x688   : > { %v1868_v25 = vadd.f32 %v1867_v44, %v1625_v13 }
 0x689   : > { %v1912_v28 = vpack.c.bf16 %v1876_v27, %v1873_v17 }
 0x68a   : > { %v1911_v29 = vpack.c.bf16 %v1868_v25, %v1865_v7 }
 0x68b   : > { %v1924_v32 = vmul.bf16 %v1912_v28, %v8793_v10  ;;  %v1926_v41 = vmul.bf16 %v1912_v28, %v8800_v15  ;;  %v1928_v46 = vmul.bf16 %v1912_v28, %v8807_v20  ;;  %v1930_v47 = vmul.bf16 %v1912_v28, %v8812_v23 }
 0x68c   : > { %v1923_v30 = vmul.bf16 %v1911_v29, %v8788_v6  ;;  %v1925_v39 = vmul.bf16 %v1911_v29, %v8795_v11  ;;  %v1927_v43 = vmul.bf16 %v1911_v29, %v8805_v19  ;;  %v1929_v3 = vmul.bf16 %v1911_v29, %v8810_v22  ;;  %v6685_v52 = vpop.f32.mrb[4].mxu1 }
 0x68d   : > { %v1880_v53 = vpop.f32.mrb[5].mxu1  ;;  %v1889_v14 = vadd.f32 %v6685_v52, %v1625_v13 }
 0x68e   : > { %6707 = vmatprep.subr.bf16.mxu1 %v1923_v30  ;;  %v1881_v54 = vadd.f32 %v1880_v53, %v1625_v13  ;;  %v6686_v56 = vpop.f32.mrb[6].mxu1 }
 0x68f   : > { %6708 = vmatpush3.bf16.msra.mxu1 %v1923_v30  ;;  %v1892_v9 = vadd.f32 %v6686_v56, %v1625_v13  ;;  %v1883_v57 = vpop.f32.mrb[7].mxu1 }
 0x690   : > { %6709 = vmatprep.subr.bf16.mxu1 %v1924_v32  ;;  %v1884_v59 = vadd.f32 %v1883_v57, %v1625_v13 }
 0x691   : > { %v9042_v60 = vpack.c.bf16 %v1892_v9, %v1889_v14 }
 0x692   : > { %v9044_v62 = vpack.c.bf16 %v1884_v59, %v1881_v54 }
 0x693   : > { %6710 = vmatpush3.bf16.msra.mxu1 %v1924_v32  ;;  %v2153_v29 = vmul.bf16 %v9042_v60, %v8793_v10  ;;  %v2155_v32 = vmul.bf16 %v9042_v60, %v8800_v15  ;;  %v2157_v14 = vmul.bf16 %v9042_v60, %v8807_v20  ;;  %v2159_v9 = vmul.bf16 %v9042_v60, %v8812_v23  ;;  %v7525_v60 = vld [vmem:[%s10553_s23] sm:$0xff]  }
 0x694   : > { %6711 = vmatprep.subr.bf16.mxu1 %v1925_v39  ;;  %v2152_v28 = vmul.bf16 %v9044_v62, %v8788_v6  ;;  %v2154_v30 = vmul.bf16 %v9044_v62, %v8795_v11  ;;  %v2158_v56 = vmul.bf16 %v9044_v62, %v8810_v22  ;;  %6843 = vmatprep.subr.bf16.mxu0 %v7525_v60 }
 0x695   : > { %6844 = vmatpush3.bf16.msra.mxu0 %v7525_v60 }
 0x697   : > { %6712 = vmatpush3.bf16.msra.mxu1 %v1925_v39 }
 0x698   : > { %6713 = vmatprep.subr.bf16.mxu1 %v1926_v41 }
 0x69b   : > { %6714 = vmatpush3.bf16.msra.mxu1 %v1926_v41 }
 0x69c   : > { %6715 = vmatprep.subr.bf16.mxu1 %v1927_v43 }
 0x69f   : > { %6716 = vmatpush3.bf16.msra.mxu1 %v1927_v43 }
 0x6a0   : > { %6717 = vmatprep.subr.bf16.mxu1 %v1928_v46 }
 0x6a3   : > { %6718 = vmatpush3.bf16.msra.mxu1 %v1928_v46 }
 0x6a4   : > { %6719 = vmatprep.subr.bf16.mxu1 %v1929_v3 }
 0x6a7   : > { %6720 = vmatpush3.bf16.msra.mxu1 %v1929_v3 }
 0x6a8   : > { %6721 = vmatprep.subr.bf16.mxu1 %v1930_v47 }
 0x6ab   : > { %6722 = vmatpush3.bf16.msra.mxu1 %v1930_v47  ;;  %v2156_v47 = vmul.bf16 %v9044_v62, %v8805_v19  ;;  %v7526_v62 = vld [vmem:[%s10553_s23 + $0x8] sm:$0xff]  }
 0x6ac   : > { %7120 = vmatprep.subr.bf16.mxu1 %v8788_v6  ;;  %6845 = vmatprep.subr.bf16.mxu0 %v7526_v62 }
 0x6ad   : > { %6846 = vmatpush3.bf16.msra.mxu0 %v7526_v62 }
 0x6be   : > { %v6705_v48 = vpop.f32.mrb[16].mxu0 }
 0x6bf   : > { %1984 = vmax.xlane.f32.xlu1 %v6705_v48  ;;  %v1965_v49 = vpop.f32.mrb[17].mxu0 }
 0x6c0   : > { %1980 = vmax.xlane.f32.xlu0 %v1965_v49  ;;  %v6706_v50 = vpop.f32.mrb[18].mxu0 }
 0x6c1   : > { %v1968_v51 = vpop.f32.mrb[19].mxu0 }
 0x6c3   : > { %1986 = vmax.xlane.f32.xlu1 %v6706_v50 }
 0x6c4   : > { %1982 = vmax.xlane.f32.xlu0 %v1968_v51 }
 0x6fe   : > { %v9046_v63 = vpop.f32.mrb[20].mxu0 }
 0x6ff   : > { %v9048_v26 = vpop.f32.mrb[21].mxu0 }
 0x700   : > { %2209 = vmax.xlane.f32.xlu0 %v9048_v26  ;;  %v9051_v61 = vpop.f32.mrb[22].mxu0 }
 0x701   : > { %v9053_v45 = vpop.f32.mrb[23].mxu0 }
 0x702   : > { %2211 = vmax.xlane.f32.xlu1 %v9053_v45 }
 0x704   : > { %2213 = vmax.xlane.f32.xlu0 %v9046_v63 }
 0x706   : > { %2215 = vmax.xlane.f32.xlu1 %v9051_v61 }
 0x74c   : > { %v1985_v0 = vpop.xlane.xlu1 %1984 }
 0x74d   : > { %v1990_v24 = vsub.f32 %v6705_v48, %v1985_v0  ;;  %v1981_v58 = vpop.xlane.xlu0 %1980  ;;  %v7527_v0 = vld [vmem:[%s10553_s23 + $0x10] sm:$0xff]  }
 0x74e   : > { %v1988_v35 = vsub.f32 %v1965_v49, %v1981_v58  ;;  %6847 = vmatprep.subr.bf16.mxu0 %v7527_v0  ;;  %v7529_v58 = vld [vmem:[%s10553_s23 + $0x20] sm:$0xff]  }
 0x74f   : > { %v1996_v38 = vmul.f32 1.442695, %v1990_v24  ;;  %6848 = vmatpush3.bf16.msra.mxu0 %v7527_v0  ;;  %v7528_v24 = vld [vmem:[%s10553_s23 + $0x18] sm:$0xff]  }
 0x750   : > { %v1992_v55 = vmul.f32 1.442695, %v1988_v35  ;;  %v1987_v4 = vpop.xlane.xlu1 %1986  ;;  %6849 = vmatprep.subr.bf16.mxu0 %v7528_v24  ;;  %v7530_v35 = vld [vmem:[%s10553_s23 + $0x28] sm:$0xff]  }
 0x751   : > { %v1991_v5 = vsub.f32 %v6706_v50, %v1987_v4  ;;  %v1983_v8 = vpop.xlane.xlu0 %1982  ;;  %7629 = vpow2.f32 %v1996_v38  ;;  %v7531_v38 = vld [vmem:[%s10553_s23 + $0x30] sm:$0xff]  }
 0x752   : > { %v1989_v13 = vsub.f32 %v1968_v51, %v1983_v8  ;;  %7631 = vpow2.f32 %v1992_v55  ;;  %v7532_v55 = vld [vmem:[%s10553_s23 + $0x38] sm:$0xff]  }
 0x753   : > { %v1998_v16 = vmul.f32 1.442695, %v1991_v5  ;;  %6850 = vmatpush3.bf16.msra.mxu0 %v7528_v24 }
 0x754   : > { %v1994_v17 = vmul.f32 1.442695, %v1989_v13  ;;  %6851 = vmatprep.subr.bf16.mxu0 %v7529_v58 }
 0x755   : > { %7633 = vpow2.f32 %v1998_v16 }
 0x756   : > { %7635 = vpow2.f32 %v1994_v17 }
 0x757   : > { %6852 = vmatpush3.bf16.msra.mxu0 %v7529_v58 }
 0x758   : > { %6853 = vmatprep.subr.bf16.mxu0 %v7530_v35 }
 0x75b   : > { %v7630_v18 = vpop.eup %7629  ;;  %6854 = vmatpush3.bf16.msra.mxu0 %v7530_v35 }
 0x75c   : > { %v7632_v7 = vpop.eup %7631  ;;  %6855 = vmatprep.subr.bf16.mxu0 %v7531_v38 }
 0x75f   : > { %v7634_v21 = vpop.eup %7633  ;;  %6856 = vmatpush3.bf16.msra.mxu0 %v7531_v38  ;;  %v7869_v38 = vld [vmem:[#allocation2] sm:$0xff] }
 0x760   : > { %v7636_v27 = vpop.eup %7635  ;;  %v2001_v44 = vpack.c.bf16 %v7634_v21, %v7630_v18  ;;  %6857 = vmatprep.subr.bf16.mxu0 %v7532_v55 }
 0x761   : > { %v2000_v25 = vpack.c.bf16 %v7636_v27, %v7632_v7 }
 0x763   : > { %6723 = vmatprep.mubr.bf16.mxu1 %v2000_v25  ;;  %6858 = vmatpush3.bf16.msra.mxu0 %v7532_v55 }
 0x764   : > { %6724 = vmatmul.mubr.bf16.vlgmr.msra.gmra.mrb[8].mxu1 %v2001_v44 }
 0x765   : > { %7122 = vmatpush3.bf16.msra.mxu1 %v8788_v6  ;;  %6759 = vmatprep.mubr.f32.mxu1 %v7632_v7 }
 0x766   : > { %7124 = vmatprep.subr.bf16.mxu1 %v8793_v10 }
 0x769   : > { %7126 = vmatpush3.bf16.msra.mxu1 %v8793_v10 }
 0x76a   : > { %7128 = vmatprep.subr.bf16.mxu1 %v8795_v11 }
 0x76d   : > { %7130 = vmatpush3.bf16.msra.mxu1 %v8795_v11 }
 0x76e   : > { %7132 = vmatprep.subr.bf16.mxu1 %v8800_v15 }
 0x771   : > { %7134 = vmatpush3.bf16.msra.mxu1 %v8800_v15 }
 0x772   : > { %7136 = vmatprep.subr.bf16.mxu1 %v8805_v19 }
 0x775   : > { %7138 = vmatpush3.bf16.msra.mxu1 %v8805_v19 }
 0x776   : > { %7140 = vmatprep.subr.bf16.mxu1 %v8807_v20 }
 0x779   : > { %7142 = vmatpush3.bf16.msra.mxu1 %v8807_v20 }
 0x77a   : > { %7144 = vmatprep.subr.bf16.mxu1 %v8810_v22 }
 0x77d   : > { %7146 = vmatpush3.bf16.msra.mxu1 %v8810_v22 }
 0x77e   : > { %7148 = vmatprep.subr.bf16.mxu1 %v8812_v23 }
 0x781   : > { %7150 = vmatpush3.bf16.msra.mxu1 %v8812_v23 }
 0x782   : > { %6785 = vmatprep.subr.bf16.mxu1 %v2152_v28 }
 0x784   : > { %6760 = vmatmul.mubr.f32.vlgmr.msra.gmra.mrb[12].mxu1 %v7636_v27 }
 0x785   : > { %6762 = vmatprep.mubr.f32.mxu1 %v7630_v18  ;;  %6786 = vmatpush3.bf16.msra.mxu1 %v2152_v28 }
 0x786   : > { %6787 = vmatprep.subr.bf16.mxu1 %v2153_v29 }
 0x788   : > { %6763 = vmatmul.mubr.f32.gmra.mrb[14].mxu1 %v7634_v21 }
 0x789   : > { %6788 = vmatpush3.bf16.msra.mxu1 %v2153_v29 }
 0x78a   : > { %6789 = vmatprep.subr.bf16.mxu1 %v2154_v30 }
 0x78d   : > { %6790 = vmatpush3.bf16.msra.mxu1 %v2154_v30  ;;  %v2210_v39 = vpop.xlane.xlu0 %2209 }
 0x78e   : > { %6791 = vmatprep.subr.bf16.mxu1 %v2155_v32  ;;  %v2217_v41 = vsub.f32 %v9048_v26, %v2210_v39 }
 0x78f   : > { %v2212_v43 = vpop.xlane.xlu1 %2211 }
 0x790   : > { %v2221_v46 = vmul.f32 1.442695, %v2217_v41  ;;  %v2218_v3 = vsub.f32 %v9053_v45, %v2212_v43 }
 0x791   : > { %6792 = vmatpush3.bf16.msra.mxu1 %v2155_v32  ;;  %v2214_v48 = vpop.xlane.xlu0 %2213 }
 0x792   : > { %v2223_v49 = vmul.f32 1.442695, %v2218_v3  ;;  %6793 = vmatprep.subr.bf16.mxu1 %v2156_v47  ;;  %v2219_v50 = vsub.f32 %v9046_v63, %v2214_v48  ;;  %7637 = vpow2.f32 %v2221_v46 }
 0x793   : > { %v2216_v51 = vpop.xlane.xlu1 %2215 }
 0x794   : > { %7639 = vpow2.f32 %v2223_v49  ;;  %v2225_v52 = vmul.f32 1.442695, %v2219_v50  ;;  %v2220_v53 = vsub.f32 %v9051_v61, %v2216_v51 }
 0x795   : > { %6794 = vmatpush3.bf16.msra.mxu1 %v2156_v47 }
 0x796   : > { %v2227_v54 = vmul.f32 1.442695, %v2220_v53  ;;  %6795 = vmatprep.subr.bf16.mxu1 %v2157_v14  ;;  %7641 = vpow2.f32 %v2225_v52 }
 0x798   : > { %7643 = vpow2.f32 %v2227_v54 }
 0x799   : > { %6796 = vmatpush3.bf16.msra.mxu1 %v2157_v14 }
 0x79a   : > { %6797 = vmatprep.subr.bf16.mxu1 %v2158_v56 }
 0x79c   : > { %v7638_v57 = vpop.eup %7637 }
 0x79d   : > { %6798 = vmatpush3.bf16.msra.mxu1 %v2158_v56 }
 0x79e   : > { %v7640_v59 = vpop.eup %7639  ;;  %6799 = vmatprep.subr.bf16.mxu1 %v2159_v9 }
 0x79f   : > { %v2229_v63 = vpack.c.bf16 %v7640_v59, %v7638_v57 }
 0x7a0   : > { %v7642_v26 = vpop.eup %7641 }
 0x7a1   : > { %6800 = vmatpush3.bf16.msra.mxu1 %v2159_v9  ;;  %6801 = vmatprep.mubr.bf16.mxu1 %v2229_v63 }
 0x7a2   : > { %v7644_v61 = vpop.eup %7643  ;;  %7152 = vmatprep.subr.bf16.mxu1 %v8788_v6 }
 0x7a3   : > { %v2230_v45 = vpack.c.bf16 %v7644_v61, %v7642_v26 }
 0x7a5   : > { %6802 = vmatmul.mubr.bf16.vlgmr.msra.gmra.mrb[16].mxu1 %v2230_v45 }
 0x7a6   : > { %7154 = vmatpush3.bf16.msra.mxu1 %v8788_v6  ;;  %6837 = vmatprep.mubr.f32.mxu1 %v7638_v57 }
 0x7a7   : > { %7156 = vmatprep.subr.bf16.mxu1 %v8793_v10 }
 0x7aa   : > { %7158 = vmatpush3.bf16.msra.mxu1 %v8793_v10 }
 0x7ab   : > { %7160 = vmatprep.subr.bf16.mxu1 %v8795_v11 }
 0x7ae   : > { %7162 = vmatpush3.bf16.msra.mxu1 %v8795_v11 }
 0x7af   : > { %7164 = vmatprep.subr.bf16.mxu1 %v8800_v15 }
 0x7b2   : > { %7166 = vmatpush3.bf16.msra.mxu1 %v8800_v15 }
 0x7b3   : > { %7168 = vmatprep.subr.bf16.mxu1 %v8805_v19 }
 0x7b6   : > { %7170 = vmatpush3.bf16.msra.mxu1 %v8805_v19 }
 0x7b7   : > { %7172 = vmatprep.subr.bf16.mxu1 %v8807_v20 }
 0x7ba   : > { %7174 = vmatpush3.bf16.msra.mxu1 %v8807_v20 }
 0x7bb   : > { %7176 = vmatprep.subr.bf16.mxu1 %v8810_v22 }
 0x7be   : > { %7178 = vmatpush3.bf16.msra.mxu1 %v8810_v22 }
 0x7bf   : > { %7180 = vmatprep.subr.bf16.mxu1 %v8812_v23 }
 0x7c2   : > { %7182 = vmatpush3.bf16.msra.mxu1 %v8812_v23 }
 0x7c5   : > { %6838 = vmatmul.mubr.f32.vlgmr.msra.gmra.mrb[20].mxu1 %v7640_v59 }
 0x7c6   : > { %6840 = vmatprep.mubr.f32.mxu1 %v7642_v26 }
 0x7c9   : > { %6841 = vmatmul.mubr.f32.gmra.mrb[22].mxu1 %v7644_v61  ;;  %v6116_v61 = vld [vmem:[%s10554_s16] ss:$0 sm:$0xff] }
 0x837   : > { %v6725_v4 = vpop.f32.mrb[8].mxu1 }
 0x838   : > { %v2036_v5 = vpop.f32.mrb[9].mxu1 }
 0x839   : > { %v6726_v8 = vpop.f32.mrb[10].mxu1 }
 0x83a   : > { %v2039_v13 = vpop.f32.mrb[11].mxu1 }
 0x857   : > { %v6761_v16 = vpop.f32.mrb[12].mxu1 }
 0x858   : > { %7645 = vrcp.f32 %v6761_v16  ;;  %v2117_v17 = vpop.f32.mrb[13].mxu1  ;;  %v7871_v16 = vld [vmem:[#allocation2 + $0x18] sm:$0xff] }
 0x859   : > { %7647 = vrcp.f32 %v2117_v17 }
 0x85b   : > { %v6764_v18 = vpop.f32.mrb[14].mxu1 }
 0x85c   : > { %7649 = vrcp.f32 %v6764_v18  ;;  %v2127_v7 = vpop.f32.mrb[15].mxu1 }
 0x85d   : > { %7651 = vrcp.f32 %v2127_v7 }
 0x862   : > { %v7646_v21 = vpop.eup %7645 }
 0x863   : > { %v7648_v27 = vpop.eup %7647  ;;  %v2141_v44 = vmul.f32 %v7646_v21, %v2039_v13 }
 0x864   : > { %v2140_v25 = vmul.f32 %v7648_v27, %v2036_v5  ;;  %v7870_v5 = vld [vmem:[#allocation2 + $0x8] sm:$0xff] }
 0x866   : > { %v7650_v28 = vpop.eup %7649  ;;  %v2389_v29 = vpack.c.bf16 %v2141_v44, %v2140_v25 }
 0x867   : > { %v7652_v30 = vpop.eup %7651  ;;  %v2143_v32 = vmul.f32 %v7650_v28, %v6726_v8 }
 0x868   : > { %6859 = vmatprep.mubr.bf16.mxu0 %v2389_v29  ;;  %v2142_v39 = vmul.f32 %v7652_v30, %v6725_v4 }
 0x86a   : > { %v2390_v41 = vpack.c.bf16 %v2143_v32, %v2142_v39 }
 0x86c   : > { %6860 = vmatmul.mubr.bf16.vlgmr.msra.gmra.mrb[24].mxu0 %v2390_v41  ;;  %v7533_v41 = vld [vmem:[#allocation5] sm:$0xff]  }
 0x86d   : > { %6867 = vmatprep.subr.bf16.mxu1 %v7533_v41 }
 0x86e   : > { %6868 = vmatpush3.bf16.msra.mxu1 %v7533_v41 }
 0x878   : > { %v6803_v43 = vpop.f32.mrb[16].mxu1 }
 0x879   : > { %v2265_v46 = vpop.f32.mrb[17].mxu1 }
 0x87a   : > { %v6804_v3 = vpop.f32.mrb[18].mxu1 }
 0x87b   : > { %v2268_v47 = vpop.f32.mrb[19].mxu1 }
 0x898   : > { %v6839_v48 = vpop.f32.mrb[20].mxu1 }
 0x899   : > { %7653 = vrcp.f32 %v6839_v48  ;;  %v2346_v49 = vpop.f32.mrb[21].mxu1 }
 0x89a   : > { %7655 = vrcp.f32 %v2346_v49 }
 0x89c   : > { %v6842_v50 = vpop.f32.mrb[22].mxu1 }
 0x89d   : > { %7657 = vrcp.f32 %v6842_v50  ;;  %v2356_v51 = vpop.f32.mrb[23].mxu1 }
 0x89e   : > { %7659 = vrcp.f32 %v2356_v51 }
 0x8a3   : > { %v7654_v52 = vpop.eup %7653 }
 0x8a4   : > { %v7656_v53 = vpop.eup %7655  ;;  %v2370_v14 = vmul.f32 %v7654_v52, %v2268_v47 }
 0x8a5   : > { %v2369_v54 = vmul.f32 %v7656_v53, %v2265_v46 }
 0x8a7   : > { %v7658_v56 = vpop.eup %7657  ;;  %v2391_v9 = vpack.c.bf16 %v2370_v14, %v2369_v54 }
 0x8a8   : > { %v7660_v57 = vpop.eup %7659  ;;  %v2372_v59 = vmul.f32 %v7658_v56, %v6804_v3  ;;  %v7534_v56 = vld [vmem:[#allocation5 + $0x8] sm:$0xff]  }
 0x8a9   : > { %6863 = vmatprep.mubr.bf16.mxu0 %v2391_v9  ;;  %v2371_v63 = vmul.f32 %v7660_v57, %v6803_v43  ;;  %6869 = vmatprep.subr.bf16.mxu1 %v7534_v56  ;;  %v7535_v9 = vld [vmem:[#allocation5 + $0x10] sm:$0xff]   ;;  %v7536_v57 = vld [vmem:[#allocation5 + $0x18] sm:$0xff]  }
 0x8aa   : > { %6870 = vmatpush3.bf16.msra.mxu1 %v7534_v56 }
 0x8ab   : > { %v2392_v26 = vpack.c.bf16 %v2372_v59, %v2371_v63  ;;  %6871 = vmatprep.subr.bf16.mxu1 %v7535_v9  ;;  %v7537_v59 = vld [vmem:[#allocation5 + $0x20] sm:$0xff]   ;;  %v7538_v63 = vld [vmem:[#allocation5 + $0x28] sm:$0xff]  }
 0x8ad   : > { %6864 = vmatmul.mubr.bf16.gmra.mrb[28].mxu0 %v2392_v26  ;;  %v7539_v26 = vld [vmem:[#allocation5 + $0x30] sm:$0xff]  }
 0x8ae   : > { %6872 = vmatpush3.bf16.msra.mxu1 %v7535_v9 }
 0x8af   : > { %6873 = vmatprep.subr.bf16.mxu1 %v7536_v57 }
 0x8b2   : > { %6874 = vmatpush3.bf16.msra.mxu1 %v7536_v57  ;;  %v6125_v57 = vld [vmem:[#allocation17] ss:$0 sm:$0xff] }
 0x8b3   : > { %6875 = vmatprep.subr.bf16.mxu1 %v7537_v59 }
 0x8b6   : > { %6876 = vmatpush3.bf16.msra.mxu1 %v7537_v59 }
 0x8b7   : > { %6877 = vmatprep.subr.bf16.mxu1 %v7538_v63 }
 0x8ba   : > { %6878 = vmatpush3.bf16.msra.mxu1 %v7538_v63 }
 0x8bb   : > { %6879 = vmatprep.subr.bf16.mxu1 %v7539_v26 }
 0x8be   : > { %6880 = vmatpush3.bf16.msra.mxu1 %v7539_v26 }
 0x93f   : > { %v6861_v45 = vpop.f32.mrb[24].mxu0 }
 0x940   : > { %v2482_v60 = vpop.f32.mrb[25].mxu0  ;;  %v2491_v58 = vadd.f32 %v6861_v45, %v6116_v61 }
 0x941   : > { %v2483_v62 = vadd.f32 %v6116_v61, %v2482_v60  ;;  %v6862_v0 = vpop.f32.mrb[26].mxu0 }
 0x942   : > { %v2485_v24 = vpop.f32.mrb[27].mxu0  ;;  %v2494_v4 = vadd.f32 %v6862_v0, %v6116_v61  ;;  %v2515_v13 = vadd.f32 %v2491_v58, %v8927_v31 }
 0x943   : > { %v2486_v35 = vadd.f32 %v6116_v61, %v2485_v24  ;;  %v2513_v55 = vadd.f32 %v7869_v38, %v2483_v62 }
 0x944   : > { %v2516_v17 = vadd.f32 %v7871_v16, %v2494_v4 }
 0x945   : > { %2523 = vadd.xlane.f32.xlu0 %v2513_v55  ;;  %v2514_v8 = vadd.f32 %v7870_v5, %v2486_v35 }
 0x947   : > { %2525 = vadd.xlane.f32.xlu1 %v2514_v8 }
 0x949   : > { %2527 = vadd.xlane.f32.xlu0 %v2515_v13 }
 0x94b   : > { %2529 = vadd.xlane.f32.xlu1 %v2516_v17 }
 0x980   : > { %v6865_v18 = vpop.f32.mrb[28].mxu0 }
 0x981   : > { %v2498_v7 = vpop.f32.mrb[29].mxu0  ;;  %v2507_v25 = vadd.f32 %v6865_v18, %v6116_v61 }
 0x982   : > { %v2499_v21 = vadd.f32 %v6116_v61, %v2498_v7  ;;  %v6866_v27 = vpop.f32.mrb[30].mxu0  ;;  %v2780_v7 = vld [vmem:[#allocation4] sm:$0xff] }
 0x983   : > { %v2501_v44 = vpop.f32.mrb[31].mxu0  ;;  %v2510_v30 = vadd.f32 %v6866_v27, %v6116_v61  ;;  %v2519_v31 = vadd.f32 %v2507_v25, %v8943_v36  ;;  %v2784_v27 = vld [vmem:[#allocation4 + $0x20] sm:$0xff]  ;;  %v2786_v25 = vld [vmem:[#allocation4 + $0x30] sm:$0xff] }
 0x984   : > { %v2502_v28 = vadd.f32 %v6116_v61, %v2501_v44  ;;  %v2517_v29 = vadd.f32 %v2499_v21, %v8933_v33  ;;  %v7540_v61 = vld [vmem:[#allocation5 + $0x38] sm:$0xff]   ;;  %v2782_v21 = vld [vmem:[#allocation4 + $0x10] sm:$0xff] }
 0x985   : > { %v2520_v39 = vadd.f32 %v2510_v30, %v8945_v37  ;;  %6881 = vmatprep.subr.bf16.mxu1 %v7540_v61  ;;  %v2808_v44 = vpack.c.bf16 %v2782_v21, %v2780_v7 }
 0x986   : > { %2531 = vadd.xlane.f32.xlu0 %v2517_v29  ;;  %v2518_v32 = vadd.f32 %v2502_v28, %v8935_v34  ;;  %6882 = vmatpush3.bf16.msra.mxu1 %v7540_v61  ;;  %v9155_v28 = vpack.c.bf16 %v2786_v25, %v2784_v27 }
 0x987   : > { %v2822_v56 = vmul.bf16 %v2808_v44, %v8810_v22 }
 0x988   : > { %2533 = vadd.xlane.f32.xlu1 %v2518_v32  ;;  %v2817_v30 = vmul.bf16 %v9155_v28, %v8793_v10 }
 0x98a   : > { %2535 = vadd.xlane.f32.xlu0 %v2519_v31 }
 0x98c   : > { %2537 = vadd.xlane.f32.xlu1 %v2520_v39 }
 0x9d2   : > { %v2524_v43 = vpop.xlane.xlu0 %2523 }
 0x9d3   : > { %v2540_v46 = vmul.f32 0.0078125, %v2524_v43 }
 0x9d4   : > { %v2526_v3 = vpop.xlane.xlu1 %2525 }
 0x9d5   : > { %v9123_v47 = vsub.f32 %v2513_v55, %v2540_v46  ;;  %v2541_v33 = vmul.f32 0.0078125, %v2526_v3  ;;  %v2821_v3 = vmul.bf16 %v9155_v28, %v8807_v20 }
 0x9d6   : > { %v2528_v48 = vpop.xlane.xlu0 %2527 }
 0x9d7   : > { %v9125_v49 = vsub.f32 %v2514_v8, %v2541_v33  ;;  %v2542_v34 = vmul.f32 0.0078125, %v2528_v48  ;;  %v2556_v36 = vmul.f32 %v9123_v47, %v9123_v47 }
 0x9d8   : > { %v2530_v50 = vpop.xlane.xlu1 %2529 }
 0x9d9   : > { %v9129_v51 = vsub.f32 %v2515_v13, %v2542_v34  ;;  %v2543_v37 = vmul.f32 0.0078125, %v2530_v50  ;;  %2564 = vadd.xlane.f32.xlu0 %v2556_v36  ;;  %v2557_v52 = vmul.f32 %v9125_v49, %v9125_v49 }
 0x9db   : > { %v9133_v53 = vsub.f32 %v2516_v17, %v2543_v37  ;;  %2566 = vadd.xlane.f32.xlu1 %v2557_v52  ;;  %v2558_v14 = vmul.f32 %v9129_v51, %v9129_v51 }
 0x9dd   : > { %2568 = vadd.xlane.f32.xlu0 %v2558_v14  ;;  %v2559_v54 = vmul.f32 %v9133_v53, %v9133_v53 }
 0x9df   : > { %2570 = vadd.xlane.f32.xlu1 %v2559_v54 }
 0xa13   : > { %v2532_v45 = vpop.xlane.xlu0 %2531 }
 0xa14   : > { %v2544_v60 = vmul.f32 0.0078125, %v2532_v45 }
 0xa15   : > { %v2534_v62 = vpop.xlane.xlu1 %2533 }
 0xa16   : > { %v9139_v0 = vsub.f32 %v2517_v29, %v2544_v60  ;;  %v2545_v24 = vmul.f32 0.0078125, %v2534_v62  ;;  %v2816_v29 = vmul.bf16 %v2808_v44, %v8788_v6  ;;  %v6126_v60 = vld [vmem:[#allocation19] ss:$0 sm:$0xff] }
 0xa17   : > { %v2536_v58 = vpop.xlane.xlu0 %2535 }
 0xa18   : > { %v9141_v35 = vsub.f32 %v2518_v32, %v2545_v24  ;;  %v2546_v38 = vmul.f32 0.0078125, %v2536_v58  ;;  %v2560_v55 = vmul.f32 %v9139_v0, %v9139_v0  ;;  %6891 = vmatprep.subr.bf16.mxu0 %v2816_v29  ;;  %v2818_v32 = vmul.bf16 %v2808_v44, %v8795_v11 }
 0xa19   : > { %v2538_v4 = vpop.xlane.xlu1 %2537  ;;  %6892 = vmatpush3.bf16.xpose.msra.mxu0 %v2816_v29 }
 0xa1a   : > { %v9145_v5 = vsub.f32 %v2519_v31, %v2546_v38  ;;  %v2547_v8 = vmul.f32 0.0078125, %v2538_v4  ;;  %2572 = vadd.xlane.f32.xlu0 %v2560_v55  ;;  %v2561_v13 = vmul.f32 %v9141_v35, %v9141_v35  ;;  %6893 = vmatprep.subr.bf16.mxu0 %v2817_v30  ;;  %v2819_v31 = vmul.bf16 %v9155_v28, %v8800_v15 }
 0xa1c   : > { %v9149_v16 = vsub.f32 %v2520_v39, %v2547_v8  ;;  %2574 = vadd.xlane.f32.xlu1 %v2561_v13  ;;  %v2562_v17 = vmul.f32 %v9145_v5, %v9145_v5  ;;  %v2820_v39 = vmul.bf16 %v2808_v44, %v8805_v19 }
 0xa1e   : > { %2576 = vadd.xlane.f32.xlu0 %v2562_v17  ;;  %v2563_v18 = vmul.f32 %v9149_v16, %v9149_v16 }
 0xa20   : > { %2578 = vadd.xlane.f32.xlu1 %v2563_v18 }
 0xa21   : > { %6894 = vmatpush3.bf16.xpose.msra.mxu0 %v2817_v30 }
 0xa22   : > { %6895 = vmatprep.subr.bf16.mxu0 %v2818_v32 }
 0xa29   : > { %6896 = vmatpush3.bf16.xpose.msra.mxu0 %v2818_v32 }
 0xa2a   : > { %6897 = vmatprep.subr.bf16.mxu0 %v2819_v31 }
 0xa31   : > { %6898 = vmatpush3.bf16.xpose.msra.mxu0 %v2819_v31 }
 0xa32   : > { %6899 = vmatprep.subr.bf16.mxu0 %v2820_v39 }
 0xa39   : > { %6900 = vmatpush3.bf16.xpose.msra.mxu0 %v2820_v39 }
 0xa3a   : > { %6901 = vmatprep.subr.bf16.mxu0 %v2821_v3 }
 0xa41   : > { %6902 = vmatpush3.bf16.xpose.msra.mxu0 %v2821_v3 }
 0xa42   : > { %6903 = vmatprep.subr.bf16.mxu0 %v2822_v56 }
 0xa49   : > { %6904 = vmatpush3.bf16.xpose.msra.mxu0 %v2822_v56 }
 0xa66   : > { %v2565_v41 = vpop.xlane.xlu0 %2564 }
 0xa67   : > { %v2580_v43 = vmul.f32 0.0078125, %v2565_v41 }
 0xa68   : > { %v2567_v46 = vpop.xlane.xlu1 %2566 }
 0xa69   : > { %v2588_v33 = vadd.f32 1e-05, %v2580_v43  ;;  %v2581_v48 = vmul.f32 0.0078125, %v2567_v46 }
 0xa6a   : > { %v2569_v34 = vpop.xlane.xlu0 %2568 }
 0xa6b   : > { %7661 = vrsqrt.f32 %v2588_v33  ;;  %v2589_v36 = vadd.f32 1e-05, %v2581_v48  ;;  %v2582_v50 = vmul.f32 0.0078125, %v2569_v34 }
 0xa6c   : > { %v2571_v37 = vpop.xlane.xlu1 %2570 }
 0xa6d   : > { %7663 = vrsqrt.f32 %v2589_v36  ;;  %v2590_v52 = vadd.f32 1e-05, %v2582_v50  ;;  %v2583_v14 = vmul.f32 0.0078125, %v2571_v37 }
 0xa6f   : > { %7665 = vrsqrt.f32 %v2590_v52  ;;  %v2591_v54 = vadd.f32 1e-05, %v2583_v14 }
 0xa71   : > { %7667 = vrsqrt.f32 %v2591_v54 }
 0xa75   : > { %v7662_v9 = vpop.eup %7661 }
 0xa76   : > { %v2604_v59 = vmul.f32 %v7662_v9, %v9123_v47 }
 0xa77   : > { %v7664_v63 = vpop.eup %7663 }
 0xa78   : > { %v2605_v26 = vmul.f32 %v7664_v63, %v9125_v49  ;;  %v2618_v61 = vmul.f32 %v6125_v57, %v2604_v59  ;;  %v2823_v59 = vmul.bf16 %v9155_v28, %v8812_v23  ;;  %v2790_v63 = vld [vmem:[#allocation4 + $0x50] sm:$0xff] }
 0xa79   : > { %v7666_v45 = vpop.eup %7665 }
 0xa7a   : > { %v2606_v62 = vmul.f32 %v7666_v45, %v9129_v51  ;;  %v2619_v24 = vmul.f32 %v6125_v57, %v2605_v26  ;;  %v9171_v4 = vadd.f32 %v6126_v60, %v2618_v61  ;;  %6905 = vmatprep.subr.bf16.mxu0 %v2823_v59 }
 0xa7b   : > { %v7668_v58 = vpop.eup %7667  ;;  %6906 = vmatpush3.bf16.xpose.msra.mxu0 %v2823_v59 }
 0xa7c   : > { %v2620_v38 = vmul.f32 %v6125_v57, %v2606_v62  ;;  %v2607_v55 = vmul.f32 %v7668_v58, %v9133_v53  ;;  %v9173_v8 = vadd.f32 %v6126_v60, %v2619_v24 }
 0xa7e   : > { %v2621_v13 = vmul.f32 %v6125_v57, %v2607_v55  ;;  %v2656_v47 = vpack.c.bf16 %v9173_v8, %v9171_v4  ;;  %v9177_v49 = vadd.f32 %v6126_v60, %v2620_v38  ;;  %v2792_v38 = vld [vmem:[#allocation4 + $0x60] sm:$0xff]  ;;  %v2794_v55 = vld [vmem:[#allocation4 + $0x70] sm:$0xff] }
 0xa80   : > { %6883 = vmatprep.mubr.bf16.mxu1 %v2656_v47  ;;  %v9179_v17 = vadd.f32 %v6126_v60, %v2621_v13 }
 0xa82   : > { %v2657_v51 = vpack.c.bf16 %v9179_v17, %v9177_v49 }
 0xa84   : > { %6884 = vmatmul.mubr.bf16.vlgmr.msra.gmra.mrb[24].mxu1 %v2657_v51 }
 0xaa7   : > { %v2573_v18 = vpop.xlane.xlu0 %2572 }
 0xaa8   : > { %v2584_v7 = vmul.f32 0.0078125, %v2573_v18 }
 0xaa9   : > { %v2575_v53 = vpop.xlane.xlu1 %2574 }
 0xaaa   : > { %v2592_v21 = vadd.f32 1e-05, %v2584_v7  ;;  %v2585_v27 = vmul.f32 0.0078125, %v2575_v53  ;;  %v2811_v7 = vpack.c.bf16 %v2794_v55, %v2792_v38 }
 0xaab   : > { %v2577_v44 = vpop.xlane.xlu0 %2576 }
 0xaac   : > { %7669 = vrsqrt.f32 %v2592_v21  ;;  %v2593_v25 = vadd.f32 1e-05, %v2585_v27  ;;  %v2586_v29 = vmul.f32 0.0078125, %v2577_v44 }
 0xaad   : > { %v2579_v30 = vpop.xlane.xlu1 %2578 }
 0xaae   : > { %7671 = vrsqrt.f32 %v2593_v25  ;;  %v2594_v32 = vadd.f32 1e-05, %v2586_v29  ;;  %v2587_v31 = vmul.f32 0.0078125, %v2579_v30  ;;  %v3046_v25 = vmul.bf16 %v2811_v7, %v8793_v10 }
 0xaaf   : > { %v3048_v30 = vmul.bf16 %v2811_v7, %v8800_v15 }
 0xab0   : > { %7673 = vrsqrt.f32 %v2594_v32  ;;  %v2595_v39 = vadd.f32 1e-05, %v2587_v31  ;;  %v3050_v31 = vmul.bf16 %v2811_v7, %v8807_v20 }
 0xab2   : > { %7675 = vrsqrt.f32 %v2595_v39 }
 0xab6   : > { %v7670_v41 = vpop.eup %7669 }
 0xab7   : > { %v2608_v43 = vmul.f32 %v7670_v41, %v9139_v0  ;;  %v3052_v41 = vmul.bf16 %v2811_v7, %v8812_v23 }
 0xab8   : > { %v7672_v46 = vpop.eup %7671 }
 0xab9   : > { %v2609_v3 = vmul.f32 %v7672_v46, %v9141_v35  ;;  %v2622_v33 = vmul.f32 %v6125_v57, %v2608_v43 }
 0xaba   : > { %v7674_v48 = vpop.eup %7673 }
 0xabb   : > { %v2623_v34 = vmul.f32 %v6125_v57, %v2609_v3  ;;  %v2610_v36 = vmul.f32 %v7674_v48, %v9145_v5  ;;  %v9186_v37 = vadd.f32 %v6126_v60, %v2622_v33 }
 0xabc   : > { %v7676_v50 = vpop.eup %7675 }
 0xabd   : > { %v9188_v52 = vadd.f32 %v6126_v60, %v2623_v34  ;;  %v2611_v14 = vmul.f32 %v7676_v50, %v9149_v16  ;;  %v2624_v54 = vmul.f32 %v6125_v57, %v2610_v36  ;;  %v2788_v16 = vld [vmem:[#allocation4 + $0x40] sm:$0xff] }
 0xabe   : > { %v2810_v26 = vpack.c.bf16 %v2790_v63, %v2788_v16  ;;  %v2781_v16 = vld [vmem:[#allocation4 + $0x8] sm:$0xff]  ;;  %v2783_v63 = vld [vmem:[#allocation4 + $0x18] sm:$0xff] }
 0xabf   : > { %v2658_v56 = vpack.c.bf16 %v9188_v52, %v9186_v37  ;;  %v2625_v0 = vmul.f32 %v6125_v57, %v2611_v14  ;;  %v9193_v9 = vadd.f32 %v6126_v60, %v2624_v54  ;;  %v6127_v57 = vld [vmem:[#allocation8] ss:$0 sm:$0xff] }
 0xac0   : > { %v3045_v61 = vmul.bf16 %v2810_v26, %v8788_v6  ;;  %v3047_v29 = vmul.bf16 %v2810_v26, %v8795_v11  ;;  %v3049_v32 = vmul.bf16 %v2810_v26, %v8805_v19  ;;  %v3051_v39 = vmul.bf16 %v2810_v26, %v8810_v22  ;;  %v2785_v26 = vld [vmem:[#allocation4 + $0x28] sm:$0xff] }
 0xac1   : > { %6887 = vmatprep.mubr.bf16.mxu1 %v2658_v56  ;;  %v9195_v35 = vadd.f32 %v6126_v60, %v2625_v0 }
 0xac2   : > { %6969 = vmatprep.subr.bf16.mxu0 %v3045_v61 }
 0xac3   : > { %v2659_v5 = vpack.c.bf16 %v9195_v35, %v9193_v9 }
 0xac5   : > { %6888 = vmatmul.mubr.bf16.gmra.mrb[28].mxu1 %v2659_v5 }
 0xb57   : > { %v6885_v45 = vpop.f32.mrb[24].mxu1 }
 0xb58   : > { %v2758_v62 = vadd.f32 %v6885_v45, %v6127_v57  ;;  %v2749_v60 = vpop.f32.mrb[25].mxu1  ;;  %v2787_v45 = vld [vmem:[#allocation4 + $0x38] sm:$0xff] }
 0xb59   : > { %v2750_v24 = vadd.f32 %v6127_v57, %v2749_v60  ;;  %v6886_v58 = vpop.f32.mrb[26].mxu1 }
 0xb5a   : > { %v2761_v13 = vadd.f32 %v6886_v58, %v6127_v57  ;;  %v2752_v47 = vpop.f32.mrb[27].mxu1  ;;  %v2798_v28 = vmul.f32 0.17677669, %v2758_v62  ;;  %v2813_v62 = vpack.c.bf16 %v2787_v45, %v2785_v26 }
 0xb5b   : > { %v2753_v51 = vadd.f32 %v6127_v57, %v2752_v47  ;;  %v2796_v53 = vmul.f32 0.17677669, %v2750_v24 }
 0xb5c   : > { %v2799_v18 = vmul.f32 0.17677669, %v2761_v13  ;;  %v2825_v24 = vmul.bf16 %v2813_v62, %v8793_v10  ;;  %v2827_v47 = vmul.bf16 %v2813_v62, %v8800_v15  ;;  %v2831_v7 = vmul.bf16 %v2813_v62, %v8812_v23 }
 0xb5d   : > { %v2797_v21 = vmul.f32 0.17677669, %v2753_v51 }
 0xb5e   : > { %v2805_v27 = vpack.c.bf16 %v2799_v18, %v2798_v28  ;;  %v2829_v28 = vmul.bf16 %v2813_v62, %v8807_v20 }
 0xb5f   : > { %v2804_v44 = vpack.c.bf16 %v2797_v21, %v2796_v53 }
 0xb61   : > { %6907 = vmatprep.mubr.bf16.mxu0 %v2804_v44 }
 0xb62   : > { %6908 = vmatmul.mubr.bf16.vlgmr.msra.gmra.mrb[32].mxu0 %v2805_v27 }
 0xb63   : > { %6970 = vmatpush3.bf16.xpose.msra.mxu0 %v3045_v61  ;;  %v2812_v61 = vpack.c.bf16 %v2783_v63, %v2781_v16  ;;  %v2793_v16 = vld [vmem:[#allocation4 + $0x68] sm:$0xff]  ;;  %v2795_v63 = vld [vmem:[#allocation4 + $0x78] sm:$0xff] }
 0xb64   : > { %6971 = vmatprep.subr.bf16.mxu0 %v3046_v25 }
 0xb65   : > { %v2824_v60 = vmul.bf16 %v2812_v61, %v8788_v6  ;;  %v2828_v51 = vmul.bf16 %v2812_v61, %v8805_v19  ;;  %v2830_v18 = vmul.bf16 %v2812_v61, %v8810_v22 }
 0xb67   : > { %6911 = vmatprep.subr.bf16.mxu1 %v2824_v60 }
 0xb68   : > { %6912 = vmatpush3.bf16.msra.mxu1 %v2824_v60 }
 0xb69   : > { %6913 = vmatprep.subr.bf16.mxu1 %v2825_v24 }
 0xb6b   : > { %6972 = vmatpush3.bf16.xpose.msra.mxu0 %v3046_v25 }
 0xb6c   : > { %6973 = vmatprep.subr.bf16.mxu0 %v3047_v29  ;;  %6914 = vmatpush3.bf16.msra.mxu1 %v2825_v24 }
 0xb73   : > { %6974 = vmatpush3.bf16.xpose.msra.mxu0 %v3047_v29 }
 0xb74   : > { %6975 = vmatprep.subr.bf16.mxu0 %v3048_v30 }
 0xb7b   : > { %6976 = vmatpush3.bf16.xpose.msra.mxu0 %v3048_v30 }
 0xb7c   : > { %6977 = vmatprep.subr.bf16.mxu0 %v3049_v32 }
 0xb83   : > { %6978 = vmatpush3.bf16.xpose.msra.mxu0 %v3049_v32 }
 0xb84   : > { %6979 = vmatprep.subr.bf16.mxu0 %v3050_v31 }
 0xb8b   : > { %6980 = vmatpush3.bf16.xpose.msra.mxu0 %v3050_v31 }
 0xb8c   : > { %6981 = vmatprep.subr.bf16.mxu0 %v3051_v39 }
 0xb93   : > { %6982 = vmatpush3.bf16.xpose.msra.mxu0 %v3051_v39 }
 0xb94   : > { %6983 = vmatprep.subr.bf16.mxu0 %v3052_v41 }
 0xb98   : > { %v6889_v43 = vpop.f32.mrb[28].mxu1 }
 0xb99   : > { %v2774_v46 = vadd.f32 %v6889_v43, %v6127_v57  ;;  %v2765_v3 = vpop.f32.mrb[29].mxu1 }
 0xb9a   : > { %v2766_v33 = vadd.f32 %v6127_v57, %v2765_v3  ;;  %v6890_v48 = vpop.f32.mrb[30].mxu1 }
 0xb9b   : > { %v2777_v34 = vadd.f32 %v6890_v48, %v6127_v57  ;;  %v2768_v36 = vpop.f32.mrb[31].mxu1  ;;  %6984 = vmatpush3.bf16.xpose.msra.mxu0 %v3052_v41  ;;  %v2802_v14 = vmul.f32 0.17677669, %v2774_v46 }
 0xb9c   : > { %v2769_v50 = vadd.f32 %v6127_v57, %v2768_v36  ;;  %v2800_v56 = vmul.f32 0.17677669, %v2766_v33  ;;  %v2826_v57 = vmul.bf16 %v2812_v61, %v8795_v11  ;;  %v2815_v61 = vpack.c.bf16 %v2795_v63, %v2793_v16 }
 0xb9d   : > { %v2803_v54 = vmul.f32 0.17677669, %v2777_v34 }
 0xb9e   : > { %v2801_v0 = vmul.f32 0.17677669, %v2769_v50  ;;  %6915 = vmatprep.subr.bf16.mxu1 %v2826_v57  ;;  %v3054_v45 = vmul.bf16 %v2815_v61, %v8793_v10  ;;  %v3056_v60 = vmul.bf16 %v2815_v61, %v8800_v15 }
 0xb9f   : > { %v2807_v5 = vpack.c.bf16 %v2803_v54, %v2802_v14  ;;  %6916 = vmatpush3.bf16.msra.mxu1 %v2826_v57 }
 0xba0   : > { %v2806_v59 = vpack.c.bf16 %v2801_v0, %v2800_v56  ;;  %6917 = vmatprep.subr.bf16.mxu1 %v2827_v47  ;;  %v2789_v0 = vld [vmem:[#allocation4 + $0x48] sm:$0xff] }
 0xba2   : > { %6985 = vmatprep.mubr.bf16.mxu0 %v2806_v59 }
 0xba3   : > { %6986 = vmatmul.mubr.bf16.vlgmr.msra.gmra.mrb[36].mxu0 %v2807_v5  ;;  %6918 = vmatpush3.bf16.msra.mxu1 %v2827_v47  ;;  %v2791_v5 = vld [vmem:[#allocation4 + $0x58] sm:$0xff] }
 0xba4   : > { %6919 = vmatprep.subr.bf16.mxu1 %v2828_v51  ;;  %v2814_v59 = vpack.c.bf16 %v2791_v5, %v2789_v0 }
 0xba6   : > { %v3053_v26 = vmul.bf16 %v2814_v59, %v8788_v6  ;;  %v3055_v62 = vmul.bf16 %v2814_v59, %v8795_v11 }
 0xba7   : > { %6920 = vmatpush3.bf16.msra.mxu1 %v2828_v51 }
 0xba8   : > { %6921 = vmatprep.subr.bf16.mxu1 %v2829_v28 }
 0xbab   : > { %6922 = vmatpush3.bf16.msra.mxu1 %v2829_v28 }
 0xbac   : > { %6923 = vmatprep.subr.bf16.mxu1 %v2830_v18 }
 0xbaf   : > { %6924 = vmatpush3.bf16.msra.mxu1 %v2830_v18  ;;  %v3058_v18 = vmul.bf16 %v2815_v61, %v8807_v20 }
 0xbb0   : > { %6925 = vmatprep.subr.bf16.mxu1 %v2831_v7 }
 0xbb3   : > { %6926 = vmatpush3.bf16.msra.mxu1 %v2831_v7 }
 0xbb4   : > { %7184 = vmatprep.subr.bf16.mxu1 %v8788_v6 }
 0xc35   : > { %v6909_v58 = vpop.f32.mrb[32].mxu0 }
 0xc36   : > { %v2866_v38 = vpop.f32.mrb[33].mxu0 }
 0xc37   : > { %2881 = vmax.xlane.f32.xlu0 %v2866_v38  ;;  %v6910_v55 = vpop.f32.mrb[34].mxu0 }
 0xc38   : > { %v2869_v13 = vpop.f32.mrb[35].mxu0 }
 0xc39   : > { %2883 = vmax.xlane.f32.xlu1 %v2869_v13 }
 0xc3b   : > { %2885 = vmax.xlane.f32.xlu0 %v6909_v58 }
 0xc3d   : > { %2887 = vmax.xlane.f32.xlu1 %v6910_v55 }
 0xc76   : > { %v9218_v53 = vpop.f32.mrb[36].mxu0 }
 0xc77   : > { %v9220_v21 = vpop.f32.mrb[37].mxu0 }
 0xc78   : > { %3110 = vmax.xlane.f32.xlu0 %v9220_v21  ;;  %v9223_v27 = vpop.f32.mrb[38].mxu0 }
 0xc79   : > { %v9225_v44 = vpop.f32.mrb[39].mxu0 }
 0xc7a   : > { %3112 = vmax.xlane.f32.xlu1 %v9225_v44 }
 0xc7c   : > { %3114 = vmax.xlane.f32.xlu0 %v9218_v53 }
 0xc7e   : > { %3116 = vmax.xlane.f32.xlu1 %v9223_v27 }
 0xcc4   : > { %v2882_v25 = vpop.xlane.xlu0 %2881 }
 0xcc5   : > { %v2889_v29 = vsub.f32 %v2866_v38, %v2882_v25 }
 0xcc6   : > { %v2884_v30 = vpop.xlane.xlu1 %2883 }
 0xcc7   : > { %v2893_v32 = vmul.f32 1.442695, %v2889_v29  ;;  %v2890_v31 = vsub.f32 %v2869_v13, %v2884_v30  ;;  %v3059_v30 = vmul.bf16 %v2814_v59, %v8810_v22 }
 0xcc8   : > { %v2886_v39 = vpop.xlane.xlu0 %2885 }
 0xcc9   : > { %v2895_v41 = vmul.f32 1.442695, %v2890_v31  ;;  %v2891_v43 = vsub.f32 %v6909_v58, %v2886_v39  ;;  %7677 = vpow2.f32 %v2893_v32  ;;  %v3057_v58 = vmul.bf16 %v2814_v59, %v8805_v19 }
 0xcca   : > { %v2888_v46 = vpop.xlane.xlu1 %2887 }
 0xccb   : > { %7679 = vpow2.f32 %v2895_v41  ;;  %v2897_v3 = vmul.f32 1.442695, %v2891_v43  ;;  %v2892_v33 = vsub.f32 %v6910_v55, %v2888_v46  ;;  %v7542_v43 = vld [vmem:[#allocation11 + $0x8] sm:$0xff]  }
 0xccd   : > { %v2899_v48 = vmul.f32 1.442695, %v2892_v33  ;;  %7681 = vpow2.f32 %v2897_v3 }
 0xccf   : > { %7683 = vpow2.f32 %v2899_v48 }
 0xcd3   : > { %v7678_v34 = vpop.eup %7677 }
 0xcd5   : > { %v7680_v36 = vpop.eup %7679 }
 0xcd6   : > { %v2901_v50 = vpack.c.bf16 %v7680_v36, %v7678_v34 }
 0xcd7   : > { %v7682_v14 = vpop.eup %7681 }
 0xcd8   : > { %6927 = vmatprep.mubr.bf16.mxu1 %v2901_v50 }
 0xcd9   : > { %v7684_v54 = vpop.eup %7683 }
 0xcda   : > { %v2902_v56 = vpack.c.bf16 %v7684_v54, %v7682_v14 }
 0xcdc   : > { %6928 = vmatmul.mubr.bf16.vlgmr.msra.gmra.mrb[32].mxu1 %v2902_v56 }
 0xcdd   : > { %7186 = vmatpush3.bf16.msra.mxu1 %v8788_v6  ;;  %6963 = vmatprep.mubr.f32.mxu1 %v7678_v34 }
 0xcde   : > { %7188 = vmatprep.subr.bf16.mxu1 %v8793_v10 }
 0xce1   : > { %7190 = vmatpush3.bf16.msra.mxu1 %v8793_v10 }
 0xce2   : > { %7192 = vmatprep.subr.bf16.mxu1 %v8795_v11 }
 0xce5   : > { %7194 = vmatpush3.bf16.msra.mxu1 %v8795_v11 }
 0xce6   : > { %7196 = vmatprep.subr.bf16.mxu1 %v8800_v15 }
 0xce9   : > { %7198 = vmatpush3.bf16.msra.mxu1 %v8800_v15 }
 0xcea   : > { %7200 = vmatprep.subr.bf16.mxu1 %v8805_v19 }
 0xced   : > { %7202 = vmatpush3.bf16.msra.mxu1 %v8805_v19 }
 0xcee   : > { %7204 = vmatprep.subr.bf16.mxu1 %v8807_v20 }
 0xcf1   : > { %7206 = vmatpush3.bf16.msra.mxu1 %v8807_v20 }
 0xcf2   : > { %7208 = vmatprep.subr.bf16.mxu1 %v8810_v22 }
 0xcf5   : > { %7210 = vmatpush3.bf16.msra.mxu1 %v8810_v22 }
 0xcf6   : > { %7212 = vmatprep.subr.bf16.mxu1 %v8812_v23 }
 0xcf9   : > { %7214 = vmatpush3.bf16.msra.mxu1 %v8812_v23 }
 0xcfa   : > { %6989 = vmatprep.subr.bf16.mxu1 %v3053_v26 }
 0xcfc   : > { %6964 = vmatmul.mubr.f32.vlgmr.msra.gmra.mrb[36].mxu1 %v7680_v36 }
 0xcfd   : > { %6966 = vmatprep.mubr.f32.mxu1 %v7682_v14  ;;  %6990 = vmatpush3.bf16.msra.mxu1 %v3053_v26 }
 0xcfe   : > { %6991 = vmatprep.subr.bf16.mxu1 %v3054_v45 }
 0xd00   : > { %6967 = vmatmul.mubr.f32.gmra.mrb[38].mxu1 %v7684_v54 }
 0xd01   : > { %6992 = vmatpush3.bf16.msra.mxu1 %v3054_v45 }
 0xd02   : > { %6993 = vmatprep.subr.bf16.mxu1 %v3055_v62 }
 0xd05   : > { %6994 = vmatpush3.bf16.msra.mxu1 %v3055_v62  ;;  %v3111_v24 = vpop.xlane.xlu0 %3110 }
 0xd06   : > { %v3118_v57 = vsub.f32 %v9220_v21, %v3111_v24  ;;  %6995 = vmatprep.subr.bf16.mxu1 %v3056_v60 }
 0xd07   : > { %v3113_v38 = vpop.xlane.xlu1 %3112 }
 0xd08   : > { %v3122_v55 = vmul.f32 1.442695, %v3118_v57  ;;  %v3119_v13 = vsub.f32 %v9225_v44, %v3113_v38 }
 0xd09   : > { %6996 = vmatpush3.bf16.msra.mxu1 %v3056_v60  ;;  %v3115_v47 = vpop.xlane.xlu0 %3114 }
 0xd0a   : > { %v3124_v51 = vmul.f32 1.442695, %v3119_v13  ;;  %v3120_v28 = vsub.f32 %v9218_v53, %v3115_v47  ;;  %6997 = vmatprep.subr.bf16.mxu1 %v3057_v58  ;;  %7685 = vpow2.f32 %v3122_v55  ;;  %v3060_v53 = vmul.bf16 %v2815_v61, %v8812_v23 }
 0xd0b   : > { %v3117_v7 = vpop.xlane.xlu1 %3116 }
 0xd0c   : > { %7687 = vpow2.f32 %v3124_v51  ;;  %v3126_v25 = vmul.f32 1.442695, %v3120_v28  ;;  %v3121_v21 = vsub.f32 %v9223_v27, %v3117_v7 }
 0xd0d   : > { %6998 = vmatpush3.bf16.msra.mxu1 %v3057_v58 }
 0xd0e   : > { %v3128_v29 = vmul.f32 1.442695, %v3121_v21  ;;  %6999 = vmatprep.subr.bf16.mxu1 %v3058_v18  ;;  %7689 = vpow2.f32 %v3126_v25 }
 0xd10   : > { %7691 = vpow2.f32 %v3128_v29 }
 0xd11   : > { %7000 = vmatpush3.bf16.msra.mxu1 %v3058_v18 }
 0xd12   : > { %7001 = vmatprep.subr.bf16.mxu1 %v3059_v30 }
 0xd14   : > { %v7686_v44 = vpop.eup %7685 }
 0xd15   : > { %7002 = vmatpush3.bf16.msra.mxu1 %v3059_v30 }
 0xd16   : > { %v7688_v32 = vpop.eup %7687  ;;  %7003 = vmatprep.subr.bf16.mxu1 %v3060_v53 }
 0xd17   : > { %v3130_v31 = vpack.c.bf16 %v7688_v32, %v7686_v44 }
 0xd18   : > { %v7690_v39 = vpop.eup %7689 }
 0xd19   : > { %7004 = vmatpush3.bf16.msra.mxu1 %v3060_v53  ;;  %7005 = vmatprep.mubr.bf16.mxu1 %v3130_v31  ;;  %v6136_v53 = vld [vmem:[#allocation13] ss:$0 sm:$0xff] }
 0xd1a   : > { %v7692_v27 = vpop.eup %7691  ;;  %7216 = vmatprep.subr.bf16.mxu1 %v8788_v6 }
 0xd1b   : > { %v3131_v41 = vpack.c.bf16 %v7692_v27, %v7690_v39 }
 0xd1d   : > { %7006 = vmatmul.mubr.bf16.vlgmr.msra.gmra.mrb[40].mxu1 %v3131_v41 }
 0xd1e   : > { %7218 = vmatpush3.bf16.msra.mxu1 %v8788_v6  ;;  %7041 = vmatprep.mubr.f32.mxu1 %v7686_v44  ;;  %v7541_v6 = vld [vmem:[#allocation11] sm:$0xff]  }
 0xd1f   : > { %7220 = vmatprep.subr.bf16.mxu1 %v8793_v10  ;;  %7047 = vmatprep.subr.bf16.mxu0 %v7541_v6 }
 0xd20   : > { %7048 = vmatpush3.bf16.msra.mxu0 %v7541_v6 }
 0xd21   : > { %7049 = vmatprep.subr.bf16.mxu0 %v7542_v43 }
 0xd22   : > { %7222 = vmatpush3.bf16.msra.mxu1 %v8793_v10  ;;  %v7543_v10 = vld [vmem:[#allocation11 + $0x10] sm:$0xff]  }
 0xd23   : > { %7224 = vmatprep.subr.bf16.mxu1 %v8795_v11 }
 0xd24   : > { %7050 = vmatpush3.bf16.msra.mxu0 %v7542_v43 }
 0xd25   : > { %7051 = vmatprep.subr.bf16.mxu0 %v7543_v10 }
 0xd26   : > { %7226 = vmatpush3.bf16.msra.mxu1 %v8795_v11  ;;  %v7544_v11 = vld [vmem:[#allocation11 + $0x18] sm:$0xff]  }
 0xd27   : > { %7228 = vmatprep.subr.bf16.mxu1 %v8800_v15 }
 0xd28   : > { %7052 = vmatpush3.bf16.msra.mxu0 %v7543_v10 }
 0xd29   : > { %7053 = vmatprep.subr.bf16.mxu0 %v7544_v11 }
 0xd2a   : > { %7230 = vmatpush3.bf16.msra.mxu1 %v8800_v15  ;;  %v7545_v15 = vld [vmem:[#allocation11 + $0x20] sm:$0xff]  }
 0xd2b   : > { %7232 = vmatprep.subr.bf16.mxu1 %v8805_v19 }
 0xd2c   : > { %7054 = vmatpush3.bf16.msra.mxu0 %v7544_v11 }
 0xd2d   : > { %7055 = vmatprep.subr.bf16.mxu0 %v7545_v15 }
 0xd2e   : > { %7234 = vmatpush3.bf16.msra.mxu1 %v8805_v19  ;;  %v7546_v19 = vld [vmem:[#allocation11 + $0x28] sm:$0xff]  }
 0xd2f   : > { %7236 = vmatprep.subr.bf16.mxu1 %v8807_v20 }
 0xd30   : > { %7056 = vmatpush3.bf16.msra.mxu0 %v7545_v15 }
 0xd31   : > { %7057 = vmatprep.subr.bf16.mxu0 %v7546_v19 }
 0xd32   : > { %7238 = vmatpush3.bf16.msra.mxu1 %v8807_v20  ;;  %v7547_v20 = vld [vmem:[#allocation11 + $0x30] sm:$0xff]  }
 0xd33   : > { %7240 = vmatprep.subr.bf16.mxu1 %v8810_v22 }
 0xd34   : > { %7058 = vmatpush3.bf16.msra.mxu0 %v7546_v19 }
 0xd35   : > { %7059 = vmatprep.subr.bf16.mxu0 %v7547_v20 }
 0xd36   : > { %7242 = vmatpush3.bf16.msra.mxu1 %v8810_v22  ;;  %v7548_v22 = vld [vmem:[#allocation11 + $0x38] sm:$0xff]  }
 0xd37   : > { %7244 = vmatprep.subr.bf16.mxu1 %v8812_v23 }
 0xd38   : > { %7060 = vmatpush3.bf16.msra.mxu0 %v7547_v20 }
 0xd39   : > { %7061 = vmatprep.subr.bf16.mxu0 %v7548_v22 }
 0xd3a   : > { %7246 = vmatpush3.bf16.msra.mxu1 %v8812_v23 }
 0xd3c   : > { %7062 = vmatpush3.bf16.msra.mxu0 %v7548_v22 }
 0xd3d   : > { %7042 = vmatmul.mubr.f32.vlgmr.msra.gmra.mrb[44].mxu1 %v7688_v32 }
 0xd3e   : > { %7044 = vmatprep.mubr.f32.mxu1 %v7690_v39 }
 0xd41   : > { %7045 = vmatmul.mubr.f32.gmra.mrb[46].mxu1 %v7692_v27 }
 0xd42   : > { %3790 = vmatprep.mubr.bf16.mxu1 %v8399_v2 }
 0xdaf   : > { %v6929_v23 = vpop.f32.mrb[32].mxu1 }
 0xdb0   : > { %v2937_v46 = vpop.f32.mrb[33].mxu1 }
 0xdb1   : > { %v6930_v3 = vpop.f32.mrb[34].mxu1 }
 0xdb2   : > { %v2940_v33 = vpop.f32.mrb[35].mxu1 }
 0xdcf   : > { %v6965_v48 = vpop.f32.mrb[36].mxu1 }
 0xdd0   : > { %7693 = vrcp.f32 %v6965_v48  ;;  %v3018_v34 = vpop.f32.mrb[37].mxu1 }
 0xdd1   : > { %7695 = vrcp.f32 %v3018_v34 }
 0xdd3   : > { %v6968_v36 = vpop.f32.mrb[38].mxu1 }
 0xdd4   : > { %7697 = vrcp.f32 %v6968_v36  ;;  %v3028_v50 = vpop.f32.mrb[39].mxu1  ;;  %v7551_v36 = vld [vmem:[%s10555_s2 + $0x4] ss:$16 sps:$4 sm:$0xff]  }
 0xdd5   : > { %7699 = vrcp.f32 %v3028_v50  ;;  %v7552_v50 = vld [vmem:[%s10555_s2 + $0x8] ss:$16 sps:$4 sm:$0xff]   ;;  %3758 = vmatprep.subr.bf16.mxu1 %v7551_v36 }
 0xdda   : > { %v7694_v14 = vpop.eup %7693 }
 0xddb   : > { %v7696_v54 = vpop.eup %7695  ;;  %v3042_v56 = vmul.f32 %v7694_v14, %v2940_v33  ;;  %v7554_v14 = vld [vmem:[%s10555_s2 + $0xc] ss:$16 sps:$4 sm:$0xff]  }
 0xddc   : > { %v3041_v0 = vmul.f32 %v7696_v54, %v2937_v46  ;;  %v7557_v54 = vld [vmem:[%s10555_s2 + $0x24] ss:$16 sps:$4 sm:$0xff]   ;;  %3831 = vmatprep.subr.bf16.mxu0 %v7554_v14 }
 0xdde   : > { %v7698_v5 = vpop.eup %7697  ;;  %v3290_v59 = vpack.c.bf16 %v3042_v56, %v3041_v0  ;;  %v7555_v56 = vld [vmem:[%s10555_s2 + $0x20] ss:$16 sps:$4 sm:$0xff]  }
 0xddf   : > { %v7700_v16 = vpop.eup %7699  ;;  %v3044_v63 = vmul.f32 %v7698_v5, %v6930_v3 }
 0xde0   : > { %7063 = vmatprep.mubr.bf16.mxu0 %v3290_v59  ;;  %v3043_v26 = vmul.f32 %v7700_v16, %v6929_v23 }
 0xde2   : > { %v3291_v61 = vpack.c.bf16 %v3044_v63, %v3043_v26 }
 0xde4   : > { %7064 = vmatmul.mubr.bf16.vlgmr.msra.gmra.mrb[40].mxu0 %v3291_v61 }
 0xde5   : > { %3832 = vmatpush1.bf16.msra.mxu0 %v7552_v50 }
 0xdf0   : > { %v7007_v45 = vpop.f32.mrb[40].mxu1 }
 0xdf1   : > { %v3166_v62 = vpop.f32.mrb[41].mxu1 }
 0xdf2   : > { %v7008_v60 = vpop.f32.mrb[42].mxu1 }
 0xdf3   : > { %v3169_v24 = vpop.f32.mrb[43].mxu1 }
 0xe10   : > { %v7043_v57 = vpop.f32.mrb[44].mxu1 }
 0xe11   : > { %7701 = vrcp.f32 %v7043_v57  ;;  %v3247_v58 = vpop.f32.mrb[45].mxu1 }
 0xe12   : > { %7703 = vrcp.f32 %v3247_v58 }
 0xe14   : > { %v7046_v38 = vpop.f32.mrb[46].mxu1 }
 0xe15   : > { %7705 = vrcp.f32 %v7046_v38  ;;  %v3257_v55 = vpop.f32.mrb[47].mxu1 }
 0xe16   : > { %7707 = vrcp.f32 %v3257_v55 }
 0xe1b   : > { %v7702_v13 = vpop.eup %7701 }
 0xe1c   : > { %v7704_v47 = vpop.eup %7703  ;;  %v3271_v51 = vmul.f32 %v7702_v13, %v3169_v24  ;;  %v7563_v13 = vld [vmem:[%s10555_s2 + $0x44] ss:$16 sps:$4 sm:$0xff]  }
 0xe1d   : > { %v3270_v28 = vmul.f32 %v7704_v47, %v3166_v62  ;;  %v7566_v47 = vld [vmem:[%s10555_s2 + $0x4c] ss:$16 sps:$4 sm:$0xff]  }
 0xe1f   : > { %v7706_v18 = vpop.eup %7705  ;;  %v3292_v7 = vpack.c.bf16 %v3271_v51, %v3270_v28  ;;  %v7561_v51 = vld [vmem:[%s10555_s2 + $0x40] ss:$16 sps:$4 sm:$0xff]   ;;  %v7564_v28 = vld [vmem:[%s10555_s2 + $0x48] ss:$16 sps:$4 sm:$0xff]  }
 0xe20   : > { %v7708_v25 = vpop.eup %7707  ;;  %v3273_v21 = vmul.f32 %v7706_v18, %v7008_v60  ;;  %v7569_v18 = vld [vmem:[%s10555_s2 + $0x64] ss:$16 sps:$4 sm:$0xff]  }
 0xe21   : > { %7067 = vmatprep.mubr.bf16.mxu0 %v3292_v7  ;;  %v3272_v29 = vmul.f32 %v7708_v25, %v7007_v45  ;;  %v7572_v7 = vld [vmem:[%s10555_s2 + $0x6c] ss:$16 sps:$4 sm:$0xff]   ;;  %v7567_v25 = vld [vmem:[%s10555_s2 + $0x60] ss:$16 sps:$4 sm:$0xff]  }
 0xe23   : > { %v3293_v30 = vpack.c.bf16 %v3273_v21, %v3272_v29  ;;  %v7570_v21 = vld [vmem:[%s10555_s2 + $0x68] ss:$16 sps:$4 sm:$0xff]   ;;  %v7575_v29 = vld [vmem:[%s10555_s2 + $0x84] ss:$16 sps:$4 sm:$0xff]  }
 0xe25   : > { %7068 = vmatmul.mubr.bf16.gmra.mrb[44].mxu0 %v3293_v30  ;;  %v7578_v30 = vld [vmem:[%s10555_s2 + $0x8c] ss:$16 sps:$4 sm:$0xff]  }
 0xe26   : > { %3863 = vmatprep.mubr.bf16.mxu0 %v8399_v2 }
 0xeb7   : > { %v7065_v44 = vpop.f32.mrb[40].mxu0 }
 0xeb8   : > { %v3383_v32 = vpop.f32.mrb[41].mxu0  ;;  %v3392_v41 = vadd.f32 %v7065_v44, %v6136_v53  ;;  %v7576_v44 = vld [vmem:[%s10555_s2 + $0x88] ss:$16 sps:$4 sm:$0xff]  }
 0xeb9   : > { %v3384_v31 = vadd.f32 %v6136_v53, %v3383_v32  ;;  %v7066_v39 = vpop.f32.mrb[42].mxu0  ;;  %v7581_v32 = vld [vmem:[%s10555_s2 + $0xa4] ss:$16 sps:$4 sm:$0xff]  }
 0xeba   : > { %v3386_v27 = vpop.f32.mrb[43].mxu0  ;;  %v3395_v10 = vadd.f32 %v7066_v39, %v6136_v53  ;;  %v3416_v15 = vadd.f32 %v3392_v41, %v9177_v49  ;;  %v7579_v39 = vld [vmem:[%s10555_s2 + $0xa0] ss:$16 sps:$4 sm:$0xff]   ;;  %v7587_v41 = vld [vmem:[%s10555_s2 + $0xc4] ss:$16 sps:$4 sm:$0xff]  }
 0xebb   : > { %v3387_v6 = vadd.f32 %v6136_v53, %v3386_v27  ;;  %v3414_v43 = vadd.f32 %v3384_v31, %v9171_v4  ;;  %v7584_v31 = vld [vmem:[%s10555_s2 + $0xac] ss:$16 sps:$4 sm:$0xff]   ;;  %v7582_v27 = vld [vmem:[%s10555_s2 + $0xa8] ss:$16 sps:$4 sm:$0xff]  }
 0xebc   : > { %v3417_v19 = vadd.f32 %v3395_v10, %v9179_v17  ;;  %v7588_v10 = vld [vmem:[%s10555_s2 + $0xc8] ss:$16 sps:$4 sm:$0xff]  }
 0xebd   : > { %3424 = vadd.xlane.f32.xlu0 %v3414_v43  ;;  %v3415_v11 = vadd.f32 %v3387_v6, %v9173_v8  ;;  %v7590_v6 = vld [vmem:[%s10555_s2 + $0xcc] ss:$16 sps:$4 sm:$0xff]  }
 0xebf   : > { %3426 = vadd.xlane.f32.xlu1 %v3415_v11 }
 0xec1   : > { %3428 = vadd.xlane.f32.xlu0 %v3416_v15 }
 0xec3   : > { %3430 = vadd.xlane.f32.xlu1 %v3417_v19 }
 0xef8   : > { %v7069_v20 = vpop.f32.mrb[44].mxu0 }
 0xef9   : > { %v3399_v22 = vpop.f32.mrb[45].mxu0  ;;  %v3408_v3 = vadd.f32 %v7069_v20, %v6136_v53  ;;  %v7596_v20 = vld [vmem:[%s10555_s2 + $0xec] ss:$16 sps:$4 sm:$0xff]  }
 0xefa   : > { %v3400_v23 = vadd.f32 %v6136_v53, %v3399_v22  ;;  %v7070_v46 = vpop.f32.mrb[46].mxu0 }
 0xefb   : > { %v3402_v4 = vpop.f32.mrb[47].mxu0  ;;  %v3411_v49 = vadd.f32 %v7070_v46, %v6136_v53  ;;  %v9288_v48 = vadd.f32 %v3408_v3, %v9193_v9  ;;  %v7558_v9 = vld [vmem:[%s10555_s2 + $0x28] ss:$16 sps:$4 sm:$0xff]  }
 0xefc   : > { %v3403_v33 = vadd.f32 %v6136_v53, %v3402_v4  ;;  %v9280_v8 = vadd.f32 %v3400_v23, %v9186_v37  ;;  %v7549_v37 = vld [vmem:[%s10555_s2] ss:$16 sps:$4 sm:$0xff]  }
 0xefd   : > { %v9292_v34 = vadd.f32 %v3411_v49, %v9195_v35  ;;  %3759 = vmatpush1.bf16.msra.mxu1 %v7549_v37  ;;  %v7573_v53 = vld [vmem:[%s10555_s2 + $0x80] ss:$16 sps:$4 sm:$0xff]  }
 0xefe   : > { %3432 = vadd.xlane.f32.xlu0 %v9280_v8  ;;  %v9284_v17 = vadd.f32 %v3403_v33, %v9188_v52  ;;  %v7560_v52 = vld [vmem:[%s10555_s2 + $0x2c] ss:$16 sps:$4 sm:$0xff]   ;;  %3760 = vmatprep.subr.bf16.mxu1 %v7557_v54 }
 0xeff   : > { %3833 = vmatprep.subr.bf16.mxu0 %v7560_v52 }
 0xf00   : > { %3434 = vadd.xlane.f32.xlu1 %v9284_v17  ;;  %3834 = vmatpush1.bf16.msra.mxu0 %v7558_v9 }
 0xf01   : > { %3761 = vmatpush1.bf16.msra.mxu1 %v7555_v56  ;;  %3835 = vmatprep.subr.bf16.mxu0 %v7566_v47 }
 0xf02   : > { %3436 = vadd.xlane.f32.xlu0 %v9288_v48  ;;  %3762 = vmatprep.subr.bf16.mxu1 %v7563_v13 }
 0xf04   : > { %3438 = vadd.xlane.f32.xlu1 %v9292_v34  ;;  %3836 = vmatpush1.bf16.msra.mxu0 %v7564_v28 }
 0xf05   : > { %3763 = vmatpush1.bf16.msra.mxu1 %v7561_v51  ;;  %3837 = vmatprep.subr.bf16.mxu0 %v7572_v7 }
 0xf06   : > { %3764 = vmatprep.subr.bf16.mxu1 %v7569_v18  ;;  %v6146_v18 = vld [vmem:[#allocation20] ss:$0 sm:$0xff] }
 0xf08   : > { %3838 = vmatpush1.bf16.msra.mxu0 %v7570_v21 }
 0xf09   : > { %3765 = vmatpush1.bf16.msra.mxu1 %v7567_v25  ;;  %3839 = vmatprep.subr.bf16.mxu0 %v7578_v30 }
 0xf0a   : > { %3766 = vmatprep.subr.bf16.mxu1 %v7575_v29 }
 0xf0c   : > { %3840 = vmatpush1.bf16.msra.mxu0 %v7576_v44 }
 0xf0d   : > { %3767 = vmatpush1.bf16.msra.mxu1 %v7573_v53  ;;  %3841 = vmatprep.subr.bf16.mxu0 %v7584_v31 }
 0xf0e   : > { %3768 = vmatprep.subr.bf16.mxu1 %v7581_v32 }
 0xf10   : > { %3842 = vmatpush1.bf16.msra.mxu0 %v7582_v27 }
 0xf11   : > { %3769 = vmatpush1.bf16.msra.mxu1 %v7579_v39  ;;  %3843 = vmatprep.subr.bf16.mxu0 %v7590_v6 }
 0xf12   : > { %3770 = vmatprep.subr.bf16.mxu1 %v7587_v41 }
 0xf14   : > { %3844 = vmatpush1.bf16.msra.mxu0 %v7588_v10 }
 0xf15   : > { %3845 = vmatprep.subr.bf16.mxu0 %v7596_v20 }
 0xf4a   : > { %v3425_v35 = vpop.xlane.xlu0 %3424 }
 0xf4b   : > { %v3440_v0 = vmul.f32 0.0078125, %v3425_v35 }
 0xf4c   : > { %v3427_v5 = vpop.xlane.xlu1 %3426 }
 0xf4d   : > { %v9303_v59 = vsub.f32 %v3414_v43, %v3440_v0  ;;  %v3441_v16 = vmul.f32 0.0078125, %v3427_v5  ;;  %v7585_v43 = vld [vmem:[%s10555_s2 + $0xc0] ss:$16 sps:$4 sm:$0xff]  }
 0xf4e   : > { %v3429_v63 = vpop.xlane.xlu0 %3428  ;;  %3771 = vmatpush1.bf16.msra.mxu1 %v7585_v43 }
 0xf4f   : > { %v9305_v26 = vsub.f32 %v3415_v11, %v3441_v16  ;;  %v3442_v61 = vmul.f32 0.0078125, %v3429_v63  ;;  %v3456_v45 = vmul.f32 %v9303_v59, %v9303_v59  ;;  %v7591_v11 = vld [vmem:[%s10555_s2 + $0xe0] ss:$16 sps:$4 sm:$0xff]  }
 0xf50   : > { %v3431_v62 = vpop.xlane.xlu1 %3430 }
 0xf51   : > { %v9309_v60 = vsub.f32 %v3416_v15, %v3442_v61  ;;  %v3443_v24 = vmul.f32 0.0078125, %v3431_v62  ;;  %3464 = vadd.xlane.f32.xlu0 %v3456_v45  ;;  %v3457_v57 = vmul.f32 %v9305_v26, %v9305_v26  ;;  %v7593_v15 = vld [vmem:[%s10555_s2 + $0xe4] ss:$16 sps:$4 sm:$0xff]  }
 0xf52   : > { %3772 = vmatprep.subr.bf16.mxu1 %v7593_v15 }
 0xf53   : > { %v9313_v58 = vsub.f32 %v3417_v19, %v3443_v24  ;;  %3466 = vadd.xlane.f32.xlu1 %v3457_v57  ;;  %v3458_v38 = vmul.f32 %v9309_v60, %v9309_v60  ;;  %v7594_v19 = vld [vmem:[%s10555_s2 + $0xe8] ss:$16 sps:$4 sm:$0xff]   ;;  %3773 = vmatpush1.bf16.msra.mxu1 %v7591_v11 }
 0xf54   : > { %3846 = vmatpush1.bf16.msra.mxu0 %v7594_v19 }
 0xf55   : > { %3468 = vadd.xlane.f32.xlu0 %v3458_v38  ;;  %v3459_v55 = vmul.f32 %v9313_v58, %v9313_v58  ;;  %v6145_v38 = vld [vmem:[%s10556_s1] ss:$0 sm:$0xff] }
 0xf57   : > { %3470 = vadd.xlane.f32.xlu1 %v3459_v55 }
 0xf8b   : > { %v3433_v22 = vpop.xlane.xlu0 %3432 }
 0xf8c   : > { %v3444_v23 = vmul.f32 0.0078125, %v3433_v22 }
 0xf8d   : > { %v3435_v46 = vpop.xlane.xlu1 %3434 }
 0xf8e   : > { %v9344_v4 = vsub.f32 %v9280_v8, %v3444_v23  ;;  %v3445_v3 = vmul.f32 0.0078125, %v3435_v46 }
 0xf8f   : > { %v3437_v33 = vpop.xlane.xlu0 %3436 }
 0xf90   : > { %v9347_v49 = vsub.f32 %v9284_v17, %v3445_v3  ;;  %v3446_v37 = vmul.f32 0.0078125, %v3437_v33  ;;  %v3460_v36 = vmul.f32 %v9344_v4, %v9344_v4 }
 0xf91   : > { %v3439_v50 = vpop.xlane.xlu1 %3438 }
 0xf92   : > { %v9352_v14 = vsub.f32 %v9288_v48, %v3446_v37  ;;  %v3447_v54 = vmul.f32 0.0078125, %v3439_v50  ;;  %3472 = vadd.xlane.f32.xlu0 %v3460_v36  ;;  %v3461_v52 = vmul.f32 %v9347_v49, %v9347_v49 }
 0xf94   : > { %v9357_v8 = vsub.f32 %v9292_v34, %v3447_v54  ;;  %3474 = vadd.xlane.f32.xlu1 %v3461_v52  ;;  %v3462_v17 = vmul.f32 %v9352_v14, %v9352_v14 }
 0xf96   : > { %3476 = vadd.xlane.f32.xlu0 %v3462_v17  ;;  %v3463_v56 = vmul.f32 %v9357_v8, %v9357_v8 }
 0xf98   : > { %3478 = vadd.xlane.f32.xlu1 %v3463_v56 }
 0xfde   : > { %v3465_v9 = vpop.xlane.xlu0 %3464 }
 0xfdf   : > { %v3480_v48 = vmul.f32 0.0078125, %v3465_v9 }
 0xfe0   : > { %v3467_v35 = vpop.xlane.xlu1 %3466 }
 0xfe1   : > { %v3488_v0 = vadd.f32 1e-05, %v3480_v48  ;;  %v3481_v5 = vmul.f32 0.0078125, %v3467_v35 }
 0xfe2   : > { %v3469_v16 = vpop.xlane.xlu0 %3468 }
 0xfe3   : > { %7709 = vrsqrt.f32 %v3488_v0  ;;  %v3489_v63 = vadd.f32 1e-05, %v3481_v5  ;;  %v3482_v34 = vmul.f32 0.0078125, %v3469_v16  ;;  %v7597_v0 = vld [vmem:[%s10562_s18 + $0x40] sm:$0xff]  }
 0xfe4   : > { %v3471_v61 = vpop.xlane.xlu1 %3470  ;;  %v9404_v5 = vld [vmem:[%s10562_s18 + $0xc0] sm:$0xff]   ;;  %6535 = vmatprep.subr.bf16.mxu1 %v7597_v0 }
 0xfe5   : > { %7711 = vrsqrt.f32 %v3489_v63  ;;  %v3490_v45 = vadd.f32 1e-05, %v3482_v34  ;;  %v3483_v62 = vmul.f32 0.0078125, %v3471_v61  ;;  %v7599_v16 = vld [vmem:[%s10562_s18] sm:$0xff]   ;;  %6575 = vmatprep.subr.bf16.mxu0 %v9404_v5  ;;  %v9414_v34 = vld [vmem:[%s10562_s18 + $0xc8] sm:$0xff]  }
 0xfe6   : > { %v9408_v63 = vld [vmem:[%s10562_s18 + $0x80] sm:$0xff]   ;;  %v7603_v61 = vld [vmem:[%s10562_s18 + $0x8] sm:$0xff]  }
 0xfe7   : > { %7713 = vrsqrt.f32 %v3490_v45  ;;  %v3491_v24 = vadd.f32 1e-05, %v3483_v62  ;;  %v9418_v45 = vld [vmem:[%s10562_s18 + $0x88] sm:$0xff]   ;;  %v7605_v62 = vld [vmem:[%s10562_s18 + $0x50] sm:$0xff]  }
 0xfe9   : > { %7715 = vrsqrt.f32 %v3491_v24  ;;  %v9424_v24 = vld [vmem:[%s10562_s18 + $0xd0] sm:$0xff]  }
 0xfed   : > { %v7710_v57 = vpop.eup %7709 }
 0xfee   : > { %v3504_v55 = vmul.f32 %v7710_v57, %v9303_v59  ;;  %v7607_v57 = vld [vmem:[%s10562_s18 + $0x10] sm:$0xff]  }
 0xfef   : > { %v7712_v13 = vpop.eup %7711 }
 0xff0   : > { %v3518_v47 = vmul.f32 %v6145_v38, %v3504_v55  ;;  %v3505_v51 = vmul.f32 %v7712_v13, %v9305_v26  ;;  %v7609_v55 = vld [vmem:[%s10562_s18 + $0x58] sm:$0xff]  }
 0xff1   : > { %v7714_v28 = vpop.eup %7713  ;;  %v9434_v13 = vld [vmem:[%s10562_s18 + $0xd8] sm:$0xff]  }
 0xff2   : > { %v3519_v7 = vmul.f32 %v6145_v38, %v3505_v51  ;;  %v9366_v21 = vadd.f32 %v6146_v18, %v3518_v47  ;;  %v3506_v30 = vmul.f32 %v7714_v28, %v9309_v60  ;;  %v7611_v47 = vld [vmem:[%s10562_s18 + $0x18] sm:$0xff]   ;;  %v7613_v28 = vld [vmem:[%s10562_s18 + $0x60] sm:$0xff]  }
 0xff3   : > { %v7716_v25 = vpop.eup %7715  ;;  %v9438_v51 = vld [vmem:[%s10562_s18 + $0x98] sm:$0xff]  }
 0xff4   : > { %10557 = vst [vmem:[#allocation49_spill] sm:$0xff] %v9366_v21  ;;  %v9368_v29 = vadd.f32 %v6146_v18, %v3519_v7  ;;  %v3507_v53 = vmul.f32 %v7716_v25, %v9313_v58  ;;  %v3520_v32 = vmul.f32 %v6145_v38, %v3506_v30  ;;  %10566 = vst [vmem:[#allocation57_spill] sm:$0xff] %v9438_v51  ;;  %v7615_v7 = vld [vmem:[%s10562_s18 + $0x20] sm:$0xff]   ;;  %v7617_v30 = vld [vmem:[%s10562_s18 + $0x68] sm:$0xff]  }
 0xff5   : > { %v9448_v25 = vld [vmem:[%s10562_s18 + $0xa0] sm:$0xff]  }
 0xff6   : > { %10558 = vst [vmem:[#allocation50_spill] sm:$0xff] %v9368_v29  ;;  %v3572_v44 = vpack.c.bf16 %v9368_v29, %v9366_v21  ;;  %v3521_v59 = vmul.f32 %v6145_v38, %v3507_v53  ;;  %v9378_v31 = vadd.f32 %v6146_v18, %v3520_v32  ;;  %10568 = vst [vmem:[#allocation59_spill] sm:$0xff] %v9448_v25  ;;  %v9454_v53 = vld [vmem:[%s10562_s18 + $0xe8] sm:$0xff]   ;;  %v7621_v32 = vld [vmem:[%s10562_s18 + $0x70] sm:$0xff]  }
 0xff7   : > { %10569 = vst [vmem:[#allocation60_spill] sm:$0xff] %v9454_v53 }
 0xff8   : > { %3791 = vmatmul.mubr.bf16.vlgmr.msra.gmra.mrb[48].mxu1 %v3572_v44  ;;  %3864 = vmatmul.mubr.bf16.vlgmr.msra.gmra.mrb[48].mxu0 %v3572_v44  ;;  %v9376_v26 = vadd.f32 %v6146_v18, %v3521_v59  ;;  %10560 = vst [vmem:[#allocation52_spill] sm:$0xff] %v9378_v31  ;;  %v7619_v44 = vld [vmem:[%s10562_s18 + $0x28] sm:$0xff]  }
 0xff9   : > { %3800 = vmatprep.mubr.bf16.mxu1 %v8399_v2  ;;  %3873 = vmatprep.mubr.bf16.mxu0 %v8399_v2  ;;  %v9458_v59 = vld [vmem:[%s10562_s18 + $0xa8] sm:$0xff]  }
 0xffa   : > { %10559 = vst [vmem:[#allocation51_spill] sm:$0xff] %v9376_v26  ;;  %v3573_v60 = vpack.c.bf16 %v9376_v26, %v9378_v31  ;;  %6536 = vmatpush3.bf16.msra.mxu1 %v7599_v16  ;;  %6576 = vmatpush3.bf16.msra.mxu0 %v9408_v63  ;;  %10570 = vst [vmem:[#allocation61_spill] sm:$0xff] %v9458_v59 }
 0xffb   : > { %6577 = vmatprep.subr.bf16.mxu0 %v9414_v34 }
 0xffe   : > { %6578 = vmatpush3.bf16.msra.mxu0 %v9418_v45 }
 0xfff   : > { %6579 = vmatprep.subr.bf16.mxu0 %v9424_v24 }
0x1000   : > { %3801 = vmatmul.mubr.bf16.gmra.mrb[52].mxu1 %v3573_v60  ;;  %3874 = vmatmul.mubr.bf16.gmra.mrb[52].mxu0 %v3573_v60  ;;  %v9464_v60 = vld [vmem:[%s10562_s18 + $0xf0] sm:$0xff]  }
0x1001   : > { %3810 = vmatprep.mubr.bf16.mxu1 %v8399_v2  ;;  %3883 = vmatprep.mubr.bf16.mxu0 %v8399_v2  ;;  %10571 = vst [vmem:[#allocation62_spill] sm:$0xff] %v9464_v60 }
0x101f   : > { %v3473_v58 = vpop.xlane.xlu0 %3472 }
0x1020   : > { %v3484_v39 = vmul.f32 0.0078125, %v3473_v58  ;;  %v7623_v58 = vld [vmem:[%s10562_s18 + $0x30] sm:$0xff]  }
0x1021   : > { %v3475_v27 = vpop.xlane.xlu1 %3474 }
0x1022   : > { %v3492_v41 = vadd.f32 1e-05, %v3484_v39  ;;  %v3485_v6 = vmul.f32 0.0078125, %v3475_v27  ;;  %v7624_v39 = vld [vmem:[%s10562_s18 + $0xb0] sm:$0xff]   ;;  %v7625_v27 = vld [vmem:[%s10562_s18 + $0x78] sm:$0xff]  }
0x1023   : > { %v3477_v43 = vpop.xlane.xlu0 %3476 }
0x1024   : > { %7717 = vrsqrt.f32 %v3492_v41  ;;  %v3493_v10 = vadd.f32 1e-05, %v3485_v6  ;;  %v3486_v11 = vmul.f32 0.0078125, %v3477_v43  ;;  %v7626_v41 = vld [vmem:[%s10562_s18 + $0xf8] sm:$0xff]  }
0x1025   : > { %v3479_v15 = vpop.xlane.xlu1 %3478  ;;  %v7627_v6 = vld [vmem:[%s10562_s18 + $0x38] sm:$0xff]  }
0x1026   : > { %7719 = vrsqrt.f32 %v3493_v10  ;;  %v3494_v19 = vadd.f32 1e-05, %v3486_v11  ;;  %v3487_v20 = vmul.f32 0.0078125, %v3479_v15  ;;  %v7628_v43 = vld [vmem:[%s10562_s18 + $0xb8] sm:$0xff]   ;;  %v3576_v10 = vld [vmem:[#allocation14] sm:$0xf] }
0x1027   : > { %v3592_v11 = vsub.s32 3, %v8954_v1  ;;  %v9477_v15 = vrot.slane %v3576_v10, %v1616_v40 }
0x1028   : > { %7721 = vrsqrt.f32 %v3494_v19  ;;  %v3495_v22 = vadd.f32 1e-05, %v3487_v20  ;;  %v9481_v19 = vrot.slane %v3576_v10, %v1624_v12  ;;  %v9485_v20 = vrot.slane %v3576_v10, %v1620_v42 }
0x102a   : > { %7723 = vrsqrt.f32 %v3495_v22  ;;  %v9487_v22 = vrot.slane %v3576_v10, %v3592_v11 }
0x102e   : > { %v7718_v23 = vpop.eup %7717 }
0x102f   : > { %v3508_v46 = vmul.f32 %v7718_v23, %v9344_v4 }
0x1030   : > { %v7720_v3 = vpop.eup %7719 }
0x1031   : > { %v3509_v33 = vmul.f32 %v7720_v3, %v9347_v49  ;;  %v3522_v37 = vmul.f32 %v6145_v38, %v3508_v46 }
0x1032   : > { %v7722_v36 = vpop.eup %7721 }
0x1033   : > { %v3523_v50 = vmul.f32 %v6145_v38, %v3509_v33  ;;  %v9386_v52 = vadd.f32 %v6146_v18, %v3522_v37  ;;  %v3510_v56 = vmul.f32 %v7722_v36, %v9352_v14 }
0x1034   : > { %v7724_v54 = vpop.eup %7723 }
0x1035   : > { %10561 = vst [vmem:[#allocation53_spill] sm:$0xff] %v9386_v52  ;;  %v9388_v17 = vadd.f32 %v6146_v18, %v3523_v50  ;;  %v3511_v9 = vmul.f32 %v7724_v54, %v9357_v8  ;;  %v3524_v48 = vmul.f32 %v6145_v38, %v3510_v56 }
0x1037   : > { %10563 = vst [vmem:[#allocation54_spill] sm:$0xff] %v9388_v17  ;;  %v3574_v4 = vpack.c.bf16 %v9388_v17, %v9386_v52  ;;  %v3525_v49 = vmul.f32 %v6145_v38, %v3511_v9  ;;  %v9398_v14 = vadd.f32 %v6146_v18, %v3524_v48  ;;  %v9428_v38 = vld [vmem:[%s10562_s18 + $0x90] sm:$0xff]  }
0x1038   : > { %6580 = vmatpush3.bf16.msra.mxu0 %v9428_v38 }
0x1039   : > { %3811 = vmatmul.mubr.bf16.gmra.mrb[56].mxu1 %v3574_v4  ;;  %3884 = vmatmul.mubr.bf16.gmra.mrb[56].mxu0 %v3574_v4  ;;  %v9396_v35 = vadd.f32 %v6146_v18, %v3525_v49  ;;  %10565 = vst [vmem:[#allocation56_spill] sm:$0xff] %v9398_v14  ;;  %v9444_v18 = vld [vmem:[%s10562_s18 + $0xe0] sm:$0xff]  }
0x103a   : > { %3820 = vmatprep.mubr.bf16.mxu1 %v8399_v2  ;;  %3893 = vmatprep.mubr.bf16.mxu0 %v8399_v2  ;;  %v7601_v2 = vld [vmem:[%s10562_s18 + $0x48] sm:$0xff]   ;;  %10567 = vst [vmem:[#allocation58_spill] sm:$0xff] %v9444_v18 }
0x103b   : > { %10564 = vst [vmem:[#allocation55_spill] sm:$0xff] %v9396_v35  ;;  %v3575_v8 = vpack.c.bf16 %v9396_v35, %v9398_v14  ;;  %6537 = vmatprep.subr.bf16.mxu1 %v7601_v2  ;;  %6581 = vmatprep.subr.bf16.mxu0 %v9434_v13 }
0x103c   : > { %6538 = vmatpush3.bf16.msra.mxu1 %v7603_v61  ;;  %6582 = vmatpush3.bf16.msra.mxu0 %v9438_v51 }
0x103d   : > { %6539 = vmatprep.subr.bf16.mxu1 %v7605_v62  ;;  %6583 = vmatprep.subr.bf16.mxu0 %v9444_v18 }
0x1040   : > { %6540 = vmatpush3.bf16.msra.mxu1 %v7607_v57  ;;  %6584 = vmatpush3.bf16.msra.mxu0 %v9448_v25 }
0x1041   : > { %3821 = vmatmul.mubr.bf16.gmra.mrb[60].mxu1 %v3575_v8  ;;  %3894 = vmatmul.mubr.bf16.gmra.mrb[60].mxu0 %v3575_v8 }
0x1042   : > { %6541 = vmatprep.subr.bf16.mxu1 %v7609_v55  ;;  %6585 = vmatprep.subr.bf16.mxu0 %v9454_v53 }
0x1044   : > { %6542 = vmatpush3.bf16.msra.mxu1 %v7611_v47  ;;  %6586 = vmatpush3.bf16.msra.mxu0 %v9458_v59 }
0x1045   : > { %6543 = vmatprep.subr.bf16.mxu1 %v7613_v28  ;;  %6587 = vmatprep.subr.bf16.mxu0 %v9464_v60 }
0x1048   : > { %6544 = vmatpush3.bf16.msra.mxu1 %v7615_v7  ;;  %6588 = vmatpush3.bf16.msra.mxu0 %v7624_v39 }
0x1049   : > { %6545 = vmatprep.subr.bf16.mxu1 %v7617_v30  ;;  %6589 = vmatprep.subr.bf16.mxu0 %v7626_v41 }
0x104c   : > { %6546 = vmatpush3.bf16.msra.mxu1 %v7619_v44  ;;  %6590 = vmatpush3.bf16.msra.mxu0 %v7628_v43 }
0x104d   : > { %6547 = vmatprep.subr.bf16.mxu1 %v7621_v32 }
0x1050   : > { %6548 = vmatpush3.bf16.msra.mxu1 %v7623_v58 }
0x1051   : > { %6549 = vmatprep.subr.bf16.mxu1 %v7625_v27 }
0x1054   : > { %6550 = vmatpush3.bf16.msra.mxu1 %v7627_v6 }
0x1055   : > { %7247 = vmatprep.subr.bf16.mxu1 %v9404_v5 }
0x10cb   : > { %v3792_v23 = vpop.f32.mrb[48].mxu1  ;;  %v3865_v46 = vpop.f32.mrb[48].mxu0 }
0x10cc   : > { %v9490_v3 = vadd.f32 %v3792_v23, %v9477_v15  ;;  %v9493_v33 = vadd.f32 %v3865_v46, %v9481_v19  ;;  %v3794_v40 = vpop.f32.mrb[49].mxu1  ;;  %v3867_v37 = vpop.f32.mrb[49].mxu0 }
0x10cd   : > { %v9496_v36 = vadd.f32 %v3794_v40, %v9485_v20  ;;  %v9499_v12 = vadd.f32 %v3867_v37, %v9487_v22  ;;  %v3796_v1 = vpop.f32.mrb[50].mxu1  ;;  %v3869_v42 = vpop.f32.mrb[50].mxu0 }
0x10ce   : > { %v3904_v50 = vand.u32 2147483647, %v9490_v3  ;;  %v3906_v54 = vand.u32 2147483647, %v9493_v33  ;;  %v3798_v9 = vpop.f32.mrb[51].mxu1  ;;  %v3871_v0 = vpop.f32.mrb[51].mxu0  ;;  %v9506_v2 = vadd.f32 %v3796_v1, %v9477_v15  ;;  %v9523_v43 = vadd.f32 %v3869_v42, %v9481_v19 }
0x10cf   : > { %v3905_v56 = vand.u32 2147483647, %v9496_v36  ;;  %v3907_v8 = vand.u32 2147483647, %v9499_v12  ;;  %v9530_v23 = vadd.f32 %v3798_v9, %v9485_v20  ;;  %vm4576_vm0 = vcmp.ge.f32.partialorder %v9490_v3, 0.0 }
0x10d0   : > { %v3936_v4 = vmul.f32 0.70710677, %v3904_v50  ;;  %v3938_v49 = vmul.f32 0.70710677, %v3906_v54  ;;  %v3908_v58 = vand.u32 2147483647, %v9506_v2  ;;  %v9535_v50 = vadd.f32 %v3871_v0, %v9487_v22 }
0x10d1   : > { %v3937_v48 = vmul.f32 0.70710677, %v3905_v56  ;;  %v9508_v62 = vmul.f32 0.70710677, %v3907_v8  ;;  %v3910_v40 = vand.u32 2147483647, %v9523_v43 }
0x10d2   : > { %v3968_v5 = vmul.f32 0.3275911, %v3936_v4  ;;  %v3970_v16 = vmul.f32 0.3275911, %v3938_v49  ;;  %v3940_v6 = vmul.f32 0.70710677, %v3908_v58 }
0x10d3   : > { %v3969_v61 = vmul.f32 0.3275911, %v3937_v48  ;;  %v3802_v47 = vpop.f32.mrb[52].mxu1  ;;  %v9510_v28 = vpop.f32.mrb[52].mxu0  ;;  %v3971_v7 = vmul.f32 0.3275911, %v9508_v62 }
0x10d4   : > { %v4000_v57 = vadd.f32 1.0, %v3968_v5  ;;  %v4002_v55 = vadd.f32 1.0, %v3970_v16  ;;  %v9513_v30 = vpop.f32.mrb[53].mxu1  ;;  %v9515_v44 = vpop.f32.mrb[53].mxu0  ;;  %v3972_v46 = vmul.f32 0.3275911, %v3940_v6 }
0x10d5   : > { %v4001_v32 = vadd.f32 1.0, %v3969_v61  ;;  %v9518_v39 = vpop.f32.mrb[54].mxu1  ;;  %v9520_v27 = vpop.f32.mrb[54].mxu0  ;;  %v4003_v41 = vadd.f32 1.0, %v3971_v7  ;;  %v4384_v37 = vsub.f32 0.0, %v3936_v4  ;;  %v4386_v56 = vsub.f32 0.0, %v3938_v49 }
0x10d6   : > { %7725 = vrcp.f32 %v4000_v57  ;;  %v9525_v10 = vpop.f32.mrb[55].mxu1  ;;  %v9527_v11 = vpop.f32.mrb[55].mxu0  ;;  %v3909_v1 = vand.u32 2147483647, %v9530_v23  ;;  %v4004_v42 = vadd.f32 1.0, %v3972_v46  ;;  %v4385_v0 = vsub.f32 0.0, %v3937_v48 }
0x10d7   : > { %7727 = vrcp.f32 %v4002_v55  ;;  %v3942_v54 = vmul.f32 0.70710677, %v3910_v40  ;;  %v4416_v9 = vmul.f32 %v4384_v37, %v3936_v4  ;;  %v3911_v61 = vand.u32 2147483647, %v9535_v50 }
0x10d8   : > { %7729 = vrcp.f32 %v4001_v32  ;;  %v9537_v8 = vmul.f32 0.70710677, %v3909_v1  ;;  %v9544_v55 = vmul.f32 0.5, %v9490_v3  ;;  %v4388_v37 = vsub.f32 0.0, %v3940_v6 }
0x10d9   : > { %7731 = vrcp.f32 %v4003_v41  ;;  %v3974_v5 = vmul.f32 0.3275911, %v3942_v54  ;;  %v4418_v41 = vmul.f32 %v4386_v56, %v3938_v49  ;;  %v9549_v40 = vmul.f32 0.70710677, %v3911_v61 }
0x10da   : > { %7733 = vrcp.f32 %v4004_v42  ;;  %v3973_v16 = vmul.f32 0.3275911, %v9537_v8  ;;  %v9553_v1 = vadd.f32 %v3802_v47, %v9477_v15  ;;  %v4448_v35 = vmul.f32 1.442695, %v4416_v9 }
0x10db   : > { %v4006_v7 = vadd.f32 1.0, %v3974_v5  ;;  %v3975_v5 = vmul.f32 0.3275911, %v9549_v40  ;;  %v4417_v52 = vmul.f32 %v4385_v0, %v3937_v48  ;;  %v4390_v49 = vsub.f32 0.0, %v3942_v54 }
0x10dc   : > { %v4005_v46 = vadd.f32 1.0, %v3973_v16  ;;  %v3912_v56 = vand.u32 2147483647, %v9553_v1  ;;  %vm4578_vm1 = vcmp.ge.f32.partialorder %v9493_v33, 0.0  ;;  %vm4580_vm2 = vcmp.ge.f32.partialorder %v9506_v2, 0.0 }
0x10dd   : > { %7735 = vrcp.f32 %v4006_v7  ;;  %v4387_v7 = vsub.f32 0.0, %v9508_v62  ;;  %v4007_v47 = vadd.f32 1.0, %v3975_v5  ;;  %v4422_v21 = vmul.f32 %v4390_v49, %v3942_v54 }
0x10de   : > { %7737 = vrcp.f32 %v4005_v46  ;;  %v4420_v46 = vmul.f32 %v4388_v37, %v3940_v6  ;;  %v9565_v31 = vmul.f32 0.70710677, %v3912_v56  ;;  %v4450_v56 = vmul.f32 1.442695, %v4417_v52 }
0x10df   : > { %7739 = vrcp.f32 %v4007_v47  ;;  %v4460_v59 = vmul.f32 1.442695, %v4422_v21  ;;  %v4391_v21 = vsub.f32 0.0, %v9549_v40  ;;  %vm4582_vm3 = vcmp.ge.f32.partialorder %v9523_v43, 0.0 }
0x10e0   : > { %v9541_v57 = vpop.eup %7725  ;;  %7741 = vpow2.f32 %v4448_v35  ;;  %v3976_v5 = vmul.f32 0.3275911, %v9565_v31  ;;  %vm4577_vm4 = vcmp.ge.f32.partialorder %v9496_v36, 0.0  ;;  %vm4579_vm5 = vcmp.ge.f32.partialorder %v9499_v12, 0.0 }
0x10e1   : > { %v9546_v32 = vpop.eup %7727  ;;  %v4096_v58 = vmul.f32 1.0614054, %v9541_v57  ;;  %vm4581_vm6 = vcmp.ge.f32.partialorder %v9530_v23, 0.0  ;;  %vm4583_vm7 = vcmp.ge.f32.partialorder %v9535_v50, 0.0  ;;  %vm4584_vm8 = vcmp.ge.f32.partialorder %v9553_v1, 0.0 }
0x10e2   : > { %v4098_v4 = vmul.f32 1.0614054, %v9546_v32  ;;  %v9556_v14 = vpop.eup %7729 }
0x10e3   : > { %v6179_v42 = vadd.f32 -1.4531521, %v4096_v58  ;;  %v4097_v61 = vmul.f32 1.0614054, %v9556_v14  ;;  %v9562_v26 = vpop.eup %7731  ;;  %v4452_v58 = vmul.f32 1.442695, %v4418_v41 }
0x10e4   : > { %v6181_v17 = vadd.f32 -1.4531521, %v4098_v4  ;;  %v4099_v0 = vmul.f32 1.0614054, %v9562_v26  ;;  %v9568_v29 = vpop.eup %7733 }
0x10e5   : > { %v4160_v16 = vmul.f32 %v9541_v57, %v6179_v42  ;;  %v6180_v48 = vadd.f32 -1.4531521, %v4097_v61  ;;  %v4100_v6 = vmul.f32 1.0614054, %v9568_v29  ;;  %7743 = vpow2.f32 %v4452_v58 }
0x10e6   : > { %v4162_v9 = vmul.f32 %v9546_v32, %v6181_v17  ;;  %v6182_v41 = vadd.f32 -1.4531521, %v4099_v0 }
0x10e7   : > { %v4192_v4 = vadd.f32 1.4214138, %v4160_v16  ;;  %v4161_v17 = vmul.f32 %v9556_v14, %v6180_v48  ;;  %v4456_v16 = vmul.f32 1.442695, %v4420_v46  ;;  %v9576_v54 = vpop.eup %7735  ;;  %v4008_v48 = vadd.f32 1.0, %v3976_v5 }
0x10e8   : > { %v4194_v42 = vadd.f32 1.4214138, %v4162_v9  ;;  %v4163_v35 = vmul.f32 %v9562_v26, %v6182_v41  ;;  %v6183_v9 = vadd.f32 -1.4531521, %v4100_v6  ;;  %v9579_v0 = vpop.eup %7737  ;;  %v4419_v5 = vmul.f32 %v4387_v7, %v9508_v62 }
0x10e9   : > { %v4224_v60 = vmul.f32 %v9541_v57, %v4192_v4  ;;  %v4193_v47 = vadd.f32 1.4214138, %v4161_v17  ;;  %v4389_v4 = vsub.f32 0.0, %v9537_v8  ;;  %v4101_v17 = vmul.f32 1.0614054, %v9579_v0 }
0x10ea   : > { %v4226_v37 = vmul.f32 %v9546_v32, %v4194_v42  ;;  %v4195_v52 = vadd.f32 1.4214138, %v4163_v35  ;;  %v4102_v42 = vmul.f32 1.0614054, %v9576_v54  ;;  %7745 = vpow2.f32 %v4456_v16  ;;  %v9589_v35 = vpop.eup %7739 }
0x10eb   : > { %v6211_v61 = vadd.f32 -0.28449672, %v4224_v60  ;;  %v4225_v58 = vmul.f32 %v9556_v14, %v4193_v47  ;;  %v4164_v60 = vmul.f32 %v9568_v29, %v6183_v9  ;;  %v6184_v47 = vadd.f32 -1.4531521, %v4101_v17  ;;  %v7742_v51 = vpop.eup %7741 }
0x10ec   : > { %v6213_v49 = vadd.f32 -0.28449672, %v4226_v37  ;;  %7747 = vrcp.f32 %v4008_v48  ;;  %v4103_v7 = vmul.f32 1.0614054, %v9589_v35  ;;  %v4421_v48 = vmul.f32 %v4389_v4, %v9537_v8 }
0x10ed   : > { %v4288_v53 = vmul.f32 %v9541_v57, %v6211_v61  ;;  %v6212_v6 = vadd.f32 -0.28449672, %v4225_v58  ;;  %v4196_v37 = vadd.f32 1.4214138, %v4164_v60  ;;  %v6185_v61 = vadd.f32 -1.4531521, %v4102_v42 }
0x10ee   : > { %v4290_v46 = vmul.f32 %v9546_v32, %v6213_v49  ;;  %v4227_v49 = vmul.f32 %v9562_v26, %v4195_v52  ;;  %v4165_v62 = vmul.f32 %v9579_v0, %v6184_v47  ;;  %7749 = vpow2.f32 %v4450_v56 }
0x10ef   : > { %v4320_v41 = vadd.f32 0.2548296, %v4288_v53  ;;  %v4228_v18 = vmul.f32 %v9568_v29, %v4196_v37  ;;  %v4166_v58 = vmul.f32 %v9576_v54, %v6185_v61  ;;  %v4289_v60 = vmul.f32 %v9556_v14, %v6212_v6  ;;  %v7744_v52 = vpop.eup %7743 }
0x10f0   : > { %v4322_v25 = vadd.f32 0.2548296, %v4290_v46  ;;  %v4197_v42 = vadd.f32 1.4214138, %v4165_v62  ;;  %v6186_v17 = vadd.f32 -1.4531521, %v4103_v7  ;;  %7751 = vpow2.f32 %v4460_v59 }
0x10f1   : > { %v4352_v9 = vmul.f32 %v9541_v57, %v4320_v41  ;;  %v6215_v57 = vadd.f32 -0.28449672, %v4228_v18  ;;  %v4198_v46 = vadd.f32 1.4214138, %v4166_v58  ;;  %v4423_v6 = vmul.f32 %v4391_v21, %v9549_v40 }
0x10f2   : > { %v4354_v53 = vmul.f32 %v9546_v32, %v4322_v25  ;;  %v6214_v32 = vadd.f32 -0.28449672, %v4227_v49  ;;  %v4229_v61 = vmul.f32 %v9579_v0, %v4197_v42  ;;  %v4321_v56 = vadd.f32 0.2548296, %v4289_v60 }
0x10f3   : > { %v4512_v16 = vmul.f32 %v7742_v51, %v4352_v9  ;;  %v4292_v41 = vmul.f32 %v9568_v29, %v6215_v57  ;;  %v4230_v51 = vmul.f32 %v9576_v54, %v4198_v46  ;;  %v4454_v18 = vmul.f32 1.442695, %v4419_v5 }
0x10f4   : > { %v4514_v37 = vmul.f32 %v7744_v52, %v4354_v53  ;;  %v6216_v62 = vadd.f32 -0.28449672, %v4229_v61  ;;  %v4167_v8 = vmul.f32 %v9589_v35, %v6186_v17  ;;  %v9608_v4 = vmul.f32 0.5, %v9493_v33  ;;  %v7746_v7 = vpop.eup %7745 }
0x10f5   : > { %v4544_v25 = vsub.f32 1.0, %v4512_v16  ;;  %v4324_v47 = vadd.f32 0.2548296, %v4292_v41  ;;  %v6217_v58 = vadd.f32 -0.28449672, %v4230_v51  ;;  %v4291_v59 = vmul.f32 %v9562_v26, %v6214_v32 }
0x10f6   : > { %v4458_v53 = vmul.f32 1.442695, %v4421_v48  ;;  %v4546_v40 = vsub.f32 1.0, %v4514_v37  ;;  %v4462_v5 = vmul.f32 1.442695, %v4423_v6  ;;  %v9614_v16 = vpop.eup %7747  ;;  %v4353_v60 = vmul.f32 %v9556_v14, %v4321_v56 }
0x10f7   : > { %v4608_v9 = vsub.f32 0.0, %v4544_v25  ;;  %v4356_v49 = vmul.f32 %v9568_v29, %v4324_v47  ;;  %v4294_v21 = vmul.f32 %v9576_v54, %v6217_v58  ;;  %7753 = vpow2.f32 %v4454_v18 }
0x10f8   : > { %v9619_v52 = vadd.f32 %v9510_v28, %v9481_v19  ;;  %v4293_v42 = vmul.f32 %v9579_v0, %v6216_v62  ;;  %v4199_v48 = vadd.f32 1.4214138, %v4167_v8  ;;  %v7750_v17 = vpop.eup %7749  ;;  %v4323_v32 = vadd.f32 0.2548296, %v4291_v59 }
0x10f9   : > { %v4516_v57 = vmul.f32 %v7746_v7, %v4356_v49  ;;  %v4640_v29 = vsel %vm4576_vm0, %v4544_v25, %v4608_v9  ;;  %v4326_v46 = vadd.f32 0.2548296, %v4294_v21  ;;  %v4676_v37 = vmul.f32 0.5, %v9506_v2 }
0x10fa   : > { %7755 = vpow2.f32 %v4458_v53  ;;  %v4610_v14 = vsub.f32 0.0, %v4546_v40  ;;  %v4231_v61 = vmul.f32 %v9589_v35, %v4199_v48  ;;  %v7752_v28 = vpop.eup %7751  ;;  %v4704_v6 = vadd.f32 1.0, %v4640_v29 }
0x10fb   : > { %v4548_v41 = vsub.f32 1.0, %v4516_v57  ;;  %v4358_v51 = vmul.f32 %v9576_v54, %v4326_v46  ;;  %7757 = vpow2.f32 %v4462_v5  ;;  %v4104_v25 = vmul.f32 1.0614054, %v9614_v16 }
0x10fc   : > { %v3914_v56 = vand.u32 2147483647, %v9619_v52  ;;  %v9629_v18 = vmul.f32 %v7750_v17, %v4353_v60  ;;  %v4325_v9 = vadd.f32 0.2548296, %v4293_v42  ;;  %v6218_v58 = vadd.f32 -0.28449672, %v4231_v61 }
0x10fd   : > { %v4612_v3 = vsub.f32 0.0, %v4548_v41  ;;  %v4518_v47 = vmul.f32 %v7752_v28, %v4358_v51  ;;  %v4355_v62 = vmul.f32 %v9562_v26, %v4323_v32  ;;  %v6187_v8 = vadd.f32 -1.4531521, %v4104_v25 }
0x10fe   : > { %v9634_v59 = vmul.f32 0.70710677, %v3914_v56  ;;  %v4642_v49 = vsel %vm4578_vm1, %v4546_v40, %v4610_v14  ;;  %v4295_v21 = vmul.f32 %v9589_v35, %v6218_v58  ;;  %v9640_v5 = vmul.f32 %v4704_v6, %v9544_v55 }
0x10ff   : > { %v4644_v54 = vsel %vm4580_vm2, %v4548_v41, %v4612_v3  ;;  %v4550_v7 = vsub.f32 1.0, %v4518_v47  ;;  %v4168_v60 = vmul.f32 %v9614_v16, %v6187_v8  ;;  %v9646_v2 = vadd.f32 %v9513_v30, %v9485_v20 }
0x1100   : > { %v4708_v53 = vadd.f32 1.0, %v4644_v54  ;;  %v3978_v26 = vmul.f32 0.3275911, %v9634_v59  ;;  %v4357_v33 = vmul.f32 %v9579_v0, %v4325_v9  ;;  %v4327_v40 = vadd.f32 0.2548296, %v4295_v21 }
0x1101   : > { %v4614_v29 = vsub.f32 0.0, %v4550_v7  ;;  %v7754_v46 = vpop.eup %7753  ;;  %v4706_v42 = vadd.f32 1.0, %v4642_v49  ;;  %v3913_v48 = vand.u32 2147483647, %v9646_v2  ;;  %v4678_v30 = vmul.f32 0.5, %v9523_v43 }
0x1102   : > { %v9648_v57 = vmul.f32 %v4708_v53, %v4676_v37  ;;  %v4010_v55 = vadd.f32 1.0, %v3978_v26  ;;  %v4392_v41 = vsub.f32 0.0, %v9565_v31  ;;  %v4545_v14 = vsub.f32 1.0, %v9629_v18 }
0x1103   : > { %v4646_v32 = vsel %vm4582_vm3, %v4550_v7, %v4614_v29  ;;  %v4200_v51 = vadd.f32 1.4214138, %v4168_v60  ;;  %v4515_v28 = vmul.f32 %v7754_v46, %v4355_v62  ;;  %v4359_v3 = vmul.f32 %v9589_v35, %v4327_v40 }
0x1104   : > { %v7756_v37 = vpop.eup %7755  ;;  %v4710_v0 = vadd.f32 1.0, %v4646_v32  ;;  %7759 = vrcp.f32 %v4010_v55  ;;  %v9662_v25 = vmul.f32 0.70710677, %v3913_v48  ;;  %v9665_v43 = vmul.f32 %v4706_v42, %v9608_v4 }
0x1105   : > { %v7758_v61 = vpop.eup %7757  ;;  %v9659_v6 = vmul.f32 %v7756_v37, %v4357_v33  ;;  %v9668_v56 = vmul.f32 0.5, %v9496_v36  ;;  %v9674_v47 = vadd.f32 %v9515_v44, %v9487_v22  ;;  %v9677_v9 = vmul.f32 0.5, %v9499_v12 }
0x1106   : > { %v9670_v18 = vmul.f32 %v4710_v0, %v4678_v30  ;;  %v9680_v58 = vmul.f32 0.5, %v9530_v23  ;;  %v4424_v35 = vmul.f32 %v4392_v41, %v9565_v31  ;;  %v3977_v4 = vmul.f32 0.3275911, %v9662_v25 }
0x1107   : > { %v4609_v62 = vsub.f32 0.0, %v4545_v14  ;;  %v4232_v8 = vmul.f32 %v9614_v16, %v4200_v51  ;;  %v3915_v44 = vand.u32 2147483647, %v9674_v47  ;;  %v4547_v49 = vsub.f32 1.0, %v4515_v28 }
0x1108   : > { %v4549_v53 = vsub.f32 1.0, %v9659_v6  ;;  %v4519_v7 = vmul.f32 %v7758_v61, %v4359_v3  ;;  %v4009_v21 = vadd.f32 1.0, %v3977_v4  ;;  %v4394_v26 = vsub.f32 0.0, %v9634_v59 }
0x1109   : > { %v9696_v29 = vmul.f32 0.70710677, %v3915_v44  ;;  %v9700_v33 = vadd.f32 %v9518_v39, %v9477_v15  ;;  %v9704_v40 = vadd.f32 %v9520_v27, %v9481_v19  ;;  %v9711_v55 = vmul.f32 0.5, %v9535_v50 }
0x110a   : > { %v4464_v48 = vmul.f32 1.442695, %v4424_v35  ;;  %v9714_v32 = vmul.f32 0.5, %v9553_v1  ;;  %7761 = vrcp.f32 %v4009_v21  ;;  %v6219_v27 = vadd.f32 -0.28449672, %v4232_v8 }
0x110b   : > { %v3979_v41 = vmul.f32 0.3275911, %v9696_v29  ;;  %v4641_v51 = vsel %vm4577_vm4, %v4545_v14, %v4609_v62  ;;  %v4611_v61 = vsub.f32 0.0, %v4547_v49  ;;  %v4551_v28 = vsub.f32 1.0, %v4519_v7 }
0x110c   : > { %v9691_v31 = vpop.f32.mrb[56].mxu1  ;;  %v9693_v60 = vpop.f32.mrb[56].mxu0  ;;  %v3916_v6 = vand.u32 2147483647, %v9700_v33  ;;  %v4613_v35 = vsub.f32 0.0, %v4549_v53  ;;  %v4426_v4 = vmul.f32 %v4394_v26, %v9634_v59  ;;  %v4393_v54 = vsub.f32 0.0, %v9662_v25 }
0x110d   : > { %v9706_v46 = vpop.f32.mrb[57].mxu1  ;;  %v9708_v42 = vpop.f32.mrb[57].mxu0  ;;  %v4011_v44 = vadd.f32 1.0, %v3979_v41  ;;  %v3918_v8 = vand.u32 2147483647, %v9704_v40  ;;  %v9737_v36 = vadd.f32 %v9525_v10, %v9485_v20  ;;  %v4705_v14 = vadd.f32 1.0, %v4641_v51 }
0x110e   : > { %v9716_v30 = vpop.f32.mrb[58].mxu1  ;;  %v9718_v39 = vpop.f32.mrb[58].mxu0  ;;  %v3948_v17 = vmul.f32 0.70710677, %v3916_v6  ;;  %v4296_v62 = vmul.f32 %v9614_v16, %v6219_v27  ;;  %v4643_v59 = vsel %vm4579_vm5, %v4547_v49, %v4611_v61  ;;  %v4615_v26 = vsub.f32 0.0, %v4551_v28 }
0x110f   : > { %10572 = vst [vmem:[#allocation63_spill] sm:$0xff] %v9718_v39  ;;  %v9722_v37 = vpop.f32.mrb[59].mxu1  ;;  %v9724_v0 = vpop.f32.mrb[59].mxu0  ;;  %7763 = vrcp.f32 %v4011_v44  ;;  %v9740_v7 = vmul.f32 0.70710677, %v3918_v8  ;;  %v4425_v44 = vmul.f32 %v4393_v54, %v9662_v25  ;;  %v4707_v23 = vadd.f32 1.0, %v4643_v59 }
0x1110   : > { %10573 = vst [vmem:[#allocation64_spill] sm:$0xff] %v9722_v37  ;;  %10574 = vst [vmem:[#allocation65_spill] sm:$0xff] %v9724_v0  ;;  %v9729_v3 = vpop.eup %7759  ;;  %v3980_v0 = vmul.f32 0.3275911, %v3948_v17  ;;  %v4645_v37 = vsel %vm4581_vm6, %v4549_v53, %v4613_v35  ;;  %v4468_v6 = vmul.f32 1.442695, %v4426_v4  ;;  %7765 = vpow2.f32 %v4464_v48 }
0x1111   : > { %v4106_v21 = vmul.f32 1.0614054, %v9729_v3  ;;  %v3982_v39 = vmul.f32 0.3275911, %v9740_v7  ;;  %v3917_v12 = vand.u32 2147483647, %v9737_v36  ;;  %v4647_v25 = vsel %vm4583_vm7, %v4551_v28, %v4615_v26 }
0x1112   : > { %v4012_v8 = vadd.f32 1.0, %v3980_v0  ;;  %v4328_v53 = vadd.f32 0.2548296, %v4296_v62  ;;  %v4395_v0 = vsub.f32 0.0, %v9696_v29  ;;  %v4466_v59 = vmul.f32 1.442695, %v4425_v44 }
0x1113   : > { %v6189_v41 = vadd.f32 -1.4531521, %v4106_v21  ;;  %v4014_v35 = vadd.f32 1.0, %v3982_v39  ;;  %v9770_v48 = vmul.f32 0.70710677, %v3917_v12  ;;  %v9775_v50 = vadd.f32 %v9527_v11, %v9487_v22 }
0x1114   : > { %v9747_v10 = vpop.f32.mrb[60].mxu1  ;;  %v9749_v51 = vpop.f32.mrb[60].mxu0  ;;  %7767 = vrcp.f32 %v4012_v8  ;;  %v4711_v26 = vadd.f32 1.0, %v4647_v25  ;;  %v4360_v8 = vmul.f32 %v9614_v16, %v4328_v53  ;;  %v4427_v12 = vmul.f32 %v4395_v0, %v9696_v29 }
0x1115   : > { %10575 = vst [vmem:[#allocation66_spill] sm:$0xff] %v9749_v51  ;;  %v4170_v27 = vmul.f32 %v9729_v3, %v6189_v41  ;;  %v9754_v49 = vpop.f32.mrb[61].mxu1  ;;  %v9756_v61 = vpop.f32.mrb[61].mxu0  ;;  %7769 = vrcp.f32 %v4014_v35  ;;  %vm4586_vm9 = vcmp.ge.f32.partialorder %v9619_v52, 0.0  ;;  %vm4588_vm10 = vcmp.ge.f32.partialorder %v9700_v33, 0.0 }
0x1116   : > { %10576 = vst [vmem:[#allocation67_spill] sm:$0xff] %v9756_v61  ;;  %v9758_v4 = vpop.f32.mrb[62].mxu1  ;;  %v9760_v21 = vpop.f32.mrb[62].mxu0  ;;  %v4709_v61 = vadd.f32 1.0, %v4645_v37  ;;  %7771 = vpow2.f32 %v4468_v6  ;;  %v3981_v37 = vmul.f32 0.3275911, %v9770_v48 }
0x1117   : > { %10577 = vst [vmem:[#allocation68_spill] sm:$0xff] %v9758_v4  ;;  %10578 = vst [vmem:[#allocation69_spill] sm:$0xff] %v9760_v21  ;;  %v9762_v51 = vpop.eup %7761  ;;  %v4202_v54 = vadd.f32 1.4214138, %v4170_v27  ;;  %v9767_v41 = vpop.f32.mrb[63].mxu1  ;;  %v4396_v21 = vsub.f32 0.0, %v3948_v17  ;;  %v4737_v4 = vmul.f32 %v4705_v14, %v9668_v56  ;;  %v4743_v56 = vmul.f32 %v4711_v26, %v9711_v55 }
0x1118   : > { %10579 = vst [vmem:[#allocation70_spill] sm:$0xff] %v9767_v41  ;;  %v4105_v62 = vmul.f32 1.0614054, %v9762_v51  ;;  %v9777_v28 = vpop.f32.mrb[63].mxu0  ;;  %v4013_v11 = vadd.f32 1.0, %v3981_v37  ;;  %v4741_v25 = vmul.f32 %v4709_v61, %v9680_v58  ;;  %v4739_v37 = vmul.f32 %v4707_v23, %v9677_v9 }
0x1119   : > { %v4234_v39 = vmul.f32 %v9729_v3, %v4202_v54  ;;  %10580 = vst [vmem:[#allocation71_spill] sm:$0xff] %v9777_v28  ;;  %v3919_v54 = vand.u32 2147483647, %v9775_v50  ;;  %v9783_v44 = vpop.eup %7763  ;;  %v4398_v28 = vsub.f32 0.0, %v9740_v7  ;;  %v9799_v61 = vadd.f32 %v9691_v31, %v9477_v15 }
0x111a   : > { %v6188_v27 = vadd.f32 -1.4531521, %v4105_v62  ;;  %v4107_v6 = vmul.f32 1.0614054, %v9783_v44  ;;  %v4428_v62 = vmul.f32 %v4396_v21, %v3948_v17  ;;  %7773 = vrcp.f32 %v4013_v11  ;;  %v7766_v58 = vpop.eup %7765 }
0x111b   : > { %v6221_v35 = vadd.f32 -0.28449672, %v4234_v39  ;;  %v9790_v16 = vmul.f32 0.70710677, %v3919_v54  ;;  %v4833_v0 = vpack.c.bf16 %v4741_v25, %v4737_v4  ;;  %7775 = vpow2.f32 %v4466_v59 }
0x111c   : > { %v4169_v41 = vmul.f32 %v9762_v51, %v6188_v27  ;;  %v6190_v39 = vadd.f32 -1.4531521, %v4107_v6  ;;  %v4470_v17 = vmul.f32 1.442695, %v4427_v12  ;;  %v4835_v54 = vpack.c.bf16 %v4743_v56, %v4739_v37 }
0x111d   : > { %v4298_v29 = vmul.f32 %v9729_v3, %v6221_v35  ;;  %v3983_v27 = vmul.f32 0.3275911, %v9790_v16  ;;  %5079 = vmatprep.mubr.bf16.mxu1 %v4833_v0  ;;  %v10581_v9 = vpack.c.bf16 %v9648_v57, %v9640_v5  ;;  %v4430_v26 = vmul.f32 %v4398_v28, %v9740_v7 }
0x111e   : > { %v4201_v53 = vadd.f32 1.4214138, %v4169_v41  ;;  %v9801_v21 = vpop.eup %7767  ;;  %v4171_v4 = vmul.f32 %v9783_v44, %v6190_v39  ;;  %v4472_v41 = vmul.f32 1.442695, %v4428_v62  ;;  %v3920_v31 = vand.u32 2147483647, %v9799_v61  ;;  %5144 = vmatprep.mubr.bf16.mxu0 %v4835_v54 }
0x111f   : > { %v4015_v35 = vadd.f32 1.0, %v3983_v27  ;;  %5080 = vmatmul.mubr.bf16.vlgmr.msra.gmra.mrb[64].mxu1 %v10581_v9  ;;  %v9807_v55 = vpop.eup %7769  ;;  %v4108_v59 = vmul.f32 1.0614054, %v9801_v21  ;;  %v4330_v12 = vadd.f32 0.2548296, %v4298_v29  ;;  %v4397_v62 = vsub.f32 0.0, %v9770_v48 }
0x1120   : > { %v4233_v14 = vmul.f32 %v9762_v51, %v4201_v53  ;;  %7255 = vmatpush3.bf16.msra.mxu1 %v9408_v63  ;;  %v4203_v11 = vadd.f32 1.4214138, %v4171_v4  ;;  %v4110_v25 = vmul.f32 1.0614054, %v9807_v55  ;;  %v7772_v5 = vpop.eup %7771  ;;  %v10582_v7 = vpack.c.bf16 %v9670_v18, %v9665_v43 }
0x1121   : > { %7777 = vrcp.f32 %v4015_v35  ;;  %7248 = vmatprep.subr.bf16.mxu1 %v9414_v34  ;;  %v6191_v6 = vadd.f32 -1.4531521, %v4108_v59  ;;  %v9820_v28 = vmul.f32 0.70710677, %v3920_v31  ;;  %v9822_v63 = vmul.f32 %v7766_v58, %v4360_v8 }
0x1122   : > { %v6220_v23 = vadd.f32 -0.28449672, %v4233_v14  ;;  %5145 = vmatmul.mubr.bf16.vlgmr.msra.gmra.mrb[64].mxu0 %v10582_v7  ;;  %v9825_v29 = vmul.f32 0.5, %v9619_v52  ;;  %v4235_v53 = vmul.f32 %v9783_v44, %v4203_v11  ;;  %v6193_v34 = vadd.f32 -1.4531521, %v4110_v25 }
0x1123   : > { %7779 = vpow2.f32 %v4470_v17  ;;  %v4172_v0 = vmul.f32 %v9801_v21, %v6191_v6  ;;  %v4476_v39 = vmul.f32 1.442695, %v4430_v26  ;;  %v3984_v27 = vmul.f32 0.3275911, %v9820_v28 }
0x1124   : > { %v4297_v57 = vmul.f32 %v9762_v51, %v6220_v23  ;;  %7256 = vmatpush3.bf16.msra.mxu1 %v9418_v45  ;;  %v4362_v43 = vmul.f32 %v9729_v3, %v4330_v12  ;;  %v6222_v37 = vadd.f32 -0.28449672, %v4235_v53  ;;  %v4174_v8 = vmul.f32 %v9807_v55, %v6193_v34  ;;  %v9834_v56 = vpop.eup %7773 }
0x1125   : > { %7249 = vmatprep.subr.bf16.mxu1 %v9424_v24  ;;  %v4204_v58 = vadd.f32 1.4214138, %v4172_v0  ;;  %7781 = vpow2.f32 %v4472_v41  ;;  %v4429_v14 = vmul.f32 %v4397_v62, %v9770_v48  ;;  %v4016_v17 = vadd.f32 1.0, %v3984_v27  ;;  %v7776_v54 = vpop.eup %7775 }
0x1126   : > { %v4329_v18 = vadd.f32 0.2548296, %v4297_v57  ;;  %v4299_v4 = vmul.f32 %v9783_v44, %v6222_v37  ;;  %v4206_v45 = vadd.f32 1.4214138, %v4174_v8  ;;  %v4109_v3 = vmul.f32 1.0614054, %v9834_v56 }
0x1127   : > { %v4399_v35 = vsub.f32 0.0, %v9790_v16  ;;  %v4552_v9 = vsub.f32 1.0, %v9822_v63  ;;  %v9843_v24 = vmul.f32 0.5, %v9646_v2  ;;  %v4236_v41 = vmul.f32 %v9801_v21, %v4204_v58  ;;  %v10583_v63 = vld [vmem:[#allocation57_spill] sm:$0xff] }
0x1128   : > { %7783 = vpow2.f32 %v4476_v39  ;;  %7257 = vmatpush3.bf16.msra.mxu1 %v9428_v38  ;;  %v9847_v48 = vmul.f32 %v7772_v5, %v4362_v43  ;;  %v4361_v23 = vmul.f32 %v9762_v51, %v4329_v18  ;;  %v4238_v59 = vmul.f32 %v9807_v55, %v4206_v45  ;;  %v10584_v39 = vld [vmem:[#allocation58_spill] sm:$0xff] }
0x1129   : > { %v6192_v26 = vadd.f32 -1.4531521, %v4109_v3  ;;  %7250 = vmatprep.subr.bf16.mxu1 %v9434_v13  ;;  %v6223_v31 = vadd.f32 -0.28449672, %v4236_v41  ;;  %v4474_v12 = vmul.f32 1.442695, %v4429_v14  ;;  %7785 = vrcp.f32 %v4016_v17 }
0x112a   : > { %v9854_v11 = vadd.f32 %v9693_v60, %v9481_v19  ;;  %v4331_v57 = vadd.f32 0.2548296, %v4299_v4  ;;  %v6225_v38 = vadd.f32 -0.28449672, %v4238_v59  ;;  %v4431_v51 = vmul.f32 %v4399_v35, %v9790_v16  ;;  %v10586_v59 = vld [vmem:[#allocation60_spill] sm:$0xff] }
0x112b   : > { %v9856_v25 = vpop.eup %7777  ;;  %v4173_v5 = vmul.f32 %v9834_v56, %v6192_v26  ;;  %v4616_v6 = vsub.f32 0.0, %v4552_v9  ;;  %v4300_v13 = vmul.f32 %v9801_v21, %v6223_v31  ;;  %v4554_v60 = vsub.f32 1.0, %v9847_v48 }
0x112c   : > { %v4111_v62 = vmul.f32 1.0614054, %v9856_v25  ;;  %v3922_v7 = vand.u32 2147483647, %v9854_v11  ;;  %7258 = vmatpush3.bf16.msra.mxu1 %v10583_v63  ;;  %v9866_v53 = vmul.f32 %v7776_v54, %v4361_v23  ;;  %v4302_v34 = vmul.f32 %v9807_v55, %v6225_v38  ;;  %v10585_v54 = vld [vmem:[#allocation59_spill] sm:$0xff] }
0x112d   : > { %v4205_v0 = vadd.f32 1.4214138, %v4173_v5  ;;  %7251 = vmatprep.subr.bf16.mxu1 %v10584_v39  ;;  %v7780_v16 = vpop.eup %7779  ;;  %v4332_v27 = vadd.f32 0.2548296, %v4300_v13  ;;  %7787 = vpow2.f32 %v4474_v12  ;;  %v4363_v37 = vmul.f32 %v9783_v44, %v4331_v57  ;;  %v10587_v13 = vld [vmem:[#allocation61_spill] sm:$0xff] }
0x112e   : > { %v6194_v43 = vadd.f32 -1.4531521, %v4111_v62  ;;  %v9870_v18 = vmul.f32 0.70710677, %v3922_v7  ;;  %v4334_v8 = vadd.f32 0.2548296, %v4302_v34  ;;  %v4648_v4 = vsel %vm4584_vm8, %v4552_v9, %v4616_v6 }
0x112f   : > { %v4237_v58 = vmul.f32 %v9834_v56, %v4205_v0  ;;  %v4478_v14 = vmul.f32 1.442695, %v4431_v51  ;;  %v7782_v17 = vpop.eup %7781  ;;  %vm4585_vm11 = vcmp.ge.f32.partialorder %v9646_v2, 0.0  ;;  %v4364_v45 = vmul.f32 %v9801_v21, %v4332_v27  ;;  %v10588_v34 = vld [vmem:[#allocation62_spill] sm:$0xff] }
0x1130   : > { %v4175_v3 = vmul.f32 %v9856_v25, %v6194_v43  ;;  %v3986_v35 = vmul.f32 0.3275911, %v9870_v18  ;;  %7259 = vmatpush3.bf16.msra.mxu1 %v10585_v54  ;;  %v4618_v44 = vsub.f32 0.0, %v4554_v60  ;;  %v4553_v41 = vsub.f32 1.0, %v9866_v53  ;;  %v7873_v54 = vld [vmem:[%s10562_s18 + $0xf8] sm:$0xff]  }
0x1131   : > { %v4366_v48 = vmul.f32 %v9807_v55, %v4334_v8  ;;  %v6224_v23 = vadd.f32 -0.28449672, %v4237_v58  ;;  %7252 = vmatprep.subr.bf16.mxu1 %v10586_v59  ;;  %v4524_v9 = vmul.f32 %v7782_v17, %v4364_v45  ;;  %v4684_v26 = vmul.f32 0.5, %v9700_v33 }
0x1132   : > { %v7784_v1 = vpop.eup %7783  ;;  %v4207_v31 = vadd.f32 1.4214138, %v4175_v3  ;;  %v4018_v21 = vadd.f32 1.0, %v3986_v35  ;;  %v9886_v12 = vmul.f32 %v7780_v16, %v4363_v37  ;;  %7789 = vpow2.f32 %v4478_v14 }
0x1133   : > { %v4526_v57 = vmul.f32 %v7784_v1, %v4366_v48  ;;  %v4301_v38 = vmul.f32 %v9834_v56, %v6224_v23  ;;  %v9889_v5 = vpop.eup %7785  ;;  %v4712_v51 = vadd.f32 1.0, %v4648_v4  ;;  %v4556_v6 = vsub.f32 1.0, %v4524_v9  ;;  %v7872_v4 = vld [vmem:[%s10562_s18 + $0xb0] sm:$0xff]  }
0x1134   : > { %v4239_v55 = vmul.f32 %v9856_v25, %v4207_v31  ;;  %7791 = vrcp.f32 %v4018_v21  ;;  %7260 = vmatpush3.bf16.msra.mxu1 %v10587_v13  ;;  %v4650_v62 = vsel %vm4586_vm9, %v4554_v60, %v4618_v44  ;;  %v4617_v7 = vsub.f32 0.0, %v4553_v41  ;;  %v7874_v21 = vld [vmem:[%s10562_s18 + $0xb8] sm:$0xff]  }
0x1135   : > { %v4558_v63 = vsub.f32 1.0, %v4526_v57  ;;  %v4333_v53 = vadd.f32 0.2548296, %v4301_v38  ;;  %7253 = vmatprep.subr.bf16.mxu1 %v10588_v34  ;;  %vm4587_vm12 = vcmp.ge.f32.partialorder %v9674_v47, 0.0  ;;  %v4620_v0 = vsub.f32 0.0, %v4556_v6 }
0x1136   : > { %vm4590_vm13 = vcmp.ge.f32.partialorder %v9704_v40, 0.0  ;;  %v4686_v39 = vmul.f32 0.5, %v9704_v40  ;;  %v6226_v16 = vadd.f32 -0.28449672, %v4239_v55  ;;  %v4555_v27 = vsub.f32 1.0, %v9886_v12 }
0x1137   : > { %v4622_v43 = vsub.f32 0.0, %v4558_v63  ;;  %v4365_v52 = vmul.f32 %v9834_v56, %v4333_v53  ;;  %v4112_v60 = vmul.f32 1.0614054, %v9889_v5  ;;  %v7788_v37 = vpop.eup %7787  ;;  %v4714_v8 = vadd.f32 1.0, %v4650_v62 }
0x1138   : > { %v4652_v58 = vsel %vm4588_vm10, %v4556_v6, %v4620_v0  ;;  %v4303_v14 = vmul.f32 %v9856_v25, %v6226_v16  ;;  %v9906_v17 = vmul.f32 %v4712_v51, %v9714_v32  ;;  %7261 = vmatpush3.bf16.msra.mxu1 %v7872_v4  ;;  %v4649_v45 = vsel %vm4585_vm11, %v4553_v41, %v4617_v7 }
0x1139   : > { %v4716_v3 = vadd.f32 1.0, %v4652_v58  ;;  %v4654_v56 = vsel %vm4590_vm13, %v4558_v63, %v4622_v43  ;;  %v4525_v35 = vmul.f32 %v7788_v37, %v4365_v52  ;;  %7254 = vmatprep.subr.bf16.mxu1 %v7873_v54  ;;  %v9916_v48 = vadd.f32 %v9706_v46, %v9485_v20 }
0x113a   : > { %v4718_v33 = vadd.f32 1.0, %v4654_v56  ;;  %v4335_v44 = vadd.f32 0.2548296, %v4303_v14  ;;  %v9920_v32 = vadd.f32 %v9708_v42, %v9487_v22  ;;  %v4619_v2 = vsub.f32 0.0, %v4555_v27 }
0x113b   : > { %v4557_v41 = vsub.f32 1.0, %v4525_v35  ;;  %v6195_v23 = vadd.f32 -1.4531521, %v4112_v60  ;;  %v4748_v59 = vmul.f32 %v4716_v3, %v4684_v26  ;;  %v4746_v1 = vmul.f32 %v4714_v8, %v9825_v29  ;;  %v10589_v3 = vld [vmem:[#allocation63_spill] sm:$0xff] }
0x113c   : > { %v4367_v40 = vmul.f32 %v9856_v25, %v4335_v44  ;;  %v4750_v9 = vmul.f32 %v4718_v33, %v4686_v39  ;;  %v3921_v31 = vand.u32 2147483647, %v9916_v48  ;;  %7262 = vmatpush3.bf16.msra.mxu1 %v7874_v21  ;;  %v7790_v12 = vpop.eup %7789  ;;  %v4713_v46 = vadd.f32 1.0, %v4649_v45 }
0x113d   : > { %vm4589_vm14 = vcmp.ge.f32.partialorder %v9737_v36, 0.0  ;;  %v4621_v57 = vsub.f32 0.0, %v4557_v41  ;;  %v4836_v42 = vpack.c.bf16 %v4748_v59, %v9906_v17  ;;  %v3923_v29 = vand.u32 2147483647, %v9920_v32 }
0x113e   : > { %v9928_v38 = vpop.eup %7791  ;;  %v4527_v51 = vmul.f32 %v7790_v12, %v4367_v40  ;;  %v4838_v26 = vpack.c.bf16 %v4750_v9, %v4746_v1  ;;  %v9930_v6 = vmul.f32 0.70710677, %v3921_v31  ;;  %v4651_v25 = vsel %vm4587_vm12, %v4555_v27, %v4619_v2  ;;  %v10590_v12 = vld [vmem:[#allocation64_spill] sm:$0xff] }
0x113f   : > { %v4653_v55 = vsel %vm4589_vm14, %v4557_v41, %v4621_v57  ;;  %v4685_v13 = vmul.f32 0.5, %v9737_v36  ;;  %v4114_v62 = vmul.f32 1.0614054, %v9928_v38  ;;  %v4176_v53 = vmul.f32 %v9889_v5, %v6195_v23 }
0x1140   : > { %v4717_v7 = vadd.f32 1.0, %v4653_v55  ;;  %v4559_v63 = vsub.f32 1.0, %v4527_v51  ;;  %v3985_v34 = vmul.f32 0.3275911, %v9930_v6  ;;  %v4683_v0 = vmul.f32 0.5, %v9674_v47 }
0x1141   : > { %v4745_v39 = vmul.f32 %v4713_v46, %v9843_v24  ;;  %v6197_v16 = vadd.f32 -1.4531521, %v4114_v62  ;;  %v9941_v43 = vmul.f32 0.70710677, %v3923_v29  ;;  %v9945_v36 = vadd.f32 %v9716_v30, %v9477_v15  ;;  %v10591_v29 = vld [vmem:[#allocation65_spill] sm:$0xff] }
0x1142   : > { %v4623_v52 = vsub.f32 0.0, %v4559_v63  ;;  %v4749_v27 = vmul.f32 %v4717_v7, %v4685_v13  ;;  %v4017_v60 = vadd.f32 1.0, %v3985_v34  ;;  %v4715_v37 = vadd.f32 1.0, %v4651_v25 }
0x1143   : > { %vm4591_vm15 = vcmp.ge.f32.partialorder %v9775_v50, 0.0  ;;  %v4687_v8 = vmul.f32 0.5, %v9775_v50  ;;  %v3987_v58 = vmul.f32 0.3275911, %v9941_v43  ;;  %v4208_v24 = vadd.f32 1.4214138, %v4176_v53 }
0x1144   : > { %v4655_v47 = vsel %vm4591_vm15, %v4559_v63, %v4623_v52  ;;  %v4837_v14 = vpack.c.bf16 %v4749_v27, %v4745_v39  ;;  %7793 = vrcp.f32 %v4017_v60  ;;  %v4178_v4 = vmul.f32 %v9928_v38, %v6197_v16 }
0x1145   : > { %v4719_v17 = vadd.f32 1.0, %v4655_v47  ;;  %v4019_v45 = vadd.f32 1.0, %v3987_v58  ;;  %v9953_v56 = vadd.f32 %v10589_v3, %v9481_v19  ;;  %v4400_v30 = vsub.f32 0.0, %v9820_v28 }
0x1146   : > { %5087 = vmatprep.mubr.bf16.mxu1 %v4837_v14  ;;  %v3924_v35 = vand.u32 2147483647, %v9945_v36  ;;  %v4747_v50 = vmul.f32 %v4715_v37, %v4683_v0  ;;  %v4240_v33 = vmul.f32 %v9889_v5, %v4208_v24  ;;  %v4210_v41 = vadd.f32 1.4214138, %v4178_v4 }
0x1147   : > { %v4751_v54 = vmul.f32 %v4719_v17, %v4687_v8  ;;  %5088 = vmatmul.mubr.bf16.gmra.mrb[68].mxu1 %v4836_v42  ;;  %7795 = vrcp.f32 %v4019_v45  ;;  %v4402_v23 = vsub.f32 0.0, %v9870_v18  ;;  %v3926_v59 = vand.u32 2147483647, %v9953_v56 }
0x1148   : > { %v9958_v44 = vmul.f32 0.70710677, %v3924_v35  ;;  %v4432_v40 = vmul.f32 %v4400_v30, %v9820_v28  ;;  %v6227_v31 = vadd.f32 -0.28449672, %v4240_v33  ;;  %v9966_v46 = vadd.f32 %v10590_v12, %v9485_v20 }
0x1149   : > { %v4839_v2 = vpack.c.bf16 %v4751_v54, %v4747_v50  ;;  %v3958_v9 = vmul.f32 0.70710677, %v3926_v59  ;;  %v4242_v57 = vmul.f32 %v9928_v38, %v4210_v41  ;;  %v4434_v42 = vmul.f32 %v4402_v23, %v9870_v18 }
0x114a   : > { %v3988_v1 = vmul.f32 0.3275911, %v9958_v44  ;;  %v9972_v25 = vadd.f32 %v10591_v29, %v9487_v22  ;;  %v4480_v55 = vmul.f32 1.442695, %v4432_v40  ;;  %v4304_v62 = vmul.f32 %v9889_v5, %v6227_v31 }
0x114b   : > { %5152 = vmatprep.mubr.bf16.mxu0 %v4839_v2  ;;  %v3990_v51 = vmul.f32 0.3275911, %v3958_v9  ;;  %v6229_v53 = vadd.f32 -0.28449672, %v4242_v57  ;;  %v4484_v34 = vmul.f32 1.442695, %v4434_v42  ;;  %v9994_v24 = vadd.f32 %v9747_v10, %v9477_v15 }
0x114c   : > { %5153 = vmatmul.mubr.bf16.gmra.mrb[68].mxu0 %v4838_v26  ;;  %v4020_v21 = vadd.f32 1.0, %v3988_v1  ;;  %v3925_v26 = vand.u32 2147483647, %v9966_v46  ;;  %v3927_v18 = vand.u32 2147483647, %v9972_v25  ;;  %v4401_v39 = vsub.f32 0.0, %v9930_v6 }
0x114d   : > { %v4022_v13 = vadd.f32 1.0, %v3990_v51  ;;  %v4336_v27 = vadd.f32 0.2548296, %v4304_v62  ;;  %v4306_v8 = vmul.f32 %v9928_v38, %v6229_v53  ;;  %v4403_v17 = vsub.f32 0.0, %v9941_v43  ;;  %v10592_v51 = vld [vmem:[#allocation66_spill] sm:$0xff] }
0x114e   : > { %v9974_v28 = vpop.eup %7793  ;;  %7797 = vrcp.f32 %v4020_v21  ;;  %v9979_v63 = vmul.f32 0.70710677, %v3925_v26  ;;  %v9986_v52 = vmul.f32 0.70710677, %v3927_v18  ;;  %v4433_v14 = vmul.f32 %v4401_v39, %v9930_v6 }
0x114f   : > { %v4113_v7 = vmul.f32 1.0614054, %v9974_v28  ;;  %7799 = vrcp.f32 %v4022_v13  ;;  %v4406_v4 = vsub.f32 0.0, %v3958_v9  ;;  %v4368_v30 = vmul.f32 %v9889_v5, %v4336_v27 }
0x1150   : > { %7801 = vpow2.f32 %v4480_v55  ;;  %v3989_v16 = vmul.f32 0.3275911, %v9979_v63  ;;  %v3991_v47 = vmul.f32 0.3275911, %v9986_v52  ;;  %v3928_v50 = vand.u32 2147483647, %v9994_v24 }
0x1151   : > { %v9982_v0 = vpop.eup %7795  ;;  %v6196_v60 = vadd.f32 -1.4531521, %v4113_v7  ;;  %7803 = vpow2.f32 %v4484_v34  ;;  %v4338_v54 = vadd.f32 0.2548296, %v4306_v8  ;;  %v10004_v10 = vmul.f32 0.5, %v9799_v61 }
0x1152   : > { %v4021_v37 = vadd.f32 1.0, %v3989_v16  ;;  %v4115_v58 = vmul.f32 1.0614054, %v9982_v0  ;;  %v4023_v45 = vadd.f32 1.0, %v3991_v47  ;;  %v10007_v2 = vmul.f32 0.5, %v9854_v11 }
0x1153   : > { %v4177_v35 = vmul.f32 %v9974_v28, %v6196_v60  ;;  %v4482_v41 = vmul.f32 1.442695, %v4433_v14  ;;  %v10009_v23 = vmul.f32 0.70710677, %v3928_v50  ;;  %v10014_v5 = vmul.f32 0.5, %v9916_v48 }
0x1154   : > { %7805 = vrcp.f32 %v4021_v37  ;;  %v6198_v33 = vadd.f32 -1.4531521, %v4115_v58  ;;  %v4435_v40 = vmul.f32 %v4403_v17, %v9941_v43  ;;  %v4438_v31 = vmul.f32 %v4406_v4, %v3958_v9 }
0x1155   : > { %7807 = vrcp.f32 %v4023_v45  ;;  %v4209_v12 = vadd.f32 1.4214138, %v4177_v35  ;;  %v3992_v42 = vmul.f32 0.3275911, %v10009_v23  ;;  %v10021_v29 = vadd.f32 %v10592_v51, %v9481_v19 }
0x1156   : > { %v4370_v26 = vmul.f32 %v9928_v38, %v4338_v54  ;;  %v4179_v13 = vmul.f32 %v9982_v0, %v6198_v33  ;;  %7809 = vpow2.f32 %v4482_v41  ;;  %v4486_v53 = vmul.f32 1.442695, %v4435_v40 }
0x1157   : > { %v4024_v62 = vadd.f32 1.0, %v3992_v42  ;;  %v3930_v7 = vand.u32 2147483647, %v10021_v29  ;;  %v10030_v34 = vmul.f32 0.5, %v9920_v32  ;;  %v4404_v39 = vsub.f32 0.0, %v9958_v44 }
0x1158   : > { %v9997_v3 = vpop.eup %7797  ;;  %v4492_v16 = vmul.f32 1.442695, %v4438_v31  ;;  %v4241_v38 = vmul.f32 %v9974_v28, %v4209_v12  ;;  %v4211_v58 = vadd.f32 1.4214138, %v4179_v13  ;;  %v10042_v4 = vmul.f32 0.5, %v9945_v36 }
0x1159   : > { %v4116_v6 = vmul.f32 1.0614054, %v9997_v3  ;;  %v10011_v59 = vpop.eup %7799  ;;  %7811 = vrcp.f32 %v4024_v62  ;;  %v10037_v37 = vmul.f32 0.70710677, %v3930_v7  ;;  %v4436_v50 = vmul.f32 %v4404_v39, %v9958_v44 }
0x115a   : > { %v7802_v21 = vpop.eup %7801  ;;  %v4118_v57 = vmul.f32 1.0614054, %v10011_v59  ;;  %7813 = vpow2.f32 %v4492_v16  ;;  %v4405_v33 = vsub.f32 0.0, %v9979_v63  ;;  %vm4594_vm0 = vcmp.ge.f32.partialorder %v9854_v11, 0.0 }
0x115b   : > { %v6199_v1 = vadd.f32 -1.4531521, %v4116_v6  ;;  %v10023_v55 = vmul.f32 %v7802_v21, %v4368_v30  ;;  %v7804_v18 = vpop.eup %7803  ;;  %v3994_v30 = vmul.f32 0.3275911, %v10037_v37  ;;  %v6228_v6 = vadd.f32 -0.28449672, %v4241_v38 }
0x115c   : > { %v6201_v9 = vadd.f32 -1.4531521, %v4118_v57  ;;  %v4530_v8 = vmul.f32 %v7804_v18, %v4370_v26  ;;  %v4243_v21 = vmul.f32 %v9982_v0, %v4211_v58  ;;  %v10061_v26 = vadd.f32 %v9754_v49, %v9485_v20 }
0x115d   : > { %v4180_v43 = vmul.f32 %v9997_v3, %v6199_v1  ;;  %v4560_v17 = vsub.f32 1.0, %v10023_v55  ;;  %v4026_v1 = vadd.f32 1.0, %v3994_v30  ;;  %v4305_v7 = vmul.f32 %v9974_v28, %v6228_v6 }
0x115e   : > { %v10033_v27 = vpop.eup %7805  ;;  %v4182_v60 = vmul.f32 %v10011_v59, %v6201_v9  ;;  %v4562_v31 = vsub.f32 1.0, %v4530_v8  ;;  %v4407_v9 = vsub.f32 0.0, %v9986_v52  ;;  %v4488_v18 = vmul.f32 1.442695, %v4436_v50 }
0x115f   : > { %v4212_v47 = vadd.f32 1.4214138, %v4180_v43  ;;  %v4117_v14 = vmul.f32 1.0614054, %v10033_v27  ;;  %v10045_v35 = vpop.eup %7807  ;;  %v10057_v44 = vsub.f32 0.0, %v4560_v17  ;;  %v4437_v43 = vmul.f32 %v4405_v33, %v9979_v63 }
0x1160   : > { %v4214_v45 = vadd.f32 1.4214138, %v4182_v60  ;;  %v4119_v40 = vmul.f32 1.0614054, %v10045_v35  ;;  %7815 = vrcp.f32 %v4026_v1  ;;  %v7810_v62 = vpop.eup %7809  ;;  %v4626_v38 = vsub.f32 0.0, %v4562_v31 }
0x1161   : > { %v6200_v54 = vadd.f32 -1.4531521, %v4117_v14  ;;  %v4244_v12 = vmul.f32 %v9997_v3, %v4212_v47  ;;  %v6230_v60 = vadd.f32 -0.28449672, %v4243_v21  ;;  %v3929_v14 = vand.u32 2147483647, %v10061_v26 }
0x1162   : > { %v4246_v41 = vmul.f32 %v10011_v59, %v4214_v45  ;;  %v6202_v51 = vadd.f32 -1.4531521, %v4119_v40  ;;  %7817 = vpow2.f32 %v4486_v53  ;;  %v4490_v30 = vmul.f32 1.442695, %v4437_v43 }
0x1163   : > { %v4181_v57 = vmul.f32 %v10033_v27, %v6200_v54  ;;  %v6231_v8 = vadd.f32 -0.28449672, %v4244_v12  ;;  %v10069_v58 = vpop.eup %7811  ;;  %v4439_v50 = vmul.f32 %v4407_v9, %v9986_v52  ;;  %v4337_v54 = vadd.f32 0.2548296, %v4305_v7  ;;  %v10593_v7 = vld [vmem:[#allocation67_spill] sm:$0xff] }
0x1164   : > { %v6233_v42 = vadd.f32 -0.28449672, %v4246_v41  ;;  %v4183_v16 = vmul.f32 %v10045_v35, %v6202_v51  ;;  %v10075_v41 = vmul.f32 0.70710677, %v3929_v14  ;;  %v7814_v40 = vpop.eup %7813  ;;  %vm4592_vm1 = vcmp.ge.f32.partialorder %v9799_v61, 0.0 }
0x1165   : > { %v4213_v13 = vadd.f32 1.4214138, %v4181_v57  ;;  %v4307_v1 = vmul.f32 %v9982_v0, %v6230_v60  ;;  %v4308_v21 = vmul.f32 %v9997_v3, %v6231_v8  ;;  %vm4598_vm2 = vcmp.ge.f32.partialorder %v9953_v56, 0.0 }
0x1166   : > { %v4310_v39 = vmul.f32 %v10011_v59, %v6233_v42  ;;  %v4215_v63 = vadd.f32 1.4214138, %v4183_v16  ;;  %v4120_v53 = vmul.f32 1.0614054, %v10069_v58  ;;  %v4658_v52 = vsel %vm4594_vm0, %v4562_v31, %v4626_v38 }
0x1167   : > { %v4245_v49 = vmul.f32 %v10033_v27, %v4213_v13  ;;  %7819 = vpow2.f32 %v4488_v18  ;;  %v3993_v12 = vmul.f32 0.3275911, %v10075_v41  ;;  %v4494_v51 = vmul.f32 1.442695, %v4439_v50 }
0x1168   : > { %v4342_v47 = vadd.f32 0.2548296, %v4310_v39  ;;  %v4247_v6 = vmul.f32 %v10045_v35, %v4215_v63  ;;  %7821 = vpow2.f32 %v4490_v30  ;;  %v4369_v13 = vmul.f32 %v9974_v28, %v4337_v54 }
0x1169   : > { %v6232_v45 = vadd.f32 -0.28449672, %v4245_v49  ;;  %v4025_v9 = vadd.f32 1.0, %v3993_v12  ;;  %v10089_v39 = vadd.f32 %v10593_v7, %v9487_v22  ;;  %v4339_v11 = vadd.f32 0.2548296, %v4307_v1 }
0x116a   : > { %v4374_v33 = vmul.f32 %v10011_v59, %v4342_v47  ;;  %v6234_v42 = vadd.f32 -0.28449672, %v4247_v6  ;;  %v10091_v16 = vpop.eup %7815  ;;  %v4340_v31 = vadd.f32 0.2548296, %v4308_v21  ;;  %v6203_v18 = vadd.f32 -1.4531521, %v4120_v53 }
0x116b   : > { %v4309_v57 = vmul.f32 %v10033_v27, %v6232_v45  ;;  %v4722_v38 = vadd.f32 1.0, %v4658_v52  ;;  %v4408_v8 = vsub.f32 0.0, %v10009_v23  ;;  %7823 = vrcp.f32 %v4025_v9 }
0x116c   : > { %v4534_v59 = vmul.f32 %v7814_v40, %v4374_v33  ;;  %v4694_v49 = vmul.f32 0.5, %v9953_v56  ;;  %v4311_v28 = vmul.f32 %v10045_v35, %v6234_v42  ;;  %7825 = vpow2.f32 %v4494_v51  ;;  %v7818_v50 = vpop.eup %7817 }
0x116d   : > { %v4341_v47 = vadd.f32 0.2548296, %v4309_v57  ;;  %v4529_v63 = vmul.f32 %v7810_v62, %v4369_v13  ;;  %v4122_v45 = vmul.f32 1.0614054, %v10091_v16  ;;  %v3931_v30 = vand.u32 2147483647, %v10089_v39 }
0x116e   : > { %v4566_v43 = vsub.f32 1.0, %v4534_v59  ;;  %v4371_v54 = vmul.f32 %v9982_v0, %v4339_v11  ;;  %v4372_v33 = vmul.f32 %v9997_v3, %v4340_v31  ;;  %v4184_v40 = vmul.f32 %v10069_v58, %v6203_v18 }
0x116f   : > { %v4656_v62 = vsel %vm4592_vm1, %v4560_v17, %v10057_v44  ;;  %v10109_v56 = vmul.f32 %v4722_v38, %v10007_v2  ;;  %v4440_v1 = vmul.f32 %v4408_v8, %v10009_v23  ;;  %v10112_v21 = vmul.f32 0.70710677, %v3931_v30  ;;  %v10594_v2 = vld [vmem:[#allocation68_spill] sm:$0xff]  ;;  %v10596_v30 = vld [vmem:[#allocation70_spill] sm:$0xff] }
0x1170   : > { %v4630_v60 = vsub.f32 0.0, %v4566_v43  ;;  %vm4593_vm3 = vcmp.ge.f32.partialorder %v9916_v48, 0.0  ;;  %v4373_v3 = vmul.f32 %v10033_v27, %v4341_v47  ;;  %v4343_v53 = vadd.f32 0.2548296, %v4311_v28  ;;  %v10597_v48 = vld [vmem:[#allocation71_spill] sm:$0xff] }
0x1171   : > { %v4410_v52 = vsub.f32 0.0, %v10037_v37  ;;  %v7820_v55 = vpop.eup %7819  ;;  %v4561_v59 = vsub.f32 1.0, %v4529_v63  ;;  %v6205_v61 = vadd.f32 -1.4531521, %v4122_v45  ;;  %v3995_v17 = vmul.f32 0.3275911, %v10112_v21 }
0x1172   : > { %v4662_v14 = vsel %vm4598_vm2, %v4566_v43, %v4630_v60  ;;  %v10122_v44 = vadd.f32 %v10594_v2, %v9477_v15  ;;  %v7822_v23 = vpop.eup %7821  ;;  %v4531_v12 = vmul.f32 %v7818_v50, %v4371_v54  ;;  %v4532_v57 = vmul.f32 %v7820_v55, %v4372_v33 }
0x1173   : > { %v4726_v6 = vadd.f32 1.0, %v4662_v14  ;;  %v4216_v51 = vadd.f32 1.4214138, %v4184_v40  ;;  %v10126_v27 = vadd.f32 1.0, %v4656_v62  ;;  %v10129_v13 = vmul.f32 0.5, %v9966_v46  ;;  %v10595_v14 = vld [vmem:[#allocation69_spill] sm:$0xff] }
0x1174   : > { %v4496_v43 = vmul.f32 1.442695, %v4440_v1  ;;  %v4027_v9 = vadd.f32 1.0, %v3995_v17  ;;  %v4533_v7 = vmul.f32 %v7822_v23, %v4373_v3  ;;  %v4375_v11 = vmul.f32 %v10045_v35, %v4343_v53 }
0x1175   : > { %v10115_v0 = vmul.f32 %v4726_v6, %v4694_v49  ;;  %v4442_v15 = vmul.f32 %v4410_v52, %v10037_v37  ;;  %v3932_v31 = vand.u32 2147483647, %v10122_v44  ;;  %v10134_v18 = vpop.eup %7823  ;;  %v4625_v38 = vsub.f32 0.0, %v4561_v59 }
0x1176   : > { %vm4595_vm4 = vcmp.ge.f32.partialorder %v9920_v32, 0.0  ;;  %v10138_v60 = vmul.f32 0.5, %v9972_v25  ;;  %v4186_v8 = vmul.f32 %v10091_v16, %v6205_v61  ;;  %7827 = vrcp.f32 %v4027_v9  ;;  %v7826_v49 = vpop.eup %7825 }
0x1177   : > { %v4842_v42 = vpack.c.bf16 %v10115_v0, %v10109_v56  ;;  %v4563_v47 = vsub.f32 1.0, %v4531_v12  ;;  %v4564_v28 = vsub.f32 1.0, %v4532_v57  ;;  %vm4596_vm5 = vcmp.ge.f32.partialorder %v9945_v36, 0.0 }
0x1178   : > { %v4248_v37 = vmul.f32 %v10069_v58, %v4216_v51  ;;  %v4121_v35 = vmul.f32 1.0614054, %v10134_v18  ;;  %vm4597_vm6 = vcmp.ge.f32.partialorder %v9966_v46, 0.0  ;;  %7829 = vpow2.f32 %v4496_v43 }
0x1179   : > { %v10145_v63 = vmul.f32 0.70710677, %v3932_v31  ;;  %v10149_v45 = vadd.f32 %v10595_v14, %v9481_v19  ;;  %v10153_v50 = vadd.f32 %v10596_v30, %v9485_v20  ;;  %v4565_v54 = vsub.f32 1.0, %v4533_v7 }
0x117a   : > { %v4535_v33 = vmul.f32 %v7826_v49, %v4375_v11  ;;  %v4500_v6 = vmul.f32 1.442695, %v4442_v15  ;;  %v6204_v40 = vadd.f32 -1.4531521, %v4121_v35  ;;  %v4657_v62 = vsel %vm4593_vm3, %v4561_v59, %v4625_v38 }
0x117b   : > { %v4218_v1 = vadd.f32 1.4214138, %v4186_v8  ;;  %v3996_v3 = vmul.f32 0.3275911, %v10145_v63  ;;  %v3934_v53 = vand.u32 2147483647, %v10149_v45  ;;  %v10166_v59 = vadd.f32 %v10597_v48, %v9487_v22 }
0x117c   : > { %v4627_v52 = vsub.f32 0.0, %v4563_v47  ;;  %v4628_v55 = vsub.f32 0.0, %v4564_v28  ;;  %v6235_v19 = vadd.f32 -0.28449672, %v4248_v37  ;;  %v4409_v61 = vsub.f32 0.0, %v10075_v41 }
0x117d   : > { %vm4599_vm7 = vcmp.ge.f32.partialorder %v9972_v25, 0.0  ;;  %v4028_v20 = vadd.f32 1.0, %v3996_v3  ;;  %v10161_v17 = vmul.f32 0.70710677, %v3934_v53  ;;  %v3933_v2 = vand.u32 2147483647, %v10153_v50 }
0x117e   : > { %v4629_v23 = vsub.f32 0.0, %v4565_v54  ;;  %v4567_v12 = vsub.f32 1.0, %v4535_v33  ;;  %7831 = vpow2.f32 %v4500_v6  ;;  %v4185_v57 = vmul.f32 %v10134_v18, %v6204_v40 }
0x117f   : > { %v4721_v51 = vadd.f32 1.0, %v4657_v62  ;;  %v4250_v43 = vmul.f32 %v10091_v16, %v4218_v1  ;;  %7833 = vrcp.f32 %v4028_v20  ;;  %v3998_v9 = vmul.f32 0.3275911, %v10161_v17 }
0x1180   : > { %v4659_v7 = vsel %vm4595_vm4, %v4563_v47, %v4627_v52  ;;  %v4312_v11 = vmul.f32 %v10069_v58, %v6235_v19  ;;  %v4441_v15 = vmul.f32 %v4409_v61, %v10075_v41  ;;  %v10175_v22 = vmul.f32 0.70710677, %v3933_v2  ;;  %v10177_v31 = vpop.eup %7827 }
0x1181   : > { %v4660_v38 = vsel %vm4596_vm5, %v4564_v28, %v4628_v55  ;;  %v4411_v8 = vsub.f32 0.0, %v10112_v21  ;;  %v4030_v49 = vadd.f32 1.0, %v3998_v9  ;;  %v3935_v37 = vand.u32 2147483647, %v10166_v59 }
0x1182   : > { %v4661_v32 = vsel %vm4597_vm6, %v4565_v54, %v4629_v23  ;;  %v4631_v47 = vsub.f32 0.0, %v4567_v12  ;;  %v4217_v35 = vadd.f32 1.4214138, %v4185_v57  ;;  %v4123_v14 = vmul.f32 1.0614054, %v10177_v31  ;;  %v7830_v41 = vpop.eup %7829 }
0x1183   : > { %v6237_v30 = vadd.f32 -0.28449672, %v4250_v43  ;;  %7835 = vrcp.f32 %v4030_v49  ;;  %v3997_v33 = vmul.f32 0.3275911, %v10175_v22  ;;  %v10187_v6 = vmul.f32 0.70710677, %v3935_v37 }
0x1184   : > { %v4723_v36 = vadd.f32 1.0, %v4659_v7  ;;  %v4344_v28 = vadd.f32 0.2548296, %v4312_v11  ;;  %v6206_v40 = vadd.f32 -1.4531521, %v4123_v14  ;;  %v4412_v62 = vsub.f32 0.0, %v10145_v63 }
0x1185   : > { %v4725_v1 = vadd.f32 1.0, %v4661_v32  ;;  %v4443_v46 = vmul.f32 %v4411_v8, %v10112_v21  ;;  %v4029_v54 = vadd.f32 1.0, %v3997_v33  ;;  %v3999_v3 = vmul.f32 0.3275911, %v10187_v6 }
0x1186   : > { %v4724_v53 = vadd.f32 1.0, %v4660_v38  ;;  %v4663_v52 = vsel %vm4599_vm7, %v4567_v12, %v4631_v47  ;;  %v4249_v55 = vmul.f32 %v10134_v18, %v4217_v35  ;;  %v4187_v19 = vmul.f32 %v10177_v31, %v6206_v40 }
0x1187   : > { %v4314_v61 = vmul.f32 %v10091_v16, %v6237_v30  ;;  %v4498_v20 = vmul.f32 1.442695, %v4441_v15  ;;  %7837 = vrcp.f32 %v4029_v54  ;;  %v4031_v2 = vadd.f32 1.0, %v3999_v3 }
0x1188   : > { %v7832_v48 = vpop.eup %7831  ;;  %v4376_v23 = vmul.f32 %v10069_v58, %v4344_v28  ;;  %v4219_v21 = vadd.f32 1.4214138, %v4187_v19  ;;  %v4444_v57 = vmul.f32 %v4412_v62, %v10145_v63  ;;  %v4414_v43 = vsub.f32 0.0, %v10161_v17 }
0x1189   : > { %v10200_v9 = vpop.eup %7833  ;;  %v4727_v25 = vadd.f32 1.0, %v4663_v52  ;;  %v4502_v12 = vmul.f32 1.442695, %v4443_v46  ;;  %v4753_v7 = vmul.f32 %v4721_v51, %v10014_v5  ;;  %v4757_v11 = vmul.f32 %v4725_v1, %v10129_v13 }
0x118a   : > { %v6236_v38 = vadd.f32 -0.28449672, %v4249_v55  ;;  %v4251_v15 = vmul.f32 %v10177_v31, %v4219_v21  ;;  %v4124_v8 = vmul.f32 1.0614054, %v10200_v9  ;;  %7839 = vrcp.f32 %v4031_v2 }
0x118b   : > { %v4346_v58 = vadd.f32 0.2548296, %v4314_v61  ;;  %v4841_v49 = vpack.c.bf16 %v4757_v11, %v4753_v7  ;;  %v4752_v63 = vmul.f32 %v10126_v27, %v10004_v10  ;;  %v4756_v37 = vmul.f32 %v4724_v53, %v10042_v4 }
0x118c   : > { %v6207_v32 = vadd.f32 -1.4531521, %v4124_v8  ;;  %v4504_v47 = vmul.f32 1.442695, %v4444_v57  ;;  %v4446_v35 = vmul.f32 %v4414_v43, %v10161_v17  ;;  %v4413_v5 = vsub.f32 0.0, %v10175_v22 }
0x118d   : > { %v10211_v13 = vpop.eup %7835  ;;  %v6238_v51 = vadd.f32 -0.28449672, %v4251_v15  ;;  %5095 = vmatprep.mubr.bf16.mxu1 %v4841_v49  ;;  %v4840_v14 = vpack.c.bf16 %v4756_v37, %v4752_v63  ;;  %v10214_v30 = vmul.f32 %v4723_v36, %v10030_v34  ;;  %v10217_v33 = vmul.f32 %v4727_v25, %v10138_v60 }
0x118e   : > { %v4313_v10 = vmul.f32 %v10134_v18, %v6236_v38  ;;  %v4188_v4 = vmul.f32 %v10200_v9, %v6207_v32  ;;  %v4126_v27 = vmul.f32 1.0614054, %v10211_v13  ;;  %v4536_v17 = vmul.f32 %v7830_v41, %v4376_v23 }
0x118f   : > { %v4378_v28 = vmul.f32 %v10091_v16, %v4346_v58  ;;  %7841 = vpow2.f32 %v4498_v20  ;;  %5096 = vmatmul.mubr.bf16.gmra.mrb[72].mxu1 %v4840_v14  ;;  %v4843_v40 = vpack.c.bf16 %v10217_v33, %v10214_v30  ;;  %v4415_v60 = vsub.f32 0.0, %v10187_v6 }
0x1190   : > { %7843 = vpow2.f32 %v4502_v12  ;;  %v4220_v34 = vadd.f32 1.4214138, %v4188_v4  ;;  %v6209_v36 = vadd.f32 -1.4531521, %v4126_v27  ;;  %v4315_v1 = vmul.f32 %v10177_v31, %v6238_v51 }
0x1191   : > { %v10226_v62 = vpop.eup %7837  ;;  %7845 = vpow2.f32 %v4504_v47  ;;  %v4508_v46 = vmul.f32 1.442695, %v4446_v35  ;;  %v4445_v41 = vmul.f32 %v4413_v5, %v10175_v22  ;;  %v4345_v54 = vadd.f32 0.2548296, %v4313_v10 }
0x1192   : > { %v4252_v16 = vmul.f32 %v10200_v9, %v4220_v34  ;;  %v4190_v3 = vmul.f32 %v10211_v13, %v6209_v36  ;;  %v4125_v53 = vmul.f32 1.0614054, %v10226_v62  ;;  %v4568_v52 = vsub.f32 1.0, %v4536_v17 }
0x1193   : > { %v4538_v55 = vmul.f32 %v7832_v48, %v4378_v28  ;;  %v4447_v23 = vmul.f32 %v4415_v60, %v10187_v6  ;;  %v4347_v21 = vadd.f32 0.2548296, %v4315_v1  ;;  %7847 = vpow2.f32 %v4508_v46 }
0x1194   : > { %v10233_v19 = vpop.eup %7839  ;;  %v6239_v61 = vadd.f32 -0.28449672, %v4252_v16  ;;  %v4222_v20 = vadd.f32 1.4214138, %v4190_v3  ;;  %v6208_v2 = vadd.f32 -1.4531521, %v4125_v53  ;;  %v4377_v43 = vmul.f32 %v10134_v18, %v4345_v54 }
0x1195   : > { %v4506_v57 = vmul.f32 1.442695, %v4445_v41  ;;  %v4127_v22 = vmul.f32 1.0614054, %v10233_v19  ;;  %v4632_v7 = vsub.f32 0.0, %v4568_v52  ;;  %v4570_v6 = vsub.f32 1.0, %v4538_v55 }
0x1196   : > { %v4316_v25 = vmul.f32 %v10200_v9, %v6239_v61  ;;  %v4254_v12 = vmul.f32 %v10211_v13, %v4222_v20  ;;  %v4189_v48 = vmul.f32 %v10226_v62, %v6208_v2  ;;  %v4510_v8 = vmul.f32 1.442695, %v4447_v23 }
0x1197   : > { %v6210_v11 = vadd.f32 -1.4531521, %v4127_v22  ;;  %v4379_v49 = vmul.f32 %v10177_v31, %v4347_v21  ;;  %7849 = vpow2.f32 %v4506_v57  ;;  %vm4600_vm8 = vcmp.ge.f32.partialorder %v9994_v24, 0.0 }
0x1198   : > { %v4348_v38 = vadd.f32 0.2548296, %v4316_v25  ;;  %v6241_v15 = vadd.f32 -0.28449672, %v4254_v12  ;;  %v4221_v63 = vadd.f32 1.4214138, %v4189_v48  ;;  %v4664_v10 = vsel %vm4600_vm8, %v4568_v52, %v4632_v7 }
0x1199   : > { %v7842_v58 = vpop.eup %7841  ;;  %v4191_v37 = vmul.f32 %v10233_v19, %v6210_v11  ;;  %7851 = vpow2.f32 %v4510_v8  ;;  %v4634_v31 = vsub.f32 0.0, %v4570_v6  ;;  %v4696_v46 = vmul.f32 0.5, %v9994_v24 }
0x119a   : > { %v7844_v32 = vpop.eup %7843  ;;  %v4537_v18 = vmul.f32 %v7842_v58, %v4377_v43  ;;  %v4380_v47 = vmul.f32 %v10200_v9, %v4348_v38  ;;  %v4318_v35 = vmul.f32 %v10211_v13, %v6241_v15  ;;  %v4253_v51 = vmul.f32 %v10226_v62, %v4221_v63 }
0x119b   : > { %v7846_v5 = vpop.eup %7845  ;;  %v4223_v14 = vadd.f32 1.4214138, %v4191_v37  ;;  %v4539_v17 = vmul.f32 %v7844_v32, %v4379_v49  ;;  %vm4602_vm9 = vcmp.ge.f32.partialorder %v10021_v29, 0.0  ;;  %v4728_v16 = vadd.f32 1.0, %v4664_v10 }
0x119c   : > { %v4540_v4 = vmul.f32 %v7846_v5, %v4380_v47  ;;  %v4350_v27 = vadd.f32 0.2548296, %v4318_v35  ;;  %v6240_v28 = vadd.f32 -0.28449672, %v4253_v51  ;;  %v4569_v36 = vsub.f32 1.0, %v4537_v18 }
0x119d   : > { %v4255_v34 = vmul.f32 %v10233_v19, %v4223_v14  ;;  %v7848_v1 = vpop.eup %7847  ;;  %vm4604_vm10 = vcmp.ge.f32.partialorder %v10122_v44, 0.0  ;;  %v4666_v52 = vsel %vm4602_vm9, %v4570_v6, %v4634_v31  ;;  %v4571_v55 = vsub.f32 1.0, %v4539_v17 }
0x119e   : > { %v4572_v9 = vsub.f32 1.0, %v4540_v4  ;;  %v4382_v60 = vmul.f32 %v10211_v13, %v4350_v27  ;;  %v4317_v41 = vmul.f32 %v10226_v62, %v6240_v28  ;;  %vm4601_vm11 = vcmp.ge.f32.partialorder %v10061_v26, 0.0 }
0x119f   : > { %v6242_v54 = vadd.f32 -0.28449672, %v4255_v34  ;;  %v4633_v13 = vsub.f32 0.0, %v4569_v36  ;;  %v4700_v23 = vmul.f32 0.5, %v10122_v44  ;;  %v4730_v25 = vadd.f32 1.0, %v4666_v52 }
0x11a0   : > { %v4636_v3 = vsub.f32 0.0, %v4572_v9  ;;  %v4542_v53 = vmul.f32 %v7848_v1, %v4382_v60  ;;  %v4349_v61 = vadd.f32 0.2548296, %v4317_v41  ;;  %vm4606_vm12 = vcmp.ge.f32.partialorder %v10149_v45, 0.0 }
0x11a1   : > { %v4319_v20 = vmul.f32 %v10233_v19, %v6242_v54  ;;  %v7850_v43 = vpop.eup %7849  ;;  %v4760_v48 = vmul.f32 %v4728_v16, %v4696_v46  ;;  %v4635_v7 = vsub.f32 0.0, %v4571_v55  ;;  %v4698_v58 = vmul.f32 0.5, %v10021_v29 }
0x11a2   : > { %v4668_v2 = vsel %vm4604_vm10, %v4572_v9, %v4636_v3  ;;  %v4574_v24 = vsub.f32 1.0, %v4542_v53  ;;  %v4381_v57 = vmul.f32 %v10226_v62, %v4349_v61  ;;  %v4665_v44 = vsel %vm4601_vm11, %v4569_v36, %v4633_v13  ;;  %v10598_v13 = vld [vmem:[#allocation49_spill] sm:$0xff] }
0x11a3   : > { %v4732_v21 = vadd.f32 1.0, %v4668_v2  ;;  %v4351_v22 = vadd.f32 0.2548296, %v4319_v20  ;;  %v7852_v8 = vpop.eup %7851  ;;  %v4702_v62 = vmul.f32 0.5, %v10149_v45  ;;  %vm4603_vm13 = vcmp.ge.f32.partialorder %v10089_v39, 0.0 }
0x11a4   : > { %v4638_v12 = vsub.f32 0.0, %v4574_v24  ;;  %v4541_v11 = vmul.f32 %v7850_v43, %v4381_v57  ;;  %v4762_v18 = vmul.f32 %v4730_v25, %v4698_v58  ;;  %v4667_v47 = vsel %vm4603_vm13, %v4571_v55, %v4635_v7 }
0x11a5   : > { %v4383_v38 = vmul.f32 %v10233_v19, %v4351_v22  ;;  %v4764_v15 = vmul.f32 %v4732_v21, %v4700_v23  ;;  %v4729_v51 = vadd.f32 1.0, %v4665_v44  ;;  %vm4605_vm14 = vcmp.ge.f32.partialorder %v10153_v50, 0.0 }
0x11a6   : > { %v4670_v6 = vsel %vm4606_vm12, %v4574_v24, %v4638_v12  ;;  %v4573_v63 = vsub.f32 1.0, %v4541_v11  ;;  %v4697_v29 = vmul.f32 0.5, %v10061_v26  ;;  %v4731_v45 = vadd.f32 1.0, %v4667_v47  ;;  %v10599_v24 = vld [vmem:[#allocation50_spill] sm:$0xff] }
0x11a7   : > { %v4734_v49 = vadd.f32 1.0, %v4670_v6  ;;  %v4543_v37 = vmul.f32 %v7852_v8, %v4383_v38  ;;  %v4844_v32 = vpack.c.bf16 %v4764_v15, %v4760_v48  ;;  %v4701_v27 = vmul.f32 0.5, %v10153_v50  ;;  %v10276_v50 = vld [vmem:[#allocation16] ss:$0 sm:$0xff] }
0x11a8   : > { %v4637_v35 = vsub.f32 0.0, %v4573_v63  ;;  %vm4607_vm15 = vcmp.ge.f32.partialorder %v10166_v59, 0.0  ;;  %v4699_v17 = vmul.f32 0.5, %v10089_v39  ;;  %v4703_v34 = vmul.f32 0.5, %v10166_v59 }
0x11a9   : > { %v4575_v19 = vsub.f32 1.0, %v4543_v37  ;;  %v4766_v5 = vmul.f32 %v4734_v49, %v4702_v62  ;;  %v4761_v9 = vmul.f32 %v4729_v51, %v4697_v29  ;;  %v10600_v49 = vld [vmem:[#allocation52_spill] sm:$0xff]  ;;  %v10601_v37 = vld [vmem:[#allocation51_spill] sm:$0xff] }
0x11aa   : > { %v4669_v14 = vsel %vm4605_vm14, %v4573_v63, %v4637_v35  ;;  %v4763_v46 = vmul.f32 %v4731_v45, %v4699_v17 }
0x11ab   : > { %v4639_v10 = vsub.f32 0.0, %v4575_v19  ;;  %v4846_v4 = vpack.c.bf16 %v4766_v5, %v4762_v18  ;;  %v4733_v31 = vadd.f32 1.0, %v4669_v14 }
0x11ad   : > { %v4671_v28 = vsel %vm4607_vm15, %v4575_v19, %v4639_v10  ;;  %v4765_v60 = vmul.f32 %v4733_v31, %v4701_v27 }
0x11ae   : > { %v4735_v36 = vadd.f32 1.0, %v4671_v28 }
0x11af   : > { %v4845_v1 = vpack.c.bf16 %v4765_v60, %v4761_v9 }
0x11b0   : > { %v4767_v26 = vmul.f32 %v4735_v36, %v4703_v34 }
0x11b1   : > { %5103 = vmatprep.mubr.bf16.mxu1 %v4845_v1 }
0x11b2   : > { %v4847_v41 = vpack.c.bf16 %v4767_v26, %v4763_v46  ;;  %5104 = vmatmul.mubr.bf16.gmra.mrb[76].mxu1 %v4844_v32 }
0x11b3   : > { %5160 = vmatprep.mubr.bf16.mxu1 %v4843_v40 }
0x11ba   : > { %5161 = vmatmul.mubr.bf16.vlgmr.msra.gmra.mrb[80].mxu1 %v4842_v42 }
0x11bb   : > { %5168 = vmatprep.mubr.bf16.mxu1 %v4847_v41 }
0x11c2   : > { %5169 = vmatmul.mubr.bf16.gmra.mrb[84].mxu1 %v4846_v4 }
0x11f2   : > { %v6551_v39 = vpop.f32.mrb[64].mxu1 }
0x11f3   : > { %v6552_v59 = vpop.f32.mrb[65].mxu1 }
0x11f4   : > { %v6553_v54 = vadd.f32 %v6552_v59, %v6551_v39  ;;  %v6554_v16 = vpop.f32.mrb[66].mxu1  ;;  %v10602_v39 = vld [vmem:[#allocation53_spill] sm:$0xff] }
0x11f5   : > { %v6591_v3 = vpop.f32.mrb[64].mxu0  ;;  %v6555_v53 = vpop.f32.mrb[67].mxu1 }
0x11f6   : > { %v5082_v52 = vadd.f32 %v6553_v54, %v10276_v50  ;;  %v6592_v55 = vpop.f32.mrb[65].mxu0  ;;  %v6556_v61 = vadd.f32 %v6555_v53, %v6554_v16 }
0x11f7   : > { %v6593_v30 = vadd.f32 %v6592_v55, %v6591_v3  ;;  %v6594_v33 = vpop.f32.mrb[66].mxu0  ;;  %v10603_v3 = vld [vmem:[#allocation54_spill] sm:$0xff] }
0x11f8   : > { %v5085_v40 = vadd.f32 %v6556_v61, %v10276_v50  ;;  %v6595_v56 = vpop.f32.mrb[67].mxu0 }
0x11f9   : > { %v5147_v0 = vadd.f32 %v6593_v30, %v5082_v52  ;;  %v6596_v42 = vadd.f32 %v6595_v56, %v6594_v33 }
0x11fb   : > { %v5150_v20 = vadd.f32 %v6596_v42, %v5085_v40  ;;  %v10281_v2 = vadd.f32 %v5147_v0, %v10598_v13 }
0x11fd   : > { %5187 = vadd.xlane.f32.xlu0 %v10281_v2  ;;  %v10285_v23 = vadd.f32 %v5150_v20, %v10599_v24 }
0x11ff   : > { %5189 = vadd.xlane.f32.xlu1 %v10285_v23 }
0x121a   : > { %v6557_v21 = vpop.f32.mrb[68].mxu1 }
0x121b   : > { %v6558_v57 = vpop.f32.mrb[69].mxu1 }
0x121c   : > { %v6559_v22 = vadd.f32 %v6558_v57, %v6557_v21  ;;  %v6560_v43 = vpop.f32.mrb[70].mxu1  ;;  %v10604_v21 = vld [vmem:[#allocation56_spill] sm:$0xff] }
0x121d   : > { %v6561_v25 = vpop.f32.mrb[71].mxu1 }
0x121e   : > { %v6562_v12 = vadd.f32 %v6561_v25, %v6560_v43  ;;  %v5090_v7 = vadd.f32 %v6559_v22, %v10276_v50  ;;  %v10605_v43 = vld [vmem:[#allocation55_spill] sm:$0xff] }
0x121f   : > { %v6597_v48 = vpop.f32.mrb[68].mxu0 }
0x1220   : > { %v6598_v11 = vpop.f32.mrb[69].mxu0  ;;  %v5093_v8 = vadd.f32 %v6562_v12, %v10276_v50 }
0x1221   : > { %v6599_v38 = vadd.f32 %v6598_v11, %v6597_v48  ;;  %v6600_v15 = vpop.f32.mrb[70].mxu0 }
0x1222   : > { %v6601_v58 = vpop.f32.mrb[71].mxu0 }
0x1223   : > { %v5155_v44 = vadd.f32 %v6599_v38, %v5090_v7  ;;  %v6602_v6 = vadd.f32 %v6601_v58, %v6600_v15 }
0x1225   : > { %v5158_v62 = vadd.f32 %v6602_v6, %v5093_v8  ;;  %v5179_v63 = vadd.f32 %v5155_v44, %v10600_v49 }
0x1227   : > { %5191 = vadd.xlane.f32.xlu0 %v5179_v63  ;;  %v5180_v32 = vadd.f32 %v5158_v62, %v10601_v37 }
0x1229   : > { %5193 = vadd.xlane.f32.xlu1 %v5180_v32 }
0x1262   : > { %v6563_v18 = vpop.f32.mrb[72].mxu1 }
0x1263   : > { %v6564_v47 = vpop.f32.mrb[73].mxu1 }
0x1264   : > { %v6565_v35 = vadd.f32 %v6564_v47, %v6563_v18  ;;  %v6566_v19 = vpop.f32.mrb[74].mxu1 }
0x1265   : > { %v6567_v5 = vpop.f32.mrb[75].mxu1 }
0x1266   : > { %v6568_v51 = vadd.f32 %v6567_v5, %v6566_v19  ;;  %v5098_v28 = vadd.f32 %v6565_v35, %v10276_v50 }
0x1268   : > { %v5101_v60 = vadd.f32 %v6568_v51, %v10276_v50 }
0x1285   : > { %v6569_v29 = vpop.f32.mrb[76].mxu1 }
0x1286   : > { %v6570_v14 = vpop.f32.mrb[77].mxu1 }
0x1287   : > { %v6571_v10 = vadd.f32 %v6570_v14, %v6569_v29  ;;  %v6572_v4 = vpop.f32.mrb[78].mxu1 }
0x1288   : > { %v6573_v45 = vpop.f32.mrb[79].mxu1 }
0x1289   : > { %v6574_v27 = vadd.f32 %v6573_v45, %v6572_v4  ;;  %v5106_v61 = vadd.f32 %v6571_v10, %v10276_v50 }
0x128a   : > { %v5188_v26 = vpop.xlane.xlu0 %5187 }
0x128b   : > { %v5203_v52 = vmul.f32 0.0078125, %v5188_v26  ;;  %v5109_v0 = vadd.f32 %v6574_v27, %v10276_v50  ;;  %v5311_v26 = vld [vmem:[#allocation3] sm:$0xff] }
0x128c   : > { %v5190_v54 = vpop.xlane.xlu1 %5189 }
0x128d   : > { %v6603_v31 = vpop.f32.mrb[80].mxu1  ;;  %v5204_v40 = vmul.f32 0.0078125, %v5190_v54  ;;  %v5211_v13 = vsub.f32 %v10281_v2, %v5203_v52  ;;  %v5312_v54 = vld [vmem:[#allocation3 + $0x8] sm:$0xff] }
0x128e   : > { %v6604_v17 = vpop.f32.mrb[81].mxu1 }
0x128f   : > { %v6605_v34 = vadd.f32 %v6604_v17, %v6603_v31  ;;  %v6606_v36 = vpop.f32.mrb[82].mxu1  ;;  %v5212_v22 = vsub.f32 %v10285_v23, %v5204_v40  ;;  %v5219_v12 = vmul.f32 %v5211_v13, %v5211_v13 }
0x1290   : > { %v6607_v9 = vpop.f32.mrb[83].mxu1 }
0x1291   : > { %v5163_v1 = vadd.f32 %v6605_v34, %v5098_v28  ;;  %v6608_v46 = vadd.f32 %v6607_v9, %v6606_v36  ;;  %v5220_v48 = vmul.f32 %v5212_v22, %v5212_v22  ;;  %v10322_v34 = vld [vmem:[#allocation22] ss:$0 sm:$0xff] }
0x1293   : > { %v5166_v41 = vadd.f32 %v6608_v46, %v5101_v60  ;;  %v5181_v59 = vadd.f32 %v5163_v1, %v10602_v39  ;;  %v10324_v60 = vld [vmem:[#allocation23] ss:$0 sm:$0xff] }
0x1295   : > { %v6609_v16 = vpop.f32.mrb[84].mxu1  ;;  %5195 = vadd.xlane.f32.xlu0 %v5181_v59  ;;  %v5182_v53 = vadd.f32 %v5166_v41, %v10603_v3 }
0x1296   : > { %v6610_v55 = vpop.f32.mrb[85].mxu1 }
0x1297   : > { %v6611_v30 = vadd.f32 %v6610_v55, %v6609_v16  ;;  %v6612_v33 = vpop.f32.mrb[86].mxu1  ;;  %5197 = vadd.xlane.f32.xlu1 %v5182_v53 }
0x1298   : > { %v6613_v56 = vpop.f32.mrb[87].mxu1 }
0x1299   : > { %v5171_v42 = vadd.f32 %v6611_v30, %v5106_v61  ;;  %v6614_v20 = vadd.f32 %v6613_v56, %v6612_v33 }
0x129b   : > { %v5174_v24 = vadd.f32 %v6614_v20, %v5109_v0  ;;  %v5183_v57 = vadd.f32 %v5171_v42, %v10604_v21 }
0x129d   : > { %5199 = vadd.xlane.f32.xlu0 %v5183_v57  ;;  %v5184_v25 = vadd.f32 %v5174_v24, %v10605_v43 }
0x129f   : > { %5201 = vadd.xlane.f32.xlu1 %v5184_v25 }
0x12a1   : > { %5227 = vadd.xlane.f32.xlu0 %v5219_v12 }
0x12a3   : > { %5229 = vadd.xlane.f32.xlu1 %v5220_v48 }
0x12b4   : > { %v5192_v7 = vpop.xlane.xlu0 %5191 }
0x12b5   : > { %v5205_v11 = vmul.f32 0.0078125, %v5192_v7 }
0x12b6   : > { %v5194_v50 = vpop.xlane.xlu1 %5193 }
0x12b7   : > { %v5213_v38 = vsub.f32 %v5179_v63, %v5205_v11  ;;  %v5206_v15 = vmul.f32 0.0078125, %v5194_v50 }
0x12b9   : > { %v10302_v8 = vsub.f32 %v5180_v32, %v5206_v15  ;;  %v5221_v2 = vmul.f32 %v5213_v38, %v5213_v38 }
0x12bb   : > { %5231 = vadd.xlane.f32.xlu0 %v5221_v2  ;;  %v5222_v23 = vmul.f32 %v10302_v8, %v10302_v8 }
0x12bd   : > { %5233 = vadd.xlane.f32.xlu1 %v5222_v23 }
0x1322   : > { %v5196_v58 = vpop.xlane.xlu0 %5195 }
0x1323   : > { %v5207_v44 = vmul.f32 0.0078125, %v5196_v58 }
0x1324   : > { %v5198_v6 = vpop.xlane.xlu1 %5197 }
0x1325   : > { %v10306_v62 = vsub.f32 %v5181_v59, %v5207_v44  ;;  %v5208_v49 = vmul.f32 0.0078125, %v5198_v6 }
0x1327   : > { %v10308_v37 = vsub.f32 %v5182_v53, %v5208_v49  ;;  %v5223_v63 = vmul.f32 %v10306_v62, %v10306_v62 }
0x1329   : > { %5235 = vadd.xlane.f32.xlu0 %v5223_v63  ;;  %v5224_v32 = vmul.f32 %v10308_v37, %v10308_v37 }
0x132a   : > { %v5200_v18 = vpop.xlane.xlu0 %5199 }
0x132b   : > { %v5209_v47 = vmul.f32 0.0078125, %v5200_v18  ;;  %5237 = vadd.xlane.f32.xlu1 %v5224_v32 }
0x132c   : > { %v5202_v35 = vpop.xlane.xlu1 %5201 }
0x132d   : > { %v10314_v19 = vsub.f32 %v5183_v57, %v5209_v47  ;;  %v5210_v5 = vmul.f32 0.0078125, %v5202_v35  ;;  %v5314_v57 = vld [vmem:[#allocation3 + $0x18] sm:$0xff]  ;;  %v5315_v47 = vld [vmem:[#allocation3 + $0x20] sm:$0xff] }
0x132e   : > { %v5228_v51 = vpop.xlane.xlu0 %5227 }
0x132f   : > { %v10316_v29 = vsub.f32 %v5184_v25, %v5210_v5  ;;  %v5225_v14 = vmul.f32 %v10314_v19, %v10314_v19  ;;  %v5243_v10 = vmul.f32 0.0078125, %v5228_v51  ;;  %v5316_v51 = vld [vmem:[#allocation3 + $0x28] sm:$0xff] }
0x1330   : > { %v5230_v4 = vpop.xlane.xlu1 %5229 }
0x1331   : > { %5239 = vadd.xlane.f32.xlu0 %v5225_v14  ;;  %v5226_v45 = vmul.f32 %v10316_v29, %v10316_v29  ;;  %v5251_v27 = vadd.f32 1e-05, %v5243_v10  ;;  %v5244_v31 = vmul.f32 0.0078125, %v5230_v4 }
0x1333   : > { %5241 = vadd.xlane.f32.xlu1 %v5226_v45  ;;  %7853 = vrsqrt.f32 %v5251_v27  ;;  %v5252_v17 = vadd.f32 1e-05, %v5244_v31 }
0x1335   : > { %7855 = vrsqrt.f32 %v5252_v17  ;;  %v5317_v17 = vld [vmem:[#allocation3 + $0x30] sm:$0xff] }
0x133d   : > { %v7854_v28 = vpop.eup %7853 }
0x133e   : > { %v5267_v36 = vmul.f32 %v7854_v28, %v5211_v13  ;;  %v5313_v13 = vld [vmem:[#allocation3 + $0x10] sm:$0xff] }
0x133f   : > { %v7856_v9 = vpop.eup %7855 }
0x1340   : > { %v5281_v1 = vmul.f32 %v10322_v34, %v5267_v36  ;;  %v5268_v46 = vmul.f32 %v7856_v9, %v5212_v22  ;;  %v5318_v9 = vld [vmem:[#allocation3 + $0x38] sm:$0xff] }
0x1342   : > { %v5295_v41 = vadd.f32 %v10324_v60, %v5281_v1  ;;  %v5282_v39 = vmul.f32 %v10322_v34, %v5268_v46 }
0x1344   : > { %5303 = vst [vmem:[#allocation2] sm:$0xff] %v5295_v41  ;;  %v5319_v3 = vadd.f32 %v5311_v26, %v5295_v41  ;;  %v5296_v53 = vadd.f32 %v10324_v60, %v5282_v39 }
0x1346   : > { %5327 = vst [vmem:[#allocation3] sm:$0xff] %v5319_v3  ;;  %5304 = vst [vmem:[#allocation2 + $0x8] sm:$0xff] %v5296_v53  ;;  %v5320_v30 = vadd.f32 %v5312_v54, %v5296_v53  ;;  %v7880_v53 = vld [vmem:[%s8546_s14 + $0x28] sm:$0xff] (!%p6278_p8)  }
0x1348   : > { %v5232_v59 = vpop.xlane.xlu0 %5231  ;;  %5328 = vst [vmem:[#allocation3 + $0x8] sm:$0xff] %v5320_v30  ;;  %v7882_v30 = vld [vmem:[%s8546_s14 + $0x38] sm:$0xff] (!%p6278_p8)  }
0x1349   : > { %v5245_v16 = vmul.f32 0.0078125, %v5232_v59 }
0x134a   : > { %v5234_v52 = vpop.xlane.xlu1 %5233 }
0x134b   : > { %v5253_v55 = vadd.f32 1e-05, %v5245_v16  ;;  %v5246_v61 = vmul.f32 0.0078125, %v5234_v52  ;;  %v7879_v16 = vld [vmem:[%s8546_s14 + $0x20] sm:$0xff] (!%p6278_p8)   ;;  %v7881_v52 = vld [vmem:[%s8546_s14 + $0x30] sm:$0xff] (!%p6278_p8)  }
0x134d   : > { %7857 = vrsqrt.f32 %v5253_v55  ;;  %v5254_v33 = vadd.f32 1e-05, %v5246_v61  ;;  %v5339_v41 = vld [vmem:[#allocation3] sm:$0xff] (!%p6278_p8) }
0x134e   : > { %v5347_v59 = vmul.f32 (!%p6278_p8), 0.5, %v5339_v41 }
0x134f   : > { %7859 = vrsqrt.f32 %v5254_v33  ;;  %v5340_v39 = vld [vmem:[#allocation3 + $0x8] sm:$0xff] (!%p6278_p8) }
0x1350   : > { %v5348_v54 = vmul.f32 (!%p6278_p8), 0.5, %v5340_v39 }
0x1352   : > { %v5371_v3 = vpack.c.bf16 (!%p6278_p8), %v5348_v54, %v5347_v59 }
0x1354   : > { %7087 = vmatprep.mubr.bf16.mxu0 (!%p6278_p8), %v5371_v3 }
0x1357   : > { %v7858_v40 = vpop.eup %7857 }
0x1358   : > { %v5269_v56 = vmul.f32 %v7858_v40, %v5213_v38 }
0x1359   : > { %v7860_v0 = vpop.eup %7859 }
0x135a   : > { %v5283_v42 = vmul.f32 %v10322_v34, %v5269_v56  ;;  %v5270_v20 = vmul.f32 %v7860_v0, %v10302_v8 }
0x135c   : > { %v5297_v24 = vadd.f32 %v10324_v60, %v5283_v42  ;;  %v5284_v21 = vmul.f32 %v10322_v34, %v5270_v20 }
0x135e   : > { %5305 = vst [vmem:[#allocation2 + $0x10] sm:$0xff] %v5297_v24  ;;  %v5321_v22 = vadd.f32 %v5313_v13, %v5297_v24  ;;  %v5298_v43 = vadd.f32 %v10324_v60, %v5284_v21 }
0x1360   : > { %5329 = vst [vmem:[#allocation3 + $0x10] sm:$0xff] %v5321_v22  ;;  %5306 = vst [vmem:[#allocation2 + $0x18] sm:$0xff] %v5298_v43  ;;  %v5322_v25 = vadd.f32 %v5314_v57, %v5298_v43 }
0x1362   : > { %5330 = vst [vmem:[#allocation3 + $0x18] sm:$0xff] %v5322_v25 }
0x1367   : > { %v5341_v55 = vld [vmem:[#allocation3 + $0x10] sm:$0xff] (!%p6278_p8) }
0x1368   : > { %v5349_v56 = vmul.f32 (!%p6278_p8), 0.5, %v5341_v55 }
0x1369   : > { %v5342_v61 = vld [vmem:[#allocation3 + $0x18] sm:$0xff] (!%p6278_p8) }
0x136a   : > { %v5350_v0 = vmul.f32 (!%p6278_p8), 0.5, %v5342_v61 }
0x136c   : > { %v5372_v13 = vpack.c.bf16 (!%p6278_p8), %v5350_v0, %v5349_v56 }
0x13b6   : > { %v5236_v12 = vpop.xlane.xlu0 %5235 }
0x13b7   : > { %v5247_v48 = vmul.f32 0.0078125, %v5236_v12  ;;  %v7883_v12 = vld [vmem:[#allocation25] sm:$0xff] (!%p6278_p8)  }
0x13b8   : > { %v5238_v7 = vpop.xlane.xlu1 %5237  ;;  %7095 = vmatprep.subr.bf16.mxu1 (!%p6278_p8), %v7883_v12 }
0x13b9   : > { %v5255_v11 = vadd.f32 1e-05, %v5247_v48  ;;  %v5248_v50 = vmul.f32 0.0078125, %v5238_v7  ;;  %7096 = vmatpush3.bf16.msra.mxu1 (!%p6278_p8), %v7883_v12  ;;  %v7884_v48 = vld [vmem:[#allocation25 + $0x8] sm:$0xff] (!%p6278_p8)   ;;  %v7885_v7 = vld [vmem:[#allocation25 + $0x10] sm:$0xff] (!%p6278_p8)  }
0x13ba   : > { %7097 = vmatprep.subr.bf16.mxu1 (!%p6278_p8), %v7884_v48 }
0x13bb   : > { %7861 = vrsqrt.f32 %v5255_v11  ;;  %v5256_v38 = vadd.f32 1e-05, %v5248_v50  ;;  %v7886_v11 = vld [vmem:[#allocation25 + $0x18] sm:$0xff] (!%p6278_p8)   ;;  %v7887_v50 = vld [vmem:[#allocation25 + $0x20] sm:$0xff] (!%p6278_p8)  }
0x13bd   : > { %7863 = vrsqrt.f32 %v5256_v38  ;;  %7098 = vmatpush3.bf16.msra.mxu1 (!%p6278_p8), %v7884_v48  ;;  %v7888_v38 = vld [vmem:[#allocation25 + $0x28] sm:$0xff] (!%p6278_p8)  }
0x13be   : > { %v5240_v15 = vpop.xlane.xlu0 %5239  ;;  %7099 = vmatprep.subr.bf16.mxu1 (!%p6278_p8), %v7885_v7 }
0x13bf   : > { %v5249_v8 = vmul.f32 0.0078125, %v5240_v15  ;;  %v7889_v15 = vld [vmem:[#allocation25 + $0x30] sm:$0xff] (!%p6278_p8)  }
0x13c0   : > { %v5242_v2 = vpop.xlane.xlu1 %5241 }
0x13c1   : > { %v5257_v23 = vadd.f32 1e-05, %v5249_v8  ;;  %v5250_v58 = vmul.f32 0.0078125, %v5242_v2  ;;  %7100 = vmatpush3.bf16.msra.mxu1 (!%p6278_p8), %v7885_v7  ;;  %v7890_v8 = vld [vmem:[#allocation25 + $0x38] sm:$0xff] (!%p6278_p8)  }
0x13c2   : > { %7101 = vmatprep.subr.bf16.mxu1 (!%p6278_p8), %v7886_v11 }
0x13c3   : > { %7865 = vrsqrt.f32 %v5257_v23  ;;  %v5258_v44 = vadd.f32 1e-05, %v5250_v58 }
0x13c5   : > { %v7862_v6 = vpop.eup %7861  ;;  %7867 = vrsqrt.f32 %v5258_v44  ;;  %7102 = vmatpush3.bf16.msra.mxu1 (!%p6278_p8), %v7886_v11 }
0x13c6   : > { %v5271_v49 = vmul.f32 %v7862_v6, %v10306_v62  ;;  %7103 = vmatprep.subr.bf16.mxu1 (!%p6278_p8), %v7887_v50 }
0x13c7   : > { %v7864_v63 = vpop.eup %7863 }
0x13c8   : > { %v5285_v32 = vmul.f32 %v10322_v34, %v5271_v49  ;;  %v5272_v18 = vmul.f32 %v7864_v63, %v10308_v37 }
0x13c9   : > { %7104 = vmatpush3.bf16.msra.mxu1 (!%p6278_p8), %v7887_v50 }
0x13ca   : > { %v5299_v35 = vadd.f32 %v10324_v60, %v5285_v32  ;;  %v5286_v5 = vmul.f32 %v10322_v34, %v5272_v18  ;;  %7105 = vmatprep.subr.bf16.mxu1 (!%p6278_p8), %v7888_v38 }
0x13cc   : > { %5307 = vst [vmem:[#allocation2 + $0x20] sm:$0xff] %v5299_v35  ;;  %v5323_v14 = vadd.f32 %v5315_v47, %v5299_v35  ;;  %v5300_v10 = vadd.f32 %v10324_v60, %v5286_v5 }
0x13cd   : > { %v7866_v4 = vpop.eup %7865  ;;  %7106 = vmatpush3.bf16.msra.mxu1 (!%p6278_p8), %v7888_v38 }
0x13ce   : > { %5331 = vst [vmem:[#allocation3 + $0x20] sm:$0xff] %v5323_v14  ;;  %5308 = vst [vmem:[#allocation2 + $0x28] sm:$0xff] %v5300_v10  ;;  %v5324_v45 = vadd.f32 %v5316_v51, %v5300_v10  ;;  %v5273_v62 = vmul.f32 %v7866_v4, %v10314_v19  ;;  %v7875_v19 = vld [vmem:[%s8546_s14] sm:$0xff] (!%p6278_p8)   ;;  %7107 = vmatprep.subr.bf16.mxu1 (!%p6278_p8), %v7889_v15 }
0x13cf   : > { %v7868_v27 = vpop.eup %7867  ;;  %7071 = vmatprep.subr.bf16.mxu0 (!%p6278_p8), %v7875_v19 }
0x13d0   : > { %5332 = vst [vmem:[#allocation3 + $0x28] sm:$0xff] %v5324_v45  ;;  %v5287_v37 = vmul.f32 %v10322_v34, %v5273_v62  ;;  %v5274_v31 = vmul.f32 %v7868_v27, %v10316_v29  ;;  %v7876_v29 = vld [vmem:[%s8546_s14 + $0x8] sm:$0xff] (!%p6278_p8)   ;;  %7072 = vmatpush3.bf16.msra.mxu0 (!%p6278_p8), %v7875_v19 }
0x13d1   : > { %7073 = vmatprep.subr.bf16.mxu0 (!%p6278_p8), %v7876_v29  ;;  %7108 = vmatpush3.bf16.msra.mxu1 (!%p6278_p8), %v7889_v15 }
0x13d2   : > { %v5301_v28 = vadd.f32 %v10324_v60, %v5287_v37  ;;  %v5288_v36 = vmul.f32 %v10322_v34, %v5274_v31  ;;  %5338 = sbr.rel (%p6278_p8) target bundleno = 5597 (0x15dd), region = 196  ;;  %v7877_v34 = vld [vmem:[%s8546_s14 + $0x10] sm:$0xff] (!%p6278_p8)   ;;  %7109 = vmatprep.subr.bf16.mxu1 (!%p6278_p8), %v7890_v8 }
0x13d4   : > { %5309 = vst [vmem:[#allocation2 + $0x30] sm:$0xff] %v5301_v28  ;;  %v5325_v1 = vadd.f32 %v5317_v17, %v5301_v28  ;;  %v5302_v46 = vadd.f32 %v10324_v60, %v5288_v36  ;;  %7074 = vmatpush3.bf16.msra.mxu0 (!%p6278_p8), %v7876_v29  ;;  %v7878_v60 = vld [vmem:[%s8546_s14 + $0x18] sm:$0xff] (!%p6278_p8)  }
0x13d5   : > { %7075 = vmatprep.subr.bf16.mxu0 (!%p6278_p8), %v7877_v34  ;;  %v5343_v33 = vld [vmem:[#allocation3 + $0x20] sm:$0xff] (!%p6278_p8)  ;;  %7110 = vmatpush3.bf16.msra.mxu1 (!%p6278_p8), %v7890_v8 }
0x13d6   : > { %5333 = vst [vmem:[#allocation3 + $0x30] sm:$0xff] %v5325_v1  ;;  %5310 = vst [vmem:[#allocation2 + $0x38] sm:$0xff] %v5302_v46  ;;  %v5326_v26 = vadd.f32 %v5318_v9, %v5302_v46  ;;  %v5351_v42 = vmul.f32 (!%p6278_p8), 0.5, %v5343_v33 }
0x13d7   : > { %v5344_v40 = vld [vmem:[#allocation3 + $0x28] sm:$0xff] (!%p6278_p8) }
0x13d8   : > { %5334 = vst [vmem:[#allocation3 + $0x38] sm:$0xff] %v5326_v26  ;;  %7076 = vmatpush3.bf16.msra.mxu0 (!%p6278_p8), %v7877_v34  ;;  %v5352_v20 = vmul.f32 (!%p6278_p8), 0.5, %v5344_v40 }
0x13d9   : > { %7077 = vmatprep.subr.bf16.mxu0 %v7878_v60 }
0x13da   : > { %v5373_v24 = vpack.c.bf16 %v5352_v20, %v5351_v42 }
0x13dc   : > { %7078 = vmatpush3.bf16.msra.mxu0 %v7878_v60 }
0x13dd   : > { %7079 = vmatprep.subr.bf16.mxu0 %v7879_v16  ;;  %v5345_v21 = vld [vmem:[#allocation3 + $0x30] sm:$0xff] }
0x13de   : > { %v5353_v22 = vmul.f32 0.5, %v5345_v21 }
0x13df   : > { %v5346_v57 = vld [vmem:[#allocation3 + $0x38] sm:$0xff] }
0x13e0   : > { %7080 = vmatpush3.bf16.msra.mxu0 %v7879_v16  ;;  %v5354_v43 = vmul.f32 0.5, %v5346_v57 }
0x13e1   : > { %7081 = vmatprep.subr.bf16.mxu0 %v7880_v53 }
0x13e2   : > { %v5374_v25 = vpack.c.bf16 %v5354_v43, %v5353_v22 }
0x13e4   : > { %7082 = vmatpush3.bf16.msra.mxu0 %v7880_v53 }
0x13e5   : > { %7083 = vmatprep.subr.bf16.mxu0 %v7881_v52 }
0x13e8   : > { %7084 = vmatpush3.bf16.msra.mxu0 %v7881_v52 }
0x13e9   : > { %7085 = vmatprep.subr.bf16.mxu0 %v7882_v30 }
0x13ec   : > { %7086 = vmatpush3.bf16.msra.mxu0 %v7882_v30 }
0x13ef   : > { %7088 = vmatmul.mubr.bf16.vlgmr.msra.gmra.mrb[0].mxu0 %v5372_v13 }
0x13f0   : > { %7091 = vmatprep.mubr.bf16.mxu0 %v5373_v24 }
0x13f7   : > { %7092 = vmatmul.mubr.bf16.gmra.mrb[4].mxu0 %v5374_v25 }
0x14c2   : > { %v10356_v2 = vpop.f32.mrb[0].mxu0 }
0x14c3   : > { %v5490_v23 = vand.u32 2147483647, %v10356_v2  ;;  %v10359_v58 = vpop.f32.mrb[1].mxu0  ;;  %vm5658_vm0 = vcmp.ge.f32.partialorder %v10356_v2, 0.0 }
0x14c4   : > { %v5488_v44 = vand.u32 2147483647, %v10359_v58  ;;  %v10362_v6 = vpop.f32.mrb[2].mxu0  ;;  %vm5656_vm1 = vcmp.ge.f32.partialorder %v10359_v58, 0.0 }
0x14c5   : > { %v5498_v49 = vmul.f32 0.70710677, %v5490_v23  ;;  %v5491_v63 = vand.u32 2147483647, %v10362_v6  ;;  %v10365_v18 = vpop.f32.mrb[3].mxu0  ;;  %vm5659_vm2 = vcmp.ge.f32.partialorder %v10362_v6, 0.0 }
0x14c6   : > { %v5496_v32 = vmul.f32 0.70710677, %v5488_v44  ;;  %v5489_v51 = vand.u32 2147483647, %v10365_v18  ;;  %vm5657_vm3 = vcmp.ge.f32.partialorder %v10365_v18, 0.0 }
0x14c7   : > { %v5506_v47 = vmul.f32 0.3275911, %v5498_v49  ;;  %v5499_v35 = vmul.f32 0.70710677, %v5491_v63  ;;  %v5610_v27 = vsub.f32 0.0, %v5498_v49 }
0x14c8   : > { %v5504_v5 = vmul.f32 0.3275911, %v5496_v32  ;;  %v5497_v45 = vmul.f32 0.70710677, %v5489_v51  ;;  %v5608_v17 = vsub.f32 0.0, %v5496_v32 }
0x14c9   : > { %v5514_v14 = vadd.f32 1.0, %v5506_v47  ;;  %v5507_v10 = vmul.f32 0.3275911, %v5499_v35  ;;  %v5618_v26 = vmul.f32 %v5610_v27, %v5498_v49  ;;  %v5611_v60 = vsub.f32 0.0, %v5499_v35 }
0x14ca   : > { %v5512_v4 = vadd.f32 1.0, %v5504_v5  ;;  %v10368_v62 = vpop.f32.mrb[4].mxu0  ;;  %v5505_v28 = vmul.f32 0.3275911, %v5497_v45  ;;  %v5616_v34 = vmul.f32 %v5608_v17, %v5496_v32  ;;  %v5609_v39 = vsub.f32 0.0, %v5497_v45 }
0x14cb   : > { %7891 = vrcp.f32 %v5514_v14  ;;  %v5515_v37 = vadd.f32 1.0, %v5507_v10  ;;  %v10370_v31 = vpop.f32.mrb[5].mxu0  ;;  %v5494_v9 = vand.u32 2147483647, %v10368_v62  ;;  %v5628_v3 = vmul.f32 1.442695, %v5618_v26 }
0x14cc   : > { %7893 = vrcp.f32 %v5512_v4  ;;  %v10372_v36 = vpop.f32.mrb[6].mxu0  ;;  %v5513_v46 = vadd.f32 1.0, %v5505_v28  ;;  %v5492_v29 = vand.u32 2147483647, %v10370_v31  ;;  %v5624_v61 = vmul.f32 1.442695, %v5616_v34 }
0x14cd   : > { %v10375_v1 = vpop.f32.mrb[7].mxu0  ;;  %7895 = vrcp.f32 %v5515_v37  ;;  %v5502_v19 = vmul.f32 0.70710677, %v5494_v9  ;;  %v5495_v41 = vand.u32 2147483647, %v10372_v36  ;;  %v5619_v30 = vmul.f32 %v5611_v60, %v5499_v35 }
0x14ce   : > { %7897 = vrcp.f32 %v5513_v46  ;;  %v5500_v54 = vmul.f32 0.70710677, %v5492_v29  ;;  %v5493_v40 = vand.u32 2147483647, %v10375_v1  ;;  %v5617_v0 = vmul.f32 %v5609_v39, %v5497_v45 }
0x14cf   : > { %v5510_v59 = vmul.f32 0.3275911, %v5502_v19  ;;  %v5503_v16 = vmul.f32 0.70710677, %v5495_v41  ;;  %v5614_v52 = vsub.f32 0.0, %v5502_v19  ;;  %vm5662_vm4 = vcmp.ge.f32.partialorder %v10368_v62, 0.0 }
0x14d0   : > { %v5508_v55 = vmul.f32 0.3275911, %v5500_v54  ;;  %v5612_v20 = vsub.f32 0.0, %v5500_v54  ;;  %v5501_v57 = vmul.f32 0.70710677, %v5493_v40  ;;  %vm5660_vm5 = vcmp.ge.f32.partialorder %v10370_v31, 0.0 }
0x14d1   : > { %v5518_v53 = vadd.f32 1.0, %v5510_v59  ;;  %v5511_v33 = vmul.f32 0.3275911, %v5503_v16  ;;  %v5622_v22 = vmul.f32 %v5614_v52, %v5502_v19  ;;  %v5615_v43 = vsub.f32 0.0, %v5503_v16 }
0x14d2   : > { %v5516_v42 = vadd.f32 1.0, %v5508_v55  ;;  %v5630_v48 = vmul.f32 1.442695, %v5619_v30  ;;  %v5509_v7 = vmul.f32 0.3275911, %v5501_v57  ;;  %v5620_v38 = vmul.f32 %v5612_v20, %v5500_v54 }
0x14d3   : > { %7899 = vrcp.f32 %v5518_v53  ;;  %v5519_v21 = vadd.f32 1.0, %v5511_v33  ;;  %v5626_v50 = vmul.f32 1.442695, %v5617_v0  ;;  %v5613_v15 = vsub.f32 0.0, %v5501_v57 }
0x14d4   : > { %7901 = vpow2.f32 %v5628_v3  ;;  %v5517_v49 = vadd.f32 1.0, %v5509_v7  ;;  %v5636_v32 = vmul.f32 1.442695, %v5622_v22  ;;  %v5623_v47 = vmul.f32 %v5615_v43, %v5503_v16 }
0x14d5   : > { %v10380_v56 = vpop.eup %7891  ;;  %7903 = vrcp.f32 %v5516_v42  ;;  %v5632_v10 = vmul.f32 1.442695, %v5620_v38  ;;  %v5621_v4 = vmul.f32 %v5613_v15, %v5501_v57  ;;  %v10406_v52 = vmul.f32 0.5, %v10356_v2 }
0x14d6   : > { %v10382_v13 = vpop.eup %7893  ;;  %v5538_v24 = vmul.f32 1.0614054, %v10380_v56  ;;  %7905 = vrcp.f32 %v5519_v21  ;;  %v5638_v9 = vmul.f32 1.442695, %v5623_v47  ;;  %vm5663_vm6 = vcmp.ge.f32.partialorder %v10372_v36, 0.0 }
0x14d7   : > { %v5536_v25 = vmul.f32 1.0614054, %v10382_v13  ;;  %v10386_v11 = vpop.eup %7895  ;;  %7907 = vpow2.f32 %v5624_v61  ;;  %v5634_v41 = vmul.f32 1.442695, %v5621_v4  ;;  %vm5661_vm7 = vcmp.ge.f32.partialorder %v10375_v1, 0.0 }
0x14d8   : > { %v6289_v12 = vadd.f32 -1.4531521, %v5538_v24  ;;  %v5539_v44 = vmul.f32 1.0614054, %v10386_v11  ;;  %v10390_v63 = vpop.eup %7897  ;;  %7909 = vrcp.f32 %v5517_v49 }
0x14d9   : > { %v6287_v8 = vadd.f32 -1.4531521, %v5536_v25  ;;  %v5537_v14 = vmul.f32 1.0614054, %v10390_v63  ;;  %7911 = vpow2.f32 %v5630_v48 }
0x14da   : > { %v5554_v23 = vmul.f32 %v10380_v56, %v6289_v12  ;;  %v6290_v51 = vadd.f32 -1.4531521, %v5539_v44  ;;  %7913 = vpow2.f32 %v5626_v50 }
0x14db   : > { %v5552_v35 = vmul.f32 %v10382_v13, %v6287_v8  ;;  %v6288_v17 = vadd.f32 -1.4531521, %v5537_v14  ;;  %7915 = vpow2.f32 %v5636_v32 }
0x14dc   : > { %v5562_v5 = vadd.f32 1.4214138, %v5554_v23  ;;  %v5555_v37 = vmul.f32 %v10386_v11, %v6290_v51  ;;  %7917 = vpow2.f32 %v5632_v10 }
0x14dd   : > { %v5560_v45 = vadd.f32 1.4214138, %v5552_v35  ;;  %v10396_v28 = vpop.eup %7899  ;;  %v5553_v34 = vmul.f32 %v10390_v63, %v6288_v17  ;;  %7919 = vpow2.f32 %v5638_v9 }
0x14de   : > { %v5570_v27 = vmul.f32 %v10380_v56, %v5562_v5  ;;  %v5563_v19 = vadd.f32 1.4214138, %v5555_v37  ;;  %v5542_v29 = vmul.f32 1.0614054, %v10396_v28  ;;  %v7902_v60 = vpop.eup %7901  ;;  %7921 = vpow2.f32 %v5634_v41 }
0x14df   : > { %v5568_v46 = vmul.f32 %v10382_v13, %v5560_v45  ;;  %v10401_v59 = vpop.eup %7903  ;;  %v5561_v53 = vadd.f32 1.4214138, %v5553_v34 }
0x14e0   : > { %v6297_v26 = vadd.f32 -0.28449672, %v5570_v27  ;;  %v5571_v16 = vmul.f32 %v10386_v11, %v5563_v19  ;;  %v6293_v3 = vadd.f32 -1.4531521, %v5542_v29  ;;  %v5540_v55 = vmul.f32 1.0614054, %v10401_v59  ;;  %v10410_v30 = vpop.eup %7905 }
0x14e1   : > { %v6295_v39 = vadd.f32 -0.28449672, %v5568_v46  ;;  %v5569_v42 = vmul.f32 %v10390_v63, %v5561_v53  ;;  %v7908_v20 = vpop.eup %7907  ;;  %v5543_v21 = vmul.f32 1.0614054, %v10410_v30 }
0x14e2   : > { %v5586_v54 = vmul.f32 %v10380_v56, %v6297_v26  ;;  %v6298_v40 = vadd.f32 -0.28449672, %v5571_v16  ;;  %v5558_v0 = vmul.f32 %v10396_v28, %v6293_v3  ;;  %v6291_v24 = vadd.f32 -1.4531521, %v5540_v55  ;;  %v10416_v22 = vpop.eup %7909 }
0x14e3   : > { %v5584_v61 = vmul.f32 %v10382_v13, %v6295_v39  ;;  %v6296_v48 = vadd.f32 -0.28449672, %v5569_v42  ;;  %v7912_v7 = vpop.eup %7911  ;;  %v6294_v38 = vadd.f32 -1.4531521, %v5543_v21  ;;  %v5541_v15 = vmul.f32 1.0614054, %v10416_v22 }
0x14e4   : > { %v5594_v33 = vadd.f32 0.2548296, %v5586_v54  ;;  %v5587_v25 = vmul.f32 %v10386_v11, %v6298_v40  ;;  %v5566_v12 = vadd.f32 1.4214138, %v5558_v0  ;;  %v5556_v50 = vmul.f32 %v10401_v59, %v6291_v24  ;;  %v7914_v23 = vpop.eup %7913 }
0x14e5   : > { %v5592_v57 = vadd.f32 0.2548296, %v5584_v61  ;;  %v7916_v47 = vpop.eup %7915  ;;  %v5559_v5 = vmul.f32 %v10410_v30, %v6294_v38  ;;  %v6292_v51 = vadd.f32 -1.4531521, %v5541_v15 }
0x14e6   : > { %v5602_v43 = vmul.f32 %v10380_v56, %v5594_v33  ;;  %v5595_v49 = vadd.f32 0.2548296, %v5587_v25  ;;  %v5574_v32 = vmul.f32 %v10396_v28, %v5566_v12  ;;  %v5585_v56 = vmul.f32 %v10390_v63, %v6296_v48  ;;  %v7918_v27 = vpop.eup %7917 }
0x14e7   : > { %v5600_v8 = vmul.f32 %v10382_v13, %v5592_v57  ;;  %v5564_v35 = vadd.f32 1.4214138, %v5556_v50  ;;  %v5567_v17 = vadd.f32 1.4214138, %v5559_v5  ;;  %v5557_v9 = vmul.f32 %v10416_v22, %v6292_v51 }
0x14e8   : > { %v5642_v44 = vmul.f32 %v7902_v60, %v5602_v43  ;;  %v5603_v13 = vmul.f32 %v10386_v11, %v5595_v49  ;;  %v6301_v4 = vadd.f32 -0.28449672, %v5574_v32  ;;  %v5593_v45 = vadd.f32 0.2548296, %v5585_v56  ;;  %v7920_v60 = vpop.eup %7919 }
0x14e9   : > { %v5640_v14 = vmul.f32 %v7908_v20, %v5600_v8  ;;  %v5572_v37 = vmul.f32 %v10401_v59, %v5564_v35  ;;  %v5575_v39 = vmul.f32 %v10410_v30, %v5567_v17  ;;  %v5565_v11 = vadd.f32 1.4214138, %v5557_v9  ;;  %v7922_v61 = vpop.eup %7921 }
0x14ea   : > { %v5650_v10 = vsub.f32 1.0, %v5642_v44  ;;  %v5643_v19 = vmul.f32 %v7912_v7, %v5603_v13  ;;  %v5590_v29 = vmul.f32 %v10396_v28, %v6301_v4  ;;  %v5601_v34 = vmul.f32 %v10390_v63, %v5593_v45 }
0x14eb   : > { %v5648_v46 = vsub.f32 1.0, %v5640_v14  ;;  %v6299_v41 = vadd.f32 -0.28449672, %v5572_v37  ;;  %v5683_v33 = vmul.f32 0.5, %v10362_v6  ;;  %v6302_v0 = vadd.f32 -0.28449672, %v5575_v39 }
0x14ec   : > { %v5666_v26 = vsub.f32 0.0, %v5650_v10  ;;  %v5651_v3 = vsub.f32 1.0, %v5643_v19  ;;  %v5598_v53 = vadd.f32 0.2548296, %v5590_v29  ;;  %v5641_v55 = vmul.f32 %v7914_v23, %v5601_v34 }
0x14ed   : > { %v5664_v54 = vsub.f32 0.0, %v5648_v46  ;;  %v5588_v40 = vmul.f32 %v10401_v59, %v6299_v41  ;;  %v5573_v63 = vmul.f32 %v10416_v22, %v5565_v11  ;;  %v5591_v2 = vmul.f32 %v10410_v30, %v6302_v0 }
0x14ee   : > { %v5674_v16 = vsel %vm5658_vm0, %v5650_v10, %v5666_v26  ;;  %v5667_v20 = vsub.f32 0.0, %v5651_v3  ;;  %v5606_v24 = vmul.f32 %v10396_v28, %v5598_v53  ;;  %v5649_v21 = vsub.f32 1.0, %v5641_v55 }
0x14ef   : > { %v5690_v42 = vadd.f32 1.0, %v5674_v16  ;;  %v5596_v57 = vadd.f32 0.2548296, %v5588_v40  ;;  %v6300_v43 = vadd.f32 -0.28449672, %v5573_v63  ;;  %v5672_v25 = vsel %vm5656_vm1, %v5648_v46, %v5664_v54 }
0x14f0   : > { %v5675_v12 = vsel %vm5659_vm2, %v5651_v3, %v5667_v20  ;;  %v5646_v48 = vmul.f32 %v7916_v47, %v5606_v24  ;;  %v5665_v7 = vsub.f32 0.0, %v5649_v21  ;;  %v5599_v15 = vadd.f32 0.2548296, %v5591_v2 }
0x14f1   : > { %v5691_v50 = vadd.f32 1.0, %v5675_v12  ;;  %v5604_v38 = vmul.f32 %v10401_v59, %v5596_v57  ;;  %v5589_v28 = vmul.f32 %v10416_v22, %v6300_v43  ;;  %v5698_v8 = vmul.f32 %v5690_v42, %v10406_v52 }
0x14f2   : > { %v5654_v23 = vsub.f32 1.0, %v5646_v48  ;;  %v5673_v44 = vsel %vm5657_vm3, %v5649_v21, %v5665_v7  ;;  %v5688_v49 = vadd.f32 1.0, %v5672_v25  ;;  %v5607_v6 = vmul.f32 %v10410_v30, %v5599_v15 }
0x14f3   : > { %v5699_v32 = vmul.f32 %v5691_v50, %v5683_v33  ;;  %v5644_v56 = vmul.f32 %v7918_v27, %v5604_v38  ;;  %v5597_v35 = vadd.f32 0.2548296, %v5589_v28  ;;  %v5680_v5 = vmul.f32 0.5, %v10359_v58 }
0x14f4   : > { %v5681_v47 = vmul.f32 0.5, %v10365_v18  ;;  %v5670_v51 = vsub.f32 0.0, %v5654_v23  ;;  %v5689_v14 = vadd.f32 1.0, %v5673_v44  ;;  %v5647_v10 = vmul.f32 %v7920_v60, %v5607_v6 }
0x14f5   : > { %v5652_v59 = vsub.f32 1.0, %v5644_v56  ;;  %v5605_v13 = vmul.f32 %v10416_v22, %v5597_v35  ;;  %v5721_v4 = vpack.c.bf16 %v5699_v32, %v5698_v8  ;;  %v5696_v52 = vmul.f32 %v5688_v49, %v5680_v5 }
0x14f6   : > { %v5697_v45 = vmul.f32 %v5689_v14, %v5681_v47  ;;  %v5678_v37 = vsel %vm5662_vm4, %v5654_v23, %v5670_v51  ;;  %v5655_v17 = vsub.f32 1.0, %v5647_v10  ;;  %v5686_v22 = vmul.f32 0.5, %v10368_v62 }
0x14f7   : > { %v5668_v27 = vsub.f32 0.0, %v5652_v59  ;;  %v5645_v30 = vmul.f32 %v7922_v61, %v5605_v13  ;;  %v5694_v26 = vadd.f32 1.0, %v5678_v37  ;;  %v5687_v60 = vmul.f32 0.5, %v10372_v36 }
0x14f8   : > { %v5720_v58 = vpack.c.bf16 %v5697_v45, %v5696_v52  ;;  %v5671_v18 = vsub.f32 0.0, %v5655_v17  ;;  %v5684_v39 = vmul.f32 0.5, %v10370_v31  ;;  %v5685_v3 = vmul.f32 0.5, %v10375_v1 }
0x14f9   : > { %v5676_v9 = vsel %vm5660_vm5, %v5652_v59, %v5668_v27  ;;  %v5653_v46 = vsub.f32 1.0, %v5645_v30  ;;  %v5702_v54 = vmul.f32 %v5694_v26, %v5686_v22 }
0x14fa   : > { %7111 = vmatprep.mubr.bf16.mxu1 %v5720_v58  ;;  %v5679_v19 = vsel %vm5663_vm6, %v5655_v17, %v5671_v18  ;;  %v5692_v34 = vadd.f32 1.0, %v5676_v9 }
0x14fb   : > { %v5669_v29 = vsub.f32 0.0, %v5653_v46  ;;  %7112 = vmatmul.mubr.bf16.vlgmr.msra.gmra.mrb[0].mxu1 %v5721_v4  ;;  %v5695_v41 = vadd.f32 1.0, %v5679_v19 }
0x14fc   : > { %v5700_v55 = vmul.f32 %v5692_v34, %v5684_v39 }
0x14fd   : > { %v5677_v11 = vsel %vm5661_vm7, %v5653_v46, %v5669_v29  ;;  %v5703_v16 = vmul.f32 %v5695_v41, %v5687_v60 }
0x14fe   : > { %v5693_v53 = vadd.f32 1.0, %v5677_v11 }
0x14ff   : > { %v5723_v62 = vpack.c.bf16 %v5703_v16, %v5702_v54 }
0x1500   : > { %v5701_v61 = vmul.f32 %v5693_v53, %v5685_v3 }
0x1502   : > { %v5722_v33 = vpack.c.bf16 %v5701_v61, %v5700_v55 }
0x1504   : > { %7115 = vmatprep.mubr.bf16.mxu1 %v5722_v33 }
0x1505   : > { %7116 = vmatmul.mubr.bf16.gmra.mrb[4].mxu1 %v5723_v62 }
0x15ce   : > { %v7113_v40 = vpop.f32.mrb[0].mxu1 }
0x15cf   : > { %5839 = vst [vmem:[#allocation26 + $0x10] sm:$0xff] %v7113_v40  ;;  %v5806_v36 = vpop.f32.mrb[1].mxu1 }
0x15d0   : > { %5837 = vst [vmem:[#allocation26] sm:$0xff] %v5806_v36  ;;  %v7114_v0 = vpop.f32.mrb[2].mxu1 }
0x15d1   : > { %5840 = vst [vmem:[#allocation26 + $0x18] sm:$0xff] %v7114_v0  ;;  %v5809_v63 = vpop.f32.mrb[3].mxu1 }
0x15d2   : > { %5838 = vst [vmem:[#allocation26 + $0x8] sm:$0xff] %v5809_v63 }
0x15d8   : > { %v7117_v31 = vpop.f32.mrb[4].mxu1 }
0x15d9   : > { %5843 = vst [vmem:[#allocation26 + $0x30] sm:$0xff] %v7117_v31  ;;  %v5822_v42 = vpop.f32.mrb[5].mxu1 }
0x15da   : > { %5841 = vst [vmem:[#allocation26 + $0x20] sm:$0xff] %v5822_v42  ;;  %v7118_v1 = vpop.f32.mrb[6].mxu1 }
0x15db   : > { %5844 = vst [vmem:[#allocation26 + $0x38] sm:$0xff] %v7118_v1  ;;  %v5825_v20 = vpop.f32.mrb[7].mxu1 }
0x15dc   : > { %5842 = vst [vmem:[#allocation26 + $0x28] sm:$0xff] %v5825_v20 }
0x15dd PF: > { %p7385_p11 = scmp.eq.s32.totalorder %s8564_s11, 1  ;;  %s8400_s28 = smov [#allocation26]  }
0x15de   : > { %s5851_s22 = sshll.u32 %s8400_s28, 4  ;;  %s5852_s22 = int_to_ptr.vmem [resolvable:$true] %s5851_s22 }
0x15df   : > { %s8287_s0 = scalar_lea.vmem %s5852_s22, 1024  ;;  %p8294_p13 = scmp.lt.s32.totalorder %s5852_s22, %s5852_s22 }
0x15e0   : > { %p8288_p4 = scmp.ne.s32.totalorder %s5852_s22, %s8287_s0  ;;  %p8295_p2 = scmp.lt.s32.totalorder %s8287_s0, %s8287_s0 }
0x15e2   : > { %p8289_p12 = pnand %p8288_p4, %p7385_p11  ;;  %p8296_p3 = por %p8295_p2, %p8294_p13 }
0x15e4   : > { %p8290_p6 = pneg %p8289_p12 }
0x15e6   : > { %p8297_p0 = pnand %p8296_p3, %p8290_p6 }
0x15e8   : > { %8300 = shalt.err (!%p8297_p0)
}
0x15e9   : > { %s8301_s9 = scalar_lea.hbm %s8556_s6, 1024 }
0x15ea   : > { %p8302_p1 = scmp.ne.s32.totalorder %s8556_s6, %s8301_s9  ;;  %p8307_p9 = scmp.lt.u32.totalorder %s8301_s9, %s8556_s6 }
0x15ec   : > { %p8303_p5 = pnand %p8302_p1, %p7385_p11 }
0x15ee   : > { %p8304_p7 = pneg %p8303_p5 }
0x15f0   : > { %p8309_p10 = pnand %p8307_p9, %p8304_p7 }
0x15f2   : > { %8312 = shalt.err (!%p8309_p10)
}
0x15f3   : > { %s8401_s16 = smov 128   ;;  %s8402_s1 = smov 8  }
0x15f4   : > { %7316 = dma.vmem_to_hbm [thread:$0]  (%p7385_p11), %s5852_s22, 1024, %s8556_s6, [#allocation7], %s8401_s16, %s8401_s16, %s8402_s1  }
0x15f5   : > { %8346 = dma.done.wait (%p7385_p11), [#allocation7], 1024  }
0x15f6   : > { %8348 = vsyncadd (%p7385_p11), [#allocation7], 4294966272 }
0x15f7 PF: > { %s77_s7 = sadd.s32 1, %s8351_s7  }
0x15f8   : > { %p74_p8 = scmp.ge.s32.totalorder %s77_s7, 4  }
0x15fa   :  { %76 = sbr.rel (!%p74_p8) target bundleno = 53 (0x35), region = 250 }
0x1601   :  { %5867 = vsyncpa [#allocation6], 1 }
0x1602   :  { %5869 = vsyncpa [#allocation6 + $0x1], 1 }
0x1603   :  { %5870 = vsyncpa [#allocation9], 1 }
0x1604   :  { %5871 = vsyncpa [#allocation12], 1 }
0x1605   :  { %5872 = vsyncpa [#allocation15], 1 }
0x1606   :  { %5873 = vsyncpa [#allocation18], 1 }
0x1607   :  { %5874 = vsyncpa [#allocation21], 1 }
0x1608   :  { %5875 = vsyncpa [#allocation24], 1 }
0x1609   :  { %5876 = vsyncpa [#allocation7], 1 }
0x160a   :  { %5878 = vsyncpa [#allocation7 + $0x1], 1 }

</bundles_post_ra>
